<compile_context>
chip_gen: v5e
topology: v5e:2x2
jax: 0.10.0
libtpu: 0.0.40
codegen_flags: <defaults>
</compile_context>

<pallas_src>
import collections
import functools

import jax
import jax.numpy as jnp
from jax.experimental import pallas as pl
from jax.experimental.pallas import tpu as pltpu

OUT_DIM = 8      # fc4 logits
OUT_PAD = 128    # lane-padded output width (one full vreg lane dimension)
H1, H2, H3 = 512, 128, 64


def _round_up(x, m):
    return ((x + m - 1) // m) * m


# ----------------------------------------------------------------------------
# Device / feature introspection (done once, outside jit).
# ----------------------------------------------------------------------------
def _device_kind():
    try:
        return jax.devices()[0].device_kind.lower()
    except Exception:
        return ""


def _vmem_budget_bytes():
    """Physical VMEM minus headroom for Mosaic scratch / DMA descriptors."""
    try:
        cap = int(getattr(pltpu.get_tpu_info(), "vmem_capacity_bytes"))
    except Exception:
        cap = 64 << 20  # conservative (v7x-sized); correct-but-loose elsewhere
    return max(cap - (12 << 20), 16 << 20)


def _probe_copy_kernel(x_ref, o_ref):
    o_ref[...] = x_ref[...]


_BUFFERED_OK = None


def _buffered_ok():
    """Probe once whether pipeline_mode=pl.Buffered(1) lowers on this backend."""
    global _BUFFERED_OK
    if _BUFFERED_OK is not None:
        return _BUFFERED_OK
    try:
        spec = pl.BlockSpec((8, 128), lambda i: (0, 0),
                            pipeline_mode=pl.Buffered(1))
        fn = pl.pallas_call(
            _probe_copy_kernel,
            out_shape=jax.ShapeDtypeStruct((8, 128), jnp.float32),
            grid=(1,),
            in_specs=[spec],
            out_specs=pl.BlockSpec((8, 128), lambda i: (0, 0)),
        )
        jax.jit(fn).lower(jnp.zeros((8, 128), jnp.float32)).compile()
        _BUFFERED_OK = True
    except Exception:
        _BUFFERED_OK = False
    return _BUFFERED_OK


def _const_spec(arr, n_grid_axes, single_buffer):
    """Full-array block whose index_map is constant across the grid."""
    if n_grid_axes == 1:
        idx = lambda i: (0, 0)
    else:
        idx = lambda i, k: (0, 0)
    if single_buffer:
        return pl.BlockSpec(arr.shape, idx, pipeline_mode=pl.Buffered(1))
    return pl.BlockSpec(arr.shape, idx)


# ----------------------------------------------------------------------------
# Kernels
# ----------------------------------------------------------------------------
def _mlp_kernel(x_ref,
                w1_ref, b1_ref,
                w2_ref, b2_ref,
                w3_ref, b3_ref,
                w4_ref, b4_ref,
                o_ref):
    # All weights resident in VMEM; x cast to bf16 in-kernel (saves an HBM pass).
    x = x_ref[...].astype(jnp.bfloat16)
    # fc1 + ReLU   (dropout p=0.5 is identity at inference)
    h = jnp.dot(x, w1_ref[...], preferred_element_type=jnp.float32)
    h = jnp.maximum(h + b1_ref[...], 0.0).astype(jnp.bfloat16)
    # fc2 + ReLU   (dropout p=0.2 is identity at inference)
    h = jnp.dot(h, w2_ref[...], preferred_element_type=jnp.float32)
    h = jnp.maximum(h + b2_ref[...], 0.0).astype(jnp.bfloat16)
    # fc3 + ReLU   (dropout p=0.2 is identity at inference)
    h = jnp.dot(h, w3_ref[...], preferred_element_type=jnp.float32)
    h = jnp.maximum(h + b3_ref[...], 0.0).astype(jnp.bfloat16)
    # fc4 (no activation); bias f32, lanes padded to 128
    h = jnp.dot(h, w4_ref[...], preferred_element_type=jnp.float32) + b4_ref[...]
    o_ref[...] = h.astype(o_ref.dtype)


def _mlp_kernel_ktiled(x_ref,
                       w1_ref, b1_ref,
                       w2_ref, b2_ref,
                       w3_ref, b3_ref,
                       w4_ref, b4_ref,
                       o_ref, acc_ref):
    # fc1 streamed over K panels (innermost "arbitrary" grid axis); fc2..fc4 in
    # the epilogue. Used when the all-resident footprint would not fit VMEM.
    k = pl.program_id(1)

    @pl.when(k == 0)
    def _():
        acc_ref[...] = jnp.zeros_like(acc_ref)

    acc_ref[...] += jnp.dot(x_ref[...].astype(jnp.bfloat16), w1_ref[...],
                            preferred_element_type=jnp.float32)

    @pl.when(k == pl.num_programs(1) - 1)
    def _():
        h = jnp.maximum(acc_ref[...] + b1_ref[...], 0.0).astype(jnp.bfloat16)
        h = jnp.dot(h, w2_ref[...], preferred_element_type=jnp.float32)
        h = jnp.maximum(h + b2_ref[...], 0.0).astype(jnp.bfloat16)
        h = jnp.dot(h, w3_ref[...], preferred_element_type=jnp.float32)
        h = jnp.maximum(h + b3_ref[...], 0.0).astype(jnp.bfloat16)
        h = jnp.dot(h, w4_ref[...], preferred_element_type=jnp.float32) + b4_ref[...]
        o_ref[...] = h.astype(o_ref.dtype)


# ----------------------------------------------------------------------------
# Static configuration (pure Python; shapes + device info only)
# ----------------------------------------------------------------------------
_FwdCfg = collections.namedtuple(
    "_FwdCfg", ["bb", "b_pad", "d_pad", "tk", "k_tiled", "single_buf",
                "vmem_limit"])


def _batch_tile(B, max_bb, min_steps):
    """Balanced batch tiling: bb is a 16-multiple, tiles split evenly."""
    B16 = _round_up(max(B, 1), 16)
    steps = max(-(-B16 // max_bb), 1)
    if min_steps > 1 and B16 >= 16 * min_steps:
        steps = max(steps, min_steps)
    bb = _round_up(-(-B16 // steps), 16)
    b_pad = bb * (-(-B // bb))
    return bb, b_pad


def _make_config(B, D, block_b=None, force_k_tiled=False, k_block=None):
    kind = _device_kind()
    is_v7 = ("v7" in kind) or ("tpu7" in kind)
    budget = _vmem_budget_bytes()
    single_buf = _buffered_ok()
    w_bufs = 1 if single_buf else 2

    max_bb = int(block_b) if block_b else (256 if is_v7 else 512)
    max_bb = max(_round_up(max_bb, 16), 16)
    min_steps = 2 if is_v7 else 1           # keep both v7x TensorCores busy
    bb, b_pad = _batch_tile(B, max_bb, min_steps)

    small_bytes = ((H1 * H2 + H2 * H3 + H3 * OUT_PAD) * 2
                   + (H1 + H2 + H3 + OUT_PAD) * 4)
    headroom = 6 << 20

    def resident_est(bb_):
        return (2 * bb_ * D * 4                     # f32 x tile, double-buffered
                + w_bufs * (D * H1 * 2 + small_bytes)
                + 2 * bb_ * OUT_PAD * 2             # bf16 out tile
                + headroom)

    def ktiled_est(bb_, tk_):
        return (2 * bb_ * tk_ * 4                   # f32 x panel
                + 2 * tk_ * H1 * 2                  # bf16 w1 panel
                + w_bufs * small_bytes
                + bb_ * H1 * 4                      # f32 accumulator scratch
                + 2 * bb_ * OUT_PAD * 2
                + headroom)

    k_tiled, tk = False, 0
    if force_k_tiled:
        k_tiled = True
        tk = _round_up(int(k_block) if k_block else min(2048, D), 128)
    else:
        while True:
            if resident_est(bb) <= budget:
                break
            for cand in (4096, 2048, 1024, 512, 256, 128):
                if cand < D and ktiled_est(bb, cand) <= budget:
                    k_tiled, tk = True, cand
                    break
            if k_tiled:
                break
            if bb <= 16:
                k_tiled, tk = True, 128   # last resort
                break
            bb = max(_round_up(bb // 2, 16), 16)
            b_pad = bb * (-(-B // bb))

    d_pad = _round_up(D, tk) if k_tiled else D
    est = ktiled_est(bb, tk) if k_tiled else resident_est(bb)
    vmem_limit = int(min(max(est, 32 << 20), max(budget, 32 << 20)))
    return _FwdCfg(bb=bb, b_pad=b_pad, d_pad=d_pad, tk=tk, k_tiled=k_tiled,
                   single_buf=single_buf, vmem_limit=vmem_limit)


# ----------------------------------------------------------------------------
# Forward
# ----------------------------------------------------------------------------
@functools.partial(jax.jit, static_argnames=("cfg",))
def _forward_impl(x, prepped, cfg):
    B, D = x.shape
    w1, b1, w2, b2, w3, b3, w4, b4 = prepped
    small = (b1, w2, b2, w3, b3, w4, b4)

    if cfg.b_pad != B:
        x = jnp.pad(x, ((0, cfg.b_pad - B), (0, 0)))

    compiler_params = pltpu.CompilerParams(
        dimension_semantics=("parallel",) if not cfg.k_tiled
        else ("parallel", "arbitrary"),
        vmem_limit_bytes=cfg.vmem_limit,
    )

    if not cfg.k_tiled:
        grid = (cfg.b_pad // cfg.bb,)
        in_specs = ([pl.BlockSpec((cfg.bb, D), lambda i: (i, 0)),      # x tile
                     _const_spec(w1, 1, cfg.single_buf)]
                    + [_const_spec(a, 1, cfg.single_buf) for a in small])
        out = pl.pallas_call(
            _mlp_kernel,
            out_shape=jax.ShapeDtypeStruct((cfg.b_pad, OUT_PAD), jnp.bfloat16),
            grid_spec=pltpu.PrefetchScalarGridSpec(
                num_scalar_prefetch=0,
                grid=grid,
                in_specs=in_specs,
                out_specs=pl.BlockSpec((cfg.bb, OUT_PAD), lambda i: (i, 0)),
            ),
            compiler_params=compiler_params,
        )(x, w1, *small)
    else:
        if cfg.d_pad != D:
            x = jnp.pad(x, ((0, 0), (0, cfg.d_pad - D)))
            w1 = jnp.pad(w1, ((0, cfg.d_pad - D), (0, 0)))
        grid = (cfg.b_pad // cfg.bb, cfg.d_pad // cfg.tk)
        in_specs = ([pl.BlockSpec((cfg.bb, cfg.tk), lambda i, k: (i, k)),  # x panel
                     pl.BlockSpec((cfg.tk, H1), lambda i, k: (k, 0))]      # w1 panel
                    + [_const_spec(a, 2, cfg.single_buf) for a in small])
        out = pl.pallas_call(
            _mlp_kernel_ktiled,
            out_shape=jax.ShapeDtypeStruct((cfg.b_pad, OUT_PAD), jnp.bfloat16),
            grid_spec=pltpu.PrefetchScalarGridSpec(
                num_scalar_prefetch=0,
                grid=grid,
                in_specs=in_specs,
                out_specs=pl.BlockSpec((cfg.bb, OUT_PAD), lambda i, k: (i, 0)),
                scratch_shapes=[pltpu.VMEM((cfg.bb, H1), jnp.float32)],
            ),
            compiler_params=compiler_params,
        )(x, w1, *small)

    return out[:B, :OUT_DIM].astype(jnp.float32)


def classification_net_forward(x, prepped_params, *, block_b=None,
                               force_k_tiled=False, k_block=None):
    """x: (B, input_dims) float32. prepped_params: output of prepare_params."""
    B, D = x.shape
    cfg = _make_config(B, D, block_b=block_b,
                       force_k_tiled=force_k_tiled, k_block=k_block)
    return _forward_impl(x, prepped_params, cfg)


# ----------------------------------------------------------------------------
# Parameters
# ----------------------------------------------------------------------------
def init_params(key, input_dims):
    """Mimic PyTorch Linear default init: U(-1/sqrt(fan_in), 1/sqrt(fan_in))."""
    dims = [(input_dims, H1), (H1, H2), (H2, H3), (H3, OUT_DIM)]
    params = {}
    for idx, (fan_in, fan_out) in enumerate(dims, start=1):
        key, kw, kb = jax.random.split(key, 3)
        bound = 1.0 / (fan_in ** 0.5)
        params[f"w{idx}"] = jax.random.uniform(
            kw, (fan_in, fan_out), jnp.float32, -bound, bound)
        params[f"b{idx}"] = jax.random.uniform(
            kb, (1, fan_out), jnp.float32, -bound, bound)
    return params


def prepare_params(params):
    """One-time weight prep: bf16 weights, f32 biases, fc4 lane-padded to 128."""
    w4 = jnp.pad(params["w4"].astype(jnp.bfloat16),
                 ((0, 0), (0, OUT_PAD - OUT_DIM)))
    b4 = jnp.pad(params["b4"].astype(jnp.float32),
                 ((0, 0), (0, OUT_PAD - OUT_DIM)))
    return (params["w1"].astype(jnp.bfloat16), params["b1"].astype(jnp.float32),
            params["w2"].astype(jnp.bfloat16), params["b2"].astype(jnp.float32),
            params["w3"].astype(jnp.bfloat16), params["b3"].astype(jnp.float32),
            w4, b4)


# ----------------------------------------------------------------------------
# References
# ----------------------------------------------------------------------------
def reference_forward_f32(x, params):
    h = jnp.maximum(x @ params["w1"] + params["b1"], 0.0)
    h = jnp.maximum(h @ params["w2"] + params["b2"], 0.0)
    h = jnp.maximum(h @ params["w3"] + params["b3"], 0.0)
    return h @ params["w4"] + params["b4"]


def reference_forward_bf16(x, params):
    """Same bf16-operand / f32-accumulate rounding points as the kernel."""
    def lin(h, w, b):
        return jnp.dot(h.astype(jnp.bfloat16), w.astype(jnp.bfloat16),
                       preferred_element_type=jnp.float32) + b
    h = jnp.maximum(lin(x, params["w1"], params["b1"]), 0.0)
    h = jnp.maximum(lin(h, params["w2"], params["b2"]), 0.0)
    h = jnp.maximum(lin(h, params["w3"], params["b3"]), 0.0)
    return lin(h, params["w4"], params["b4"])


if __name__ == "__main__":
    key = jax.random.PRNGKey(0)
    k_x, k_p = jax.random.split(key)

    # Small shapes consistent with the module (fc1 is input_dims -> 512; the
    # module default input_dims=8192 also works). Batch deliberately NOT a
    # multiple of the tile to exercise balanced tiling + padding.
    batch, input_dims = 300, 1024
    x = jax.random.normal(k_x, (batch, input_dims), jnp.float32)
    params = init_params(k_p, input_dims)
    prepped = prepare_params(params)

    out = jax.block_until_ready(classification_net_forward(x, prepped))
    assert out.shape == (batch, OUT_DIM)

    ref_bf16 = reference_forward_bf16(x, params)
    ref_f32 = reference_forward_f32(x, params)
    assert bool(jnp.allclose(out, ref_bf16, atol=2e-2, rtol=2e-2)), \
        "mismatch vs bf16-emulated reference"
    max_err = float(jnp.max(jnp.abs(out - ref_f32)))
    assert max_err < 0.1, f"bf16 drift vs f32 reference too large: {max_err}"

    # Exercise the K-tiled fc1 fallback path (used automatically for very
    # large input_dims) at small size to verify its correctness too.
    out_kt = jax.block_until_ready(
        classification_net_forward(x, prepped, force_k_tiled=True, k_block=256))
    assert bool(jnp.allclose(out_kt, ref_bf16, atol=2e-2, rtol=2e-2)), \
        "K-tiled path mismatch vs bf16-emulated reference"

    print("KERNEL_OK")
</pallas_src>

<mosaic_0001>
module attributes {stable_mosaic.version = 11 : i64} {
  func.func @_mlp_kernel(%arg0: i32, %arg1: memref<304x1024xf32, #tpu.memory_space<vmem>>, %arg2: memref<1024x512xbf16, #tpu.memory_space<vmem>>, %arg3: memref<1x512xf32, #tpu.memory_space<vmem>>, %arg4: memref<512x128xbf16, #tpu.memory_space<vmem>>, %arg5: memref<1x128xf32, #tpu.memory_space<vmem>>, %arg6: memref<128x64xbf16, #tpu.memory_space<vmem>>, %arg7: memref<1x64xf32, #tpu.memory_space<vmem>>, %arg8: memref<64x128xbf16, #tpu.memory_space<vmem>>, %arg9: memref<1x128xf32, #tpu.memory_space<vmem>>, %arg10: memref<304x128xbf16, #tpu.memory_space<vmem>>) attributes {dimension_semantics = [#tpu.dimension_semantics<parallel>], iteration_bounds = array<i64: 1>, scalar_prefetch = 0 : i64, scratch_operands = 0 : i64, tpu.core_type = #tpu.core_type<tc>, window_params = [{transform_indices = @transform_0, window_bounds = array<i64: 304, 1024>}, {pipeline_mode = #tpu.pipeline_mode<synchronous>, transform_indices = @transform_1, window_bounds = array<i64: 1024, 512>}, {pipeline_mode = #tpu.pipeline_mode<synchronous>, transform_indices = @transform_2, window_bounds = array<i64: 1, 512>}, {pipeline_mode = #tpu.pipeline_mode<synchronous>, transform_indices = @transform_3, window_bounds = array<i64: 512, 128>}, {pipeline_mode = #tpu.pipeline_mode<synchronous>, transform_indices = @transform_4, window_bounds = array<i64: 1, 128>}, {pipeline_mode = #tpu.pipeline_mode<synchronous>, transform_indices = @transform_5, window_bounds = array<i64: 128, 64>}, {pipeline_mode = #tpu.pipeline_mode<synchronous>, transform_indices = @transform_6, window_bounds = array<i64: 1, 64>}, {pipeline_mode = #tpu.pipeline_mode<synchronous>, transform_indices = @transform_7, window_bounds = array<i64: 64, 128>}, {pipeline_mode = #tpu.pipeline_mode<synchronous>, transform_indices = @transform_8, window_bounds = array<i64: 1, 128>}, {transform_indices = @transform_9, window_bounds = array<i64: 304, 128>}]} {
    %c0 = arith.constant 0 : index
    %c0_0 = arith.constant 0 : index
    %0 = vector.load %arg1[%c0, %c0_0] : memref<304x1024xf32, #tpu.memory_space<vmem>>, vector<304x1024xf32>
    %1 = arith.truncf %0 : vector<304x1024xf32> to vector<304x1024xbf16>
    %c0_1 = arith.constant 0 : index
    %c0_2 = arith.constant 0 : index
    %2 = vector.load %arg2[%c0_1, %c0_2] : memref<1024x512xbf16, #tpu.memory_space<vmem>>, vector<1024x512xbf16>
    %cst = arith.constant dense<0.000000e+00> : vector<304x512xf32>
    %3 = tpu.matmul %1, %2, %cst {dimension_numbers = #tpu.dot_dimension_numbers<[1], [0], [0], [1], [0, 0, 1, 1], [], []>} : vector<304x1024xbf16>, vector<1024x512xbf16>, vector<304x512xf32> -> vector<304x512xf32>
    %c0_3 = arith.constant 0 : index
    %c0_4 = arith.constant 0 : index
    %4 = vector.load %arg3[%c0_3, %c0_4] : memref<1x512xf32, #tpu.memory_space<vmem>>, vector<1x512xf32>
    %5 = vector.broadcast %4 : vector<1x512xf32> to vector<304x512xf32>
    %6 = arith.addf %3, %5 : vector<304x512xf32>
    %cst_5 = arith.constant 0.000000e+00 : f32
    %7 = vector.broadcast %cst_5 : f32 to vector<304x512xf32>
    %8 = arith.maximumf %6, %7 : vector<304x512xf32>
    %9 = arith.truncf %8 : vector<304x512xf32> to vector<304x512xbf16>
    %c0_6 = arith.constant 0 : index
    %c0_7 = arith.constant 0 : index
    %10 = vector.load %arg4[%c0_6, %c0_7] : memref<512x128xbf16, #tpu.memory_space<vmem>>, vector<512x128xbf16>
    %cst_8 = arith.constant dense<0.000000e+00> : vector<304x128xf32>
    %11 = tpu.matmul %9, %10, %cst_8 {dimension_numbers = #tpu.dot_dimension_numbers<[1], [0], [0], [1], [0, 0, 1, 1], [], []>} : vector<304x512xbf16>, vector<512x128xbf16>, vector<304x128xf32> -> vector<304x128xf32>
    %c0_9 = arith.constant 0 : index
    %c0_10 = arith.constant 0 : index
    %12 = vector.load %arg5[%c0_9, %c0_10] : memref<1x128xf32, #tpu.memory_space<vmem>>, vector<1x128xf32>
    %13 = vector.broadcast %12 : vector<1x128xf32> to vector<304x128xf32>
    %14 = arith.addf %11, %13 : vector<304x128xf32>
    %cst_11 = arith.constant 0.000000e+00 : f32
    %15 = vector.broadcast %cst_11 : f32 to vector<304x128xf32>
    %16 = arith.maximumf %14, %15 : vector<304x128xf32>
    %17 = arith.truncf %16 : vector<304x128xf32> to vector<304x128xbf16>
    %c0_12 = arith.constant 0 : index
    %c0_13 = arith.constant 0 : index
    %18 = vector.load %arg6[%c0_12, %c0_13] : memref<128x64xbf16, #tpu.memory_space<vmem>>, vector<128x64xbf16>
    %cst_14 = arith.constant dense<0.000000e+00> : vector<304x64xf32>
    %19 = tpu.matmul %17, %18, %cst_14 {dimension_numbers = #tpu.dot_dimension_numbers<[1], [0], [0], [1], [0, 0, 1, 1], [], []>} : vector<304x128xbf16>, vector<128x64xbf16>, vector<304x64xf32> -> vector<304x64xf32>
    %c0_15 = arith.constant 0 : index
    %c0_16 = arith.constant 0 : index
    %20 = vector.load %arg7[%c0_15, %c0_16] : memref<1x64xf32, #tpu.memory_space<vmem>>, vector<1x64xf32>
    %21 = vector.broadcast %20 : vector<1x64xf32> to vector<304x64xf32>
    %22 = arith.addf %19, %21 : vector<304x64xf32>
    %cst_17 = arith.constant 0.000000e+00 : f32
    %23 = vector.broadcast %cst_17 : f32 to vector<304x64xf32>
    %24 = arith.maximumf %22, %23 : vector<304x64xf32>
    %25 = arith.truncf %24 : vector<304x64xf32> to vector<304x64xbf16>
    %c0_18 = arith.constant 0 : index
    %c0_19 = arith.constant 0 : index
    %26 = vector.load %arg8[%c0_18, %c0_19] : memref<64x128xbf16, #tpu.memory_space<vmem>>, vector<64x128xbf16>
    %cst_20 = arith.constant dense<0.000000e+00> : vector<304x128xf32>
    %27 = tpu.matmul %25, %26, %cst_20 {dimension_numbers = #tpu.dot_dimension_numbers<[1], [0], [0], [1], [0, 0, 1, 1], [], []>} : vector<304x64xbf16>, vector<64x128xbf16>, vector<304x128xf32> -> vector<304x128xf32>
    %c0_21 = arith.constant 0 : index
    %c0_22 = arith.constant 0 : index
    %28 = vector.load %arg9[%c0_21, %c0_22] : memref<1x128xf32, #tpu.memory_space<vmem>>, vector<1x128xf32>
    %29 = vector.broadcast %28 : vector<1x128xf32> to vector<304x128xf32>
    %30 = arith.addf %27, %29 : vector<304x128xf32>
    %31 = arith.truncf %30 : vector<304x128xf32> to vector<304x128xbf16>
    %c0_23 = arith.constant 0 : index
    %c0_24 = arith.constant 0 : index
    %32 = vector.load %arg10[%c0_23, %c0_24] : memref<304x128xbf16, #tpu.memory_space<vmem>>, vector<304x128xbf16>
    tpu.vector_store %arg10[%c0_23, %c0_24], %31 {strides = array<i32>} : memref<304x128xbf16, #tpu.memory_space<vmem>>, vector<304x128xbf16>,
    return
  }
  func.func @transform_0(%arg0: i32) -> (i32, i32) {
    %c0_i32 = arith.constant 0 : i32
    %c0_i32_0 = arith.constant 0 : i32
    return %arg0, %c0_i32 : i32, i32
  }
  func.func @transform_1(%arg0: i32) -> (i32, i32) {
    %c0_i32 = arith.constant 0 : i32
    %c0_i32_0 = arith.constant 0 : i32
    %c0_i32_1 = arith.constant 0 : i32
    return %c0_i32, %c0_i32_0 : i32, i32
  }
  func.func @transform_2(%arg0: i32) -> (i32, i32) {
    %c0_i32 = arith.constant 0 : i32
    %c0_i32_0 = arith.constant 0 : i32
    %c0_i32_1 = arith.constant 0 : i32
    return %c0_i32, %c0_i32_0 : i32, i32
  }
  func.func @transform_3(%arg0: i32) -> (i32, i32) {
    %c0_i32 = arith.constant 0 : i32
    %c0_i32_0 = arith.constant 0 : i32
    %c0_i32_1 = arith.constant 0 : i32
    return %c0_i32, %c0_i32_0 : i32, i32
  }
  func.func @transform_4(%arg0: i32) -> (i32, i32) {
    %c0_i32 = arith.constant 0 : i32
    %c0_i32_0 = arith.constant 0 : i32
    %c0_i32_1 = arith.constant 0 : i32
    return %c0_i32, %c0_i32_0 : i32, i32
  }
  func.func @transform_5(%arg0: i32) -> (i32, i32) {
    %c0_i32 = arith.constant 0 : i32
    %c0_i32_0 = arith.constant 0 : i32
    %c0_i32_1 = arith.constant 0 : i32
    return %c0_i32, %c0_i32_0 : i32, i32
  }
  func.func @transform_6(%arg0: i32) -> (i32, i32) {
    %c0_i32 = arith.constant 0 : i32
    %c0_i32_0 = arith.constant 0 : i32
    %c0_i32_1 = arith.constant 0 : i32
    return %c0_i32, %c0_i32_0 : i32, i32
  }
  func.func @transform_7(%arg0: i32) -> (i32, i32) {
    %c0_i32 = arith.constant 0 : i32
    %c0_i32_0 = arith.constant 0 : i32
    %c0_i32_1 = arith.constant 0 : i32
    return %c0_i32, %c0_i32_0 : i32, i32
  }
  func.func @transform_8(%arg0: i32) -> (i32, i32) {
    %c0_i32 = arith.constant 0 : i32
    %c0_i32_0 = arith.constant 0 : i32
    %c0_i32_1 = arith.constant 0 : i32
    return %c0_i32, %c0_i32_0 : i32, i32
  }
  func.func @transform_9(%arg0: i32) -> (i32, i32) {
    %c0_i32 = arith.constant 0 : i32
    %c0_i32_0 = arith.constant 0 : i32
    return %arg0, %c0_i32 : i32, i32
  }
}

</mosaic_0001>

<bundles_post_ra>
// kernel: _forward_impl.1
= control target key start
LH: loop header
LB: loop body
LE: loop exit
PB: predicated region body
PF: predicated region fallthrough
CT: control target
= control target key end

     0   :  { %vm6589_vm0 = vcmask 523264   ;;  %s13709_s1 = inlined_call_operand.vmem [shape: bf16[1024,512], index: 1, kind: input, shape index: {}]   ;;  %s13710_s0 = inlined_call_operand.vmem [shape: f32[304,1024], index: 0, kind: input, shape index: {}]   ;;  %s13711_s2 = inlined_call_operand.vmem [shape: f32[1,512], index: 2, kind: input, shape index: {}]   ;;  %s13712_s3 = inlined_call_operand.vmem [shape: bf16[512,128], index: 3, kind: input, shape index: {}]   ;;  %s13713_s4 = inlined_call_operand.vmem [shape: f32[1,128], index: 4, kind: input, shape index: {}]   ;;  %s13714_s5 = inlined_call_operand.vmem [shape: bf16[128,64], index: 5, kind: input, shape index: {}]   ;;  %s13715_s7 = inlined_call_operand.vmem [shape: bf16[64,128], index: 7, kind: input, shape index: {}]   ;;  %s13716_s6 = inlined_call_operand.vmem [shape: f32[1,64], index: 6, kind: input, shape index: {}]   ;;  %s13717_s8 = inlined_call_operand.vmem [shape: f32[1,128], index: 8, kind: input, shape index: {}]   ;;  %s13718_s9 = inlined_call_operand.vmem [shape: bf16[304,128], index: 9, kind: output, shape index: {}]  }
   0x1   :  { %v6945_v0 = vld [vmem:[%s13709_s1 + $0xe0] sm:$0xf]  ;;  %v8080_v1 = vld [vmem:[%s13709_s1 + $0xec] sm:$0xf0]  ;;  %v34_v55 = vld [vmem:[%s13710_s0 + $0x8] sm:$0xff] }
   0x2   :  { %v7073_v2 = vld [vmem:[%s13709_s1 + $0x1e0] sm:$0xf]  ;;  %v6946_v3 = vor.u32 %v8080_v1, %v6945_v0  ;;  %v8112_v4 = vld [vmem:[%s13709_s1 + $0x1ec] sm:$0xf0]  ;;  %v42_v57 = vld [vmem:[%s13710_s0 + $0x48] sm:$0xff] }
   0x3   :  { %v6929_v5 = vld [vmem:[%s13709_s1 + $0xc0] sm:$0xf]  ;;  %v8076_v6 = vld [vmem:[%s13709_s1 + $0xcc] sm:$0xf0]  ;;  %v7074_v7 = vor.u32 %v8112_v4, %v7073_v2  ;;  %v194_v58 = vld [vmem:[%s13710_s0 + $0x508] sm:$0xff]  ;;  %v8684_v4 = vpack.c.bf16 %v42_v57, %v34_v55 }
   0x4   :  { %v7057_v8 = vld [vmem:[%s13709_s1 + $0x1c0] sm:$0xf]  ;;  %v8108_v9 = vld [vmem:[%s13709_s1 + $0x1cc] sm:$0xf0]  ;;  %2035 = vmatpush.bf16.msra.mxu0 %v6946_v3  ;;  %8463 = vmatpush.bf16.msra.mxu2 %v6946_v3  ;;  %v6930_v10 = vor.u32 %v8076_v6, %v6929_v5  ;;  %v202_v59 = vld [vmem:[%s13710_s0 + $0x548] sm:$0xff] }
   0x5   :  { %2139 = vmatpush.bf16.msra.mxu1 %v7074_v7  ;;  %8471 = vmatpush.bf16.msra.mxu3 %v7074_v7  ;;  %v7058_v11 = vor.u32 %v8108_v9, %v7057_v8  ;;  %v6913_v12 = vld [vmem:[%s13709_s1 + $0xa0] sm:$0xf]  ;;  %v8072_v13 = vld [vmem:[%s13709_s1 + $0xac] sm:$0xf0]  ;;  %14019 = vst [vmem:[#allocation4_spill] sm:$0xff] %v8684_v4  ;;  %v8686_v5 = vpack.c.bf16 %v202_v59, %v194_v58  ;;  %v90_v55 = vld [vmem:[%s13710_s0 + $0x1c8] sm:$0xff] }
   0x6   :  { %v7041_v14 = vld [vmem:[%s13709_s1 + $0x1a0] sm:$0xf]  ;;  %v8104_v15 = vld [vmem:[%s13709_s1 + $0x1ac] sm:$0xf0]  ;;  %v6914_v16 = vor.u32 %v8072_v13, %v6913_v12  ;;  %v250_v57 = vld [vmem:[%s13710_s0 + $0x6c8] sm:$0xff] }
   0x7   :  { %v7042_v17 = vor.u32 %v8104_v15, %v7041_v14  ;;  %v6897_v18 = vld [vmem:[%s13709_s1 + $0x80] sm:$0xf]  ;;  %v8068_v19 = vld [vmem:[%s13709_s1 + $0x8c] sm:$0xf0]  ;;  %14020 = vst [vmem:[#allocation5_spill] sm:$0xff] %v8686_v5 }
   0x8   :  { %2036 = vmatpush.bf16.msra.mxu0 %v6930_v10  ;;  %8464 = vmatpush.bf16.msra.mxu2 %v6930_v10  ;;  %v7025_v20 = vld [vmem:[%s13709_s1 + $0x180] sm:$0xf]  ;;  %v8100_v21 = vld [vmem:[%s13709_s1 + $0x18c] sm:$0xf0]  ;;  %v6898_v22 = vor.u32 %v8068_v19, %v6897_v18  ;;  %v50_v18 = vld [vmem:[%s13710_s0 + $0x88] sm:$0xff] }
   0x9   :  { %2140 = vmatpush.bf16.msra.mxu1 %v7058_v11  ;;  %8472 = vmatpush.bf16.msra.mxu3 %v7058_v11  ;;  %v7026_v23 = vor.u32 %v8100_v21, %v7025_v20  ;;  %v6881_v24 = vld [vmem:[%s13709_s1 + $0x60] sm:$0xf]  ;;  %v8064_v25 = vld [vmem:[%s13709_s1 + $0x6c] sm:$0xf0]  ;;  %v58_v19 = vld [vmem:[%s13710_s0 + $0xc8] sm:$0xff] }
   0xa   :  { %v7009_v26 = vld [vmem:[%s13709_s1 + $0x160] sm:$0xf]  ;;  %v8096_v27 = vld [vmem:[%s13709_s1 + $0x16c] sm:$0xf0]  ;;  %v6882_v28 = vor.u32 %v8064_v25, %v6881_v24  ;;  %v210_v20 = vld [vmem:[%s13710_s0 + $0x588] sm:$0xff]  ;;  %v8732_v24 = vpack.c.bf16 %v58_v19, %v50_v18 }
   0xb   :  { %v7010_v29 = vor.u32 %v8096_v27, %v7009_v26  ;;  %v6865_v30 = vld [vmem:[%s13709_s1 + $0x40] sm:$0xf]  ;;  %v8060_v31 = vld [vmem:[%s13709_s1 + $0x4c] sm:$0xf0]  ;;  %v218_v21 = vld [vmem:[%s13710_s0 + $0x5c8] sm:$0xff] }
   0xc   :  { %2037 = vmatpush.bf16.msra.mxu0 %v6914_v16  ;;  %8465 = vmatpush.bf16.msra.mxu2 %v6914_v16  ;;  %v6993_v32 = vld [vmem:[%s13709_s1 + $0x140] sm:$0xf]  ;;  %v8092_v33 = vld [vmem:[%s13709_s1 + $0x14c] sm:$0xf0]  ;;  %v6866_v34 = vor.u32 %v8060_v31, %v6865_v30  ;;  %14023 = vst [vmem:[#allocation8_spill] sm:$0xff] %v8732_v24  ;;  %v8734_v25 = vpack.c.bf16 %v218_v21, %v210_v20 }
   0xd   :  { %2141 = vmatpush.bf16.msra.mxu1 %v7042_v17  ;;  %8473 = vmatpush.bf16.msra.mxu3 %v7042_v17  ;;  %v6994_v35 = vor.u32 %v8092_v33, %v6993_v32  ;;  %v6849_v36 = vld [vmem:[%s13709_s1 + $0x20] sm:$0xf]  ;;  %v8056_v37 = vld [vmem:[%s13709_s1 + $0x2c] sm:$0xf0] }
   0xe   :  { %v6977_v38 = vld [vmem:[%s13709_s1 + $0x120] sm:$0xf]  ;;  %v8088_v39 = vld [vmem:[%s13709_s1 + $0x12c] sm:$0xf0]  ;;  %v6850_v40 = vor.u32 %v8056_v37, %v6849_v36  ;;  %14024 = vst [vmem:[#allocation9_spill] sm:$0xff] %v8734_v25  ;;  %v66_v36 = vld [vmem:[%s13710_s0 + $0x108] sm:$0xff] }
   0xf   :  { %v6833_v41 = vld [vmem:[%s13709_s1] sm:$0xf]  ;;  %v6978_v42 = vor.u32 %v8088_v39, %v6977_v38  ;;  %v8052_v43 = vld [vmem:[%s13709_s1 + $0xc] sm:$0xf0]  ;;  %v74_v37 = vld [vmem:[%s13710_s0 + $0x148] sm:$0xff] }
  0x10   :  { %2038 = vmatpush.bf16.msra.mxu0 %v6898_v22  ;;  %8466 = vmatpush.bf16.msra.mxu2 %v6898_v22  ;;  %v6961_v44 = vld [vmem:[%s13709_s1 + $0x100] sm:$0xf]  ;;  %v8084_v45 = vld [vmem:[%s13709_s1 + $0x10c] sm:$0xf0]  ;;  %v6834_v52 = vor.u32 %v8052_v43, %v6833_v41  ;;  %v226_v38 = vld [vmem:[%s13710_s0 + $0x608] sm:$0xff] }
  0x11   :  { %2142 = vmatpush.bf16.msra.mxu1 %v7026_v23  ;;  %8474 = vmatpush.bf16.msra.mxu3 %v7026_v23  ;;  %v33_v46 = vld [vmem:[%s13710_s0] sm:$0xff]  ;;  %v8144_v49 = vld [vmem:[%s13709_s1 + $0x2ec] sm:$0xf0]  ;;  %v6962_v56 = vor.u32 %v8084_v45, %v6961_v44  ;;  %v234_v39 = vld [vmem:[%s13710_s0 + $0x648] sm:$0xff] }
  0x12   :  { %v41_v47 = vld [vmem:[%s13710_s0 + $0x40] sm:$0xff]  ;;  %v8176_v51 = vld [vmem:[%s13709_s1 + $0x3ec] sm:$0xf0]  ;;  %v8782_v43 = vpack.c.bf16 %v234_v39, %v226_v38 }
  0x13   :  { %v7201_v48 = vld [vmem:[%s13709_s1 + $0x2e0] sm:$0xf]  ;;  %v8671_v63 = vpack.c.bf16 %v41_v47, %v33_v46  ;;  %v8140_v1 = vld [vmem:[%s13709_s1 + $0x2cc] sm:$0xf0] }
  0x14   :  { %2039 = vmatpush.bf16.msra.mxu0 %v6882_v28  ;;  %8467 = vmatpush.bf16.msra.mxu2 %v6882_v28  ;;  %v7329_v50 = vld [vmem:[%s13709_s1 + $0x3e0] sm:$0xf]  ;;  %v7202_v60 = vor.u32 %v8144_v49, %v7201_v48  ;;  %v8172_v3 = vld [vmem:[%s13709_s1 + $0x3cc] sm:$0xf0]  ;;  %14028 = vst [vmem:[#allocation13_spill] sm:$0xff] %v8782_v43 }
  0x15   :  { %2143 = vmatpush.bf16.msra.mxu1 %v7010_v29  ;;  %8475 = vmatpush.bf16.msra.mxu3 %v7010_v29  ;;  %v193_v53 = vld [vmem:[%s13710_s0 + $0x500] sm:$0xff]  ;;  %v7330_v61 = vor.u32 %v8176_v51, %v7329_v50  ;;  %14017 = vst [vmem:[#allocation2_spill] sm:$0xff] %v8671_v63  ;;  %v8136_v9 = vld [vmem:[%s13709_s1 + $0x2ac] sm:$0xf0] }
  0x16   :  { %v201_v54 = vld [vmem:[%s13710_s0 + $0x540] sm:$0xff]  ;;  %v8168_v11 = vld [vmem:[%s13709_s1 + $0x3ac] sm:$0xf0] }
  0x17   :  { %v7185_v62 = vld [vmem:[%s13709_s1 + $0x2c0] sm:$0xf]  ;;  %v8673_v0 = vpack.c.bf16 %v201_v54, %v193_v53  ;;  %v8132_v27 = vld [vmem:[%s13709_s1 + $0x28c] sm:$0xf0]  ;;  %v82_v54 = vld [vmem:[%s13710_s0 + $0x188] sm:$0xff] }
  0x18   :  { %2040 = vmatpush.bf16.msra.mxu0 %v6866_v34  ;;  %8468 = vmatpush.bf16.msra.mxu2 %v6866_v34  ;;  %v7313_v2 = vld [vmem:[%s13709_s1 + $0x3c0] sm:$0xf]  ;;  %v7186_v6 = vor.u32 %v8140_v1, %v7185_v62  ;;  %v8164_v30 = vld [vmem:[%s13709_s1 + $0x38c] sm:$0xf0] }
  0x19   :  { %2144 = vmatpush.bf16.msra.mxu1 %v6994_v35  ;;  %8476 = vmatpush.bf16.msra.mxu3 %v6994_v35  ;;  %14018 = vst [vmem:[#allocation3_spill] sm:$0xff] %v8673_v0  ;;  %v7314_v7 = vor.u32 %v8172_v3, %v7313_v2  ;;  %v7169_v8 = vld [vmem:[%s13709_s1 + $0x2a0] sm:$0xf]  ;;  %v8128_v45 = vld [vmem:[%s13709_s1 + $0x26c] sm:$0xf0] }
  0x1a   :  { %v7297_v10 = vld [vmem:[%s13709_s1 + $0x3a0] sm:$0xf]  ;;  %v7170_v12 = vor.u32 %v8136_v9, %v7169_v8  ;;  %v8160_v48 = vld [vmem:[%s13709_s1 + $0x36c] sm:$0xf0] }
  0x1b   :  { %v7298_v13 = vor.u32 %v8168_v11, %v7297_v10  ;;  %v49_v14 = vld [vmem:[%s13710_s0 + $0x80] sm:$0xff]  ;;  %v8124_v1 = vld [vmem:[%s13709_s1 + $0x24c] sm:$0xf0] }
  0x1c   :  { %2041 = vmatpush.bf16.msra.mxu0 %v6850_v40  ;;  %8469 = vmatpush.bf16.msra.mxu2 %v6850_v40  ;;  %v57_v15 = vld [vmem:[%s13710_s0 + $0xc0] sm:$0xff]  ;;  %v8120_v21 = vld [vmem:[%s13709_s1 + $0x22c] sm:$0xf0] }
  0x1d   :  { %2145 = vmatpush.bf16.msra.mxu1 %v6978_v42  ;;  %8477 = vmatpush.bf16.msra.mxu3 %v6978_v42  ;;  %v209_v16 = vld [vmem:[%s13710_s0 + $0x580] sm:$0xff]  ;;  %v8728_v22 = vpack.c.bf16 %v57_v15, %v49_v14  ;;  %v8780_v42 = vpack.c.bf16 %v74_v37, %v66_v36  ;;  %v258_v14 = vld [vmem:[%s13710_s0 + $0x708] sm:$0xff] }
  0x1e   :  { %v217_v17 = vld [vmem:[%s13710_s0 + $0x5c0] sm:$0xff]  ;;  %v266_v15 = vld [vmem:[%s13710_s0 + $0x748] sm:$0xff] }
  0x1f   :  { %14021 = vst [vmem:[#allocation6_spill] sm:$0xff] %v8728_v22  ;;  %v8730_v23 = vpack.c.bf16 %v217_v17, %v209_v16  ;;  %v7153_v26 = vld [vmem:[%s13709_s1 + $0x280] sm:$0xf]  ;;  %v8878_v19 = vpack.c.bf16 %v266_v15, %v258_v14  ;;  %v274_v36 = vld [vmem:[%s13710_s0 + $0x788] sm:$0xff]  ;;  %v8204_v14 = vld [vmem:[%s13709_s1 + $0x4cc] sm:$0xf0] }
  0x20   :  { %2042 = vmatpush.bf16.msra.mxu0 %v6834_v52  ;;  %8470 = vmatpush.bf16.msra.mxu2 %v6834_v52  ;;  %v7281_v28 = vld [vmem:[%s13709_s1 + $0x380] sm:$0xf]  ;;  %v7154_v29 = vor.u32 %v8132_v27, %v7153_v26  ;;  %14027 = vst [vmem:[#allocation12_spill] sm:$0xff] %v8780_v42  ;;  %v282_v37 = vld [vmem:[%s13710_s0 + $0x7c8] sm:$0xff] }
  0x21   :  { %2146 = vmatpush.bf16.msra.mxu1 %v6962_v56  ;;  %8478 = vmatpush.bf16.msra.mxu3 %v6962_v56  ;;  %14022 = vst [vmem:[#allocation7_spill] sm:$0xff] %v8730_v23  ;;  %v7282_v31 = vor.u32 %v8164_v30, %v7281_v28  ;;  %v65_v32 = vld [vmem:[%s13710_s0 + $0x100] sm:$0xff]  ;;  %v242_v56 = vld [vmem:[%s13710_s0 + $0x688] sm:$0xff]  ;;  %v8152_v28 = vld [vmem:[%s13709_s1 + $0x32c] sm:$0xf0] }
  0x22   :  { %v73_v33 = vld [vmem:[%s13710_s0 + $0x140] sm:$0xff]  ;;  %14036 = vst [vmem:[#allocation21_spill] sm:$0xff] %v8878_v19 }
  0x23   :  { %2043 = vmatmul.bf16.vlgmr.msra.gmra.mxu0 %v8671_v63  ;;  %2093 = vmatmul.bf16.vlgmr.msra.gmra.mxu2 %v8673_v0  ;;  %v225_v34 = vld [vmem:[%s13710_s0 + $0x600] sm:$0xff]  ;;  %v8776_v40 = vpack.c.bf16 %v73_v33, %v65_v32 }
  0x24   :  { %2243 = vmatpush.bf16.msrb.mxu2 %v7202_v60  ;;  %2147 = vmatmul.bf16.vlgmr.msra.gmra.mxu1 %v8684_v4  ;;  %v233_v35 = vld [vmem:[%s13710_s0 + $0x640] sm:$0xff]  ;;  %v8828_v60 = vpack.c.bf16 %v90_v55, %v82_v54 }
  0x25   :  { %2347 = vmatpush.bf16.msrb.mxu3 %v7330_v61  ;;  %14025 = vst [vmem:[#allocation10_spill] sm:$0xff] %v8776_v40  ;;  %v8778_v41 = vpack.c.bf16 %v233_v35, %v225_v34  ;;  %v7137_v44 = vld [vmem:[%s13709_s1 + $0x260] sm:$0xf]  ;;  %v8830_v61 = vpack.c.bf16 %v250_v57, %v242_v56  ;;  %v114_v34 = vld [vmem:[%s13710_s0 + $0x288] sm:$0xff] }
  0x26   :  { %2197 = vmatmul.bf16.vlgmr.msra.gmra.mxu3 %v8686_v5  ;;  %v7265_v46 = vld [vmem:[%s13709_s1 + $0x360] sm:$0xf]  ;;  %v7138_v47 = vor.u32 %v8128_v45, %v7137_v44  ;;  %14031 = vst [vmem:[#allocation16_spill] sm:$0xff] %v8828_v60  ;;  %v122_v35 = vld [vmem:[%s13710_s0 + $0x2c8] sm:$0xff]  ;;  %v8926_v45 = vpack.c.bf16 %v282_v37, %v274_v36 }
  0x27   :  { %14026 = vst [vmem:[#allocation11_spill] sm:$0xff] %v8778_v41  ;;  %v7266_v49 = vor.u32 %v8160_v48, %v7265_v46  ;;  %v81_v50 = vld [vmem:[%s13710_s0 + $0x180] sm:$0xff]  ;;  %v8924_v44 = vpack.c.bf16 %v122_v35, %v114_v34  ;;  %v146_v36 = vld [vmem:[%s13710_s0 + $0x388] sm:$0xff] }
  0x28   :  { %2244 = vmatpush.bf16.msrb.mxu2 %v7186_v6  ;;  %v89_v51 = vld [vmem:[%s13710_s0 + $0x1c0] sm:$0xff]  ;;  %14032 = vst [vmem:[#allocation17_spill] sm:$0xff] %v8830_v61  ;;  %v8156_v6 = vld [vmem:[%s13709_s1 + $0x34c] sm:$0xf0] }
  0x29   :  { %2348 = vmatpush.bf16.msrb.mxu3 %v7314_v7  ;;  %v241_v52 = vld [vmem:[%s13710_s0 + $0x680] sm:$0xff]  ;;  %v8824_v58 = vpack.c.bf16 %v89_v51, %v81_v50  ;;  %14039 = vst [vmem:[#allocation24_spill] sm:$0xff] %v8924_v44  ;;  %v130_v50 = vld [vmem:[%s13710_s0 + $0x308] sm:$0xff] }
  0x2a   :  { %v249_v53 = vld [vmem:[%s13710_s0 + $0x6c0] sm:$0xff]  ;;  %14040 = vst [vmem:[#allocation25_spill] sm:$0xff] %v8926_v45  ;;  %v138_v51 = vld [vmem:[%s13710_s0 + $0x348] sm:$0xff] }
  0x2b   :  { %14029 = vst [vmem:[#allocation14_spill] sm:$0xff] %v8824_v58  ;;  %v8826_v59 = vpack.c.bf16 %v249_v53, %v241_v52  ;;  %v7121_v62 = vld [vmem:[%s13709_s1 + $0x240] sm:$0xf]  ;;  %v290_v52 = vld [vmem:[%s13710_s0 + $0x808] sm:$0xff]  ;;  %v8960_v56 = vpack.c.bf16 %v138_v51, %v130_v50  ;;  %v8196_v51 = vld [vmem:[%s13709_s1 + $0x48c] sm:$0xf0] }
  0x2c   :  { %2245 = vmatpush.bf16.msrb.mxu2 %v7170_v12  ;;  %v7249_v2 = vld [vmem:[%s13709_s1 + $0x340] sm:$0xf]  ;;  %v7122_v3 = vor.u32 %v8124_v1, %v7121_v62  ;;  %v98_v12 = vld [vmem:[%s13710_s0 + $0x208] sm:$0xff]  ;;  %v8116_v1 = vld [vmem:[%s13709_s1 + $0x20c] sm:$0xf0] }
  0x2d   :  { %2349 = vmatpush.bf16.msrb.mxu3 %v7298_v13  ;;  %14030 = vst [vmem:[#allocation15_spill] sm:$0xff] %v8826_v59  ;;  %v7250_v7 = vor.u32 %v8156_v6, %v7249_v2  ;;  %v97_v8 = vld [vmem:[%s13710_s0 + $0x200] sm:$0xff]  ;;  %v106_v13 = vld [vmem:[%s13710_s0 + $0x248] sm:$0xff]  ;;  %v8148_v6 = vld [vmem:[%s13709_s1 + $0x30c] sm:$0xf0] }
  0x2e   :  { %v105_v9 = vld [vmem:[%s13710_s0 + $0x240] sm:$0xff]  ;;  %v8876_v18 = vpack.c.bf16 %v106_v13, %v98_v12  ;;  %v298_v53 = vld [vmem:[%s13710_s0 + $0x848] sm:$0xff]  ;;  %14043 = vst [vmem:[#allocation28_spill] sm:$0xff] %v8960_v56  ;;  %v8240_v12 = vld [vmem:[%s13709_s1 + $0x5ec] sm:$0xf0] }
  0x2f   :  { %v257_v10 = vld [vmem:[%s13710_s0 + $0x700] sm:$0xff]  ;;  %v8872_v16 = vpack.c.bf16 %v105_v9, %v97_v8  ;;  %v8962_v57 = vpack.c.bf16 %v298_v53, %v290_v52  ;;  %v8208_v9 = vld [vmem:[%s13709_s1 + $0x4ec] sm:$0xf0] }
  0x30   :  { %2246 = vmatpush.bf16.msrb.mxu2 %v7154_v29  ;;  %v265_v11 = vld [vmem:[%s13710_s0 + $0x740] sm:$0xff]  ;;  %14035 = vst [vmem:[#allocation20_spill] sm:$0xff] %v8876_v18 }
  0x31   :  { %2350 = vmatpush.bf16.msrb.mxu3 %v7282_v31  ;;  %14033 = vst [vmem:[#allocation18_spill] sm:$0xff] %v8872_v16  ;;  %v8874_v17 = vpack.c.bf16 %v265_v11, %v257_v10  ;;  %v7105_v20 = vld [vmem:[%s13709_s1 + $0x220] sm:$0xf] }
  0x32   :  { %v7233_v26 = vld [vmem:[%s13709_s1 + $0x320] sm:$0xf]  ;;  %v7106_v27 = vor.u32 %v8120_v21, %v7105_v20  ;;  %14044 = vst [vmem:[#allocation29_spill] sm:$0xff] %v8962_v57  ;;  %v8236_v21 = vld [vmem:[%s13709_s1 + $0x5cc] sm:$0xf0] }
  0x33   :  { %2048 = vmatmul.bf16.gmra.mxu0 %v8728_v22  ;;  %2098 = vmatmul.bf16.gmra.mxu2 %v8730_v23  ;;  %14034 = vst [vmem:[#allocation19_spill] sm:$0xff] %v8874_v17  ;;  %v7234_v29 = vor.u32 %v8152_v28, %v7233_v26  ;;  %v113_v30 = vld [vmem:[%s13710_s0 + $0x280] sm:$0xff] }
  0x34   :  { %2152 = vmatmul.bf16.gmra.mxu1 %v8732_v24  ;;  %2247 = vmatpush.bf16.msrb.mxu2 %v7138_v47  ;;  %v121_v31 = vld [vmem:[%s13710_s0 + $0x2c0] sm:$0xff] }
  0x35   :  { %2351 = vmatpush.bf16.msrb.mxu3 %v7266_v49  ;;  %v273_v32 = vld [vmem:[%s13710_s0 + $0x780] sm:$0xff]  ;;  %v8920_v38 = vpack.c.bf16 %v121_v31, %v113_v30 }
  0x36   :  { %2202 = vmatmul.bf16.gmra.mxu3 %v8734_v25  ;;  %v281_v33 = vld [vmem:[%s13710_s0 + $0x7c0] sm:$0xff] }
  0x37   :  { %14037 = vst [vmem:[#allocation22_spill] sm:$0xff] %v8920_v38  ;;  %v8922_v39 = vpack.c.bf16 %v281_v33, %v273_v32  ;;  %v129_v46 = vld [vmem:[%s13710_s0 + $0x300] sm:$0xff]  ;;  %v8232_v33 = vld [vmem:[%s13709_s1 + $0x5ac] sm:$0xf0] }
  0x38   :  { %2248 = vmatpush.bf16.msrb.mxu2 %v7122_v3  ;;  %v137_v47 = vld [vmem:[%s13710_s0 + $0x340] sm:$0xff] }
  0x39   :  { %2352 = vmatpush.bf16.msrb.mxu3 %v7250_v7  ;;  %14038 = vst [vmem:[#allocation23_spill] sm:$0xff] %v8922_v39  ;;  %v289_v48 = vld [vmem:[%s13710_s0 + $0x800] sm:$0xff]  ;;  %v8956_v54 = vpack.c.bf16 %v137_v47, %v129_v46  ;;  %v154_v46 = vld [vmem:[%s13710_s0 + $0x3c8] sm:$0xff] }
  0x3a   :  { %v297_v49 = vld [vmem:[%s13710_s0 + $0x840] sm:$0xff]  ;;  %v306_v47 = vld [vmem:[%s13710_s0 + $0x888] sm:$0xff] }
  0x3b   :  { %14041 = vst [vmem:[#allocation26_spill] sm:$0xff] %v8956_v54  ;;  %v8958_v55 = vpack.c.bf16 %v297_v49, %v289_v48  ;;  %v7089_v62 = vld [vmem:[%s13709_s1 + $0x200] sm:$0xf]  ;;  %v314_v48 = vld [vmem:[%s13710_s0 + $0x8c8] sm:$0xff] }
  0x3c   :  { %2249 = vmatpush.bf16.msrb.mxu2 %v7106_v27  ;;  %v7090_v2 = vor.u32 %v8116_v1, %v7089_v62  ;;  %v7217_v3 = vld [vmem:[%s13709_s1 + $0x300] sm:$0xf]  ;;  %v8228_v1 = vld [vmem:[%s13709_s1 + $0x58c] sm:$0xf0] }
  0x3d   :  { %2353 = vmatpush.bf16.msrb.mxu3 %v7234_v29  ;;  %14042 = vst [vmem:[#allocation27_spill] sm:$0xff] %v8958_v55  ;;  %v7218_v7 = vor.u32 %v8148_v6, %v7217_v3  ;;  %v7457_v8 = vld [vmem:[%s13709_s1 + $0x4e0] sm:$0xf]  ;;  %v8200_v29 = vld [vmem:[%s13709_s1 + $0x4ac] sm:$0xf0]  ;;  %v9058_v3 = vpack.c.bf16 %v314_v48, %v306_v47 }
  0x3e   :  { %v7585_v10 = vld [vmem:[%s13709_s1 + $0x5e0] sm:$0xf]  ;;  %v7458_v11 = vor.u32 %v8208_v9, %v7457_v8  ;;  %v8216_v48 = vld [vmem:[%s13709_s1 + $0x52c] sm:$0xf0] }
  0x3f   :  { %v7441_v13 = vld [vmem:[%s13709_s1 + $0x4c0] sm:$0xf]  ;;  %v7586_v15 = vor.u32 %v8240_v12, %v7585_v10  ;;  %14048 = vst [vmem:[#allocation33_spill] sm:$0xff] %v9058_v3  ;;  %v8272_v10 = vld [vmem:[%s13709_s1 + $0x6ec] sm:$0xf0] }
  0x40   :  { %2250 = vmatpush.bf16.msrb.mxu2 %v7090_v2  ;;  %v7569_v20 = vld [vmem:[%s13709_s1 + $0x5c0] sm:$0xf]  ;;  %2451 = vmatpush.bf16.msrb.mxu0 %v7458_v11  ;;  %v7442_v26 = vor.u32 %v8204_v14, %v7441_v13  ;;  %v9056_v2 = vpack.c.bf16 %v154_v46, %v146_v36  ;;  %v8192_v11 = vld [vmem:[%s13709_s1 + $0x46c] sm:$0xf0] }
  0x41   :  { %2354 = vmatpush.bf16.msrb.mxu3 %v7218_v7  ;;  %2555 = vmatpush.bf16.msrb.mxu1 %v7586_v15  ;;  %v7570_v27 = vor.u32 %v8236_v21, %v7569_v20  ;;  %v7425_v28 = vld [vmem:[%s13709_s1 + $0x4a0] sm:$0xf]  ;;  %v8224_v15 = vld [vmem:[%s13709_s1 + $0x56c] sm:$0xf0] }
  0x42   :  { %v7553_v30 = vld [vmem:[%s13709_s1 + $0x5a0] sm:$0xf]  ;;  %v7426_v37 = vor.u32 %v8200_v29, %v7425_v28  ;;  %14047 = vst [vmem:[#allocation32_spill] sm:$0xff] %v9056_v2  ;;  %v8188_v28 = vld [vmem:[%s13709_s1 + $0x44c] sm:$0xf0] }
  0x43   :  { %2053 = vmatmul.bf16.gmra.mxu0 %v8776_v40  ;;  %2103 = vmatmul.bf16.gmra.mxu2 %v8778_v41  ;;  %v145_v31 = vld [vmem:[%s13710_s0 + $0x380] sm:$0xff]  ;;  %v7554_v49 = vor.u32 %v8232_v33, %v7553_v30  ;;  %v8184_v36 = vld [vmem:[%s13709_s1 + $0x42c] sm:$0xf0] }
  0x44   :  { %2157 = vmatmul.bf16.gmra.mxu1 %v8780_v42  ;;  %v153_v32 = vld [vmem:[%s13710_s0 + $0x3c0] sm:$0xff]  ;;  %2452 = vmatpush.bf16.msrb.mxu0 %v7442_v26  ;;  %v8304_v26 = vld [vmem:[%s13709_s1 + $0x7ec] sm:$0xf0] }
  0x45   :  { %v305_v34 = vld [vmem:[%s13710_s0 + $0x880] sm:$0xff]  ;;  %2556 = vmatpush.bf16.msrb.mxu1 %v7570_v27  ;;  %v9049_v53 = vpack.c.bf16 %v153_v32, %v145_v31  ;;  %v8220_v31 = vld [vmem:[%s13709_s1 + $0x54c] sm:$0xf0] }
  0x46   :  { %2207 = vmatmul.bf16.gmra.mxu3 %v8782_v43  ;;  %v313_v35 = vld [vmem:[%s13710_s0 + $0x8c0] sm:$0xff] }
  0x47   :  { %v7409_v50 = vld [vmem:[%s13709_s1 + $0x480] sm:$0xf]  ;;  %14045 = vst [vmem:[#allocation30_spill] sm:$0xff] %v9049_v53  ;;  %v9051_v62 = vpack.c.bf16 %v313_v35, %v305_v34 }
  0x48   :  { %v7537_v52 = vld [vmem:[%s13709_s1 + $0x580] sm:$0xf]  ;;  %2453 = vmatpush.bf16.msrb.mxu0 %v7426_v37  ;;  %v7410_v6 = vor.u32 %v8196_v51, %v7409_v50  ;;  %v162_v51 = vld [vmem:[%s13710_s0 + $0x408] sm:$0xff] }
  0x49   :  { %14046 = vst [vmem:[#allocation31_spill] sm:$0xff] %v9051_v62  ;;  %2557 = vmatpush.bf16.msrb.mxu1 %v7554_v49  ;;  %v7538_v7 = vor.u32 %v8228_v1, %v7537_v52  ;;  %v7393_v8 = vld [vmem:[%s13709_s1 + $0x460] sm:$0xf]  ;;  %v170_v52 = vld [vmem:[%s13710_s0 + $0x448] sm:$0xff] }
  0x4a   :  { %v7713_v9 = vld [vmem:[%s13709_s1 + $0x6e0] sm:$0xf]  ;;  %v7394_v13 = vor.u32 %v8192_v11, %v7393_v8  ;;  %v322_v1 = vld [vmem:[%s13710_s0 + $0x908] sm:$0xff] }
  0x4b   :  { %v7714_v12 = vor.u32 %v8272_v10, %v7713_v9  ;;  %v7521_v14 = vld [vmem:[%s13709_s1 + $0x560] sm:$0xf]  ;;  %v8180_v10 = vld [vmem:[%s13709_s1 + $0x40c] sm:$0xf0] }
  0x4c   :  { %2454 = vmatpush.bf16.msrb.mxu0 %v7410_v6  ;;  %v7841_v20 = vld [vmem:[%s13709_s1 + $0x7e0] sm:$0xf]  ;;  %v7522_v21 = vor.u32 %v8224_v15, %v7521_v14  ;;  %v330_v6 = vld [vmem:[%s13710_s0 + $0x948] sm:$0xff]  ;;  %v8212_v15 = vld [vmem:[%s13709_s1 + $0x50c] sm:$0xf0] }
  0x4d   :  { %2558 = vmatpush.bf16.msrb.mxu1 %v7538_v7  ;;  %v7377_v27 = vld [vmem:[%s13709_s1 + $0x440] sm:$0xf]  ;;  %2659 = vmatpush.bf16.msra.mxu2 %v7714_v12  ;;  %v7842_v29 = vor.u32 %v8304_v26, %v7841_v20  ;;  %v9159_v26 = vpack.c.bf16 %v330_v6, %v322_v1  ;;  %v186_v1 = vld [vmem:[%s13710_s0 + $0x4c8] sm:$0xff]  ;;  %v36_v6 = vld [vmem:[%s13710_s0 + $0x18] sm:$0xff] }
  0x4e   :  { %v7505_v30 = vld [vmem:[%s13709_s1 + $0x540] sm:$0xf]  ;;  %v7378_v32 = vor.u32 %v8188_v28, %v7377_v27 }
  0x4f   :  { %v7506_v33 = vor.u32 %v8220_v31, %v7505_v30  ;;  %v745_v34 = vld [vmem:[%s13711_s2] sm:$0xf]  ;;  %2763 = vmatpush.bf16.msra.mxu3 %v7842_v29  ;;  %14052 = vst [vmem:[#allocation37_spill] sm:$0xff] %v9159_v26 }
  0x50   :  { %2455 = vmatpush.bf16.msrb.mxu0 %v7394_v13  ;;  %v7361_v35 = vld [vmem:[%s13709_s1 + $0x420] sm:$0xf]  ;;  %v9148_v12 = vperm.slane %v745_v34, 0 }
  0x51   :  { %2559 = vmatpush.bf16.msrb.mxu1 %v7522_v21  ;;  %v7489_v37 = vld [vmem:[%s13709_s1 + $0x520] sm:$0xf]  ;;  %v7362_v7 = vor.u32 %v8184_v36, %v7361_v35  ;;  %v9157_v21 = vpack.c.bf16 %v170_v52, %v162_v51  ;;  %v35_v51 = vld [vmem:[%s13710_s0 + $0x10] sm:$0xff] }
  0x52   :  { %v161_v46 = vld [vmem:[%s13710_s0 + $0x400] sm:$0xff]  ;;  %v7490_v8 = vor.u32 %v8216_v48, %v7489_v37  ;;  %v43_v52 = vld [vmem:[%s13710_s0 + $0x50] sm:$0xff] }
  0x53   :  { %2058 = vmatmul.bf16.gmra.mxu0 %v8824_v58  ;;  %2108 = vmatmul.bf16.gmra.mxu2 %v8826_v59  ;;  %v169_v47 = vld [vmem:[%s13710_s0 + $0x440] sm:$0xff]  ;;  %14051 = vst [vmem:[#allocation36_spill] sm:$0xff] %v9157_v21 }
  0x54   :  { %2162 = vmatmul.bf16.gmra.mxu1 %v8828_v60  ;;  %v321_v49 = vld [vmem:[%s13710_s0 + $0x900] sm:$0xff]  ;;  %2456 = vmatpush.bf16.msrb.mxu0 %v7378_v32  ;;  %v9150_v13 = vpack.c.bf16 %v169_v47, %v161_v46 }
  0x55   :  { %v329_v50 = vld [vmem:[%s13710_s0 + $0x940] sm:$0xff]  ;;  %2560 = vmatpush.bf16.msrb.mxu1 %v7506_v33 }
  0x56   :  { %2212 = vmatmul.bf16.gmra.mxu3 %v8830_v61  ;;  %v7345_v9 = vld [vmem:[%s13709_s1 + $0x400] sm:$0xf]  ;;  %14049 = vst [vmem:[#allocation34_spill] sm:$0xff] %v9150_v13  ;;  %v9152_v14 = vpack.c.bf16 %v329_v50, %v321_v49  ;;  %v178_v50 = vld [vmem:[%s13710_s0 + $0x488] sm:$0xff] }
  0x57   :  { %v7473_v11 = vld [vmem:[%s13709_s1 + $0x500] sm:$0xf]  ;;  %v7346_v29 = vor.u32 %v8180_v10, %v7345_v9 }
  0x58   :  { %14050 = vst [vmem:[#allocation35_spill] sm:$0xff] %v9152_v14  ;;  %2457 = vmatpush.bf16.msrb.mxu0 %v7362_v7  ;;  %v7474_v30 = vor.u32 %v8212_v15, %v7473_v11  ;;  %v177_v48 = vld [vmem:[%s13710_s0 + $0x480] sm:$0xff]  ;;  %v44_v7 = vld [vmem:[%s13710_s0 + $0x58] sm:$0xff]  ;;  %v9201_v15 = vpack.c.bf16 %v43_v52, %v35_v51  ;;  %v51_v51 = vld [vmem:[%s13710_s0 + $0x90] sm:$0xff] }
  0x59   :  { %2561 = vmatpush.bf16.msrb.mxu1 %v7490_v8  ;;  %v185_v49 = vld [vmem:[%s13710_s0 + $0x4c0] sm:$0xff]  ;;  %v59_v52 = vld [vmem:[%s13710_s0 + $0xd0] sm:$0xff] }
  0x5a   :  { %v9199_v11 = vpack.c.bf16 %v185_v49, %v177_v48  ;;  %14054 = vst [vmem:[#allocation39_spill] sm:$0xff] %v9201_v15 }
  0x5c   :  { %2458 = vmatpush.bf16.msrb.mxu0 %v7346_v29  ;;  %14053 = vst [vmem:[#allocation38_spill] sm:$0xff] %v9199_v11 }
  0x5d   :  { %2562 = vmatpush.bf16.msrb.mxu1 %v7474_v30 }
  0x63   :  { %2063 = vmatmul.bf16.gmra.mxu0 %v8872_v16  ;;  %2113 = vmatmul.bf16.gmra.mxu2 %v8874_v17  ;;  %v7681_v17 = vld [vmem:[%s13709_s1 + $0x6a0] sm:$0xf] }
  0x64   :  { %2167 = vmatmul.bf16.gmra.mxu1 %v8876_v18 }
  0x66   :  { %2217 = vmatmul.bf16.gmra.mxu3 %v8878_v19 }
  0x73   :  { %2068 = vmatmul.bf16.gmra.mxu0 %v8920_v38  ;;  %2118 = vmatmul.bf16.gmra.mxu2 %v8922_v39 }
  0x74   :  { %2172 = vmatmul.bf16.gmra.mxu1 %v8924_v44 }
  0x76   :  { %2222 = vmatmul.bf16.gmra.mxu3 %v8926_v45 }
  0x83   :  { %2073 = vmatmul.bf16.gmra.mxu0 %v8956_v54  ;;  %2123 = vmatmul.bf16.gmra.mxu2 %v8958_v55 }
  0x84   :  { %2177 = vmatmul.bf16.gmra.mxu1 %v8960_v56 }
  0x86   :  { %2227 = vmatmul.bf16.gmra.mxu3 %v8962_v57 }
  0x93   :  { %2078 = vmatmul.bf16.gmra.mxu0 %v9049_v53  ;;  %2128 = vmatmul.bf16.gmra.mxu2 %v9051_v62 }
  0x94   :  { %2182 = vmatmul.bf16.gmra.mxu1 %v9056_v2 }
  0x96   :  { %2232 = vmatmul.bf16.gmra.mxu3 %v9058_v3 }
  0xa0   :  { %v2044_v20 = vpop.f32.mrf.mxu0 }
  0xa1   :  { %v2045_v27 = vadd.f32 %v2044_v20, %v9148_v12  ;;  %v2148_v28 = vpop.f32.mrf.mxu1 }
  0xa3   :  { %v9162_v31 = vadd.f32 %v2148_v28, %v2045_v27  ;;  %2083 = vmatmul.bf16.gmra.mxu0 %v9150_v13  ;;  %2133 = vmatmul.bf16.gmra.mxu2 %v9152_v14  ;;  %v9203_v27 = vpack.c.bf16 %v186_v1, %v178_v50  ;;  %v9205_v28 = vpack.c.bf16 %v44_v7, %v36_v6  ;;  %v52_v6 = vld [vmem:[%s13710_s0 + $0x98] sm:$0xff]  ;;  %v7697_v7 = vld [vmem:[%s13709_s1 + $0x6c0] sm:$0xf] }
  0xa4   :  { %2187 = vmatmul.bf16.gmra.mxu1 %v9157_v21 }
  0xa5   :  { %14055 = vst [vmem:[#allocation40_spill] sm:$0xff] %v9203_v27 }
  0xa6   :  { %2237 = vmatmul.bf16.gmra.mxu3 %v9159_v26  ;;  %v2094_v32 = vpop.f32.mrf.mxu2  ;;  %14056 = vst [vmem:[#allocation41_spill] sm:$0xff] %v9205_v28 }
  0xa7   :  { %v2095_v33 = vadd.f32 %v2094_v32, %v9148_v12 }
  0xa8   :  { %v2046_v35 = vpop.f32.mrf.mxu0 }
  0xa9   :  { %v2198_v34 = vpop.f32.mrf.mxu3  ;;  %v2047_v37 = vadd.f32 %v2046_v35, %v9148_v12  ;;  %v2150_v46 = vpop.f32.mrf.mxu1 }
  0xaa   :  { %v9169_v36 = vadd.f32 %v2198_v34, %v2095_v33 }
  0xab   :  { %v9172_v47 = vadd.f32 %v2150_v46, %v2047_v37 }
  0xae   :  { %v2096_v8 = vpop.f32.mrf.mxu2 }
  0xaf   :  { %v2097_v9 = vadd.f32 %v2096_v8, %v9148_v12  ;;  %v8268_v8 = vld [vmem:[%s13709_s1 + $0x6cc] sm:$0xf0] }
  0xb0   :  { %v2049_v20 = vpop.f32.mrf.mxu0 }
  0xb1   :  { %v2200_v10 = vpop.f32.mrf.mxu3  ;;  %v2050_v30 = vadd.f32 %v2049_v20, %v9148_v12  ;;  %v2153_v32 = vpop.f32.mrf.mxu1  ;;  %v45_v20 = vld [vmem:[%s13710_s0 + $0x60] sm:$0xff] }
  0xb2   :  { %v9207_v29 = vadd.f32 %v2200_v10, %v2097_v9  ;;  %v7825_v9 = vld [vmem:[%s13709_s1 + $0x7c0] sm:$0xf] }
  0xb3   :  { %v9210_v33 = vadd.f32 %v2153_v32, %v2050_v30  ;;  %2088 = vmatmul.bf16.gmra.mxu0 %v9199_v11  ;;  %2251 = vmatmul.bf16.vlgmr.msrb.gmra.mxu2 %v9201_v15  ;;  %v37_v10 = vld [vmem:[%s13710_s0 + $0x20] sm:$0xff]  ;;  %v7698_v30 = vor.u32 %v8268_v8, %v7697_v7  ;;  %v8300_v32 = vld [vmem:[%s13709_s1 + $0x7cc] sm:$0xf0]  ;;  %v9259_v8 = vpack.c.bf16 %v59_v52, %v51_v51 }
  0xb4   :  { %2192 = vmatmul.bf16.gmra.mxu1 %v9203_v27 }
  0xb5   :  { %2660 = vmatpush.bf16.msra.mxu2 %v7698_v30  ;;  %14057 = vst [vmem:[#allocation42_spill] sm:$0xff] %v9259_v8 }
  0xb6   :  { %2355 = vmatmul.bf16.vlgmr.msrb.gmra.mxu3 %v9205_v28  ;;  %v2099_v34 = vpop.f32.mrf.mxu2  ;;  %v9261_v28 = vpack.c.bf16 %v45_v20, %v37_v10 }
  0xb7   :  { %v2100_v35 = vadd.f32 %v2099_v34, %v9148_v12  ;;  %v60_v34 = vld [vmem:[%s13710_s0 + $0xd8] sm:$0xff] }
  0xb8   :  { %v2051_v46 = vpop.f32.mrf.mxu0  ;;  %14058 = vst [vmem:[#allocation43_spill] sm:$0xff] %v9261_v28  ;;  %v9263_v15 = vpack.c.bf16 %v60_v34, %v52_v6  ;;  %v67_v34 = vld [vmem:[%s13710_s0 + $0x110] sm:$0xff] }
  0xb9   :  { %v2203_v37 = vpop.f32.mrf.mxu3  ;;  %v2052_v49 = vadd.f32 %v2051_v46, %v9148_v12  ;;  %v2155_v50 = vpop.f32.mrf.mxu1  ;;  %v7826_v46 = vor.u32 %v8300_v32, %v7825_v9 }
  0xba   :  { %v9217_v48 = vadd.f32 %v2203_v37, %v2100_v35  ;;  %v38_v35 = vld [vmem:[%s13710_s0 + $0x28] sm:$0xff]  ;;  %14059 = vst [vmem:[#allocation44_spill] sm:$0xff] %v9263_v15 }
  0xbb   :  { %v9226_v1 = vadd.f32 %v2155_v50, %v2052_v49  ;;  %v46_v37 = vld [vmem:[%s13710_s0 + $0x68] sm:$0xff]  ;;  %2764 = vmatpush.bf16.msra.mxu3 %v7826_v46  ;;  %v53_v46 = vld [vmem:[%s13710_s0 + $0xa0] sm:$0xff] }
  0xbc   :  { %v9265_v14 = vpack.c.bf16 %v46_v37, %v38_v35  ;;  %v75_v35 = vld [vmem:[%s13710_s0 + $0x150] sm:$0xff]  ;;  %v68_v37 = vld [vmem:[%s13710_s0 + $0x118] sm:$0xff] }
  0xbe   :  { %v2101_v49 = vpop.f32.mrf.mxu2  ;;  %14060 = vst [vmem:[#allocation45_spill] sm:$0xff] %v9265_v14 }
  0xbf   :  { %v2102_v50 = vadd.f32 %v2101_v49, %v9148_v12  ;;  %v61_v49 = vld [vmem:[%s13710_s0 + $0xe0] sm:$0xff] }
  0xc0   :  { %v2054_v26 = vpop.f32.mrf.mxu0 }
  0xc1   :  { %v2205_v7 = vpop.f32.mrf.mxu3  ;;  %v2055_v62 = vadd.f32 %v2054_v26, %v9148_v12  ;;  %v2158_v9 = vpop.f32.mrf.mxu1 }
  0xc2   :  { %v9267_v3 = vadd.f32 %v2205_v7, %v2102_v50  ;;  %v76_v50 = vld [vmem:[%s13710_s0 + $0x158] sm:$0xff]  ;;  %v54_v7 = vld [vmem:[%s13710_s0 + $0xa8] sm:$0xff] }
  0xc3   :  { %v9270_v32 = vadd.f32 %v2158_v9, %v2055_v62  ;;  %2256 = vmatmul.bf16.gmra.mxu2 %v9259_v8  ;;  %2459 = vmatmul.bf16.vlgmr.msrb.gmra.mxu0 %v9261_v28  ;;  %v62_v9 = vld [vmem:[%s13710_s0 + $0xe8] sm:$0xff] }
  0xc4   :  { %2563 = vmatmul.bf16.vlgmr.msrb.gmra.mxu1 %v9265_v14  ;;  %v9311_v14 = vpack.c.bf16 %v76_v50, %v68_v37 }
  0xc6   :  { %2360 = vmatmul.bf16.gmra.mxu3 %v9263_v15  ;;  %v2104_v51 = vpop.f32.mrf.mxu2  ;;  %14063 = vst [vmem:[#allocation48_spill] sm:$0xff] %v9311_v14  ;;  %v9313_v15 = vpack.c.bf16 %v62_v9, %v54_v7  ;;  %v91_v9 = vld [vmem:[%s13710_s0 + $0x1d0] sm:$0xff] }
  0xc7   :  { %v2105_v52 = vadd.f32 %v2104_v51, %v9148_v12 }
  0xc8   :  { %v2056_v10 = vpop.f32.mrf.mxu0  ;;  %14064 = vst [vmem:[#allocation49_spill] sm:$0xff] %v9313_v15 }
  0xc9   :  { %v2208_v6 = vpop.f32.mrf.mxu3  ;;  %v2057_v26 = vadd.f32 %v2056_v10, %v9148_v12  ;;  %v2160_v30 = vpop.f32.mrf.mxu1  ;;  %v9307_v10 = vpack.c.bf16 %v75_v35, %v67_v34 }
  0xca   :  { %v9277_v20 = vadd.f32 %v2208_v6, %v2105_v52 }
  0xcb   :  { %v9280_v62 = vadd.f32 %v2160_v30, %v2057_v26  ;;  %14061 = vst [vmem:[#allocation46_spill] sm:$0xff] %v9307_v10  ;;  %v9309_v26 = vpack.c.bf16 %v61_v49, %v53_v46 }
  0xcd   :  { %14062 = vst [vmem:[#allocation47_spill] sm:$0xff] %v9309_v26 }
  0xce   :  { %v2106_v51 = vpop.f32.mrf.mxu2 }
  0xcf   :  { %v2107_v52 = vadd.f32 %v2106_v51, %v9148_v12  ;;  %v84_v51 = vld [vmem:[%s13710_s0 + $0x198] sm:$0xff] }
  0xd0   :  { %v2059_v30 = vpop.f32.mrf.mxu0 }
  0xd1   :  { %v2210_v6 = vpop.f32.mrf.mxu3  ;;  %v2060_v8 = vadd.f32 %v2059_v30, %v9148_v12  ;;  %v2163_v57 = vpop.f32.mrf.mxu1  ;;  %v92_v30 = vld [vmem:[%s13710_s0 + $0x1d8] sm:$0xff] }
  0xd2   :  { %v9315_v28 = vadd.f32 %v2210_v6, %v2107_v52  ;;  %v69_v52 = vld [vmem:[%s13710_s0 + $0x120] sm:$0xff] }
  0xd3   :  { %v9318_v55 = vadd.f32 %v2163_v57, %v2060_v8  ;;  %2261 = vmatmul.bf16.gmra.mxu2 %v9307_v10  ;;  %2464 = vmatmul.bf16.gmra.mxu0 %v9309_v26  ;;  %v83_v8 = vld [vmem:[%s13710_s0 + $0x190] sm:$0xff]  ;;  %v77_v6 = vld [vmem:[%s13710_s0 + $0x160] sm:$0xff]  ;;  %v9359_v26 = vpack.c.bf16 %v92_v30, %v84_v51 }
  0xd4   :  { %2568 = vmatmul.bf16.gmra.mxu1 %v9313_v15  ;;  %v9357_v15 = vpack.c.bf16 %v77_v6, %v69_v52  ;;  %v8296_v51 = vld [vmem:[%s13709_s1 + $0x7ac] sm:$0xf0] }
  0xd5   :  { %14067 = vst [vmem:[#allocation52_spill] sm:$0xff] %v9359_v26 }
  0xd6   :  { %2365 = vmatmul.bf16.gmra.mxu3 %v9311_v14  ;;  %v2109_v34 = vpop.f32.mrf.mxu2  ;;  %14066 = vst [vmem:[#allocation51_spill] sm:$0xff] %v9357_v15 }
  0xd7   :  { %v2110_v35 = vadd.f32 %v2109_v34, %v9148_v12  ;;  %v70_v34 = vld [vmem:[%s13710_s0 + $0x128] sm:$0xff] }
  0xd8   :  { %v2061_v46 = vpop.f32.mrf.mxu0 }
  0xd9   :  { %v2213_v37 = vpop.f32.mrf.mxu3  ;;  %v2062_v50 = vadd.f32 %v2061_v46, %v9148_v12  ;;  %v2165_v7 = vpop.f32.mrf.mxu1 }
  0xda   :  { %v9325_v49 = vadd.f32 %v2213_v37, %v2110_v35  ;;  %v78_v35 = vld [vmem:[%s13710_s0 + $0x168] sm:$0xff] }
  0xdb   :  { %v9328_v57 = vadd.f32 %v2165_v7, %v2062_v50  ;;  %v9355_v7 = vpack.c.bf16 %v91_v9, %v83_v8  ;;  %v9361_v10 = vpack.c.bf16 %v78_v35, %v70_v34  ;;  %v8264_v8 = vld [vmem:[%s13709_s1 + $0x6ac] sm:$0xf0] }
  0xdc   :  { %v7682_v9 = vor.u32 %v8264_v8, %v7681_v17  ;;  %v107_v8 = vld [vmem:[%s13710_s0 + $0x250] sm:$0xff] }
  0xdd   :  { %14065 = vst [vmem:[#allocation50_spill] sm:$0xff] %v9355_v7 }
  0xde   :  { %v2111_v37 = vpop.f32.mrf.mxu2  ;;  %14068 = vst [vmem:[#allocation53_spill] sm:$0xff] %v9361_v10  ;;  %2661 = vmatpush.bf16.msra.mxu2 %v7682_v9  ;;  %v100_v9 = vld [vmem:[%s13710_s0 + $0x218] sm:$0xff] }
  0xdf   :  { %v2112_v46 = vadd.f32 %v2111_v37, %v9148_v12 }
  0xe0   :  { %v2064_v14 = vpop.f32.mrf.mxu0 }
  0xe1   :  { %v2215_v50 = vpop.f32.mrf.mxu3  ;;  %v2065_v39 = vadd.f32 %v2064_v14, %v9148_v12  ;;  %v2168_v19 = vpop.f32.mrf.mxu1  ;;  %v7809_v14 = vld [vmem:[%s13709_s1 + $0x7a0] sm:$0xf] }
  0xe2   :  { %v9363_v45 = vadd.f32 %v2215_v50, %v2112_v46  ;;  %v7810_v6 = vor.u32 %v8296_v51, %v7809_v14  ;;  %v99_v50 = vld [vmem:[%s13710_s0 + $0x210] sm:$0xff]  ;;  %v85_v14 = vld [vmem:[%s13710_s0 + $0x1a0] sm:$0xff] }
  0xe3   :  { %v9372_v52 = vadd.f32 %v2168_v19, %v2065_v39  ;;  %2266 = vmatmul.bf16.gmra.mxu2 %v9355_v7  ;;  %2469 = vmatmul.bf16.gmra.mxu0 %v9357_v15  ;;  %v93_v51 = vld [vmem:[%s13710_s0 + $0x1e0] sm:$0xff] }
  0xe4   :  { %2573 = vmatmul.bf16.gmra.mxu1 %v9361_v10  ;;  %2765 = vmatpush.bf16.msra.mxu3 %v7810_v6  ;;  %v108_v6 = vld [vmem:[%s13710_s0 + $0x258] sm:$0xff]  ;;  %v9417_v10 = vpack.c.bf16 %v93_v51, %v85_v14 }
  0xe5   :  { %v9419_v15 = vpack.c.bf16 %v108_v6, %v100_v9 }
  0xe6   :  { %2370 = vmatmul.bf16.gmra.mxu3 %v9359_v26  ;;  %v2114_v17 = vpop.f32.mrf.mxu2  ;;  %14070 = vst [vmem:[#allocation55_spill] sm:$0xff] %v9417_v10 }
  0xe7   :  { %v2115_v19 = vadd.f32 %v2114_v17, %v9148_v12  ;;  %v86_v17 = vld [vmem:[%s13710_s0 + $0x1a8] sm:$0xff]  ;;  %14071 = vst [vmem:[#allocation56_spill] sm:$0xff] %v9419_v15 }
  0xe8   :  { %v2066_v30 = vpop.f32.mrf.mxu0 }
  0xe9   :  { %v2218_v39 = vpop.f32.mrf.mxu3  ;;  %v2067_v35 = vadd.f32 %v2066_v30, %v9148_v12  ;;  %v2170_v37 = vpop.f32.mrf.mxu1 }
  0xea   :  { %v9385_v34 = vadd.f32 %v2218_v39, %v2115_v19  ;;  %v94_v19 = vld [vmem:[%s13710_s0 + $0x1e8] sm:$0xff] }
  0xeb   :  { %v9388_v46 = vadd.f32 %v2170_v37, %v2067_v35  ;;  %v9415_v37 = vpack.c.bf16 %v107_v8, %v99_v50  ;;  %v9421_v7 = vpack.c.bf16 %v94_v19, %v86_v17  ;;  %v123_v17 = vld [vmem:[%s13710_s0 + $0x2d0] sm:$0xff]  ;;  %v116_v19 = vld [vmem:[%s13710_s0 + $0x298] sm:$0xff] }
  0xed   :  { %14069 = vst [vmem:[#allocation54_spill] sm:$0xff] %v9415_v37 }
  0xee   :  { %v2116_v39 = vpop.f32.mrf.mxu2  ;;  %14072 = vst [vmem:[#allocation57_spill] sm:$0xff] %v9421_v7 }
  0xef   :  { %v2117_v30 = vadd.f32 %v2116_v39, %v9148_v12  ;;  %v101_v39 = vld [vmem:[%s13710_s0 + $0x220] sm:$0xff] }
  0xf0   :  { %v2069_v26 = vpop.f32.mrf.mxu0 }
  0xf1   :  { %v2220_v35 = vpop.f32.mrf.mxu3  ;;  %v2070_v59 = vadd.f32 %v2069_v26, %v9148_v12  ;;  %v2173_v43 = vpop.f32.mrf.mxu1 }
  0xf2   :  { %v9423_v61 = vadd.f32 %v2220_v35, %v2117_v30  ;;  %v109_v30 = vld [vmem:[%s13710_s0 + $0x260] sm:$0xff]  ;;  %v124_v35 = vld [vmem:[%s13710_s0 + $0x2d8] sm:$0xff] }
  0xf3   :  { %v9426_v41 = vadd.f32 %v2173_v43, %v2070_v59  ;;  %2271 = vmatmul.bf16.gmra.mxu2 %v9415_v37  ;;  %2474 = vmatmul.bf16.gmra.mxu0 %v9417_v10  ;;  %v115_v59 = vld [vmem:[%s13710_s0 + $0x290] sm:$0xff]  ;;  %v9467_v10 = vpack.c.bf16 %v124_v35, %v116_v19 }
  0xf4   :  { %2578 = vmatmul.bf16.gmra.mxu1 %v9421_v7  ;;  %v9465_v7 = vpack.c.bf16 %v109_v30, %v101_v39 }
  0xf5   :  { %14075 = vst [vmem:[#allocation60_spill] sm:$0xff] %v9467_v10 }
  0xf6   :  { %2375 = vmatmul.bf16.gmra.mxu3 %v9419_v15  ;;  %v2119_v50 = vpop.f32.mrf.mxu2  ;;  %14074 = vst [vmem:[#allocation59_spill] sm:$0xff] %v9465_v7 }
  0xf7   :  { %v2120_v8 = vadd.f32 %v2119_v50, %v9148_v12  ;;  %v102_v50 = vld [vmem:[%s13710_s0 + $0x228] sm:$0xff] }
  0xf8   :  { %v2071_v14 = vpop.f32.mrf.mxu0 }
  0xf9   :  { %v2223_v9 = vpop.f32.mrf.mxu3  ;;  %v2072_v26 = vadd.f32 %v2071_v14, %v9148_v12  ;;  %v2175_v6 = vpop.f32.mrf.mxu1 }
  0xfa   :  { %v9433_v51 = vadd.f32 %v2223_v9, %v2120_v8  ;;  %v110_v8 = vld [vmem:[%s13710_s0 + $0x268] sm:$0xff] }
  0xfb   :  { %v9436_v43 = vadd.f32 %v2175_v6, %v2072_v26  ;;  %v9463_v6 = vpack.c.bf16 %v123_v17, %v115_v59  ;;  %v9469_v37 = vpack.c.bf16 %v110_v8, %v102_v50  ;;  %v7665_v59 = vld [vmem:[%s13709_s1 + $0x680] sm:$0xf]  ;;  %v8260_v17 = vld [vmem:[%s13709_s1 + $0x68c] sm:$0xf0] }
  0xfc   :  { %v7793_v8 = vld [vmem:[%s13709_s1 + $0x780] sm:$0xf] }
  0xfd   :  { %14073 = vst [vmem:[#allocation58_spill] sm:$0xff] %v9463_v6 }
  0xfe   :  { %v2121_v9 = vpop.f32.mrf.mxu2  ;;  %14076 = vst [vmem:[#allocation61_spill] sm:$0xff] %v9469_v37 }
  0xff   :  { %v2122_v14 = vadd.f32 %v2121_v9, %v9148_v12  ;;  %v8292_v9 = vld [vmem:[%s13709_s1 + $0x78c] sm:$0xf0] }
 0x100   :  { %v2074_v15 = vpop.f32.mrf.mxu0 }
 0x101   :  { %v2225_v26 = vpop.f32.mrf.mxu3  ;;  %v2075_v23 = vadd.f32 %v2074_v15, %v9148_v12  ;;  %v2178_v5 = vpop.f32.mrf.mxu1  ;;  %v7666_v15 = vor.u32 %v8260_v17, %v7665_v59  ;;  %v131_v59 = vld [vmem:[%s13710_s0 + $0x310] sm:$0xff] }
 0x102   :  { %v9471_v25 = vadd.f32 %v2225_v26, %v2122_v14  ;;  %v7794_v14 = vor.u32 %v8292_v9, %v7793_v8  ;;  %v139_v17 = vld [vmem:[%s13710_s0 + $0x350] sm:$0xff] }
 0x103   :  { %v9474_v0 = vadd.f32 %v2178_v5, %v2075_v23  ;;  %2276 = vmatmul.bf16.gmra.mxu2 %v9463_v6  ;;  %2479 = vmatmul.bf16.gmra.mxu0 %v9465_v7 }
 0x104   :  { %2583 = vmatmul.bf16.gmra.mxu1 %v9469_v37  ;;  %2662 = vmatpush.bf16.msra.mxu2 %v7666_v15  ;;  %v132_v15 = vld [vmem:[%s13710_s0 + $0x318] sm:$0xff]  ;;  %v9523_v37 = vpack.c.bf16 %v139_v17, %v131_v59 }
 0x105   :  { %2766 = vmatpush.bf16.msra.mxu3 %v7794_v14 }
 0x106   :  { %2380 = vmatmul.bf16.gmra.mxu3 %v9467_v10  ;;  %v2124_v19 = vpop.f32.mrf.mxu2  ;;  %14077 = vst [vmem:[#allocation62_spill] sm:$0xff] %v9523_v37 }
 0x107   :  { %v2125_v5 = vadd.f32 %v2124_v19, %v9148_v12  ;;  %v117_v19 = vld [vmem:[%s13710_s0 + $0x2a0] sm:$0xff] }
 0x108   :  { %v2076_v39 = vpop.f32.mrf.mxu0 }
 0x109   :  { %v2228_v23 = vpop.f32.mrf.mxu3  ;;  %v2077_v35 = vadd.f32 %v2076_v39, %v9148_v12  ;;  %v2180_v50 = vpop.f32.mrf.mxu1  ;;  %v118_v39 = vld [vmem:[%s13710_s0 + $0x2a8] sm:$0xff] }
 0x10a   :  { %v9487_v30 = vadd.f32 %v2228_v23, %v2125_v5  ;;  %v125_v5 = vld [vmem:[%s13710_s0 + $0x2e0] sm:$0xff]  ;;  %v140_v23 = vld [vmem:[%s13710_s0 + $0x358] sm:$0xff] }
 0x10b   :  { %v9496_v26 = vadd.f32 %v2180_v50, %v2077_v35  ;;  %v126_v35 = vld [vmem:[%s13710_s0 + $0x2e8] sm:$0xff]  ;;  %v9525_v10 = vpack.c.bf16 %v125_v5, %v117_v19  ;;  %v9527_v7 = vpack.c.bf16 %v140_v23, %v132_v15 }
 0x10c   :  { %v9529_v6 = vpack.c.bf16 %v126_v35, %v118_v39  ;;  %v155_v35 = vld [vmem:[%s13710_s0 + $0x3d0] sm:$0xff] }
 0x10d   :  { %14078 = vst [vmem:[#allocation63_spill] sm:$0xff] %v9525_v10 }
 0x10e   :  { %v2126_v50 = vpop.f32.mrf.mxu2  ;;  %14079 = vst [vmem:[#allocation64_spill] sm:$0xff] %v9527_v7 }
 0x10f   :  { %v2127_v8 = vadd.f32 %v2126_v50, %v9148_v12  ;;  %14080 = vst [vmem:[#allocation65_spill] sm:$0xff] %v9529_v6  ;;  %v148_v50 = vld [vmem:[%s13710_s0 + $0x398] sm:$0xff] }
 0x110   :  { %v2079_v14 = vpop.f32.mrf.mxu0 }
 0x111   :  { %v2230_v9 = vpop.f32.mrf.mxu3  ;;  %v2080_v11 = vadd.f32 %v2079_v14, %v9148_v12  ;;  %v2183_v21 = vpop.f32.mrf.mxu1  ;;  %v156_v14 = vld [vmem:[%s13710_s0 + $0x3d8] sm:$0xff] }
 0x112   :  { %v9531_v27 = vadd.f32 %v2230_v9, %v2127_v8  ;;  %v133_v8 = vld [vmem:[%s13710_s0 + $0x320] sm:$0xff] }
 0x113   :  { %v9534_v13 = vadd.f32 %v2183_v21, %v2080_v11  ;;  %2281 = vmatmul.bf16.gmra.mxu2 %v9523_v37  ;;  %2484 = vmatmul.bf16.gmra.mxu0 %v9525_v10  ;;  %v147_v11 = vld [vmem:[%s13710_s0 + $0x390] sm:$0xff]  ;;  %v141_v9 = vld [vmem:[%s13710_s0 + $0x360] sm:$0xff]  ;;  %v9575_v10 = vpack.c.bf16 %v156_v14, %v148_v50 }
 0x114   :  { %14081 = vst [vmem:[#allocation66_spill] sm:$0xff] %v9531_v27  ;;  %2588 = vmatmul.bf16.gmra.mxu1 %v9529_v6  ;;  %v9573_v6 = vpack.c.bf16 %v141_v9, %v133_v8 }
 0x115   :  { %14085 = vst [vmem:[#allocation70_spill] sm:$0xff] %v9575_v10 }
 0x116   :  { %2385 = vmatmul.bf16.gmra.mxu3 %v9527_v7  ;;  %v2129_v59 = vpop.f32.mrf.mxu2  ;;  %14084 = vst [vmem:[#allocation69_spill] sm:$0xff] %v9573_v6 }
 0x117   :  { %v2130_v17 = vadd.f32 %v2129_v59, %v9148_v12  ;;  %v134_v59 = vld [vmem:[%s13710_s0 + $0x328] sm:$0xff] }
 0x118   :  { %v2081_v19 = vpop.f32.mrf.mxu0 }
 0x119   :  { %v2233_v15 = vpop.f32.mrf.mxu3  ;;  %v2082_v23 = vadd.f32 %v2081_v19, %v9148_v12  ;;  %v2185_v39 = vpop.f32.mrf.mxu1 }
 0x11a   :  { %v9541_v5 = vadd.f32 %v2233_v15, %v2130_v17  ;;  %v142_v17 = vld [vmem:[%s13710_s0 + $0x368] sm:$0xff] }
 0x11b   :  { %v9544_v21 = vadd.f32 %v2185_v39, %v2082_v23  ;;  %v9571_v39 = vpack.c.bf16 %v155_v35, %v147_v11  ;;  %v9577_v37 = vpack.c.bf16 %v142_v17, %v134_v59  ;;  %v163_v59 = vld [vmem:[%s13710_s0 + $0x410] sm:$0xff] }
 0x11c   :  { %14082 = vst [vmem:[#allocation67_spill] sm:$0xff] %v9541_v5  ;;  %v171_v17 = vld [vmem:[%s13710_s0 + $0x450] sm:$0xff] }
 0x11d   :  { %14083 = vst [vmem:[#allocation68_spill] sm:$0xff] %v9571_v39 }
 0x11e   :  { %v2131_v15 = vpop.f32.mrf.mxu2  ;;  %14086 = vst [vmem:[#allocation71_spill] sm:$0xff] %v9577_v37 }
 0x11f   :  { %v2132_v19 = vadd.f32 %v2131_v15, %v9148_v12 }
 0x120   :  { %v2084_v7 = vpop.f32.mrf.mxu0 }
 0x121   :  { %v2235_v23 = vpop.f32.mrf.mxu3  ;;  %v2085_v53 = vadd.f32 %v2084_v7, %v9148_v12  ;;  %v2188_v56 = vpop.f32.mrf.mxu1 }
 0x122   :  { %v9579_v2 = vadd.f32 %v2235_v23, %v2132_v19  ;;  %v164_v23 = vld [vmem:[%s13710_s0 + $0x418] sm:$0xff] }
 0x123   :  { %v9582_v54 = vadd.f32 %v2188_v56, %v2085_v53  ;;  %2286 = vmatmul.bf16.gmra.mxu2 %v9571_v39  ;;  %2489 = vmatmul.bf16.gmra.mxu0 %v9573_v6  ;;  %v8078_v56 = vld [vmem:[%s13709_s1 + $0xe4] sm:$0xf]  ;;  %v6947_v53 = vld [vmem:[%s13709_s1 + $0xf0] sm:$0xf0] }
 0x124   :  { %14087 = vst [vmem:[#allocation72_spill] sm:$0xff] %v9579_v2  ;;  %2593 = vmatmul.bf16.gmra.mxu1 %v9577_v37  ;;  %v6950_v15 = vor.u32 %v8078_v56, %v6947_v53  ;;  %v8288_v56 = vld [vmem:[%s13709_s1 + $0x76c] sm:$0xf0]  ;;  %v172_v53 = vld [vmem:[%s13710_s0 + $0x458] sm:$0xff]  ;;  %v150_v37 = vld [vmem:[%s13710_s0 + $0x3a8] sm:$0xff] }
 0x125   :  { %v9641_v5 = vpack.c.bf16 %v172_v53, %v164_v23  ;;  %v166_v53 = vld [vmem:[%s13710_s0 + $0x428] sm:$0xff] }
 0x126   :  { %2390 = vmatmul.bf16.gmra.mxu3 %v9575_v10  ;;  %v2134_v11 = vpop.f32.mrf.mxu2  ;;  %2867 = vmatpush.bf16.msra.mxu0 %v6950_v15  ;;  %v158_v10 = vld [vmem:[%s13710_s0 + $0x3e8] sm:$0xff] }
 0x127   :  { %v2135_v35 = vadd.f32 %v2134_v11, %v9148_v12  ;;  %v7649_v11 = vld [vmem:[%s13709_s1 + $0x660] sm:$0xf]  ;;  %14091 = vst [vmem:[#allocation76_spill] sm:$0xff] %v9641_v5  ;;  %v9643_v44 = vpack.c.bf16 %v158_v10, %v150_v37 }
 0x128   :  { %v2086_v8 = vpop.f32.mrf.mxu0 }
 0x129   :  { %v2238_v50 = vpop.f32.mrf.mxu3  ;;  %v2087_v7 = vadd.f32 %v2086_v8, %v9148_v12  ;;  %v2190_v14 = vpop.f32.mrf.mxu1  ;;  %v149_v8 = vld [vmem:[%s13710_s0 + $0x3a0] sm:$0xff]  ;;  %14092 = vst [vmem:[#allocation77_spill] sm:$0xff] %v9643_v44 }
 0x12a   :  { %v9589_v9 = vadd.f32 %v2238_v50, %v2135_v35  ;;  %v8256_v35 = vld [vmem:[%s13709_s1 + $0x66c] sm:$0xf0]  ;;  %v7777_v50 = vld [vmem:[%s13709_s1 + $0x760] sm:$0xf] }
 0x12b   :  { %v9604_v19 = vadd.f32 %v2190_v14, %v2087_v7  ;;  %v157_v7 = vld [vmem:[%s13710_s0 + $0x3e0] sm:$0xff]  ;;  %v7650_v14 = vor.u32 %v8256_v35, %v7649_v11  ;;  %v7778_v6 = vor.u32 %v8288_v56, %v7777_v50  ;;  %v9637_v35 = vpack.c.bf16 %v171_v17, %v163_v59 }
 0x12c   :  { %14088 = vst [vmem:[#allocation73_spill] sm:$0xff] %v9589_v9  ;;  %v9639_v9 = vpack.c.bf16 %v157_v7, %v149_v8  ;;  %v187_v8 = vld [vmem:[%s13710_s0 + $0x4d0] sm:$0xff]  ;;  %v165_v7 = vld [vmem:[%s13710_s0 + $0x420] sm:$0xff] }
 0x12d   :  { %2663 = vmatpush.bf16.msra.mxu2 %v7650_v14  ;;  %14089 = vst [vmem:[#allocation74_spill] sm:$0xff] %v9637_v35  ;;  %2767 = vmatpush.bf16.msra.mxu3 %v7778_v6  ;;  %v188_v14 = vld [vmem:[%s13710_s0 + $0x4d8] sm:$0xff] }
 0x12e   :  { %v2136_v39 = vpop.f32.mrf.mxu2  ;;  %14090 = vst [vmem:[#allocation75_spill] sm:$0xff] %v9639_v9 }
 0x12f   :  { %v2137_v15 = vadd.f32 %v2136_v39, %v9148_v12 }
 0x130   :  { %v2089_v2 = vpop.f32.mrf.mxu0 }
 0x131   :  { %v2240_v11 = vpop.f32.mrf.mxu3  ;;  %v2090_v27 = vadd.f32 %v2089_v2, %v9148_v12  ;;  %v2193_v50 = vpop.f32.mrf.mxu1 }
 0x132   :  { %v9645_v38 = vadd.f32 %v2240_v11, %v2137_v15  ;;  %v174_v15 = vld [vmem:[%s13710_s0 + $0x468] sm:$0xff] }
 0x133   :  { %v9648_v56 = vadd.f32 %v2193_v50, %v2090_v27  ;;  %2291 = vmatmul.bf16.gmra.mxu2 %v9637_v35  ;;  %2494 = vmatmul.bf16.gmra.mxu0 %v9639_v9  ;;  %v179_v27 = vld [vmem:[%s13710_s0 + $0x490] sm:$0xff] }
 0x134   :  { %2598 = vmatmul.bf16.gmra.mxu1 %v9643_v44 }
 0x136   :  { %2395 = vmatmul.bf16.gmra.mxu3 %v9641_v5  ;;  %v2252_v6 = vpop.f32.mrf.mxu2 }
 0x137   :  { %v2253_v39 = vadd.f32 %v2252_v6, %v9162_v31  ;;  %v180_v31 = vld [vmem:[%s13710_s0 + $0x498] sm:$0xff] }
 0x138   :  { %v2091_v37 = vpop.f32.mrf.mxu0 }
 0x139   :  { %v2356_v10 = vpop.f32.mrf.mxu3  ;;  %v2092_v17 = vadd.f32 %v2091_v37, %v9148_v12  ;;  %v2195_v2 = vpop.f32.mrf.mxu1  ;;  %v173_v12 = vld [vmem:[%s13710_s0 + $0x460] sm:$0xff] }
 0x13a   :  { %v2357_v59 = vadd.f32 %v2356_v10, %v2253_v39  ;;  %v9683_v39 = vpack.c.bf16 %v187_v8, %v179_v27  ;;  %v9685_v10 = vpack.c.bf16 %v173_v12, %v165_v7 }
 0x13b   :  { %v9656_v23 = vadd.f32 %v2195_v2, %v2092_v17  ;;  %v9687_v17 = vpack.c.bf16 %v188_v14, %v180_v31  ;;  %v9689_v2 = vpack.c.bf16 %v174_v15, %v166_v53  ;;  %v8074_v53 = vld [vmem:[%s13709_s1 + $0xc4] sm:$0xf] }
 0x13c   :  { %14093 = vst [vmem:[#allocation78_spill] sm:$0xff] %v9683_v39  ;;  %v181_v15 = vld [vmem:[%s13710_s0 + $0x4a0] sm:$0xff] }
 0x13d   :  { %14094 = vst [vmem:[#allocation79_spill] sm:$0xff] %v9685_v10 }
 0x13e   :  { %v2254_v11 = vpop.f32.mrf.mxu2  ;;  %14095 = vst [vmem:[#allocation80_spill] sm:$0xff] %v9687_v17 }
 0x13f   :  { %v2255_v50 = vadd.f32 %v2254_v11, %v9172_v47  ;;  %14096 = vst [vmem:[#allocation81_spill] sm:$0xff] %v9689_v2  ;;  %v189_v11 = vld [vmem:[%s13710_s0 + $0x4e0] sm:$0xff] }
 0x140   :  { %v2460_v37 = vpop.f32.mrf.mxu0 }
 0x141   :  { %v2358_v6 = vpop.f32.mrf.mxu3  ;;  %v2461_v5 = vadd.f32 %v2460_v37, %v2357_v59  ;;  %v2564_v9 = vpop.f32.mrf.mxu1  ;;  %v203_v59 = vld [vmem:[%s13710_s0 + $0x550] sm:$0xff]  ;;  %v182_v37 = vld [vmem:[%s13710_s0 + $0x4a8] sm:$0xff] }
 0x142   :  { %v2359_v44 = vadd.f32 %v2358_v6, %v2255_v50  ;;  %v204_v6 = vld [vmem:[%s13710_s0 + $0x558] sm:$0xff] }
 0x143   :  { %v9691_v35 = vadd.f32 %v2564_v9, %v2461_v5  ;;  %2296 = vmatmul.bf16.gmra.mxu2 %v9683_v39  ;;  %2499 = vmatmul.bf16.gmra.mxu0 %v9685_v10  ;;  %v195_v5 = vld [vmem:[%s13710_s0 + $0x510] sm:$0xff] }
 0x144   :  { %2603 = vmatmul.bf16.gmra.mxu1 %v9689_v2 }
 0x146   :  { %2400 = vmatmul.bf16.gmra.mxu3 %v9687_v17  ;;  %v2257_v47 = vpop.f32.mrf.mxu2 }
 0x147   :  { %v2258_v27 = vadd.f32 %v2257_v47, %v9210_v33  ;;  %v6931_v33 = vld [vmem:[%s13709_s1 + $0xd0] sm:$0xf0]  ;;  %v190_v47 = vld [vmem:[%s13710_s0 + $0x4e8] sm:$0xff] }
 0x148   :  { %v2462_v31 = vpop.f32.mrf.mxu0  ;;  %v6934_v50 = vor.u32 %v8074_v53, %v6931_v33  ;;  %v9737_v2 = vpack.c.bf16 %v190_v47, %v182_v37 }
 0x149   :  { %v2361_v8 = vpop.f32.mrf.mxu3  ;;  %v2463_v12 = vadd.f32 %v2462_v31, %v2359_v44  ;;  %v2566_v14 = vpop.f32.mrf.mxu1  ;;  %v196_v44 = vld [vmem:[%s13710_s0 + $0x518] sm:$0xff] }
 0x14a   :  { %v2362_v7 = vadd.f32 %v2361_v8, %v2258_v27  ;;  %2868 = vmatpush.bf16.msra.mxu0 %v6934_v50  ;;  %v9735_v33 = vpack.c.bf16 %v204_v6, %v196_v44  ;;  %14101 = vst [vmem:[#allocation86_spill] sm:$0xff] %v9737_v2 }
 0x14b   :  { %v9701_v9 = vadd.f32 %v2566_v14, %v2463_v12  ;;  %v9731_v12 = vpack.c.bf16 %v203_v59, %v195_v5  ;;  %v9733_v14 = vpack.c.bf16 %v189_v11, %v181_v15  ;;  %v8252_v5 = vld [vmem:[%s13709_s1 + $0x64c] sm:$0xf0] }
 0x14c   :  { %14100 = vst [vmem:[#allocation85_spill] sm:$0xff] %v9735_v33 }
 0x14d   :  { %14097 = vst [vmem:[#allocation82_spill] sm:$0xff] %v9701_v9 }
 0x14e   :  { %v2259_v27 = vpop.f32.mrf.mxu2  ;;  %14098 = vst [vmem:[#allocation83_spill] sm:$0xff] %v9731_v12 }
 0x14f   :  { %v2260_v8 = vadd.f32 %v2259_v27, %v9226_v1  ;;  %14099 = vst [vmem:[#allocation84_spill] sm:$0xff] %v9733_v14  ;;  %v7633_v1 = vld [vmem:[%s13709_s1 + $0x640] sm:$0xf] }
 0x150   :  { %v2465_v53 = vpop.f32.mrf.mxu0 }
 0x151   :  { %v2363_v31 = vpop.f32.mrf.mxu3  ;;  %v2466_v10 = vadd.f32 %v2465_v53, %v2362_v7  ;;  %v2569_v39 = vpop.f32.mrf.mxu1  ;;  %v7634_v7 = vor.u32 %v8252_v5, %v7633_v1  ;;  %v197_v53 = vld [vmem:[%s13710_s0 + $0x520] sm:$0xff]  ;;  %v220_v1 = vld [vmem:[%s13710_s0 + $0x5d8] sm:$0xff]  ;;  %v198_v5 = vld [vmem:[%s13710_s0 + $0x528] sm:$0xff] }
 0x152   :  { %v2364_v17 = vadd.f32 %v2363_v31, %v2260_v8  ;;  %v211_v8 = vld [vmem:[%s13710_s0 + $0x590] sm:$0xff] }
 0x153   :  { %v9739_v9 = vadd.f32 %v2569_v39, %v2466_v10  ;;  %2301 = vmatmul.bf16.gmra.mxu2 %v9731_v12  ;;  %2504 = vmatmul.bf16.gmra.mxu0 %v9733_v14  ;;  %v7761_v39 = vld [vmem:[%s13709_s1 + $0x740] sm:$0xf]  ;;  %v8284_v10 = vld [vmem:[%s13709_s1 + $0x74c] sm:$0xf0] }
 0x154   :  { %2608 = vmatmul.bf16.gmra.mxu1 %v9737_v2  ;;  %v7762_v59 = vor.u32 %v8284_v10, %v7761_v39  ;;  %2664 = vmatpush.bf16.msra.mxu2 %v7634_v7  ;;  %v219_v31 = vld [vmem:[%s13710_s0 + $0x5d0] sm:$0xff]  ;;  %v206_v7 = vld [vmem:[%s13710_s0 + $0x568] sm:$0xff] }
 0x156   :  { %2405 = vmatmul.bf16.gmra.mxu3 %v9735_v33  ;;  %v2262_v44 = vpop.f32.mrf.mxu2 }
 0x157   :  { %v2263_v15 = vadd.f32 %v2262_v44, %v9270_v32  ;;  %2768 = vmatpush.bf16.msra.mxu3 %v7762_v59  ;;  %v212_v32 = vld [vmem:[%s13710_s0 + $0x598] sm:$0xff]  ;;  %v9785_v44 = vpack.c.bf16 %v219_v31, %v211_v8 }
 0x158   :  { %v2467_v50 = vpop.f32.mrf.mxu0 }
 0x159   :  { %v2366_v11 = vpop.f32.mrf.mxu3  ;;  %v2468_v37 = vadd.f32 %v2467_v50, %v2364_v17  ;;  %v2571_v47 = vpop.f32.mrf.mxu1  ;;  %v205_v17 = vld [vmem:[%s13710_s0 + $0x560] sm:$0xff]  ;;  %14102 = vst [vmem:[#allocation87_spill] sm:$0xff] %v9785_v44  ;;  %v9789_v50 = vpack.c.bf16 %v220_v1, %v212_v32 }
 0x15a   :  { %v2367_v6 = vadd.f32 %v2366_v11, %v2263_v15  ;;  %v9787_v15 = vpack.c.bf16 %v205_v17, %v197_v53 }
 0x15b   :  { %v9758_v27 = vadd.f32 %v2571_v47, %v2468_v37  ;;  %14104 = vst [vmem:[#allocation89_spill] sm:$0xff] %v9789_v50  ;;  %v9791_v37 = vpack.c.bf16 %v206_v7, %v198_v5  ;;  %v228_v5 = vld [vmem:[%s13710_s0 + $0x618] sm:$0xff]  ;;  %v221_v7 = vld [vmem:[%s13710_s0 + $0x5e0] sm:$0xff] }
 0x15c   :  { %14103 = vst [vmem:[#allocation88_spill] sm:$0xff] %v9787_v15 }
 0x15d   :  { %14105 = vst [vmem:[#allocation90_spill] sm:$0xff] %v9791_v37 }
 0x15e   :  { %v2264_v39 = vpop.f32.mrf.mxu2 }
 0x15f   :  { %v2265_v10 = vadd.f32 %v2264_v39, %v9280_v62  ;;  %v236_v39 = vld [vmem:[%s13710_s0 + $0x658] sm:$0xff] }
 0x160   :  { %v2470_v11 = vpop.f32.mrf.mxu0 }
 0x161   :  { %v2368_v59 = vpop.f32.mrf.mxu3  ;;  %v2471_v2 = vadd.f32 %v2470_v11, %v2367_v6  ;;  %v2574_v33 = vpop.f32.mrf.mxu1 }
 0x162   :  { %v2369_v47 = vadd.f32 %v2368_v59, %v2265_v10  ;;  %v214_v10 = vld [vmem:[%s13710_s0 + $0x5a8] sm:$0xff] }
 0x163   :  { %v9793_v14 = vadd.f32 %v2574_v33, %v2471_v2  ;;  %2306 = vmatmul.bf16.gmra.mxu2 %v9785_v44  ;;  %2509 = vmatmul.bf16.gmra.mxu0 %v9787_v15  ;;  %v227_v2 = vld [vmem:[%s13710_s0 + $0x610] sm:$0xff]  ;;  %v222_v59 = vld [vmem:[%s13710_s0 + $0x5e8] sm:$0xff] }
 0x164   :  { %2613 = vmatmul.bf16.gmra.mxu1 %v9791_v37  ;;  %v235_v33 = vld [vmem:[%s13710_s0 + $0x650] sm:$0xff] }
 0x166   :  { %2410 = vmatmul.bf16.gmra.mxu3 %v9789_v50  ;;  %v2267_v62 = vpop.f32.mrf.mxu2 }
 0x167   :  { %v2268_v8 = vadd.f32 %v2267_v62, %v9318_v55  ;;  %v213_v55 = vld [vmem:[%s13710_s0 + $0x5a0] sm:$0xff] }
 0x168   :  { %v2472_v32 = vpop.f32.mrf.mxu0 }
 0x169   :  { %v2371_v31 = vpop.f32.mrf.mxu3  ;;  %v2473_v17 = vadd.f32 %v2472_v32, %v2369_v47  ;;  %v2576_v1 = vpop.f32.mrf.mxu1 }
 0x16a   :  { %v2372_v53 = vadd.f32 %v2371_v31, %v2268_v8  ;;  %v9827_v8 = vpack.c.bf16 %v235_v33, %v227_v2  ;;  %v9829_v31 = vpack.c.bf16 %v221_v7, %v213_v55  ;;  %v6915_v2 = vld [vmem:[%s13709_s1 + $0xb0] sm:$0xf0] }
 0x16b   :  { %v9800_v6 = vadd.f32 %v2576_v1, %v2473_v17  ;;  %v9831_v17 = vpack.c.bf16 %v236_v39, %v228_v5  ;;  %v9833_v1 = vpack.c.bf16 %v222_v59, %v214_v10  ;;  %v7617_v10 = vld [vmem:[%s13709_s1 + $0x620] sm:$0xf]  ;;  %v8248_v59 = vld [vmem:[%s13709_s1 + $0x62c] sm:$0xf0] }
 0x16c   :  { %14106 = vst [vmem:[#allocation91_spill] sm:$0xff] %v9827_v8 }
 0x16d   :  { %14107 = vst [vmem:[#allocation92_spill] sm:$0xff] %v9829_v31 }
 0x16e   :  { %v2269_v11 = vpop.f32.mrf.mxu2  ;;  %14108 = vst [vmem:[#allocation93_spill] sm:$0xff] %v9831_v17 }
 0x16f   :  { %v2270_v47 = vadd.f32 %v2269_v11, %v9328_v57  ;;  %14109 = vst [vmem:[#allocation94_spill] sm:$0xff] %v9833_v1  ;;  %v8070_v57 = vld [vmem:[%s13709_s1 + $0xa4] sm:$0xf]  ;;  %v243_v11 = vld [vmem:[%s13710_s0 + $0x690] sm:$0xff] }
 0x170   :  { %v2475_v32 = vpop.f32.mrf.mxu0 }
 0x171   :  { %v2373_v62 = vpop.f32.mrf.mxu3  ;;  %v2476_v50 = vadd.f32 %v2475_v32, %v2372_v53  ;;  %v2579_v15 = vpop.f32.mrf.mxu1  ;;  %v6918_v53 = vor.u32 %v8070_v57, %v6915_v2  ;;  %v8280_v32 = vld [vmem:[%s13709_s1 + $0x72c] sm:$0xf0]  ;;  %v244_v57 = vld [vmem:[%s13710_s0 + $0x698] sm:$0xff]  ;;  %v229_v2 = vld [vmem:[%s13710_s0 + $0x620] sm:$0xff] }
 0x172   :  { %v2374_v37 = vadd.f32 %v2373_v62, %v2270_v47  ;;  %v7618_v47 = vor.u32 %v8248_v59, %v7617_v10  ;;  %v7745_v62 = vld [vmem:[%s13709_s1 + $0x720] sm:$0xf] }
 0x173   :  { %v9835_v44 = vadd.f32 %v2579_v15, %v2476_v50  ;;  %2311 = vmatmul.bf16.gmra.mxu2 %v9827_v8  ;;  %2514 = vmatmul.bf16.gmra.mxu0 %v9829_v31 }
 0x174   :  { %2618 = vmatmul.bf16.gmra.mxu1 %v9833_v1  ;;  %2869 = vmatpush.bf16.msra.mxu0 %v6918_v53  ;;  %v237_v53 = vld [vmem:[%s13710_s0 + $0x660] sm:$0xff] }
 0x175   :  { %2665 = vmatpush.bf16.msra.mxu2 %v7618_v47  ;;  %v9889_v47 = vpack.c.bf16 %v237_v53, %v229_v2 }
 0x176   :  { %2415 = vmatmul.bf16.gmra.mxu3 %v9831_v17  ;;  %v2272_v33 = vpop.f32.mrf.mxu2 }
 0x177   :  { %v2273_v15 = vadd.f32 %v2272_v33, %v9372_v52  ;;  %v7746_v33 = vor.u32 %v8280_v32, %v7745_v62  ;;  %14111 = vst [vmem:[#allocation96_spill] sm:$0xff] %v9889_v47 }
 0x178   :  { %v2477_v5 = vpop.f32.mrf.mxu0 }
 0x179   :  { %v2376_v50 = vpop.f32.mrf.mxu3  ;;  %v2478_v7 = vadd.f32 %v2477_v5, %v2374_v37  ;;  %v2581_v39 = vpop.f32.mrf.mxu1  ;;  %v251_v37 = vld [vmem:[%s13710_s0 + $0x6d0] sm:$0xff]  ;;  %v238_v5 = vld [vmem:[%s13710_s0 + $0x668] sm:$0xff]  ;;  %2769 = vmatpush.bf16.msra.mxu3 %v7746_v33 }
 0x17a   :  { %v2377_v55 = vadd.f32 %v2376_v50, %v2273_v15  ;;  %v252_v15 = vld [vmem:[%s13710_s0 + $0x6d8] sm:$0xff]  ;;  %v230_v50 = vld [vmem:[%s13710_s0 + $0x628] sm:$0xff]  ;;  %v9887_v59 = vpack.c.bf16 %v251_v37, %v243_v11 }
 0x17b   :  { %v9857_v52 = vadd.f32 %v2581_v39, %v2478_v7  ;;  %v9891_v32 = vpack.c.bf16 %v252_v15, %v244_v57  ;;  %v9893_v1 = vpack.c.bf16 %v238_v5, %v230_v50  ;;  %v260_v15 = vld [vmem:[%s13710_s0 + $0x718] sm:$0xff]  ;;  %v246_v5 = vld [vmem:[%s13710_s0 + $0x6a8] sm:$0xff] }
 0x17c   :  { %14110 = vst [vmem:[#allocation95_spill] sm:$0xff] %v9887_v59  ;;  %v268_v50 = vld [vmem:[%s13710_s0 + $0x758] sm:$0xff] }
 0x17d   :  { %14112 = vst [vmem:[#allocation97_spill] sm:$0xff] %v9891_v32 }
 0x17e   :  { %v2274_v7 = vpop.f32.mrf.mxu2  ;;  %14113 = vst [vmem:[#allocation98_spill] sm:$0xff] %v9893_v1 }
 0x17f   :  { %v2275_v39 = vadd.f32 %v2274_v7, %v9388_v46  ;;  %v254_v7 = vld [vmem:[%s13710_s0 + $0x6e8] sm:$0xff] }
 0x180   :  { %v2480_v62 = vpop.f32.mrf.mxu0 }
 0x181   :  { %v2378_v10 = vpop.f32.mrf.mxu3  ;;  %v2481_v31 = vadd.f32 %v2480_v62, %v2377_v55  ;;  %v2584_v8 = vpop.f32.mrf.mxu1 }
 0x182   :  { %v2379_v17 = vadd.f32 %v2378_v10, %v2275_v39 }
 0x183   :  { %v9895_v12 = vadd.f32 %v2584_v8, %v2481_v31  ;;  %2316 = vmatmul.bf16.gmra.mxu2 %v9887_v59  ;;  %2519 = vmatmul.bf16.gmra.mxu0 %v9889_v47  ;;  %v259_v8 = vld [vmem:[%s13710_s0 + $0x710] sm:$0xff] }
 0x184   :  { %2623 = vmatmul.bf16.gmra.mxu1 %v9893_v1  ;;  %v267_v31 = vld [vmem:[%s13710_s0 + $0x750] sm:$0xff] }
 0x186   :  { %2420 = vmatmul.bf16.gmra.mxu3 %v9891_v32  ;;  %v2277_v46 = vpop.f32.mrf.mxu2 }
 0x187   :  { %v2278_v11 = vadd.f32 %v2277_v46, %v9426_v41  ;;  %v245_v41 = vld [vmem:[%s13710_s0 + $0x6a0] sm:$0xff]  ;;  %v9929_v46 = vpack.c.bf16 %v267_v31, %v259_v8 }
 0x188   :  { %v2482_v57 = vpop.f32.mrf.mxu0 }
 0x189   :  { %v2381_v37 = vpop.f32.mrf.mxu3  ;;  %v2483_v53 = vadd.f32 %v2482_v57, %v2379_v17  ;;  %v2586_v33 = vpop.f32.mrf.mxu1  ;;  %v253_v17 = vld [vmem:[%s13710_s0 + $0x6e0] sm:$0xff]  ;;  %14114 = vst [vmem:[#allocation99_spill] sm:$0xff] %v9929_v46  ;;  %v9933_v57 = vpack.c.bf16 %v268_v50, %v260_v15 }
 0x18a   :  { %v2382_v2 = vadd.f32 %v2381_v37, %v2278_v11  ;;  %v9931_v11 = vpack.c.bf16 %v253_v17, %v245_v41 }
 0x18b   :  { %v9902_v55 = vadd.f32 %v2586_v33, %v2483_v53  ;;  %14116 = vst [vmem:[#allocation101_spill] sm:$0xff] %v9933_v57  ;;  %v9935_v53 = vpack.c.bf16 %v254_v7, %v246_v5  ;;  %v276_v5 = vld [vmem:[%s13710_s0 + $0x798] sm:$0xff]  ;;  %v6899_v7 = vld [vmem:[%s13709_s1 + $0x90] sm:$0xf0] }
 0x18c   :  { %14115 = vst [vmem:[#allocation100_spill] sm:$0xff] %v9931_v11 }
 0x18d   :  { %14117 = vst [vmem:[#allocation102_spill] sm:$0xff] %v9935_v53 }
 0x18e   :  { %v2279_v39 = vpop.f32.mrf.mxu2 }
 0x18f   :  { %v2280_v10 = vadd.f32 %v2279_v39, %v9436_v43  ;;  %v7601_v39 = vld [vmem:[%s13709_s1 + $0x600] sm:$0xf] }
 0x190   :  { %v2485_v37 = vpop.f32.mrf.mxu0 }
 0x191   :  { %v2383_v62 = vpop.f32.mrf.mxu3  ;;  %v2486_v1 = vadd.f32 %v2485_v37, %v2382_v2  ;;  %v2589_v32 = vpop.f32.mrf.mxu1 }
 0x192   :  { %v2384_v33 = vadd.f32 %v2383_v62, %v2280_v10  ;;  %v261_v10 = vld [vmem:[%s13710_s0 + $0x720] sm:$0xff] }
 0x193   :  { %v9937_v47 = vadd.f32 %v2589_v32, %v2486_v1  ;;  %2321 = vmatmul.bf16.gmra.mxu2 %v9929_v46  ;;  %2524 = vmatmul.bf16.gmra.mxu0 %v9931_v11  ;;  %v275_v1 = vld [vmem:[%s13710_s0 + $0x790] sm:$0xff]  ;;  %v269_v62 = vld [vmem:[%s13710_s0 + $0x760] sm:$0xff] }
 0x194   :  { %2628 = vmatmul.bf16.gmra.mxu1 %v9935_v53  ;;  %v283_v32 = vld [vmem:[%s13710_s0 + $0x7d0] sm:$0xff]  ;;  %v9985_v53 = vpack.c.bf16 %v269_v62, %v261_v10 }
 0x195   :  { %14118 = vst [vmem:[#allocation103_spill] sm:$0xff] %v9937_v47 }
 0x196   :  { %2425 = vmatmul.bf16.gmra.mxu3 %v9933_v57  ;;  %v2282_v43 = vpop.f32.mrf.mxu2  ;;  %14121 = vst [vmem:[#allocation106_spill] sm:$0xff] %v9985_v53 }
 0x197   :  { %v2283_v8 = vadd.f32 %v2282_v43, %v9474_v0  ;;  %v8066_v0 = vld [vmem:[%s13709_s1 + $0x84] sm:$0xf]  ;;  %v284_v43 = vld [vmem:[%s13710_s0 + $0x7d8] sm:$0xff] }
 0x198   :  { %v2487_v15 = vpop.f32.mrf.mxu0  ;;  %v6902_v37 = vor.u32 %v8066_v0, %v6899_v7  ;;  %v9983_v7 = vpack.c.bf16 %v283_v32, %v275_v1  ;;  %v9987_v11 = vpack.c.bf16 %v284_v43, %v276_v5 }
 0x199   :  { %v2386_v31 = vpop.f32.mrf.mxu3  ;;  %v2488_v17 = vadd.f32 %v2487_v15, %v2384_v33  ;;  %v2591_v50 = vpop.f32.mrf.mxu1  ;;  %v8244_v33 = vld [vmem:[%s13709_s1 + $0x60c] sm:$0xf0] }
 0x19a   :  { %v2387_v41 = vadd.f32 %v2386_v31, %v2283_v8  ;;  %v262_v8 = vld [vmem:[%s13710_s0 + $0x728] sm:$0xff]  ;;  %v7602_v15 = vor.u32 %v8244_v33, %v7601_v39  ;;  %2870 = vmatpush.bf16.msra.mxu0 %v6902_v37  ;;  %14120 = vst [vmem:[#allocation105_spill] sm:$0xff] %v9983_v7  ;;  %v7729_v39 = vld [vmem:[%s13709_s1 + $0x700] sm:$0xf] }
 0x19b   :  { %v9950_v2 = vadd.f32 %v2591_v50, %v2488_v17  ;;  %v270_v31 = vld [vmem:[%s13710_s0 + $0x768] sm:$0xff]  ;;  %14122 = vst [vmem:[#allocation107_spill] sm:$0xff] %v9987_v11 }
 0x19c   :  { %2666 = vmatpush.bf16.msra.mxu2 %v7602_v15  ;;  %v9989_v46 = vpack.c.bf16 %v270_v31, %v262_v8  ;;  %v292_v8 = vld [vmem:[%s13710_s0 + $0x818] sm:$0xff]  ;;  %v278_v15 = vld [vmem:[%s13710_s0 + $0x7a8] sm:$0xff] }
 0x19d   :  { %14119 = vst [vmem:[#allocation104_spill] sm:$0xff] %v9950_v2  ;;  %v300_v31 = vld [vmem:[%s13710_s0 + $0x858] sm:$0xff] }
 0x19e   :  { %v2284_v17 = vpop.f32.mrf.mxu2  ;;  %14123 = vst [vmem:[#allocation108_spill] sm:$0xff] %v9989_v46 }
 0x19f   :  { %v2285_v50 = vadd.f32 %v2284_v17, %v9496_v26  ;;  %v8276_v26 = vld [vmem:[%s13709_s1 + $0x70c] sm:$0xf0]  ;;  %v286_v17 = vld [vmem:[%s13710_s0 + $0x7e8] sm:$0xff] }
 0x1a0   :  { %v2490_v57 = vpop.f32.mrf.mxu0  ;;  %v7730_v1 = vor.u32 %v8276_v26, %v7729_v39 }
 0x1a1   :  { %v2388_v0 = vpop.f32.mrf.mxu3  ;;  %v2491_v2 = vadd.f32 %v2490_v57, %v2387_v41  ;;  %v2594_v47 = vpop.f32.mrf.mxu1 }
 0x1a2   :  { %v2389_v59 = vadd.f32 %v2388_v0, %v2285_v50  ;;  %2770 = vmatpush.bf16.msra.mxu3 %v7730_v1 }
 0x1a3   :  { %v9997_v32 = vadd.f32 %v2594_v47, %v2491_v2  ;;  %2326 = vmatmul.bf16.gmra.mxu2 %v9983_v7  ;;  %2529 = vmatmul.bf16.gmra.mxu0 %v9985_v53  ;;  %v291_v47 = vld [vmem:[%s13710_s0 + $0x810] sm:$0xff]  ;;  %v8062_v7 = vld [vmem:[%s13709_s1 + $0x64] sm:$0xf] }
 0x1a4   :  { %2633 = vmatmul.bf16.gmra.mxu1 %v9989_v46  ;;  %v299_v2 = vld [vmem:[%s13710_s0 + $0x850] sm:$0xff] }
 0x1a5   :  { %v10031_v26 = vpack.c.bf16 %v299_v2, %v291_v47  ;;  %v7075_v47 = vld [vmem:[%s13709_s1 + $0x1f0] sm:$0xf0] }
 0x1a6   :  { %2430 = vmatmul.bf16.gmra.mxu3 %v9987_v11  ;;  %v2287_v57 = vpop.f32.mrf.mxu2 }
 0x1a7   :  { %v2288_v41 = vadd.f32 %v2287_v57, %v9534_v13  ;;  %v277_v13 = vld [vmem:[%s13710_s0 + $0x7a0] sm:$0xff]  ;;  %14124 = vst [vmem:[#allocation109_spill] sm:$0xff] %v10031_v26 }
 0x1a8   :  { %v2492_v10 = vpop.f32.mrf.mxu0 }
 0x1a9   :  { %v2391_v5 = vpop.f32.mrf.mxu3  ;;  %v2493_v37 = vadd.f32 %v2492_v10, %v2389_v59  ;;  %v2596_v33 = vpop.f32.mrf.mxu1  ;;  %v285_v59 = vld [vmem:[%s13710_s0 + $0x7e0] sm:$0xff] }
 0x1aa   :  { %v2392_v62 = vadd.f32 %v2391_v5, %v2288_v41  ;;  %v10033_v1 = vpack.c.bf16 %v285_v59, %v277_v13  ;;  %v10035_v41 = vpack.c.bf16 %v300_v31, %v292_v8  ;;  %v10037_v5 = vpack.c.bf16 %v286_v17, %v278_v15  ;;  %v8106_v8 = vld [vmem:[%s13709_s1 + $0x1c4] sm:$0xf]  ;;  %v7059_v13 = vld [vmem:[%s13709_s1 + $0x1d0] sm:$0xf0] }
 0x1ab   :  { %v10004_v43 = vadd.f32 %v2596_v33, %v2493_v37  ;;  %v7062_v15 = vor.u32 %v8106_v8, %v7059_v13  ;;  %v316_v8 = vld [vmem:[%s13710_s0 + $0x8d8] sm:$0xff]  ;;  %v294_v13 = vld [vmem:[%s13710_s0 + $0x828] sm:$0xff] }
 0x1ac   :  { %14125 = vst [vmem:[#allocation110_spill] sm:$0xff] %v10033_v1 }
 0x1ad   :  { %14126 = vst [vmem:[#allocation111_spill] sm:$0xff] %v10035_v41 }
 0x1ae   :  { %v2289_v50 = vpop.f32.mrf.mxu2  ;;  %14127 = vst [vmem:[#allocation112_spill] sm:$0xff] %v10037_v5 }
 0x1af   :  { %v2290_v0 = vadd.f32 %v2289_v50, %v9544_v21  ;;  %v8110_v21 = vld [vmem:[%s13709_s1 + $0x1e4] sm:$0xf] }
 0x1b0   :  { %v2495_v57 = vpop.f32.mrf.mxu0 }
 0x1b1   :  { %v2393_v39 = vpop.f32.mrf.mxu3  ;;  %v2496_v37 = vadd.f32 %v2495_v57, %v2392_v62  ;;  %v2599_v33 = vpop.f32.mrf.mxu1  ;;  %v7078_v62 = vor.u32 %v8110_v21, %v7075_v47  ;;  %v8102_v57 = vld [vmem:[%s13709_s1 + $0x1a4] sm:$0xf]  ;;  %v315_v21 = vld [vmem:[%s13710_s0 + $0x8d0] sm:$0xff]  ;;  %v308_v47 = vld [vmem:[%s13710_s0 + $0x898] sm:$0xff] }
 0x1b2   :  { %v2394_v10 = vadd.f32 %v2393_v39, %v2290_v0 }
 0x1b3   :  { %v10039_v46 = vadd.f32 %v2599_v33, %v2496_v37  ;;  %2331 = vmatmul.bf16.gmra.mxu2 %v10031_v26  ;;  %2534 = vmatmul.bf16.gmra.mxu0 %v10033_v1  ;;  %v7043_v37 = vld [vmem:[%s13709_s1 + $0x1b0] sm:$0xf0] }
 0x1b4   :  { %2638 = vmatmul.bf16.gmra.mxu1 %v10037_v5 }
 0x1b5   :  { %2971 = vmatpush.bf16.msra.mxu1 %v7078_v62  ;;  %v293_v62 = vld [vmem:[%s13710_s0 + $0x820] sm:$0xff] }
 0x1b6   :  { %2435 = vmatmul.bf16.gmra.mxu3 %v10035_v41  ;;  %v2292_v2 = vpop.f32.mrf.mxu2  ;;  %v10101_v41 = vpack.c.bf16 %v316_v8, %v308_v47  ;;  %v7331_v8 = vld [vmem:[%s13709_s1 + $0x3f0] sm:$0xf0] }
 0x1b7   :  { %v2293_v59 = vadd.f32 %v2292_v2, %v9582_v54  ;;  %v307_v54 = vld [vmem:[%s13710_s0 + $0x890] sm:$0xff]  ;;  %v301_v2 = vld [vmem:[%s13710_s0 + $0x860] sm:$0xff] }
 0x1b8   :  { %v2497_v17 = vpop.f32.mrf.mxu0  ;;  %14130 = vst [vmem:[#allocation115_spill] sm:$0xff] %v10101_v41 }
 0x1b9   :  { %v2396_v31 = vpop.f32.mrf.mxu3  ;;  %v2498_v0 = vadd.f32 %v2497_v17, %v2394_v10  ;;  %v2601_v39 = vpop.f32.mrf.mxu1  ;;  %2972 = vmatpush.bf16.msra.mxu1 %v7062_v15  ;;  %v7046_v10 = vor.u32 %v8102_v57, %v7043_v37  ;;  %v8098_v15 = vld [vmem:[%s13709_s1 + $0x184] sm:$0xf]  ;;  %v7027_v17 = vld [vmem:[%s13709_s1 + $0x190] sm:$0xf0]  ;;  %v10097_v57 = vpack.c.bf16 %v315_v21, %v307_v54  ;;  %v10099_v37 = vpack.c.bf16 %v301_v2, %v293_v62 }
 0x1ba   :  { %v2397_v50 = vadd.f32 %v2396_v31, %v2293_v59  ;;  %v302_v59 = vld [vmem:[%s13710_s0 + $0x868] sm:$0xff]  ;;  %v7030_v54 = vor.u32 %v8098_v15, %v7027_v17 }
 0x1bb   :  { %v10064_v33 = vadd.f32 %v2601_v39, %v2498_v0  ;;  %14128 = vst [vmem:[#allocation113_spill] sm:$0xff] %v10097_v57  ;;  %v10103_v1 = vpack.c.bf16 %v302_v59, %v294_v13  ;;  %v8058_v13 = vld [vmem:[%s13709_s1 + $0x44] sm:$0xf]  ;;  %v6867_v59 = vld [vmem:[%s13709_s1 + $0x50] sm:$0xf0] }
 0x1bc   :  { %14129 = vst [vmem:[#allocation114_spill] sm:$0xff] %v10099_v37 }
 0x1bd   :  { %2973 = vmatpush.bf16.msra.mxu1 %v7046_v10  ;;  %14131 = vst [vmem:[#allocation116_spill] sm:$0xff] %v10103_v1  ;;  %v8174_v10 = vld [vmem:[%s13709_s1 + $0x3e4] sm:$0xf] }
 0x1be   :  { %v2294_v31 = vpop.f32.mrf.mxu2  ;;  %v7334_v17 = vor.u32 %v8174_v10, %v7331_v8  ;;  %v6979_v8 = vld [vmem:[%s13709_s1 + $0x130] sm:$0xf0] }
 0x1bf   :  { %v2295_v0 = vadd.f32 %v2294_v31, %v9604_v19  ;;  %v6883_v19 = vld [vmem:[%s13709_s1 + $0x70] sm:$0xf0] }
 0x1c0   :  { %v2500_v5 = vpop.f32.mrf.mxu0  ;;  %v6886_v21 = vor.u32 %v8062_v7, %v6883_v19  ;;  %v7011_v7 = vld [vmem:[%s13709_s1 + $0x170] sm:$0xf0]  ;;  %3179 = vmatpush.bf16.msrb.mxu3 %v7334_v17  ;;  %v310_v17 = vld [vmem:[%s13710_s0 + $0x8a8] sm:$0xff] }
 0x1c1   :  { %v2398_v39 = vpop.f32.mrf.mxu3  ;;  %v2501_v11 = vadd.f32 %v2500_v5, %v2397_v50  ;;  %v2604_v53 = vpop.f32.mrf.mxu1  ;;  %v8142_v5 = vld [vmem:[%s13709_s1 + $0x2e4] sm:$0xf]  ;;  %v7203_v50 = vld [vmem:[%s13709_s1 + $0x2f0] sm:$0xf0]  ;;  %2974 = vmatpush.bf16.msra.mxu1 %v7030_v54 }
 0x1c2   :  { %v2399_v26 = vadd.f32 %v2398_v39, %v2295_v0  ;;  %2871 = vmatpush.bf16.msra.mxu0 %v6886_v21  ;;  %v6870_v0 = vor.u32 %v8058_v13, %v6867_v59  ;;  %v8090_v39 = vld [vmem:[%s13709_s1 + $0x144] sm:$0xf]  ;;  %v6995_v19 = vld [vmem:[%s13709_s1 + $0x150] sm:$0xf0]  ;;  %v324_v13 = vld [vmem:[%s13710_s0 + $0x918] sm:$0xff] }
 0x1c3   :  { %v10111_v62 = vadd.f32 %v2604_v53, %v2501_v11  ;;  %2336 = vmatmul.bf16.gmra.mxu2 %v10097_v57  ;;  %2539 = vmatmul.bf16.gmra.mxu0 %v10099_v37  ;;  %v7206_v11 = vor.u32 %v8142_v5, %v7203_v50  ;;  %v8094_v53 = vld [vmem:[%s13709_s1 + $0x164] sm:$0xf] }
 0x1c4   :  { %2643 = vmatmul.bf16.gmra.mxu1 %v10103_v1  ;;  %v7014_v2 = vor.u32 %v8094_v53, %v7011_v7  ;;  %v6998_v53 = vor.u32 %v8090_v39, %v6995_v19  ;;  %v8086_v7 = vld [vmem:[%s13709_s1 + $0x124] sm:$0xf] }
 0x1c5   :  { %14132 = vst [vmem:[#allocation117_spill] sm:$0xff] %v10111_v62  ;;  %3075 = vmatpush.bf16.msrb.mxu2 %v7206_v11  ;;  %v6851_v11 = vld [vmem:[%s13709_s1 + $0x30] sm:$0xf0]  ;;  %v309_v59 = vld [vmem:[%s13710_s0 + $0x8a0] sm:$0xff]  ;;  %v6982_v39 = vor.u32 %v8086_v7, %v6979_v8 }
 0x1c6   :  { %2440 = vmatmul.bf16.gmra.mxu3 %v10101_v41  ;;  %v2297_v47 = vpop.f32.mrf.mxu2  ;;  %2975 = vmatpush.bf16.msra.mxu1 %v7014_v2 }
 0x1c7   :  { %v2298_v31 = vadd.f32 %v2297_v47, %v9648_v56  ;;  %2872 = vmatpush.bf16.msra.mxu0 %v6870_v0  ;;  %v8054_v56 = vld [vmem:[%s13709_s1 + $0x24] sm:$0xf]  ;;  %v331_v47 = vld [vmem:[%s13710_s0 + $0x950] sm:$0xff]  ;;  %v318_v0 = vld [vmem:[%s13710_s0 + $0x8e8] sm:$0xff] }
 0x1c8   :  { %v2502_v54 = vpop.f32.mrf.mxu0  ;;  %v6854_v2 = vor.u32 %v8054_v56, %v6851_v11  ;;  %v10205_v37 = vpack.c.bf16 %v318_v0, %v310_v17 }
 0x1c9   :  { %v2401_v15 = vpop.f32.mrf.mxu3  ;;  %v2503_v5 = vadd.f32 %v2502_v54, %v2399_v26  ;;  %v2606_v50 = vpop.f32.mrf.mxu1  ;;  %v323_v26 = vld [vmem:[%s13710_s0 + $0x910] sm:$0xff]  ;;  %v8050_v54 = vld [vmem:[%s13709_s1 + $0x4] sm:$0xf] }
 0x1ca   :  { %v2402_v21 = vadd.f32 %v2401_v15, %v2298_v31  ;;  %v317_v31 = vld [vmem:[%s13710_s0 + $0x8e0] sm:$0xff]  ;;  %v332_v15 = vld [vmem:[%s13710_s0 + $0x958] sm:$0xff]  ;;  %2976 = vmatpush.bf16.msra.mxu1 %v6998_v53  ;;  %v10196_v1 = vpack.c.bf16 %v331_v47, %v323_v26  ;;  %14136 = vst [vmem:[#allocation121_spill] sm:$0xff] %v10205_v37 }
 0x1cb   :  { %v10157_v10 = vadd.f32 %v2606_v50, %v2503_v5  ;;  %2873 = vmatpush.bf16.msra.mxu0 %v6854_v2  ;;  %v6835_v5 = vld [vmem:[%s13709_s1 + $0x10] sm:$0xf0]  ;;  %v8082_v50 = vld [vmem:[%s13709_s1 + $0x104] sm:$0xf]  ;;  %v10198_v53 = vpack.c.bf16 %v317_v31, %v309_v59  ;;  %v10203_v41 = vpack.c.bf16 %v332_v15, %v324_v13 }
 0x1cc   :  { %v6838_v7 = vor.u32 %v8050_v54, %v6835_v5  ;;  %v6963_v2 = vld [vmem:[%s13709_s1 + $0x110] sm:$0xf0]  ;;  %v40_v54 = vld [vmem:[%s13710_s0 + $0x38] sm:$0xff] }
 0x1cd   :  { %14133 = vst [vmem:[#allocation118_spill] sm:$0xff] %v10157_v10  ;;  %v48_v5 = vld [vmem:[%s13710_s0 + $0x78] sm:$0xff] }
 0x1ce   :  { %v2299_v19 = vpop.f32.mrf.mxu2  ;;  %14134 = vst [vmem:[#allocation119_spill] sm:$0xff] %v10198_v53  ;;  %2977 = vmatpush.bf16.msra.mxu1 %v6982_v39  ;;  %v326_v39 = vld [vmem:[%s13710_s0 + $0x928] sm:$0xff] }
 0x1cf   :  { %v2300_v56 = vadd.f32 %v2299_v19, %v9656_v23  ;;  %14135 = vst [vmem:[#allocation120_spill] sm:$0xff] %v10203_v41  ;;  %v6966_v23 = vor.u32 %v8082_v50, %v6963_v2  ;;  %2874 = vmatpush.bf16.msra.mxu0 %v6838_v7  ;;  %v334_v19 = vld [vmem:[%s13710_s0 + $0x968] sm:$0xff] }
 0x1d0   :  { %v2505_v8 = vpop.f32.mrf.mxu0 }
 0x1d1   :  { %v2403_v11 = vpop.f32.mrf.mxu3  ;;  %v2506_v10 = vadd.f32 %v2505_v8, %v2402_v21  ;;  %v2609_v62 = vpop.f32.mrf.mxu1 }
 0x1d2   :  { %v2404_v57 = vadd.f32 %v2403_v11, %v2300_v56  ;;  %2978 = vmatpush.bf16.msra.mxu1 %v6966_v23  ;;  %v10245_v23 = vpack.c.bf16 %v334_v19, %v326_v39  ;;  %v8138_v19 = vld [vmem:[%s13709_s1 + $0x2c4] sm:$0xf] }
 0x1d3   :  { %v10207_v26 = vadd.f32 %v2609_v62, %v2506_v10  ;;  %2341 = vmatmul.bf16.gmra.mxu2 %v10196_v1  ;;  %2544 = vmatmul.bf16.gmra.mxu0 %v10198_v53  ;;  %v325_v62 = vld [vmem:[%s13710_s0 + $0x920] sm:$0xff] }
 0x1d4   :  { %2648 = vmatmul.bf16.gmra.mxu1 %v10205_v37  ;;  %v333_v10 = vld [vmem:[%s13710_s0 + $0x960] sm:$0xff]  ;;  %14139 = vst [vmem:[#allocation124_spill] sm:$0xff] %v10245_v23 }
 0x1d5   :  { %v10241_v7 = vpack.c.bf16 %v333_v10, %v325_v62 }
 0x1d6   :  { %2445 = vmatmul.bf16.gmra.mxu3 %v10203_v41  ;;  %v2302_v47 = vpop.f32.mrf.mxu2 }
 0x1d7   :  { %v2303_v13 = vadd.f32 %v2302_v47, %v9169_v36  ;;  %v39_v36 = vld [vmem:[%s13710_s0 + $0x30] sm:$0xff]  ;;  %14137 = vst [vmem:[#allocation122_spill] sm:$0xff] %v10241_v7  ;;  %v10247_v47 = vpack.c.bf16 %v48_v5, %v40_v54  ;;  %v8170_v5 = vld [vmem:[%s13709_s1 + $0x3c4] sm:$0xf] }
 0x1d8   :  { %v2507_v21 = vpop.f32.mrf.mxu0  ;;  %v7187_v54 = vld [vmem:[%s13709_s1 + $0x2d0] sm:$0xf0] }
 0x1d9   :  { %v2406_v59 = vpop.f32.mrf.mxu3  ;;  %v2508_v15 = vadd.f32 %v2507_v21, %v2404_v57  ;;  %v2611_v17 = vpop.f32.mrf.mxu1  ;;  %v47_v57 = vld [vmem:[%s13710_s0 + $0x70] sm:$0xff]  ;;  %14140 = vst [vmem:[#allocation125_spill] sm:$0xff] %v10247_v47 }
 0x1da   :  { %v2407_v31 = vadd.f32 %v2406_v59, %v2303_v13  ;;  %v10243_v2 = vpack.c.bf16 %v47_v57, %v39_v36 }
 0x1db   :  { %v10214_v0 = vadd.f32 %v2611_v17, %v2508_v15 }
 0x1dc   :  { %14138 = vst [vmem:[#allocation123_spill] sm:$0xff] %v10243_v2 }
 0x1de   :  { %v2304_v50 = vpop.f32.mrf.mxu2 }
 0x1df   :  { %v2305_v56 = vadd.f32 %v2304_v50, %v9207_v29  ;;  %v63_v50 = vld [vmem:[%s13710_s0 + $0xf0] sm:$0xff] }
 0x1e0   :  { %v2510_v8 = vpop.f32.mrf.mxu0 }
 0x1e1   :  { %v2408_v11 = vpop.f32.mrf.mxu3  ;;  %v2511_v59 = vadd.f32 %v2510_v8, %v2407_v31  ;;  %v2614_v21 = vpop.f32.mrf.mxu1  ;;  %v56_v8 = vld [vmem:[%s13710_s0 + $0xb8] sm:$0xff] }
 0x1e2   :  { %v2409_v13 = vadd.f32 %v2408_v11, %v2305_v56  ;;  %v7190_v56 = vor.u32 %v8138_v19, %v7187_v54  ;;  %v7315_v11 = vld [vmem:[%s13709_s1 + $0x3d0] sm:$0xf0] }
 0x1e3   :  { %v10249_v15 = vadd.f32 %v2614_v21, %v2511_v59  ;;  %2549 = vmatmul.bf16.gmra.mxu0 %v10241_v7  ;;  %2667 = vmatmul.bf16.vlgmr.msra.gmra.mxu2 %v10243_v2  ;;  %v7318_v59 = vor.u32 %v8170_v5, %v7315_v11 }
 0x1e4   :  { %2653 = vmatmul.bf16.gmra.mxu1 %v10245_v23  ;;  %3076 = vmatpush.bf16.msrb.mxu2 %v7190_v56 }
 0x1e5   :  { %3180 = vmatpush.bf16.msrb.mxu3 %v7318_v59  ;;  %v79_v59 = vld [vmem:[%s13710_s0 + $0x170] sm:$0xff] }
 0x1e6   :  { %2771 = vmatmul.bf16.vlgmr.msra.gmra.mxu3 %v10247_v47  ;;  %v2307_v29 = vpop.f32.mrf.mxu2 }
 0x1e7   :  { %v2308_v17 = vadd.f32 %v2307_v29, %v9217_v48  ;;  %v55_v48 = vld [vmem:[%s13710_s0 + $0xb0] sm:$0xff] }
 0x1e8   :  { %v2512_v10 = vpop.f32.mrf.mxu0 }
 0x1e9   :  { %v2411_v62 = vpop.f32.mrf.mxu3  ;;  %v2513_v36 = vadd.f32 %v2512_v10, %v2409_v13  ;;  %v2616_v57 = vpop.f32.mrf.mxu1  ;;  %v64_v13 = vld [vmem:[%s13710_s0 + $0xf8] sm:$0xff] }
 0x1ea   :  { %v2412_v39 = vadd.f32 %v2411_v62, %v2308_v17  ;;  %v10283_v62 = vpack.c.bf16 %v63_v50, %v55_v48 }
 0x1eb   :  { %v10256_v31 = vadd.f32 %v2616_v57, %v2513_v36  ;;  %v10285_v36 = vpack.c.bf16 %v64_v13, %v56_v8  ;;  %v71_v13 = vld [vmem:[%s13710_s0 + $0x130] sm:$0xff] }
 0x1ec   :  { %14141 = vst [vmem:[#allocation126_spill] sm:$0xff] %v10283_v62 }
 0x1ed   :  { %14142 = vst [vmem:[#allocation127_spill] sm:$0xff] %v10285_v36 }
 0x1ee   :  { %v2309_v21 = vpop.f32.mrf.mxu2 }
 0x1ef   :  { %v2310_v29 = vadd.f32 %v2309_v21, %v9267_v3  ;;  %v72_v21 = vld [vmem:[%s13710_s0 + $0x138] sm:$0xff] }
 0x1f0   :  { %v2515_v10 = vpop.f32.mrf.mxu0 }
 0x1f1   :  { %v2413_v17 = vpop.f32.mrf.mxu3  ;;  %v2516_v19 = vadd.f32 %v2515_v10, %v2412_v39  ;;  %v2619_v54 = vpop.f32.mrf.mxu1 }
 0x1f2   :  { %v2414_v57 = vadd.f32 %v2413_v17, %v2310_v29 }
 0x1f3   :  { %v10287_v47 = vadd.f32 %v2619_v54, %v2516_v19  ;;  %2672 = vmatmul.bf16.gmra.mxu2 %v10283_v62  ;;  %2875 = vmatmul.bf16.vlgmr.msra.gmra.mxu0 %v8671_v63 }
 0x1f4   :  { %2979 = vmatmul.bf16.vlgmr.msra.gmra.mxu1 %v8684_v4 }
 0x1f6   :  { %2776 = vmatmul.bf16.gmra.mxu3 %v10285_v36  ;;  %v2312_v3 = vpop.f32.mrf.mxu2 }
 0x1f7   :  { %v2313_v5 = vadd.f32 %v2312_v3, %v9277_v20  ;;  %v80_v20 = vld [vmem:[%s13710_s0 + $0x178] sm:$0xff] }
 0x1f8   :  { %v2517_v50 = vpop.f32.mrf.mxu0  ;;  %v10311_v54 = vpack.c.bf16 %v80_v20, %v72_v21 }
 0x1f9   :  { %v2416_v48 = vpop.f32.mrf.mxu3  ;;  %v2518_v11 = vadd.f32 %v2517_v50, %v2414_v57  ;;  %v2621_v8 = vpop.f32.mrf.mxu1  ;;  %v10309_v57 = vpack.c.bf16 %v79_v59, %v71_v13 }
 0x1fa   :  { %v2417_v56 = vadd.f32 %v2416_v48, %v2313_v5  ;;  %14144 = vst [vmem:[#allocation129_spill] sm:$0xff] %v10311_v54 }
 0x1fb   :  { %v10294_v39 = vadd.f32 %v2621_v8, %v2518_v11  ;;  %14143 = vst [vmem:[#allocation128_spill] sm:$0xff] %v10309_v57 }
 0x1fe   :  { %v2314_v29 = vpop.f32.mrf.mxu2 }
 0x1ff   :  { %v2315_v17 = vadd.f32 %v2314_v29, %v9315_v28  ;;  %v87_v29 = vld [vmem:[%s13710_s0 + $0x1b0] sm:$0xff] }
 0x200   :  { %v2520_v19 = vpop.f32.mrf.mxu0 }
 0x201   :  { %v2418_v10 = vpop.f32.mrf.mxu3  ;;  %v2521_v5 = vadd.f32 %v2520_v19, %v2417_v56  ;;  %v2624_v48 = vpop.f32.mrf.mxu1 }
 0x202   :  { %v2419_v3 = vadd.f32 %v2418_v10, %v2315_v17  ;;  %v95_v17 = vld [vmem:[%s13710_s0 + $0x1f0] sm:$0xff]  ;;  %v88_v10 = vld [vmem:[%s13710_s0 + $0x1b8] sm:$0xff] }
 0x203   :  { %v10313_v50 = vadd.f32 %v2624_v48, %v2521_v5  ;;  %2677 = vmatmul.bf16.gmra.mxu2 %v10309_v57  ;;  %2880 = vmatmul.bf16.gmra.mxu0 %v8728_v22  ;;  %v10335_v48 = vpack.c.bf16 %v95_v17, %v87_v29 }
 0x204   :  { %2984 = vmatmul.bf16.gmra.mxu1 %v8732_v24  ;;  %v7171_v24 = vld [vmem:[%s13709_s1 + $0x2b0] sm:$0xf0] }
 0x205   :  { %14145 = vst [vmem:[#allocation130_spill] sm:$0xff] %v10335_v48 }
 0x206   :  { %2781 = vmatmul.bf16.gmra.mxu3 %v10311_v54  ;;  %v2317_v28 = vpop.f32.mrf.mxu2 }
 0x207   :  { %v2318_v11 = vadd.f32 %v2317_v28, %v9325_v49  ;;  %v96_v49 = vld [vmem:[%s13710_s0 + $0x1f8] sm:$0xff] }
 0x208   :  { %v2522_v13 = vpop.f32.mrf.mxu0 }
 0x209   :  { %v2421_v8 = vpop.f32.mrf.mxu3  ;;  %v2523_v21 = vadd.f32 %v2522_v13, %v2419_v3  ;;  %v2626_v20 = vpop.f32.mrf.mxu1 }
 0x20a   :  { %v2422_v59 = vadd.f32 %v2421_v8, %v2318_v11  ;;  %v10337_v11 = vpack.c.bf16 %v96_v49, %v88_v10 }
 0x20b   :  { %v10320_v56 = vadd.f32 %v2626_v20, %v2523_v21  ;;  %v8134_v20 = vld [vmem:[%s13709_s1 + $0x2a4] sm:$0xf] }
 0x20c   :  { %14146 = vst [vmem:[#allocation131_spill] sm:$0xff] %v10337_v11  ;;  %v7174_v54 = vor.u32 %v8134_v20, %v7171_v24 }
 0x20e   :  { %v2319_v19 = vpop.f32.mrf.mxu2  ;;  %3077 = vmatpush.bf16.msrb.mxu2 %v7174_v54  ;;  %v104_v54 = vld [vmem:[%s13710_s0 + $0x238] sm:$0xff] }
 0x20f   :  { %v2320_v3 = vadd.f32 %v2319_v19, %v9363_v45  ;;  %v8166_v45 = vld [vmem:[%s13709_s1 + $0x3a4] sm:$0xf] }
 0x210   :  { %v2525_v28 = vpop.f32.mrf.mxu0 }
 0x211   :  { %v2423_v5 = vpop.f32.mrf.mxu3  ;;  %v2526_v13 = vadd.f32 %v2525_v28, %v2422_v59  ;;  %v2629_v21 = vpop.f32.mrf.mxu1  ;;  %v7299_v59 = vld [vmem:[%s13709_s1 + $0x3b0] sm:$0xf0] }
 0x212   :  { %v2424_v8 = vadd.f32 %v2423_v5, %v2320_v3  ;;  %v7302_v29 = vor.u32 %v8166_v45, %v7299_v59 }
 0x213   :  { %v10345_v22 = vadd.f32 %v2629_v21, %v2526_v13  ;;  %2682 = vmatmul.bf16.gmra.mxu2 %v10335_v48  ;;  %2885 = vmatmul.bf16.gmra.mxu0 %v8776_v40  ;;  %v103_v13 = vld [vmem:[%s13710_s0 + $0x230] sm:$0xff] }
 0x214   :  { %2989 = vmatmul.bf16.gmra.mxu1 %v8780_v42  ;;  %3181 = vmatpush.bf16.msrb.mxu3 %v7302_v29  ;;  %v111_v21 = vld [vmem:[%s13710_s0 + $0x270] sm:$0xff] }
 0x215   :  { %v10373_v59 = vpack.c.bf16 %v111_v21, %v103_v13 }
 0x216   :  { %2786 = vmatmul.bf16.gmra.mxu3 %v10337_v11  ;;  %v2322_v24 = vpop.f32.mrf.mxu2 }
 0x217   :  { %v2323_v17 = vadd.f32 %v2322_v24, %v9385_v34  ;;  %v112_v34 = vld [vmem:[%s13710_s0 + $0x278] sm:$0xff]  ;;  %14147 = vst [vmem:[#allocation132_spill] sm:$0xff] %v10373_v59 }
 0x218   :  { %v2527_v49 = vpop.f32.mrf.mxu0  ;;  %v10375_v24 = vpack.c.bf16 %v112_v34, %v104_v54 }
 0x219   :  { %v2426_v10 = vpop.f32.mrf.mxu3  ;;  %v2528_v3 = vadd.f32 %v2527_v49, %v2424_v8  ;;  %v2631_v5 = vpop.f32.mrf.mxu1 }
 0x21a   :  { %v2427_v19 = vadd.f32 %v2426_v10, %v2323_v17  ;;  %14148 = vst [vmem:[#allocation133_spill] sm:$0xff] %v10375_v24 }
 0x21b   :  { %v10358_v28 = vadd.f32 %v2631_v5, %v2528_v3 }
 0x21e   :  { %v2324_v8 = vpop.f32.mrf.mxu2 }
 0x21f   :  { %v2325_v20 = vadd.f32 %v2324_v8, %v9423_v61 }
 0x220   :  { %v2530_v29 = vpop.f32.mrf.mxu0 }
 0x221   :  { %v2428_v45 = vpop.f32.mrf.mxu3  ;;  %v2531_v10 = vadd.f32 %v2530_v29, %v2427_v19  ;;  %v2634_v49 = vpop.f32.mrf.mxu1  ;;  %v120_v29 = vld [vmem:[%s13710_s0 + $0x2b8] sm:$0xff] }
 0x222   :  { %v2429_v17 = vadd.f32 %v2428_v45, %v2325_v20  ;;  %v119_v20 = vld [vmem:[%s13710_s0 + $0x2b0] sm:$0xff] }
 0x223   :  { %v10377_v3 = vadd.f32 %v2634_v49, %v2531_v10  ;;  %2687 = vmatmul.bf16.gmra.mxu2 %v10373_v59  ;;  %2890 = vmatmul.bf16.gmra.mxu0 %v8824_v58  ;;  %v127_v45 = vld [vmem:[%s13710_s0 + $0x2f0] sm:$0xff] }
 0x224   :  { %2994 = vmatmul.bf16.gmra.mxu1 %v8828_v60  ;;  %v14161_v59 = vld [vmem:[#allocation28_spill] sm:$0xff] }
 0x226   :  { %2791 = vmatmul.bf16.gmra.mxu3 %v10375_v24  ;;  %v2327_v61 = vpop.f32.mrf.mxu2  ;;  %v14155_v24 = vld [vmem:[#allocation24_spill] sm:$0xff] }
 0x227   :  { %v2328_v5 = vadd.f32 %v2327_v61, %v9433_v51  ;;  %v128_v51 = vld [vmem:[%s13710_s0 + $0x2f8] sm:$0xff]  ;;  %v10399_v61 = vpack.c.bf16 %v127_v45, %v119_v20  ;;  %v7155_v20 = vld [vmem:[%s13709_s1 + $0x290] sm:$0xf0] }
 0x228   :  { %v2532_v21 = vpop.f32.mrf.mxu0 }
 0x229   :  { %v2431_v13 = vpop.f32.mrf.mxu3  ;;  %v2533_v34 = vadd.f32 %v2532_v21, %v2429_v17  ;;  %v2636_v8 = vpop.f32.mrf.mxu1  ;;  %14149 = vst [vmem:[#allocation134_spill] sm:$0xff] %v10399_v61 }
 0x22a   :  { %v2432_v54 = vadd.f32 %v2431_v13, %v2328_v5  ;;  %v10401_v13 = vpack.c.bf16 %v128_v51, %v120_v29 }
 0x22b   :  { %v10384_v19 = vadd.f32 %v2636_v8, %v2533_v34 }
 0x22c   :  { %14150 = vst [vmem:[#allocation135_spill] sm:$0xff] %v10401_v13 }
 0x22e   :  { %v2329_v17 = vpop.f32.mrf.mxu2 }
 0x22f   :  { %v2330_v10 = vadd.f32 %v2329_v17, %v9471_v25  ;;  %v8130_v25 = vld [vmem:[%s13709_s1 + $0x284] sm:$0xf] }
 0x230   :  { %v2535_v5 = vpop.f32.mrf.mxu0 }
 0x231   :  { %v2433_v49 = vpop.f32.mrf.mxu3  ;;  %v2536_v34 = vadd.f32 %v2535_v5, %v2432_v54  ;;  %v2639_v8 = vpop.f32.mrf.mxu1  ;;  %v7158_v54 = vor.u32 %v8130_v25, %v7155_v20  ;;  %v136_v25 = vld [vmem:[%s13710_s0 + $0x338] sm:$0xff] }
 0x232   :  { %v2434_v21 = vadd.f32 %v2433_v49, %v2330_v10  ;;  %v144_v20 = vld [vmem:[%s13710_s0 + $0x378] sm:$0xff] }
 0x233   :  { %v10403_v60 = vadd.f32 %v2639_v8, %v2536_v34  ;;  %2692 = vmatmul.bf16.gmra.mxu2 %v10399_v61  ;;  %2895 = vmatmul.bf16.gmra.mxu0 %v8872_v16  ;;  %v8162_v34 = vld [vmem:[%s13709_s1 + $0x384] sm:$0xf]  ;;  %v7283_v8 = vld [vmem:[%s13709_s1 + $0x390] sm:$0xf0] }
 0x234   :  { %2999 = vmatmul.bf16.gmra.mxu1 %v8876_v18  ;;  %3078 = vmatpush.bf16.msrb.mxu2 %v7158_v54  ;;  %v7286_v18 = vor.u32 %v8162_v34, %v7283_v8  ;;  %v14154_v61 = vld [vmem:[#allocation22_spill] sm:$0xff] }
 0x236   :  { %2796 = vmatmul.bf16.gmra.mxu3 %v10401_v13  ;;  %v2332_v45 = vpop.f32.mrf.mxu2 }
 0x237   :  { %v2333_v29 = vadd.f32 %v2332_v45, %v9487_v30  ;;  %v135_v30 = vld [vmem:[%s13710_s0 + $0x330] sm:$0xff]  ;;  %3182 = vmatpush.bf16.msrb.mxu3 %v7286_v18  ;;  %v14151_v45 = vld [vmem:[#allocation66_spill] sm:$0xff] }
 0x238   :  { %v2537_v17 = vpop.f32.mrf.mxu0 }
 0x239   :  { %v2436_v51 = vpop.f32.mrf.mxu3  ;;  %v2538_v49 = vadd.f32 %v2537_v17, %v2434_v21  ;;  %v2641_v5 = vpop.f32.mrf.mxu1  ;;  %v143_v21 = vld [vmem:[%s13710_s0 + $0x370] sm:$0xff] }
 0x23a   :  { %v2437_v10 = vadd.f32 %v2436_v51, %v2333_v29  ;;  %v10437_v17 = vpack.c.bf16 %v143_v21, %v135_v30 }
 0x23b   :  { %v10422_v13 = vadd.f32 %v2641_v5, %v2538_v49  ;;  %v10439_v5 = vpack.c.bf16 %v144_v20, %v136_v25 }
 0x23c   :  { %14152 = vst [vmem:[#allocation66_spill] sm:$0xff] %v10437_v17 }
 0x23d   :  { %14153 = vst [vmem:[#allocation136_spill] sm:$0xff] %v10439_v5 }
 0x23e   :  { %v2334_v54 = vpop.f32.mrf.mxu2 }
 0x23f   :  { %v2335_v29 = vadd.f32 %v2334_v54, %v14151_v45  ;;  %v14156_v45 = vld [vmem:[#allocation67_spill] sm:$0xff] }
 0x240   :  { %v2540_v49 = vpop.f32.mrf.mxu0 }
 0x241   :  { %v2438_v51 = vpop.f32.mrf.mxu3  ;;  %v2541_v8 = vadd.f32 %v2540_v49, %v2437_v10  ;;  %v2644_v18 = vpop.f32.mrf.mxu1  ;;  %v159_v49 = vld [vmem:[%s13710_s0 + $0x3f0] sm:$0xff] }
 0x242   :  { %v2439_v34 = vadd.f32 %v2438_v51, %v2335_v29  ;;  %v151_v51 = vld [vmem:[%s13710_s0 + $0x3b0] sm:$0xff] }
 0x243   :  { %v10441_v16 = vadd.f32 %v2644_v18, %v2541_v8  ;;  %2697 = vmatmul.bf16.gmra.mxu2 %v10437_v17  ;;  %2900 = vmatmul.bf16.gmra.mxu0 %v14154_v61  ;;  %v152_v8 = vld [vmem:[%s13710_s0 + $0x3b8] sm:$0xff]  ;;  %v14160_v17 = vld [vmem:[#allocation26_spill] sm:$0xff] }
 0x244   :  { %3004 = vmatmul.bf16.gmra.mxu1 %v14155_v24  ;;  %v160_v18 = vld [vmem:[%s13710_s0 + $0x3f8] sm:$0xff] }
 0x246   :  { %2801 = vmatmul.bf16.gmra.mxu3 %v10439_v5  ;;  %v2337_v54 = vpop.f32.mrf.mxu2 }
 0x247   :  { %v2338_v30 = vadd.f32 %v2337_v54, %v14156_v45 }
 0x248   :  { %v2542_v58 = vpop.f32.mrf.mxu0 }
 0x249   :  { %v2441_v21 = vpop.f32.mrf.mxu3  ;;  %v2543_v20 = vadd.f32 %v2542_v58, %v2439_v34  ;;  %v2646_v29 = vpop.f32.mrf.mxu1  ;;  %v14157_v34 = vld [vmem:[#allocation72_spill] sm:$0xff] }
 0x24a   :  { %v2442_v25 = vadd.f32 %v2441_v21, %v2338_v30  ;;  %v10463_v30 = vpack.c.bf16 %v159_v49, %v151_v51 }
 0x24b   :  { %v10448_v10 = vadd.f32 %v2646_v29, %v2543_v20  ;;  %v10465_v20 = vpack.c.bf16 %v160_v18, %v152_v8 }
 0x24c   :  { %14158 = vst [vmem:[#allocation67_spill] sm:$0xff] %v10463_v30 }
 0x24d   :  { %14159 = vst [vmem:[#allocation72_spill] sm:$0xff] %v10465_v20 }
 0x24e   :  { %v2339_v58 = vpop.f32.mrf.mxu2 }
 0x24f   :  { %v2340_v54 = vadd.f32 %v2339_v58, %v14157_v34  ;;  %v14162_v34 = vld [vmem:[#allocation73_spill] sm:$0xff] }
 0x250   :  { %v2545_v21 = vpop.f32.mrf.mxu0 }
 0x251   :  { %v2443_v45 = vpop.f32.mrf.mxu3  ;;  %v2546_v24 = vadd.f32 %v2545_v21, %v2442_v25  ;;  %v2649_v5 = vpop.f32.mrf.mxu1  ;;  %v7459_v21 = vld [vmem:[%s13709_s1 + $0x4f0] sm:$0xf0] }
 0x252   :  { %v2444_v29 = vadd.f32 %v2443_v45, %v2340_v54  ;;  %v8206_v45 = vld [vmem:[%s13709_s1 + $0x4e4] sm:$0xf] }
 0x253   :  { %v10467_v61 = vadd.f32 %v2649_v5, %v2546_v24  ;;  %2702 = vmatmul.bf16.gmra.mxu2 %v10463_v30  ;;  %2905 = vmatmul.bf16.gmra.mxu0 %v14160_v17  ;;  %v167_v24 = vld [vmem:[%s13710_s0 + $0x430] sm:$0xff] }
 0x254   :  { %3009 = vmatmul.bf16.gmra.mxu1 %v14161_v59  ;;  %v175_v5 = vld [vmem:[%s13710_s0 + $0x470] sm:$0xff] }
 0x255   :  { %v10507_v17 = vpack.c.bf16 %v175_v5, %v167_v24 }
 0x256   :  { %2806 = vmatmul.bf16.gmra.mxu3 %v10465_v20  ;;  %v2342_v58 = vpop.f32.mrf.mxu2 }
 0x257   :  { %v2343_v51 = vadd.f32 %v2342_v58, %v14162_v34  ;;  %v7139_v58 = vld [vmem:[%s13709_s1 + $0x270] sm:$0xf0]  ;;  %v8158_v34 = vld [vmem:[%s13709_s1 + $0x364] sm:$0xf]  ;;  %14163 = vst [vmem:[#allocation73_spill] sm:$0xff] %v10507_v17 }
 0x258   :  { %v2547_v42 = vpop.f32.mrf.mxu0 }
 0x259   :  { %v2446_v49 = vpop.f32.mrf.mxu3  ;;  %v2548_v18 = vadd.f32 %v2547_v42, %v2444_v29  ;;  %v2651_v54 = vpop.f32.mrf.mxu1  ;;  %v8126_v42 = vld [vmem:[%s13709_s1 + $0x264] sm:$0xf]  ;;  %v7462_v29 = vor.u32 %v8206_v45, %v7459_v21 }
 0x25a   :  { %v2447_v8 = vadd.f32 %v2446_v49, %v2343_v51  ;;  %v7267_v51 = vld [vmem:[%s13709_s1 + $0x370] sm:$0xf0]  ;;  %v168_v49 = vld [vmem:[%s13710_s0 + $0x438] sm:$0xff] }
 0x25b   :  { %v10480_v25 = vadd.f32 %v2651_v54, %v2548_v18  ;;  %v176_v18 = vld [vmem:[%s13710_s0 + $0x478] sm:$0xff]  ;;  %v7142_v54 = vor.u32 %v8126_v42, %v7139_v58  ;;  %v7270_v45 = vor.u32 %v8158_v34, %v7267_v51  ;;  %3283 = vmatpush.bf16.msrb.mxu0 %v7462_v29  ;;  %v14165_v42 = vld [vmem:[#allocation30_spill] sm:$0xff] }
 0x25c   :  { %v10509_v11 = vpack.c.bf16 %v176_v18, %v168_v49  ;;  %v14167_v18 = vld [vmem:[#allocation82_spill] sm:$0xff] }
 0x25d   :  { %3079 = vmatpush.bf16.msrb.mxu2 %v7142_v54  ;;  %3183 = vmatpush.bf16.msrb.mxu3 %v7270_v45 }
 0x25e   :  { %v2344_v21 = vpop.f32.mrf.mxu2  ;;  %14164 = vst [vmem:[#allocation137_spill] sm:$0xff] %v10509_v11 }
 0x25f   :  { %v2345_v59 = vadd.f32 %v2344_v21, %v9645_v38  ;;  %v14166_v38 = vld [vmem:[#allocation32_spill] sm:$0xff] }
 0x260   :  { %v2550_v30 = vpop.f32.mrf.mxu0 }
 0x261   :  { %v2448_v20 = vpop.f32.mrf.mxu3  ;;  %v2551_v48 = vadd.f32 %v2550_v30, %v2447_v8  ;;  %v2654_v57 = vpop.f32.mrf.mxu1  ;;  %v192_v8 = vld [vmem:[%s13710_s0 + $0x4f8] sm:$0xff] }
 0x262   :  { %v2449_v40 = vadd.f32 %v2448_v20, %v2345_v59  ;;  %v8482_v20 = vld [vmem:[%s13711_s2] sm:$0xf] }
 0x263   :  { %v10511_v4 = vadd.f32 %v2654_v57, %v2551_v48  ;;  %2707 = vmatmul.bf16.gmra.mxu2 %v10507_v17  ;;  %2910 = vmatmul.bf16.gmra.mxu0 %v14165_v42  ;;  %v183_v57 = vld [vmem:[%s13710_s0 + $0x4b0] sm:$0xff]  ;;  %v14175_v42 = vld [vmem:[#allocation38_spill] sm:$0xff] }
 0x264   :  { %3014 = vmatmul.bf16.gmra.mxu1 %v14166_v38  ;;  %v191_v48 = vld [vmem:[%s13710_s0 + $0x4f0] sm:$0xff] }
 0x265   :  { %v10538_v21 = vpack.c.bf16 %v191_v48, %v183_v57 }
 0x266   :  { %2811 = vmatmul.bf16.gmra.mxu3 %v10509_v11  ;;  %v2668_v24 = vpop.f32.mrf.mxu2  ;;  %v14170_v11 = vld [vmem:[#allocation34_spill] sm:$0xff] }
 0x267   :  { %v2669_v5 = vadd.f32 %v2668_v24, %v9691_v35  ;;  %v10529_v35 = vperm.slane %v8482_v20, 1  ;;  %14168 = vst [vmem:[#allocation82_spill] sm:$0xff] %v10538_v21 }
 0x268   :  { %v2552_v58 = vpop.f32.mrf.mxu0 }
 0x269   :  { %v2772_v29 = vpop.f32.mrf.mxu3  ;;  %v2553_v51 = vadd.f32 %v2552_v58, %v2449_v40  ;;  %v2656_v59 = vpop.f32.mrf.mxu1  ;;  %v184_v40 = vld [vmem:[%s13710_s0 + $0x4b8] sm:$0xff] }
 0x26a   :  { %v2773_v34 = vadd.f32 %v2772_v29, %v2669_v5  ;;  %v10540_v5 = vpack.c.bf16 %v192_v8, %v184_v40 }
 0x26b   :  { %v10518_v30 = vadd.f32 %v2656_v59, %v2553_v51 }
 0x26c   :  { %14169 = vst [vmem:[#allocation138_spill] sm:$0xff] %v10540_v5  ;;  %v5363_v59 = vmax.f32 %v2773_v34, 0.0 }
 0x26e   :  { %v2670_v49 = vpop.f32.mrf.mxu2 }
 0x26f   :  { %v2671_v54 = vadd.f32 %v2670_v49, %v14167_v18  ;;  %v14171_v49 = vld [vmem:[#allocation36_spill] sm:$0xff] }
 0x270   :  { %v2876_v24 = vpop.f32.mrf.mxu0 }
 0x271   :  { %v2774_v45 = vpop.f32.mrf.mxu3  ;;  %v2877_v58 = vadd.f32 %v2876_v24, %v10529_v35  ;;  %v2980_v51 = vpop.f32.mrf.mxu1 }
 0x272   :  { %v2775_v29 = vadd.f32 %v2774_v45, %v2671_v54 }
 0x273   :  { %v10543_v38 = vadd.f32 %v2980_v51, %v2877_v58  ;;  %2712 = vmatmul.bf16.gmra.mxu2 %v10538_v21  ;;  %2915 = vmatmul.bf16.gmra.mxu0 %v14170_v11  ;;  %v7443_v58 = vld [vmem:[%s13709_s1 + $0x4d0] sm:$0xf0] }
 0x274   :  { %v5367_v20 = vmax.f32 %v2775_v29, 0.0  ;;  %3019 = vmatmul.bf16.gmra.mxu1 %v14171_v49  ;;  %v8202_v29 = vld [vmem:[%s13709_s1 + $0x4c4] sm:$0xf]  ;;  %v207_v51 = vld [vmem:[%s13710_s0 + $0x570] sm:$0xff] }
 0x276   :  { %2816 = vmatmul.bf16.gmra.mxu3 %v10540_v5  ;;  %v10549_v57 = vpack.c.bf16 %v5367_v20, %v5363_v59  ;;  %v2673_v48 = vpop.f32.mrf.mxu2  ;;  %v7446_v59 = vor.u32 %v8202_v29, %v7443_v58  ;;  %v200_v20 = vld [vmem:[%s13710_s0 + $0x538] sm:$0xff] }
 0x277   :  { %v2674_v40 = vadd.f32 %v2673_v48, %v9739_v9  ;;  %v199_v9 = vld [vmem:[%s13710_s0 + $0x530] sm:$0xff]  ;;  %v208_v48 = vld [vmem:[%s13710_s0 + $0x578] sm:$0xff] }
 0x278   :  { %14172 = vst [vmem:[#allocation139_spill] sm:$0xff] %v10549_v57  ;;  %v2878_v18 = vpop.f32.mrf.mxu0  ;;  %3284 = vmatpush.bf16.msrb.mxu0 %v7446_v59  ;;  %v10576_v57 = vpack.c.bf16 %v208_v48, %v200_v20  ;;  %v7251_v59 = vld [vmem:[%s13709_s1 + $0x350] sm:$0xf0] }
 0x279   :  { %v2777_v8 = vpop.f32.mrf.mxu3  ;;  %v2879_v34 = vadd.f32 %v2878_v18, %v10529_v35  ;;  %v2982_v45 = vpop.f32.mrf.mxu1 }
 0x27a   :  { %v2778_v54 = vadd.f32 %v2777_v8, %v2674_v40  ;;  %14174 = vst [vmem:[#allocation141_spill] sm:$0xff] %v10576_v57 }
 0x27b   :  { %v10553_v24 = vadd.f32 %v2982_v45, %v2879_v34  ;;  %v10574_v34 = vpack.c.bf16 %v207_v51, %v199_v9  ;;  %v7123_v9 = vld [vmem:[%s13709_s1 + $0x250] sm:$0xf0] }
 0x27c   :  { %v5371_v5 = vmax.f32 %v2778_v54, 0.0  ;;  %v14176_v51 = vld [vmem:[#allocation40_spill] sm:$0xff] }
 0x27d   :  { %14173 = vst [vmem:[#allocation140_spill] sm:$0xff] %v10574_v34 }
 0x27e   :  { %v2675_v40 = vpop.f32.mrf.mxu2 }
 0x27f   :  { %v2676_v8 = vadd.f32 %v2675_v40, %v9758_v27  ;;  %v8122_v27 = vld [vmem:[%s13709_s1 + $0x244] sm:$0xf] }
 0x280   :  { %v2881_v45 = vpop.f32.mrf.mxu0  ;;  %v7126_v54 = vor.u32 %v8122_v27, %v7123_v9 }
 0x281   :  { %v2779_v18 = vpop.f32.mrf.mxu3  ;;  %v2882_v29 = vadd.f32 %v2881_v45, %v10529_v35  ;;  %v2985_v58 = vpop.f32.mrf.mxu1 }
 0x282   :  { %v2780_v49 = vadd.f32 %v2779_v18, %v2676_v8  ;;  %3080 = vmatpush.bf16.msrb.mxu2 %v7126_v54 }
 0x283   :  { %v10579_v21 = vadd.f32 %v2985_v58, %v2882_v29  ;;  %2717 = vmatmul.bf16.gmra.mxu2 %v10574_v34  ;;  %2920 = vmatmul.bf16.gmra.mxu0 %v14175_v42  ;;  %v14180_v42 = vld [vmem:[#allocation3_spill] sm:$0xff] }
 0x284   :  { %v5375_v11 = vmax.f32 %v2780_v49, 0.0  ;;  %3024 = vmatmul.bf16.gmra.mxu1 %v14176_v51  ;;  %v8154_v49 = vld [vmem:[%s13709_s1 + $0x344] sm:$0xf]  ;;  %v215_v51 = vld [vmem:[%s13710_s0 + $0x5b0] sm:$0xff] }
 0x285   :  { %v7254_v20 = vor.u32 %v8154_v49, %v7251_v59 }
 0x286   :  { %2821 = vmatmul.bf16.gmra.mxu3 %v10576_v57  ;;  %v10597_v48 = vpack.c.bf16 %v5375_v11, %v5371_v5  ;;  %v2678_v40 = vpop.f32.mrf.mxu2  ;;  %v223_v11 = vld [vmem:[%s13710_s0 + $0x5f0] sm:$0xff]  ;;  %v224_v5 = vld [vmem:[%s13710_s0 + $0x5f8] sm:$0xff] }
 0x287   :  { %v2679_v8 = vadd.f32 %v2678_v40, %v9793_v14  ;;  %3184 = vmatpush.bf16.msrb.mxu3 %v7254_v20  ;;  %v216_v14 = vld [vmem:[%s13710_s0 + $0x5b8] sm:$0xff]  ;;  %v10616_v20 = vpack.c.bf16 %v223_v11, %v215_v51 }
 0x288   :  { %14177 = vst [vmem:[#allocation142_spill] sm:$0xff] %v10597_v48  ;;  %v2883_v45 = vpop.f32.mrf.mxu0 }
 0x289   :  { %v2782_v18 = vpop.f32.mrf.mxu3  ;;  %v2884_v58 = vadd.f32 %v2883_v45, %v10529_v35  ;;  %v2987_v27 = vpop.f32.mrf.mxu1  ;;  %14178 = vst [vmem:[#allocation143_spill] sm:$0xff] %v10616_v20 }
 0x28a   :  { %v2783_v29 = vadd.f32 %v2782_v18, %v2679_v8  ;;  %v10618_v8 = vpack.c.bf16 %v224_v5, %v216_v14 }
 0x28b   :  { %v10601_v9 = vadd.f32 %v2987_v27, %v2884_v58 }
 0x28c   :  { %14179 = vst [vmem:[#allocation144_spill] sm:$0xff] %v10618_v8  ;;  %v5379_v27 = vmax.f32 %v2783_v29, 0.0 }
 0x28e   :  { %v2680_v54 = vpop.f32.mrf.mxu2 }
 0x28f   :  { %v2681_v49 = vadd.f32 %v2680_v54, %v9800_v6  ;;  %v14181_v6 = vld [vmem:[#allocation5_spill] sm:$0xff] }
 0x290   :  { %v2886_v40 = vpop.f32.mrf.mxu0 }
 0x291   :  { %v2784_v59 = vpop.f32.mrf.mxu3  ;;  %v2887_v45 = vadd.f32 %v2886_v40, %v10529_v35  ;;  %v2990_v58 = vpop.f32.mrf.mxu1 }
 0x292   :  { %v2785_v18 = vadd.f32 %v2784_v59, %v2681_v49 }
 0x293   :  { %v10621_v57 = vadd.f32 %v2990_v58, %v2887_v45  ;;  %2722 = vmatmul.bf16.gmra.mxu2 %v10616_v20  ;;  %2925 = vmatmul.bf16.gmra.mxu0 %v14180_v42  ;;  %v240_v45 = vld [vmem:[%s13710_s0 + $0x678] sm:$0xff]  ;;  %v14185_v20 = vld [vmem:[#allocation7_spill] sm:$0xff] }
 0x294   :  { %v5383_v48 = vmax.f32 %v2785_v18, 0.0  ;;  %3029 = vmatmul.bf16.gmra.mxu1 %v14181_v6  ;;  %v231_v18 = vld [vmem:[%s13710_s0 + $0x630] sm:$0xff] }
 0x296   :  { %2826 = vmatmul.bf16.gmra.mxu3 %v10618_v8  ;;  %v10627_v51 = vpack.c.bf16 %v5383_v48, %v5379_v27  ;;  %v2683_v11 = vpop.f32.mrf.mxu2  ;;  %v239_v48 = vld [vmem:[%s13710_s0 + $0x670] sm:$0xff] }
 0x297   :  { %v2684_v14 = vadd.f32 %v2683_v11, %v9835_v44  ;;  %v232_v44 = vld [vmem:[%s13710_s0 + $0x638] sm:$0xff] }
 0x298   :  { %14182 = vst [vmem:[#allocation145_spill] sm:$0xff] %v10627_v51  ;;  %v2888_v54 = vpop.f32.mrf.mxu0 }
 0x299   :  { %v2787_v5 = vpop.f32.mrf.mxu3  ;;  %v2889_v29 = vadd.f32 %v2888_v54, %v10529_v35  ;;  %v2992_v59 = vpop.f32.mrf.mxu1  ;;  %v10648_v54 = vpack.c.bf16 %v240_v45, %v232_v44 }
 0x29a   :  { %v2788_v49 = vadd.f32 %v2787_v5, %v2684_v14  ;;  %v10646_v14 = vpack.c.bf16 %v239_v48, %v231_v18  ;;  %v8198_v18 = vld [vmem:[%s13709_s1 + $0x4a4] sm:$0xf]  ;;  %v7427_v48 = vld [vmem:[%s13709_s1 + $0x4b0] sm:$0xf0] }
 0x29b   :  { %v10631_v40 = vadd.f32 %v2992_v59, %v2889_v29  ;;  %14184 = vst [vmem:[#allocation147_spill] sm:$0xff] %v10648_v54 }
 0x29c   :  { %14183 = vst [vmem:[#allocation146_spill] sm:$0xff] %v10646_v14  ;;  %v5387_v6 = vmax.f32 %v2788_v49, 0.0  ;;  %v7430_v49 = vor.u32 %v8198_v18, %v7427_v48  ;;  %v8150_v48 = vld [vmem:[%s13709_s1 + $0x324] sm:$0xf] }
 0x29e   :  { %v2685_v58 = vpop.f32.mrf.mxu2  ;;  %3285 = vmatpush.bf16.msrb.mxu0 %v7430_v49  ;;  %v7235_v49 = vld [vmem:[%s13709_s1 + $0x330] sm:$0xf0] }
 0x29f   :  { %v2686_v27 = vadd.f32 %v2685_v58, %v9857_v52  ;;  %v14186_v52 = vld [vmem:[#allocation9_spill] sm:$0xff] }
 0x2a0   :  { %v2891_v5 = vpop.f32.mrf.mxu0 }
 0x2a1   :  { %v2789_v11 = vpop.f32.mrf.mxu3  ;;  %v2892_v59 = vadd.f32 %v2891_v5, %v10529_v35  ;;  %v2995_v51 = vpop.f32.mrf.mxu1 }
 0x2a2   :  { %v2790_v29 = vadd.f32 %v2789_v11, %v2686_v27 }
 0x2a3   :  { %v10651_v42 = vadd.f32 %v2995_v51, %v2892_v59  ;;  %2727 = vmatmul.bf16.gmra.mxu2 %v10646_v14  ;;  %2930 = vmatmul.bf16.gmra.mxu0 %v14185_v20 }
 0x2a4   :  { %v5391_v8 = vmax.f32 %v2790_v29, 0.0  ;;  %3034 = vmatmul.bf16.gmra.mxu1 %v14186_v52  ;;  %v247_v52 = vld [vmem:[%s13710_s0 + $0x6b0] sm:$0xff] }
 0x2a6   :  { %2831 = vmatmul.bf16.gmra.mxu3 %v10648_v54  ;;  %v10663_v44 = vpack.c.bf16 %v5391_v8, %v5387_v6  ;;  %v2688_v51 = vpop.f32.mrf.mxu2  ;;  %v8118_v8 = vld [vmem:[%s13709_s1 + $0x224] sm:$0xf]  ;;  %v255_v6 = vld [vmem:[%s13710_s0 + $0x6f0] sm:$0xff] }
 0x2a7   :  { %v2689_v45 = vadd.f32 %v2688_v51, %v9895_v12  ;;  %v7107_v12 = vld [vmem:[%s13709_s1 + $0x230] sm:$0xf0]  ;;  %v248_v51 = vld [vmem:[%s13710_s0 + $0x6b8] sm:$0xff] }
 0x2a8   :  { %14187 = vst [vmem:[#allocation148_spill] sm:$0xff] %v10663_v44  ;;  %v2893_v27 = vpop.f32.mrf.mxu0  ;;  %v7110_v18 = vor.u32 %v8118_v8, %v7107_v12  ;;  %v10694_v8 = vpack.c.bf16 %v255_v6, %v247_v52 }
 0x2a9   :  { %v2792_v58 = vpop.f32.mrf.mxu3  ;;  %v2894_v5 = vadd.f32 %v2893_v27, %v10529_v35  ;;  %v2997_v29 = vpop.f32.mrf.mxu1 }
 0x2aa   :  { %v2793_v11 = vadd.f32 %v2792_v58, %v2689_v45  ;;  %v256_v45 = vld [vmem:[%s13710_s0 + $0x6f8] sm:$0xff]  ;;  %v7238_v58 = vor.u32 %v8150_v48, %v7235_v49  ;;  %3081 = vmatpush.bf16.msrb.mxu2 %v7110_v18  ;;  %14188 = vst [vmem:[#allocation149_spill] sm:$0xff] %v10694_v8  ;;  %v14190_v18 = vld [vmem:[#allocation11_spill] sm:$0xff] }
 0x2ab   :  { %v10667_v59 = vadd.f32 %v2997_v29, %v2894_v5  ;;  %v10696_v44 = vpack.c.bf16 %v256_v45, %v248_v51  ;;  %v14193_v48 = vld [vmem:[#allocation103_spill] sm:$0xff] }
 0x2ac   :  { %3185 = vmatpush.bf16.msrb.mxu3 %v7238_v58  ;;  %v5395_v34 = vmax.f32 %v2793_v11, 0.0  ;;  %v263_v11 = vld [vmem:[%s13710_s0 + $0x730] sm:$0xff] }
 0x2ad   :  { %14189 = vst [vmem:[#allocation150_spill] sm:$0xff] %v10696_v44 }
 0x2ae   :  { %v2690_v27 = vpop.f32.mrf.mxu2 }
 0x2af   :  { %v2691_v5 = vadd.f32 %v2690_v27, %v9902_v55  ;;  %v14191_v55 = vld [vmem:[#allocation13_spill] sm:$0xff] }
 0x2b0   :  { %v2896_v12 = vpop.f32.mrf.mxu0  ;;  %v272_v27 = vld [vmem:[%s13710_s0 + $0x778] sm:$0xff] }
 0x2b1   :  { %v2794_v29 = vpop.f32.mrf.mxu3  ;;  %v2897_v20 = vadd.f32 %v2896_v12, %v10529_v35  ;;  %v3000_v14 = vpop.f32.mrf.mxu1 }
 0x2b2   :  { %v2795_v54 = vadd.f32 %v2794_v29, %v2691_v5  ;;  %v14194_v29 = vld [vmem:[#allocation104_spill] sm:$0xff] }
 0x2b3   :  { %v10699_v36 = vadd.f32 %v3000_v14, %v2897_v20  ;;  %2732 = vmatmul.bf16.gmra.mxu2 %v10694_v8  ;;  %2935 = vmatmul.bf16.gmra.mxu0 %v14190_v18  ;;  %v14197_v18 = vld [vmem:[#allocation15_spill] sm:$0xff] }
 0x2b4   :  { %v5399_v17 = vmax.f32 %v2795_v54, 0.0  ;;  %3039 = vmatmul.bf16.gmra.mxu1 %v14191_v55 }
 0x2b6   :  { %2836 = vmatmul.bf16.gmra.mxu3 %v10696_v44  ;;  %v10705_v52 = vpack.c.bf16 %v5399_v17, %v5395_v34  ;;  %v2693_v6 = vpop.f32.mrf.mxu2  ;;  %v271_v17 = vld [vmem:[%s13710_s0 + $0x770] sm:$0xff]  ;;  %v264_v34 = vld [vmem:[%s13710_s0 + $0x738] sm:$0xff] }
 0x2b7   :  { %v2694_v49 = vadd.f32 %v2693_v6, %v14193_v48  ;;  %v10724_v48 = vpack.c.bf16 %v271_v17, %v263_v11 }
 0x2b8   :  { %14192 = vst [vmem:[#allocation151_spill] sm:$0xff] %v10705_v52  ;;  %v2898_v45 = vpop.f32.mrf.mxu0 }
 0x2b9   :  { %v2797_v51 = vpop.f32.mrf.mxu3  ;;  %v2899_v54 = vadd.f32 %v2898_v45, %v10529_v35  ;;  %v3002_v20 = vpop.f32.mrf.mxu1  ;;  %14195 = vst [vmem:[#allocation103_spill] sm:$0xff] %v10724_v48 }
 0x2ba   :  { %v2798_v58 = vadd.f32 %v2797_v51, %v2694_v49  ;;  %v10726_v51 = vpack.c.bf16 %v272_v27, %v264_v34 }
 0x2bb   :  { %v10709_v14 = vadd.f32 %v3002_v20, %v2899_v54 }
 0x2bc   :  { %14196 = vst [vmem:[#allocation104_spill] sm:$0xff] %v10726_v51  ;;  %v5403_v52 = vmax.f32 %v2798_v58, 0.0 }
 0x2be   :  { %v2695_v5 = vpop.f32.mrf.mxu2 }
 0x2bf   :  { %v2696_v12 = vadd.f32 %v2695_v5, %v14194_v29  ;;  %v14198_v5 = vld [vmem:[#allocation17_spill] sm:$0xff] }
 0x2c0   :  { %v2901_v49 = vpop.f32.mrf.mxu0 }
 0x2c1   :  { %v2799_v6 = vpop.f32.mrf.mxu3  ;;  %v2902_v54 = vadd.f32 %v2901_v49, %v10529_v35  ;;  %v3005_v20 = vpop.f32.mrf.mxu1 }
 0x2c2   :  { %v2800_v45 = vadd.f32 %v2799_v6, %v2696_v12 }
 0x2c3   :  { %v10729_v44 = vadd.f32 %v3005_v20, %v2902_v54  ;;  %2737 = vmatmul.bf16.gmra.mxu2 %v10724_v48  ;;  %2940 = vmatmul.bf16.gmra.mxu0 %v14197_v18  ;;  %v8114_v20 = vld [vmem:[%s13709_s1 + $0x204] sm:$0xf] }
 0x2c4   :  { %v5407_v55 = vmax.f32 %v2800_v45, 0.0  ;;  %3044 = vmatmul.bf16.gmra.mxu1 %v14198_v5  ;;  %v279_v45 = vld [vmem:[%s13710_s0 + $0x7b0] sm:$0xff] }
 0x2c6   :  { %2841 = vmatmul.bf16.gmra.mxu3 %v10726_v51  ;;  %v10735_v11 = vpack.c.bf16 %v5407_v55, %v5403_v52  ;;  %v2698_v17 = vpop.f32.mrf.mxu2  ;;  %v8194_v55 = vld [vmem:[%s13709_s1 + $0x484] sm:$0xf]  ;;  %v287_v52 = vld [vmem:[%s13710_s0 + $0x7f0] sm:$0xff] }
 0x2c7   :  { %v2699_v34 = vadd.f32 %v2698_v17, %v9997_v32  ;;  %v7411_v32 = vld [vmem:[%s13709_s1 + $0x490] sm:$0xf0] }
 0x2c8   :  { %14199 = vst [vmem:[#allocation152_spill] sm:$0xff] %v10735_v11  ;;  %v2903_v29 = vpop.f32.mrf.mxu0  ;;  %v7414_v54 = vor.u32 %v8194_v55, %v7411_v32  ;;  %v7091_v17 = vld [vmem:[%s13709_s1 + $0x210] sm:$0xf0]  ;;  %v10766_v32 = vpack.c.bf16 %v287_v52, %v279_v45 }
 0x2c9   :  { %v2802_v27 = vpop.f32.mrf.mxu3  ;;  %v2904_v58 = vadd.f32 %v2903_v29, %v10529_v35  ;;  %v3007_v6 = vpop.f32.mrf.mxu1  ;;  %v7094_v29 = vor.u32 %v8114_v20, %v7091_v17  ;;  %v7219_v45 = vld [vmem:[%s13709_s1 + $0x310] sm:$0xf0] }
 0x2ca   :  { %v2803_v12 = vadd.f32 %v2802_v27, %v2699_v34  ;;  %v280_v34 = vld [vmem:[%s13710_s0 + $0x7b8] sm:$0xff]  ;;  %3286 = vmatpush.bf16.msrb.mxu0 %v7414_v54  ;;  %14200 = vst [vmem:[#allocation153_spill] sm:$0xff] %v10766_v32  ;;  %v14202_v54 = vld [vmem:[#allocation19_spill] sm:$0xff] }
 0x2cb   :  { %v10739_v49 = vadd.f32 %v3007_v6, %v2904_v58  ;;  %v288_v27 = vld [vmem:[%s13710_s0 + $0x7f8] sm:$0xff]  ;;  %3082 = vmatpush.bf16.msrb.mxu2 %v7094_v29 }
 0x2cc   :  { %v10768_v5 = vpack.c.bf16 %v288_v27, %v280_v34  ;;  %v5411_v8 = vmax.f32 %v2803_v12, 0.0 }
 0x2ce   :  { %v2700_v58 = vpop.f32.mrf.mxu2  ;;  %14201 = vst [vmem:[#allocation154_spill] sm:$0xff] %v10768_v5 }
 0x2cf   :  { %v2701_v6 = vadd.f32 %v2700_v58, %v10004_v43  ;;  %v8146_v43 = vld [vmem:[%s13709_s1 + $0x304] sm:$0xf]  ;;  %v295_v58 = vld [vmem:[%s13710_s0 + $0x830] sm:$0xff] }
 0x2d0   :  { %v2906_v11 = vpop.f32.mrf.mxu0  ;;  %v7222_v12 = vor.u32 %v8146_v43, %v7219_v45 }
 0x2d1   :  { %v2804_v55 = vpop.f32.mrf.mxu3  ;;  %v2907_v18 = vadd.f32 %v2906_v11, %v10529_v35  ;;  %v3010_v48 = vpop.f32.mrf.mxu1  ;;  %v14203_v11 = vld [vmem:[#allocation21_spill] sm:$0xff] }
 0x2d2   :  { %v2805_v51 = vadd.f32 %v2804_v55, %v2701_v6  ;;  %3186 = vmatpush.bf16.msrb.mxu3 %v7222_v12 }
 0x2d3   :  { %v10771_v62 = vadd.f32 %v3010_v48, %v2907_v18  ;;  %2742 = vmatmul.bf16.gmra.mxu2 %v10766_v32  ;;  %2945 = vmatmul.bf16.gmra.mxu0 %v14202_v54  ;;  %v8190_v54 = vld [vmem:[%s13709_s1 + $0x464] sm:$0xf] }
 0x2d4   :  { %v5415_v63 = vmax.f32 %v2805_v51, 0.0  ;;  %3049 = vmatmul.bf16.gmra.mxu1 %v14203_v11 }
 0x2d6   :  { %2846 = vmatmul.bf16.gmra.mxu3 %v10768_v5  ;;  %v10783_v51 = vpack.c.bf16 %v5415_v63, %v5411_v8  ;;  %v2703_v18 = vpop.f32.mrf.mxu2  ;;  %v303_v63 = vld [vmem:[%s13710_s0 + $0x870] sm:$0xff]  ;;  %v304_v8 = vld [vmem:[%s13710_s0 + $0x878] sm:$0xff] }
 0x2d7   :  { %v2704_v48 = vadd.f32 %v2703_v18, %v10039_v46  ;;  %v296_v46 = vld [vmem:[%s13710_s0 + $0x838] sm:$0xff]  ;;  %v10802_v45 = vpack.c.bf16 %v303_v63, %v295_v58  ;;  %v14207_v58 = vld [vmem:[#allocation23_spill] sm:$0xff] }
 0x2d8   :  { %14204 = vst [vmem:[#allocation155_spill] sm:$0xff] %v10783_v51  ;;  %v2908_v20 = vpop.f32.mrf.mxu0  ;;  %v10804_v18 = vpack.c.bf16 %v304_v8, %v296_v46  ;;  %v14208_v46 = vld [vmem:[#allocation25_spill] sm:$0xff] }
 0x2d9   :  { %v2807_v52 = vpop.f32.mrf.mxu3  ;;  %v2909_v34 = vadd.f32 %v2908_v20, %v10529_v35  ;;  %v3012_v27 = vpop.f32.mrf.mxu1  ;;  %14205 = vst [vmem:[#allocation156_spill] sm:$0xff] %v10802_v45 }
 0x2da   :  { %v2808_v17 = vadd.f32 %v2807_v52, %v2704_v48  ;;  %14206 = vst [vmem:[#allocation157_spill] sm:$0xff] %v10804_v18 }
 0x2db   :  { %v10787_v29 = vadd.f32 %v3012_v27, %v2909_v34  ;;  %v8238_v34 = vld [vmem:[%s13709_s1 + $0x5e4] sm:$0xf]  ;;  %v7587_v27 = vld [vmem:[%s13709_s1 + $0x5f0] sm:$0xf0] }
 0x2dc   :  { %v5419_v51 = vmax.f32 %v2808_v17, 0.0  ;;  %v7590_v63 = vor.u32 %v8238_v34, %v7587_v27  ;;  %v8234_v17 = vld [vmem:[%s13709_s1 + $0x5c4] sm:$0xf] }
 0x2de   :  { %v2705_v6 = vpop.f32.mrf.mxu2  ;;  %3387 = vmatpush.bf16.msrb.mxu1 %v7590_v63 }
 0x2df   :  { %v2706_v55 = vadd.f32 %v2705_v6, %v10064_v33 }
 0x2e0   :  { %v2911_v12 = vpop.f32.mrf.mxu0 }
 0x2e1   :  { %v2809_v43 = vpop.f32.mrf.mxu3  ;;  %v2912_v52 = vadd.f32 %v2911_v12, %v10529_v35  ;;  %v3015_v20 = vpop.f32.mrf.mxu1  ;;  %v14210_v12 = vld [vmem:[#allocation117_spill] sm:$0xff] }
 0x2e2   :  { %v2810_v48 = vadd.f32 %v2809_v43, %v2706_v55  ;;  %v7571_v43 = vld [vmem:[%s13709_s1 + $0x5d0] sm:$0xf0] }
 0x2e3   :  { %v10813_v6 = vadd.f32 %v3015_v20, %v2912_v52  ;;  %2747 = vmatmul.bf16.gmra.mxu2 %v10802_v45  ;;  %2950 = vmatmul.bf16.gmra.mxu0 %v14207_v58  ;;  %v7574_v20 = vor.u32 %v8234_v17, %v7571_v43  ;;  %v319_v17 = vld [vmem:[%s13710_s0 + $0x8f0] sm:$0xff]  ;;  %v312_v43 = vld [vmem:[%s13710_s0 + $0x8b8] sm:$0xff] }
 0x2e4   :  { %v5423_v33 = vmax.f32 %v2810_v48, 0.0  ;;  %3054 = vmatmul.bf16.gmra.mxu1 %v14208_v46 }
 0x2e5   :  { %3388 = vmatpush.bf16.msrb.mxu1 %v7574_v20  ;;  %v14211_v20 = vld [vmem:[#allocation118_spill] sm:$0xff] }
 0x2e6   :  { %2851 = vmatmul.bf16.gmra.mxu3 %v10804_v18  ;;  %v10819_v8 = vpack.c.bf16 %v5423_v33, %v5419_v51  ;;  %v2708_v55 = vpop.f32.mrf.mxu2  ;;  %v8230_v51 = vld [vmem:[%s13709_s1 + $0x5a4] sm:$0xf]  ;;  %v7555_v33 = vld [vmem:[%s13709_s1 + $0x5b0] sm:$0xf0] }
 0x2e7   :  { %v2709_v48 = vadd.f32 %v2708_v55, %v14210_v12  ;;  %v7558_v18 = vor.u32 %v8230_v51, %v7555_v33  ;;  %v311_v55 = vld [vmem:[%s13710_s0 + $0x8b0] sm:$0xff]  ;;  %v320_v12 = vld [vmem:[%s13710_s0 + $0x8f8] sm:$0xff] }
 0x2e8   :  { %14209 = vst [vmem:[#allocation158_spill] sm:$0xff] %v10819_v8  ;;  %v2913_v34 = vpop.f32.mrf.mxu0  ;;  %v10856_v51 = vpack.c.bf16 %v319_v17, %v311_v55  ;;  %v10858_v45 = vpack.c.bf16 %v320_v12, %v312_v43  ;;  %v8222_v55 = vld [vmem:[%s13709_s1 + $0x564] sm:$0xf] }
 0x2e9   :  { %v2812_v52 = vpop.f32.mrf.mxu3  ;;  %v2914_v46 = vadd.f32 %v2913_v34, %v10529_v35  ;;  %v3017_v63 = vpop.f32.mrf.mxu1  ;;  %3389 = vmatpush.bf16.msrb.mxu1 %v7558_v18 }
 0x2ea   :  { %v2813_v27 = vadd.f32 %v2812_v52, %v2709_v48  ;;  %v8226_v48 = vld [vmem:[%s13709_s1 + $0x584] sm:$0xf]  ;;  %v7539_v52 = vld [vmem:[%s13709_s1 + $0x590] sm:$0xf0]  ;;  %14212 = vst [vmem:[#allocation117_spill] sm:$0xff] %v10856_v51 }
 0x2eb   :  { %v10835_v8 = vadd.f32 %v3017_v63, %v2914_v46  ;;  %v7542_v33 = vor.u32 %v8226_v48, %v7539_v52  ;;  %14213 = vst [vmem:[#allocation118_spill] sm:$0xff] %v10858_v45  ;;  %v7523_v52 = vld [vmem:[%s13709_s1 + $0x570] sm:$0xf0] }
 0x2ec   :  { %v5427_v17 = vmax.f32 %v2813_v27, 0.0  ;;  %v8270_v27 = vld [vmem:[%s13709_s1 + $0x6e4] sm:$0xf] }
 0x2ed   :  { %3390 = vmatpush.bf16.msrb.mxu1 %v7542_v33 }
 0x2ee   :  { %v2710_v46 = vpop.f32.mrf.mxu2 }
 0x2ef   :  { %v2711_v34 = vadd.f32 %v2710_v46, %v14211_v20  ;;  %v7395_v46 = vld [vmem:[%s13709_s1 + $0x470] sm:$0xf0]  ;;  %v14215_v20 = vld [vmem:[#allocation29_spill] sm:$0xff] }
 0x2f0   :  { %v2916_v58 = vpop.f32.mrf.mxu0  ;;  %v7398_v48 = vor.u32 %v8190_v54, %v7395_v46  ;;  %v8302_v54 = vld [vmem:[%s13709_s1 + $0x7e4] sm:$0xf] }
 0x2f1   :  { %v2814_v63 = vpop.f32.mrf.mxu3  ;;  %v2917_v18 = vadd.f32 %v2916_v58, %v10529_v35  ;;  %v3020_v5 = vpop.f32.mrf.mxu1  ;;  %v14214_v58 = vld [vmem:[#allocation27_spill] sm:$0xff] }
 0x2f2   :  { %v2815_v11 = vadd.f32 %v2814_v63, %v2711_v34  ;;  %3287 = vmatpush.bf16.msrb.mxu0 %v7398_v48  ;;  %v7843_v63 = vld [vmem:[%s13709_s1 + $0x7f0] sm:$0xf0]  ;;  %v8218_v48 = vld [vmem:[%s13709_s1 + $0x544] sm:$0xf] }
 0x2f3   :  { %v10870_v12 = vadd.f32 %v3020_v5, %v2917_v18  ;;  %2752 = vmatmul.bf16.gmra.mxu2 %v10856_v51  ;;  %2955 = vmatmul.bf16.gmra.mxu0 %v14214_v58  ;;  %v7715_v5 = vld [vmem:[%s13709_s1 + $0x6f0] sm:$0xf0]  ;;  %v7846_v46 = vor.u32 %v8302_v54, %v7843_v63 }
 0x2f4   :  { %v5431_v43 = vmax.f32 %v2815_v11, 0.0  ;;  %3059 = vmatmul.bf16.gmra.mxu1 %v14215_v20  ;;  %v7526_v11 = vor.u32 %v8222_v55, %v7523_v52  ;;  %v7718_v34 = vor.u32 %v8270_v27, %v7715_v5  ;;  %v8186_v20 = vld [vmem:[%s13709_s1 + $0x444] sm:$0xf]  ;;  %v7379_v55 = vld [vmem:[%s13709_s1 + $0x450] sm:$0xf0] }
 0x2f5   :  { %3595 = vmatpush.bf16.msra.mxu3 %v7846_v46 }
 0x2f6   :  { %2856 = vmatmul.bf16.gmra.mxu3 %v10858_v45  ;;  %v10891_v33 = vpack.c.bf16 %v5431_v43, %v5427_v17  ;;  %v2713_v18 = vpop.f32.mrf.mxu2  ;;  %3391 = vmatpush.bf16.msrb.mxu1 %v7526_v11  ;;  %v7382_v17 = vor.u32 %v8186_v20, %v7379_v55  ;;  %v7507_v43 = vld [vmem:[%s13709_s1 + $0x550] sm:$0xf0] }
 0x2f7   :  { %v2714_v52 = vadd.f32 %v2713_v18, %v10207_v26  ;;  %3491 = vmatpush.bf16.msra.mxu2 %v7718_v34  ;;  %v7510_v11 = vor.u32 %v8218_v48, %v7507_v43  ;;  %v8182_v26 = vld [vmem:[%s13709_s1 + $0x424] sm:$0xf]  ;;  %v7363_v20 = vld [vmem:[%s13709_s1 + $0x430] sm:$0xf0] }
 0x2f8   :  { %14216 = vst [vmem:[#allocation159_spill] sm:$0xff] %v10891_v33  ;;  %v2918_v5 = vpop.f32.mrf.mxu0  ;;  %3288 = vmatpush.bf16.msrb.mxu0 %v7382_v17  ;;  %v8214_v34 = vld [vmem:[%s13709_s1 + $0x524] sm:$0xf]  ;;  %v7366_v46 = vor.u32 %v8182_v26, %v7363_v20  ;;  %v7491_v55 = vld [vmem:[%s13709_s1 + $0x530] sm:$0xf0]  ;;  %v328_v17 = vld [vmem:[%s13710_s0 + $0x938] sm:$0xff] }
 0x2f9   :  { %v2817_v27 = vpop.f32.mrf.mxu3  ;;  %v2919_v63 = vadd.f32 %v2918_v5, %v10529_v35  ;;  %v3022_v33 = vpop.f32.mrf.mxu1  ;;  %v327_v48 = vld [vmem:[%s13710_s0 + $0x930] sm:$0xff]  ;;  %v8178_v5 = vld [vmem:[%s13709_s1 + $0x404] sm:$0xf] }
 0x2fa   :  { %v2818_v54 = vadd.f32 %v2817_v27, %v2714_v52  ;;  %3392 = vmatpush.bf16.msrb.mxu1 %v7510_v11  ;;  %v335_v52 = vld [vmem:[%s13710_s0 + $0x970] sm:$0xff]  ;;  %v7494_v27 = vor.u32 %v8214_v34, %v7491_v55 }
 0x2fb   :  { %v10916_v18 = vadd.f32 %v3022_v33, %v2919_v63  ;;  %v336_v33 = vld [vmem:[%s13710_s0 + $0x978] sm:$0xff]  ;;  %v7347_v11 = vld [vmem:[%s13709_s1 + $0x410] sm:$0xf0]  ;;  %v8210_v63 = vld [vmem:[%s13709_s1 + $0x504] sm:$0xf]  ;;  %v10943_v34 = vpack.c.bf16 %v335_v52, %v327_v48 }
 0x2fc   :  { %3289 = vmatpush.bf16.msrb.mxu0 %v7366_v46  ;;  %v7350_v46 = vor.u32 %v8178_v5, %v7347_v11  ;;  %v7475_v55 = vld [vmem:[%s13709_s1 + $0x510] sm:$0xf0]  ;;  %v10948_v45 = vpack.c.bf16 %v336_v33, %v328_v17  ;;  %v5435_v2 = vmax.f32 %v2818_v54, 0.0  ;;  %v14218_v48 = vld [vmem:[#allocation31_spill] sm:$0xff]  ;;  %v14219_v52 = vld [vmem:[#allocation33_spill] sm:$0xff] }
 0x2fd   :  { %v7478_v58 = vor.u32 %v8210_v63, %v7475_v55 }
 0x2fe   :  { %v2715_v43 = vpop.f32.mrf.mxu2  ;;  %3393 = vmatpush.bf16.msrb.mxu1 %v7494_v27  ;;  %14217 = vst [vmem:[#allocation160_spill] sm:$0xff] %v10948_v45 }
 0x2ff   :  { %v2716_v26 = vadd.f32 %v2715_v43, %v10214_v0 }
 0x300   :  { %v2921_v27 = vpop.f32.mrf.mxu0  ;;  %3290 = vmatpush.bf16.msrb.mxu0 %v7350_v46 }
 0x301   :  { %v2819_v20 = vpop.f32.mrf.mxu3  ;;  %v2922_v32 = vadd.f32 %v2921_v27, %v10529_v35  ;;  %v3025_v23 = vpop.f32.mrf.mxu1 }
 0x302   :  { %v2820_v51 = vadd.f32 %v2819_v20, %v2716_v26  ;;  %3394 = vmatpush.bf16.msrb.mxu1 %v7478_v58 }
 0x303   :  { %v10951_v43 = vadd.f32 %v3025_v23, %v2922_v32  ;;  %2757 = vmatmul.bf16.gmra.mxu2 %v10943_v34  ;;  %2960 = vmatmul.bf16.gmra.mxu0 %v14218_v48 }
 0x304   :  { %v5439_v0 = vmax.f32 %v2820_v51, 0.0  ;;  %3064 = vmatmul.bf16.gmra.mxu1 %v14219_v52 }
 0x306   :  { %2861 = vmatmul.bf16.gmra.mxu3 %v10948_v45  ;;  %v10957_v17 = vpack.c.bf16 %v5439_v0, %v5435_v2  ;;  %v2718_v33 = vpop.f32.mrf.mxu2 }
 0x307   :  { %v2719_v5 = vadd.f32 %v2718_v33, %v10249_v15  ;;  %v14221_v33 = vld [vmem:[#allocation35_spill] sm:$0xff] }
 0x308   :  { %14220 = vst [vmem:[#allocation31_spill] sm:$0xff] %v10957_v17  ;;  %v2923_v63 = vpop.f32.mrf.mxu0 }
 0x309   :  { %v2822_v11 = vpop.f32.mrf.mxu3  ;;  %v2924_v51 = vadd.f32 %v2923_v63, %v10529_v35  ;;  %v3027_v23 = vpop.f32.mrf.mxu1  ;;  %v14224_v63 = vld [vmem:[#allocation41_spill] sm:$0xff] }
 0x30a   :  { %v2823_v58 = vadd.f32 %v2822_v11, %v2719_v5  ;;  %v14222_v5 = vld [vmem:[#allocation39_spill] sm:$0xff]  ;;  %v14223_v11 = vld [vmem:[#allocation37_spill] sm:$0xff] }
 0x30b   :  { %v10961_v32 = vadd.f32 %v3027_v23, %v2924_v51 }
 0x30c   :  { %v5443_v0 = vmax.f32 %v2823_v58, 0.0 }
 0x30e   :  { %v2720_v54 = vpop.f32.mrf.mxu2 }
 0x30f   :  { %v2721_v26 = vadd.f32 %v2720_v54, %v10256_v31 }
 0x310   :  { %v2926_v46 = vpop.f32.mrf.mxu0 }
 0x311   :  { %v2824_v20 = vpop.f32.mrf.mxu3  ;;  %v2927_v2 = vadd.f32 %v2926_v46, %v10529_v35  ;;  %v3030_v27 = vpop.f32.mrf.mxu1 }
 0x312   :  { %v2825_v55 = vadd.f32 %v2824_v20, %v2721_v26 }
 0x313   :  { %v10965_v15 = vadd.f32 %v3030_v27, %v2927_v2  ;;  %2965 = vmatmul.bf16.gmra.mxu0 %v14221_v33  ;;  %3083 = vmatmul.bf16.vlgmr.msrb.gmra.mxu2 %v14222_v5  ;;  %v8266_v2 = vld [vmem:[%s13709_s1 + $0x6c4] sm:$0xf]  ;;  %v14227_v33 = vld [vmem:[#allocation43_spill] sm:$0xff] }
 0x314   :  { %v5447_v17 = vmax.f32 %v2825_v55, 0.0  ;;  %3069 = vmatmul.bf16.gmra.mxu1 %v14223_v11  ;;  %v14226_v5 = vld [vmem:[#allocation42_spill] sm:$0xff] }
 0x316   :  { %3187 = vmatmul.bf16.vlgmr.msrb.gmra.mxu3 %v14224_v63  ;;  %v10971_v51 = vpack.c.bf16 %v5447_v17, %v5443_v0  ;;  %v2723_v31 = vpop.f32.mrf.mxu2  ;;  %v7699_v17 = vld [vmem:[%s13709_s1 + $0x6d0] sm:$0xf0] }
 0x317   :  { %v2724_v23 = vadd.f32 %v2723_v31, %v10287_v47  ;;  %v7702_v27 = vor.u32 %v8266_v2, %v7699_v17  ;;  %v8298_v47 = vld [vmem:[%s13709_s1 + $0x7c4] sm:$0xf]  ;;  %v7827_v0 = vld [vmem:[%s13709_s1 + $0x7d0] sm:$0xf0] }
 0x318   :  { %14225 = vst [vmem:[#allocation161_spill] sm:$0xff] %v10971_v51  ;;  %v2928_v26 = vpop.f32.mrf.mxu0  ;;  %v7830_v31 = vor.u32 %v8298_v47, %v7827_v0  ;;  %v14228_v47 = vld [vmem:[#allocation44_spill] sm:$0xff] }
 0x319   :  { %v2827_v54 = vpop.f32.mrf.mxu3  ;;  %v2929_v58 = vadd.f32 %v2928_v26, %v10529_v35  ;;  %v3032_v46 = vpop.f32.mrf.mxu1  ;;  %3492 = vmatpush.bf16.msra.mxu2 %v7702_v27  ;;  %v14229_v27 = vld [vmem:[#allocation45_spill] sm:$0xff] }
 0x31a   :  { %v2828_v20 = vadd.f32 %v2827_v54, %v2724_v23  ;;  %3596 = vmatpush.bf16.msra.mxu3 %v7830_v31 }
 0x31b   :  { %v10975_v55 = vadd.f32 %v3032_v46, %v2929_v58 }
 0x31c   :  { %v5451_v17 = vmax.f32 %v2828_v20, 0.0 }
 0x31e   :  { %v2725_v23 = vpop.f32.mrf.mxu2 }
 0x31f   :  { %v2726_v54 = vadd.f32 %v2725_v23, %v10294_v39 }
 0x320   :  { %v2931_v58 = vpop.f32.mrf.mxu0 }
 0x321   :  { %v2829_v26 = vpop.f32.mrf.mxu3  ;;  %v2932_v51 = vadd.f32 %v2931_v58, %v10529_v35  ;;  %v3035_v2 = vpop.f32.mrf.mxu1 }
 0x322   :  { %v2830_v46 = vadd.f32 %v2829_v26, %v2726_v54 }
 0x323   :  { %v10991_v11 = vadd.f32 %v3035_v2, %v2932_v51  ;;  %3088 = vmatmul.bf16.gmra.mxu2 %v14226_v5  ;;  %3291 = vmatmul.bf16.vlgmr.msrb.gmra.mxu0 %v14227_v33 }
 0x324   :  { %v5455_v63 = vmax.f32 %v2830_v46, 0.0  ;;  %3395 = vmatmul.bf16.vlgmr.msrb.gmra.mxu1 %v14229_v27 }
 0x326   :  { %3192 = vmatmul.bf16.gmra.mxu3 %v14228_v47  ;;  %v10997_v39 = vpack.c.bf16 %v5455_v63, %v5451_v17  ;;  %v2728_v0 = vpop.f32.mrf.mxu2 }
 0x327   :  { %v2729_v31 = vadd.f32 %v2728_v0, %v10313_v50  ;;  %v14231_v0 = vld [vmem:[#allocation46_spill] sm:$0xff] }
 0x328   :  { %14230 = vst [vmem:[#allocation162_spill] sm:$0xff] %v10997_v39  ;;  %v2933_v54 = vpop.f32.mrf.mxu0 }
 0x329   :  { %v2832_v23 = vpop.f32.mrf.mxu3  ;;  %v2934_v20 = vadd.f32 %v2933_v54, %v10529_v35  ;;  %v3037_v51 = vpop.f32.mrf.mxu1  ;;  %v14234_v54 = vld [vmem:[#allocation49_spill] sm:$0xff] }
 0x32a   :  { %v2833_v26 = vadd.f32 %v2832_v23, %v2729_v31  ;;  %v14232_v31 = vld [vmem:[#allocation47_spill] sm:$0xff]  ;;  %v14233_v23 = vld [vmem:[#allocation48_spill] sm:$0xff] }
 0x32b   :  { %v11001_v58 = vadd.f32 %v3037_v51, %v2934_v20 }
 0x32c   :  { %v5459_v39 = vmax.f32 %v2833_v26, 0.0 }
 0x32e   :  { %v2730_v46 = vpop.f32.mrf.mxu2 }
 0x32f   :  { %v2731_v2 = vadd.f32 %v2730_v46, %v10320_v56 }
 0x330   :  { %v2936_v47 = vpop.f32.mrf.mxu0 }
 0x331   :  { %v2834_v33 = vpop.f32.mrf.mxu3  ;;  %v2937_v63 = vadd.f32 %v2936_v47, %v10529_v35  ;;  %v3040_v17 = vpop.f32.mrf.mxu1 }
 0x332   :  { %v2835_v5 = vadd.f32 %v2834_v33, %v2731_v2 }
 0x333   :  { %v11005_v50 = vadd.f32 %v3040_v17, %v2937_v63  ;;  %3093 = vmatmul.bf16.gmra.mxu2 %v14231_v0  ;;  %3296 = vmatmul.bf16.gmra.mxu0 %v14232_v31 }
 0x334   :  { %v5463_v27 = vmax.f32 %v2835_v5, 0.0  ;;  %3400 = vmatmul.bf16.gmra.mxu1 %v14234_v54 }
 0x336   :  { %3197 = vmatmul.bf16.gmra.mxu3 %v14233_v23  ;;  %v11011_v20 = vpack.c.bf16 %v5463_v27, %v5459_v39  ;;  %v2733_v56 = vpop.f32.mrf.mxu2 }
 0x337   :  { %v2734_v33 = vadd.f32 %v2733_v56, %v10345_v22  ;;  %v14236_v56 = vld [vmem:[#allocation50_spill] sm:$0xff] }
 0x338   :  { %14235 = vst [vmem:[#allocation163_spill] sm:$0xff] %v11011_v20  ;;  %v2938_v47 = vpop.f32.mrf.mxu0 }
 0x339   :  { %v2837_v51 = vpop.f32.mrf.mxu3  ;;  %v2939_v5 = vadd.f32 %v2938_v47, %v10529_v35  ;;  %v3042_v26 = vpop.f32.mrf.mxu1 }
 0x33a   :  { %v2838_v46 = vadd.f32 %v2837_v51, %v2734_v33  ;;  %v14237_v33 = vld [vmem:[#allocation51_spill] sm:$0xff]  ;;  %v8262_v51 = vld [vmem:[%s13709_s1 + $0x6a4] sm:$0xf] }
 0x33b   :  { %v11015_v2 = vadd.f32 %v3042_v26, %v2939_v5 }
 0x33c   :  { %v5467_v20 = vmax.f32 %v2838_v46, 0.0  ;;  %v7811_v46 = vld [vmem:[%s13709_s1 + $0x7b0] sm:$0xf0] }
 0x33e   :  { %v2735_v63 = vpop.f32.mrf.mxu2 }
 0x33f   :  { %v2736_v17 = vadd.f32 %v2735_v63, %v10358_v28  ;;  %v7683_v28 = vld [vmem:[%s13709_s1 + $0x6b0] sm:$0xf0] }
 0x340   :  { %v2941_v23 = vpop.f32.mrf.mxu0  ;;  %v7686_v47 = vor.u32 %v8262_v51, %v7683_v28 }
 0x341   :  { %v2839_v31 = vpop.f32.mrf.mxu3  ;;  %v2942_v27 = vadd.f32 %v2941_v23, %v10529_v35  ;;  %v3045_v39 = vpop.f32.mrf.mxu1  ;;  %v14239_v23 = vld [vmem:[#allocation53_spill] sm:$0xff] }
 0x342   :  { %v2840_v0 = vadd.f32 %v2839_v31, %v2736_v17  ;;  %v14238_v31 = vld [vmem:[#allocation52_spill] sm:$0xff]  ;;  %3493 = vmatpush.bf16.msra.mxu2 %v7686_v47 }
 0x343   :  { %v11019_v22 = vadd.f32 %v3045_v39, %v2942_v27  ;;  %3098 = vmatmul.bf16.gmra.mxu2 %v14236_v56  ;;  %3301 = vmatmul.bf16.gmra.mxu0 %v14237_v33 }
 0x344   :  { %v5471_v54 = vmax.f32 %v2840_v0, 0.0  ;;  %3405 = vmatmul.bf16.gmra.mxu1 %v14239_v23  ;;  %v8294_v0 = vld [vmem:[%s13709_s1 + $0x7a4] sm:$0xf] }
 0x345   :  { %v7814_v5 = vor.u32 %v8294_v0, %v7811_v46 }
 0x346   :  { %3202 = vmatmul.bf16.gmra.mxu3 %v14238_v31  ;;  %v11037_v26 = vpack.c.bf16 %v5471_v54, %v5467_v20  ;;  %v2738_v63 = vpop.f32.mrf.mxu2 }
 0x347   :  { %v2739_v17 = vadd.f32 %v2738_v63, %v10377_v3  ;;  %3597 = vmatpush.bf16.msra.mxu3 %v7814_v5  ;;  %v14241_v5 = vld [vmem:[#allocation54_spill] sm:$0xff] }
 0x348   :  { %14240 = vst [vmem:[#allocation164_spill] sm:$0xff] %v11037_v26  ;;  %v2943_v39 = vpop.f32.mrf.mxu0 }
 0x349   :  { %v2842_v27 = vpop.f32.mrf.mxu3  ;;  %v2944_v51 = vadd.f32 %v2943_v39, %v10529_v35  ;;  %v3047_v28 = vpop.f32.mrf.mxu1  ;;  %v14244_v39 = vld [vmem:[#allocation57_spill] sm:$0xff] }
 0x34a   :  { %v2843_v23 = vadd.f32 %v2842_v27, %v2739_v17  ;;  %v14242_v17 = vld [vmem:[#allocation55_spill] sm:$0xff]  ;;  %v14243_v27 = vld [vmem:[#allocation56_spill] sm:$0xff] }
 0x34b   :  { %v11041_v31 = vadd.f32 %v3047_v28, %v2944_v51 }
 0x34c   :  { %v5475_v46 = vmax.f32 %v2843_v23, 0.0 }
 0x34e   :  { %v2740_v33 = vpop.f32.mrf.mxu2 }
 0x34f   :  { %v2741_v56 = vadd.f32 %v2740_v33, %v10384_v19 }
 0x350   :  { %v2946_v0 = vpop.f32.mrf.mxu0 }
 0x351   :  { %v2844_v52 = vpop.f32.mrf.mxu3  ;;  %v2947_v20 = vadd.f32 %v2946_v0, %v10529_v35  ;;  %v3050_v47 = vpop.f32.mrf.mxu1 }
 0x352   :  { %v2845_v54 = vadd.f32 %v2844_v52, %v2741_v56 }
 0x353   :  { %v11045_v63 = vadd.f32 %v3050_v47, %v2947_v20  ;;  %3103 = vmatmul.bf16.gmra.mxu2 %v14241_v5  ;;  %3306 = vmatmul.bf16.gmra.mxu0 %v14242_v17 }
 0x354   :  { %v5479_v3 = vmax.f32 %v2845_v54, 0.0  ;;  %3410 = vmatmul.bf16.gmra.mxu1 %v14244_v39 }
 0x356   :  { %3207 = vmatmul.bf16.gmra.mxu3 %v14243_v27  ;;  %v11051_v51 = vpack.c.bf16 %v5479_v3, %v5475_v46  ;;  %v2743_v19 = vpop.f32.mrf.mxu2 }
 0x357   :  { %v2744_v52 = vadd.f32 %v2743_v19, %v10403_v60  ;;  %v14246_v19 = vld [vmem:[#allocation58_spill] sm:$0xff] }
 0x358   :  { %14245 = vst [vmem:[#allocation165_spill] sm:$0xff] %v11051_v51  ;;  %v2948_v33 = vpop.f32.mrf.mxu0 }
 0x359   :  { %v2847_v56 = vpop.f32.mrf.mxu3  ;;  %v2949_v23 = vadd.f32 %v2948_v33, %v10529_v35  ;;  %v3052_v0 = vpop.f32.mrf.mxu1  ;;  %v14249_v33 = vld [vmem:[#allocation61_spill] sm:$0xff] }
 0x35a   :  { %v2848_v28 = vadd.f32 %v2847_v56, %v2744_v52  ;;  %v14247_v52 = vld [vmem:[#allocation59_spill] sm:$0xff]  ;;  %v14248_v56 = vld [vmem:[#allocation60_spill] sm:$0xff] }
 0x35b   :  { %v11055_v54 = vadd.f32 %v3052_v0, %v2949_v23 }
 0x35c   :  { %v5483_v51 = vmax.f32 %v2848_v28, 0.0 }
 0x35e   :  { %v2745_v20 = vpop.f32.mrf.mxu2 }
 0x35f   :  { %v2746_v47 = vadd.f32 %v2745_v20, %v10422_v13  ;;  %v8258_v13 = vld [vmem:[%s13709_s1 + $0x684] sm:$0xf] }
 0x360   :  { %v2951_v27 = vpop.f32.mrf.mxu0 }
 0x361   :  { %v2849_v26 = vpop.f32.mrf.mxu3  ;;  %v2952_v46 = vadd.f32 %v2951_v27, %v10529_v35  ;;  %v3055_v3 = vpop.f32.mrf.mxu1 }
 0x362   :  { %v2850_v17 = vadd.f32 %v2849_v26, %v2746_v47  ;;  %v7667_v26 = vld [vmem:[%s13709_s1 + $0x690] sm:$0xf0] }
 0x363   :  { %v11059_v60 = vadd.f32 %v3055_v3, %v2952_v46  ;;  %3108 = vmatmul.bf16.gmra.mxu2 %v14246_v19  ;;  %3311 = vmatmul.bf16.gmra.mxu0 %v14247_v52  ;;  %v7670_v27 = vor.u32 %v8258_v13, %v7667_v26  ;;  %v14252_v52 = vld [vmem:[#allocation63_spill] sm:$0xff]  ;;  %v14253_v19 = vld [vmem:[#allocation64_spill] sm:$0xff] }
 0x364   :  { %v5487_v39 = vmax.f32 %v2850_v17, 0.0  ;;  %3415 = vmatmul.bf16.gmra.mxu1 %v14249_v33 }
 0x365   :  { %3494 = vmatpush.bf16.msra.mxu2 %v7670_v27 }
 0x366   :  { %3212 = vmatmul.bf16.gmra.mxu3 %v14248_v56  ;;  %v11071_v17 = vpack.c.bf16 %v5487_v39, %v5483_v51  ;;  %v2748_v28 = vpop.f32.mrf.mxu2  ;;  %v8290_v56 = vld [vmem:[%s13709_s1 + $0x784] sm:$0xf]  ;;  %v7795_v39 = vld [vmem:[%s13709_s1 + $0x790] sm:$0xf0] }
 0x367   :  { %v2749_v23 = vadd.f32 %v2748_v28, %v10441_v16  ;;  %v7798_v51 = vor.u32 %v8290_v56, %v7795_v39  ;;  %v14254_v56 = vld [vmem:[#allocation65_spill] sm:$0xff] }
 0x368   :  { %14250 = vst [vmem:[#allocation166_spill] sm:$0xff] %v11071_v17  ;;  %v2953_v20 = vpop.f32.mrf.mxu0  ;;  %v14251_v17 = vld [vmem:[#allocation62_spill] sm:$0xff] }
 0x369   :  { %v2852_v0 = vpop.f32.mrf.mxu3  ;;  %v2954_v46 = vadd.f32 %v2953_v20, %v10529_v35  ;;  %v3057_v3 = vpop.f32.mrf.mxu1  ;;  %3598 = vmatpush.bf16.msra.mxu3 %v7798_v51 }
 0x36a   :  { %v2853_v47 = vadd.f32 %v2852_v0, %v2749_v23 }
 0x36b   :  { %v11075_v33 = vadd.f32 %v3057_v3, %v2954_v46 }
 0x36c   :  { %v5491_v20 = vmax.f32 %v2853_v47, 0.0 }
 0x36e   :  { %v2750_v13 = vpop.f32.mrf.mxu2 }
 0x36f   :  { %v2751_v16 = vadd.f32 %v2750_v13, %v10448_v10 }
 0x370   :  { %v2956_v27 = vpop.f32.mrf.mxu0 }
 0x371   :  { %v2854_v26 = vpop.f32.mrf.mxu3  ;;  %v2957_v23 = vadd.f32 %v2956_v27, %v10529_v35  ;;  %v3060_v0 = vpop.f32.mrf.mxu1 }
 0x372   :  { %v2855_v28 = vadd.f32 %v2854_v26, %v2751_v16 }
 0x373   :  { %v11085_v3 = vadd.f32 %v3060_v0, %v2957_v23  ;;  %3113 = vmatmul.bf16.gmra.mxu2 %v14251_v17  ;;  %3316 = vmatmul.bf16.gmra.mxu0 %v14252_v52 }
 0x374   :  { %v5495_v46 = vmax.f32 %v2855_v28, 0.0  ;;  %3420 = vmatmul.bf16.gmra.mxu1 %v14254_v56 }
 0x376   :  { %3217 = vmatmul.bf16.gmra.mxu3 %v14253_v19  ;;  %v11091_v39 = vpack.c.bf16 %v5495_v46, %v5491_v20  ;;  %v2753_v10 = vpop.f32.mrf.mxu2 }
 0x377   :  { %v2754_v51 = vadd.f32 %v2753_v10, %v10467_v61  ;;  %v14256_v10 = vld [vmem:[#allocation68_spill] sm:$0xff] }
 0x378   :  { %14255 = vst [vmem:[#allocation167_spill] sm:$0xff] %v11091_v39  ;;  %v2958_v16 = vpop.f32.mrf.mxu0 }
 0x379   :  { %v2857_v13 = vpop.f32.mrf.mxu3  ;;  %v2959_v47 = vadd.f32 %v2958_v16, %v10529_v35  ;;  %v3062_v27 = vpop.f32.mrf.mxu1  ;;  %v14259_v16 = vld [vmem:[#allocation71_spill] sm:$0xff] }
 0x37a   :  { %v2858_v26 = vadd.f32 %v2857_v13, %v2754_v51  ;;  %v14257_v51 = vld [vmem:[#allocation69_spill] sm:$0xff]  ;;  %v14258_v13 = vld [vmem:[#allocation70_spill] sm:$0xff] }
 0x37b   :  { %v11095_v28 = vadd.f32 %v3062_v27, %v2959_v47 }
 0x37c   :  { %v5499_v39 = vmax.f32 %v2858_v26, 0.0 }
 0x37e   :  { %v2755_v23 = vpop.f32.mrf.mxu2 }
 0x37f   :  { %v2756_v0 = vadd.f32 %v2755_v23, %v10480_v25 }
 0x380   :  { %v2961_v19 = vpop.f32.mrf.mxu0 }
 0x381   :  { %v2859_v52 = vpop.f32.mrf.mxu3  ;;  %v2962_v20 = vadd.f32 %v2961_v19, %v10529_v35  ;;  %v3065_v46 = vpop.f32.mrf.mxu1 }
 0x382   :  { %v2860_v17 = vadd.f32 %v2859_v52, %v2756_v0  ;;  %v6953_v0 = vld [vmem:[%s13709_s1 + $0xe8] sm:$0xf] }
 0x383   :  { %v11099_v61 = vadd.f32 %v3065_v46, %v2962_v20  ;;  %3118 = vmatmul.bf16.gmra.mxu2 %v14256_v10  ;;  %3321 = vmatmul.bf16.gmra.mxu0 %v14257_v51  ;;  %v8081_v20 = vld [vmem:[%s13709_s1 + $0xf4] sm:$0xf0]  ;;  %v14261_v51 = vld [vmem:[#allocation74_spill] sm:$0xff]  ;;  %v14262_v10 = vld [vmem:[#allocation75_spill] sm:$0xff] }
 0x384   :  { %v5503_v56 = vmax.f32 %v2860_v17, 0.0  ;;  %3425 = vmatmul.bf16.gmra.mxu1 %v14259_v16  ;;  %v6954_v46 = vor.u32 %v8081_v20, %v6953_v0 }
 0x386   :  { %3222 = vmatmul.bf16.gmra.mxu3 %v14258_v13  ;;  %v11105_v47 = vpack.c.bf16 %v5503_v56, %v5499_v39  ;;  %v2758_v25 = vpop.f32.mrf.mxu2  ;;  %v7651_v39 = vld [vmem:[%s13709_s1 + $0x670] sm:$0xf0]  ;;  %3699 = vmatpush.bf16.msra.mxu0 %v6954_v46 }
 0x387   :  { %v2759_v52 = vadd.f32 %v2758_v25, %v10511_v4  ;;  %v8254_v4 = vld [vmem:[%s13709_s1 + $0x664] sm:$0xf] }
 0x388   :  { %14260 = vst [vmem:[#allocation168_spill] sm:$0xff] %v11105_v47  ;;  %v2963_v19 = vpop.f32.mrf.mxu0  ;;  %v7654_v25 = vor.u32 %v8254_v4, %v7651_v39 }
 0x389   :  { %v2862_v27 = vpop.f32.mrf.mxu3  ;;  %v2964_v17 = vadd.f32 %v2963_v19, %v10529_v35  ;;  %v3067_v26 = vpop.f32.mrf.mxu1 }
 0x38a   :  { %v2863_v23 = vadd.f32 %v2862_v27, %v2759_v52  ;;  %v8286_v52 = vld [vmem:[%s13709_s1 + $0x764] sm:$0xf]  ;;  %v7779_v27 = vld [vmem:[%s13709_s1 + $0x770] sm:$0xf0]  ;;  %3495 = vmatpush.bf16.msra.mxu2 %v7654_v25  ;;  %v14264_v25 = vld [vmem:[#allocation77_spill] sm:$0xff] }
 0x38b   :  { %v11115_v56 = vadd.f32 %v3067_v26, %v2964_v17  ;;  %v7782_v19 = vor.u32 %v8286_v52, %v7779_v27  ;;  %v14263_v52 = vld [vmem:[#allocation76_spill] sm:$0xff] }
 0x38c   :  { %v5507_v39 = vmax.f32 %v2863_v23, 0.0 }
 0x38d   :  { %3599 = vmatpush.bf16.msra.mxu3 %v7782_v19 }
 0x38e   :  { %v2760_v17 = vpop.f32.mrf.mxu2 }
 0x38f   :  { %v2761_v26 = vadd.f32 %v2760_v17, %v10518_v30 }
 0x390   :  { %v2966_v20 = vpop.f32.mrf.mxu0 }
 0x391   :  { %v2864_v0 = vpop.f32.mrf.mxu3  ;;  %v2967_v46 = vadd.f32 %v2966_v20, %v10529_v35  ;;  %v3070_v4 = vpop.f32.mrf.mxu1 }
 0x392   :  { %v2865_v47 = vadd.f32 %v2864_v0, %v2761_v26 }
 0x393   :  { %v11131_v13 = vadd.f32 %v3070_v4, %v2967_v46  ;;  %3123 = vmatmul.bf16.gmra.mxu2 %v14261_v51  ;;  %3326 = vmatmul.bf16.gmra.mxu0 %v14262_v10 }
 0x394   :  { %v5511_v16 = vmax.f32 %v2865_v47, 0.0  ;;  %3430 = vmatmul.bf16.gmra.mxu1 %v14264_v25 }
 0x396   :  { %3227 = vmatmul.bf16.gmra.mxu3 %v14263_v52  ;;  %v11137_v30 = vpack.c.bf16 %v5511_v16, %v5507_v39  ;;  %v3084_v27 = vpop.f32.mrf.mxu2 }
 0x397   :  { %v3085_v19 = vadd.f32 %v3084_v27, %v10543_v38  ;;  %v14267_v38 = vld [vmem:[#allocation79_spill] sm:$0xff]  ;;  %v14268_v27 = vld [vmem:[#allocation80_spill] sm:$0xff] }
 0x398   :  { %14265 = vst [vmem:[#allocation169_spill] sm:$0xff] %v11137_v30  ;;  %v2968_v26 = vpop.f32.mrf.mxu0  ;;  %v14266_v30 = vld [vmem:[#allocation78_spill] sm:$0xff] }
 0x399   :  { %v3188_v17 = vpop.f32.mrf.mxu3  ;;  %v2969_v47 = vadd.f32 %v2968_v26, %v10529_v35  ;;  %v3072_v23 = vpop.f32.mrf.mxu1  ;;  %v14269_v35 = vld [vmem:[#allocation81_spill] sm:$0xff] }
 0x39a   :  { %v3189_v0 = vadd.f32 %v3188_v17, %v3085_v19 }
 0x39b   :  { %v11141_v20 = vadd.f32 %v3072_v23, %v2969_v47 }
 0x39e   :  { %v3086_v46 = vpop.f32.mrf.mxu2 }
 0x39f   :  { %v3087_v4 = vadd.f32 %v3086_v46, %v10553_v24 }
 0x3a0   :  { %v3292_v52 = vpop.f32.mrf.mxu0 }
 0x3a1   :  { %v3190_v10 = vpop.f32.mrf.mxu3  ;;  %v3293_v25 = vadd.f32 %v3292_v52, %v3189_v0  ;;  %v3396_v16 = vpop.f32.mrf.mxu1  ;;  %v8077_v0 = vld [vmem:[%s13709_s1 + $0xd4] sm:$0xf0] }
 0x3a2   :  { %v3191_v51 = vadd.f32 %v3190_v10, %v3087_v4 }
 0x3a3   :  { %v11144_v39 = vadd.f32 %v3396_v16, %v3293_v25  ;;  %3128 = vmatmul.bf16.gmra.mxu2 %v14266_v30  ;;  %3331 = vmatmul.bf16.gmra.mxu0 %v14267_v38  ;;  %v6937_v25 = vld [vmem:[%s13709_s1 + $0xc8] sm:$0xf] }
 0x3a4   :  { %3435 = vmatmul.bf16.gmra.mxu1 %v14269_v35  ;;  %v6938_v46 = vor.u32 %v8077_v0, %v6937_v25  ;;  %v8250_v35 = vld [vmem:[%s13709_s1 + $0x644] sm:$0xf]  ;;  %v7635_v25 = vld [vmem:[%s13709_s1 + $0x650] sm:$0xf0] }
 0x3a5   :  { %v14273_v0 = vld [vmem:[#allocation86_spill] sm:$0xff] }
 0x3a6   :  { %3232 = vmatmul.bf16.gmra.mxu3 %v14268_v27  ;;  %v3089_v19 = vpop.f32.mrf.mxu2  ;;  %3700 = vmatpush.bf16.msra.mxu0 %v6938_v46  ;;  %v8282_v46 = vld [vmem:[%s13709_s1 + $0x744] sm:$0xf] }
 0x3a7   :  { %v3090_v17 = vadd.f32 %v3089_v19, %v10579_v21 }
 0x3a8   :  { %v3294_v24 = vpop.f32.mrf.mxu0 }
 0x3a9   :  { %v3193_v26 = vpop.f32.mrf.mxu3  ;;  %v3295_v23 = vadd.f32 %v3294_v24, %v3191_v51  ;;  %v3398_v10 = vpop.f32.mrf.mxu1 }
 0x3aa   :  { %v3194_v47 = vadd.f32 %v3193_v26, %v3090_v17 }
 0x3ab   :  { %v11151_v52 = vadd.f32 %v3398_v10, %v3295_v23  ;;  %v14270_v23 = vld [vmem:[#allocation83_spill] sm:$0xff]  ;;  %v14271_v10 = vld [vmem:[#allocation84_spill] sm:$0xff] }
 0x3ae   :  { %v3091_v4 = vpop.f32.mrf.mxu2 }
 0x3af   :  { %v3092_v21 = vadd.f32 %v3091_v4, %v10601_v9  ;;  %v14272_v9 = vld [vmem:[#allocation85_spill] sm:$0xff]  ;;  %v7763_v4 = vld [vmem:[%s13709_s1 + $0x750] sm:$0xf0] }
 0x3b0   :  { %v3297_v19 = vpop.f32.mrf.mxu0 }
 0x3b1   :  { %v3195_v16 = vpop.f32.mrf.mxu3  ;;  %v3298_v51 = vadd.f32 %v3297_v19, %v3194_v47  ;;  %v3401_v26 = vpop.f32.mrf.mxu1  ;;  %v7638_v47 = vor.u32 %v8250_v35, %v7635_v25 }
 0x3b2   :  { %v3196_v17 = vadd.f32 %v3195_v16, %v3092_v21  ;;  %v7766_v21 = vor.u32 %v8282_v46, %v7763_v4 }
 0x3b3   :  { %v11160_v24 = vadd.f32 %v3401_v26, %v3298_v51  ;;  %3133 = vmatmul.bf16.gmra.mxu2 %v14270_v23  ;;  %3336 = vmatmul.bf16.gmra.mxu0 %v14271_v10 }
 0x3b4   :  { %3440 = vmatmul.bf16.gmra.mxu1 %v14273_v0  ;;  %3496 = vmatpush.bf16.msra.mxu2 %v7638_v47  ;;  %v14274_v47 = vld [vmem:[#allocation87_spill] sm:$0xff] }
 0x3b5   :  { %3600 = vmatpush.bf16.msra.mxu3 %v7766_v21  ;;  %v14276_v21 = vld [vmem:[#allocation89_spill] sm:$0xff] }
 0x3b6   :  { %3237 = vmatmul.bf16.gmra.mxu3 %v14272_v9  ;;  %v3094_v16 = vpop.f32.mrf.mxu2 }
 0x3b7   :  { %v3095_v19 = vadd.f32 %v3094_v16, %v10621_v57  ;;  %v14275_v57 = vld [vmem:[#allocation88_spill] sm:$0xff] }
 0x3b8   :  { %v3299_v26 = vpop.f32.mrf.mxu0 }
 0x3b9   :  { %v3198_v51 = vpop.f32.mrf.mxu3  ;;  %v3300_v10 = vadd.f32 %v3299_v26, %v3196_v17  ;;  %v3403_v0 = vpop.f32.mrf.mxu1  ;;  %v14277_v17 = vld [vmem:[#allocation90_spill] sm:$0xff] }
 0x3ba   :  { %v3199_v9 = vadd.f32 %v3198_v51, %v3095_v19 }
 0x3bb   :  { %v11179_v35 = vadd.f32 %v3403_v0, %v3300_v10 }
 0x3be   :  { %v3096_v25 = vpop.f32.mrf.mxu2 }
 0x3bf   :  { %v3097_v23 = vadd.f32 %v3096_v25, %v10631_v40 }
 0x3c0   :  { %v3302_v38 = vpop.f32.mrf.mxu0 }
 0x3c1   :  { %v3200_v27 = vpop.f32.mrf.mxu3  ;;  %v3303_v5 = vadd.f32 %v3302_v38, %v3199_v9  ;;  %v3406_v46 = vpop.f32.mrf.mxu1 }
 0x3c2   :  { %v3201_v30 = vadd.f32 %v3200_v27, %v3097_v23 }
 0x3c3   :  { %v11182_v4 = vadd.f32 %v3406_v46, %v3303_v5  ;;  %3138 = vmatmul.bf16.gmra.mxu2 %v14274_v47  ;;  %3341 = vmatmul.bf16.gmra.mxu0 %v14275_v57 }
 0x3c4   :  { %3445 = vmatmul.bf16.gmra.mxu1 %v14277_v17  ;;  %v14278_v17 = vld [vmem:[#allocation91_spill] sm:$0xff] }
 0x3c6   :  { %3242 = vmatmul.bf16.gmra.mxu3 %v14276_v21  ;;  %v3099_v10 = vpop.f32.mrf.mxu2 }
 0x3c7   :  { %v3100_v0 = vadd.f32 %v3099_v10, %v10651_v42  ;;  %v14279_v42 = vld [vmem:[#allocation92_spill] sm:$0xff]  ;;  %v14280_v10 = vld [vmem:[#allocation93_spill] sm:$0xff] }
 0x3c8   :  { %v3304_v40 = vpop.f32.mrf.mxu0 }
 0x3c9   :  { %v3203_v16 = vpop.f32.mrf.mxu3  ;;  %v3305_v51 = vadd.f32 %v3304_v40, %v3201_v30  ;;  %v3408_v27 = vpop.f32.mrf.mxu1  ;;  %v14281_v30 = vld [vmem:[#allocation94_spill] sm:$0xff] }
 0x3ca   :  { %v3204_v19 = vadd.f32 %v3203_v16, %v3100_v0  ;;  %v6921_v0 = vld [vmem:[%s13709_s1 + $0xa8] sm:$0xf] }
 0x3cb   :  { %v11189_v38 = vadd.f32 %v3408_v27, %v3305_v51 }
 0x3ce   :  { %v3101_v5 = vpop.f32.mrf.mxu2 }
 0x3cf   :  { %v3102_v23 = vadd.f32 %v3101_v5, %v10667_v59  ;;  %v8073_v59 = vld [vmem:[%s13709_s1 + $0xb4] sm:$0xf0] }
 0x3d0   :  { %v3307_v26 = vpop.f32.mrf.mxu0  ;;  %v6922_v16 = vor.u32 %v8073_v59, %v6921_v0 }
 0x3d1   :  { %v3205_v9 = vpop.f32.mrf.mxu3  ;;  %v3308_v46 = vadd.f32 %v3307_v26, %v3204_v19  ;;  %v3411_v21 = vpop.f32.mrf.mxu1  ;;  %v7619_v26 = vld [vmem:[%s13709_s1 + $0x630] sm:$0xf0] }
 0x3d2   :  { %v3206_v25 = vadd.f32 %v3205_v9, %v3102_v23  ;;  %3701 = vmatpush.bf16.msra.mxu0 %v6922_v16  ;;  %v8246_v9 = vld [vmem:[%s13709_s1 + $0x624] sm:$0xf] }
 0x3d3   :  { %v11192_v57 = vadd.f32 %v3411_v21, %v3308_v46  ;;  %3143 = vmatmul.bf16.gmra.mxu2 %v14278_v17  ;;  %3346 = vmatmul.bf16.gmra.mxu0 %v14279_v42  ;;  %v7622_v46 = vor.u32 %v8246_v9, %v7619_v26  ;;  %v14282_v9 = vld [vmem:[#allocation95_spill] sm:$0xff]  ;;  %v14283_v26 = vld [vmem:[#allocation96_spill] sm:$0xff]  ;;  %v14285_v42 = vld [vmem:[#allocation98_spill] sm:$0xff] }
 0x3d4   :  { %3450 = vmatmul.bf16.gmra.mxu1 %v14281_v30 }
 0x3d5   :  { %3497 = vmatpush.bf16.msra.mxu2 %v7622_v46 }
 0x3d6   :  { %3247 = vmatmul.bf16.gmra.mxu3 %v14280_v10  ;;  %v3104_v40 = vpop.f32.mrf.mxu2  ;;  %v14284_v10 = vld [vmem:[#allocation97_spill] sm:$0xff] }
 0x3d7   :  { %v3105_v21 = vadd.f32 %v3104_v40, %v10699_v36  ;;  %v8278_v36 = vld [vmem:[%s13709_s1 + $0x724] sm:$0xf] }
 0x3d8   :  { %v3309_v51 = vpop.f32.mrf.mxu0 }
 0x3d9   :  { %v3208_v19 = vpop.f32.mrf.mxu3  ;;  %v3310_v5 = vadd.f32 %v3309_v51, %v3206_v25  ;;  %v3413_v23 = vpop.f32.mrf.mxu1  ;;  %v7747_v25 = vld [vmem:[%s13709_s1 + $0x730] sm:$0xf0] }
 0x3da   :  { %v3209_v27 = vadd.f32 %v3208_v19, %v3105_v21  ;;  %v7750_v0 = vor.u32 %v8278_v36, %v7747_v25 }
 0x3db   :  { %v11211_v30 = vadd.f32 %v3413_v23, %v3310_v5 }
 0x3dc   :  { %3601 = vmatpush.bf16.msra.mxu3 %v7750_v0 }
 0x3de   :  { %v3106_v59 = vpop.f32.mrf.mxu2 }
 0x3df   :  { %v3107_v16 = vadd.f32 %v3106_v59, %v10709_v14 }
 0x3e0   :  { %v3312_v21 = vpop.f32.mrf.mxu0 }
 0x3e1   :  { %v3210_v40 = vpop.f32.mrf.mxu3  ;;  %v3313_v51 = vadd.f32 %v3312_v21, %v3209_v27  ;;  %v3416_v5 = vpop.f32.mrf.mxu1 }
 0x3e2   :  { %v3211_v19 = vadd.f32 %v3210_v40, %v3107_v16 }
 0x3e3   :  { %v11220_v23 = vadd.f32 %v3416_v5, %v3313_v51  ;;  %3148 = vmatmul.bf16.gmra.mxu2 %v14282_v9  ;;  %3351 = vmatmul.bf16.gmra.mxu0 %v14283_v26 }
 0x3e4   :  { %3455 = vmatmul.bf16.gmra.mxu1 %v14285_v42  ;;  %v14286_v42 = vld [vmem:[#allocation99_spill] sm:$0xff] }
 0x3e6   :  { %3252 = vmatmul.bf16.gmra.mxu3 %v14284_v10  ;;  %v3109_v46 = vpop.f32.mrf.mxu2 }
 0x3e7   :  { %v3110_v36 = vadd.f32 %v3109_v46, %v10729_v44  ;;  %v14287_v44 = vld [vmem:[#allocation100_spill] sm:$0xff]  ;;  %v14288_v46 = vld [vmem:[#allocation101_spill] sm:$0xff] }
 0x3e8   :  { %v3314_v14 = vpop.f32.mrf.mxu0 }
 0x3e9   :  { %v3213_v25 = vpop.f32.mrf.mxu3  ;;  %v3315_v59 = vadd.f32 %v3314_v14, %v3211_v19  ;;  %v3418_v16 = vpop.f32.mrf.mxu1  ;;  %v14289_v19 = vld [vmem:[#allocation102_spill] sm:$0xff] }
 0x3ea   :  { %v3214_v0 = vadd.f32 %v3213_v25, %v3110_v36 }
 0x3eb   :  { %v11227_v27 = vadd.f32 %v3418_v16, %v3315_v59 }
 0x3ee   :  { %v3111_v40 = vpop.f32.mrf.mxu2 }
 0x3ef   :  { %v3112_v21 = vadd.f32 %v3111_v40, %v10739_v49 }
 0x3f0   :  { %v3317_v5 = vpop.f32.mrf.mxu0 }
 0x3f1   :  { %v3215_v51 = vpop.f32.mrf.mxu3  ;;  %v3318_v9 = vadd.f32 %v3317_v5, %v3214_v0  ;;  %v3421_v10 = vpop.f32.mrf.mxu1 }
 0x3f2   :  { %v3216_v26 = vadd.f32 %v3215_v51, %v3112_v21  ;;  %v8242_v21 = vld [vmem:[%s13709_s1 + $0x604] sm:$0xf] }
 0x3f3   :  { %v11230_v17 = vadd.f32 %v3421_v10, %v3318_v9  ;;  %3153 = vmatmul.bf16.gmra.mxu2 %v14286_v42  ;;  %3356 = vmatmul.bf16.gmra.mxu0 %v14287_v44  ;;  %v6905_v10 = vld [vmem:[%s13709_s1 + $0x88] sm:$0xf]  ;;  %v8069_v9 = vld [vmem:[%s13709_s1 + $0x94] sm:$0xf0] }
 0x3f4   :  { %3460 = vmatmul.bf16.gmra.mxu1 %v14289_v19  ;;  %v8274_v19 = vld [vmem:[%s13709_s1 + $0x704] sm:$0xf] }
 0x3f6   :  { %3257 = vmatmul.bf16.gmra.mxu3 %v14288_v46  ;;  %v3114_v36 = vpop.f32.mrf.mxu2 }
 0x3f7   :  { %v3115_v25 = vadd.f32 %v3114_v36, %v10771_v62  ;;  %v6906_v62 = vor.u32 %v8069_v9, %v6905_v10  ;;  %v7731_v10 = vld [vmem:[%s13709_s1 + $0x710] sm:$0xf0] }
 0x3f8   :  { %v3319_v49 = vpop.f32.mrf.mxu0  ;;  %v7734_v9 = vor.u32 %v8274_v19, %v7731_v10 }
 0x3f9   :  { %v3218_v14 = vpop.f32.mrf.mxu3  ;;  %v3320_v16 = vadd.f32 %v3319_v49, %v3216_v26  ;;  %v3423_v40 = vpop.f32.mrf.mxu1  ;;  %v7603_v26 = vld [vmem:[%s13709_s1 + $0x610] sm:$0xf0]  ;;  %3702 = vmatpush.bf16.msra.mxu0 %v6906_v62  ;;  %v14290_v62 = vld [vmem:[#allocation105_spill] sm:$0xff] }
 0x3fa   :  { %v3219_v59 = vadd.f32 %v3218_v14, %v3115_v25  ;;  %v7606_v51 = vor.u32 %v8242_v21, %v7603_v26  ;;  %v14292_v26 = vld [vmem:[#allocation107_spill] sm:$0xff]  ;;  %3602 = vmatpush.bf16.msra.mxu3 %v7734_v9 }
 0x3fb   :  { %v11237_v0 = vadd.f32 %v3423_v40, %v3320_v16  ;;  %v7081_v9 = vld [vmem:[%s13709_s1 + $0x1e8] sm:$0xf] }
 0x3fc   :  { %3498 = vmatpush.bf16.msra.mxu2 %v7606_v51  ;;  %v14293_v51 = vld [vmem:[#allocation108_spill] sm:$0xff] }
 0x3fe   :  { %v3116_v5 = vpop.f32.mrf.mxu2 }
 0x3ff   :  { %v3117_v36 = vadd.f32 %v3116_v5, %v10787_v29  ;;  %v14291_v29 = vld [vmem:[#allocation106_spill] sm:$0xff] }
 0x400   :  { %v3322_v14 = vpop.f32.mrf.mxu0 }
 0x401   :  { %v3220_v25 = vpop.f32.mrf.mxu3  ;;  %v3323_v16 = vadd.f32 %v3322_v14, %v3219_v59  ;;  %v3426_v40 = vpop.f32.mrf.mxu1 }
 0x402   :  { %v3221_v49 = vadd.f32 %v3220_v25, %v3117_v36 }
 0x403   :  { %v11258_v21 = vadd.f32 %v3426_v40, %v3323_v16  ;;  %3158 = vmatmul.bf16.gmra.mxu2 %v14290_v62  ;;  %3361 = vmatmul.bf16.gmra.mxu0 %v14291_v29 }
 0x404   :  { %3465 = vmatmul.bf16.gmra.mxu1 %v14293_v51 }
 0x406   :  { %3262 = vmatmul.bf16.gmra.mxu3 %v14292_v26  ;;  %v3119_v59 = vpop.f32.mrf.mxu2 }
 0x407   :  { %v3120_v5 = vadd.f32 %v3119_v59, %v10813_v6  ;;  %v8113_v6 = vld [vmem:[%s13709_s1 + $0x1f4] sm:$0xf0]  ;;  %v14296_v59 = vld [vmem:[#allocation111_spill] sm:$0xff] }
 0x408   :  { %v3324_v25 = vpop.f32.mrf.mxu0 }
 0x409   :  { %v3223_v36 = vpop.f32.mrf.mxu3  ;;  %v3325_v46 = vadd.f32 %v3324_v25, %v3221_v49  ;;  %v3428_v44 = vpop.f32.mrf.mxu1 }
 0x40a   :  { %v3224_v14 = vadd.f32 %v3223_v36, %v3120_v5  ;;  %v14297_v5 = vld [vmem:[#allocation112_spill] sm:$0xff]  ;;  %v7065_v36 = vld [vmem:[%s13709_s1 + $0x1c8] sm:$0xf] }
 0x40b   :  { %v11265_v19 = vadd.f32 %v3428_v44, %v3325_v46  ;;  %v14294_v44 = vld [vmem:[#allocation109_spill] sm:$0xff]  ;;  %v14295_v46 = vld [vmem:[#allocation110_spill] sm:$0xff] }
 0x40e   :  { %v3121_v16 = vpop.f32.mrf.mxu2 }
 0x40f   :  { %v3122_v40 = vadd.f32 %v3121_v16, %v10835_v8  ;;  %v7082_v8 = vor.u32 %v8113_v6, %v7081_v9  ;;  %v7049_v6 = vld [vmem:[%s13709_s1 + $0x1a8] sm:$0xf] }
 0x410   :  { %v3327_v29 = vpop.f32.mrf.mxu0 }
 0x411   :  { %v3225_v10 = vpop.f32.mrf.mxu3  ;;  %v3328_v26 = vadd.f32 %v3327_v29, %v3224_v14  ;;  %v3431_v42 = vpop.f32.mrf.mxu1  ;;  %3803 = vmatpush.bf16.msra.mxu1 %v7082_v8  ;;  %v8105_v8 = vld [vmem:[%s13709_s1 + $0x1b4] sm:$0xf0] }
 0x412   :  { %v3226_v62 = vadd.f32 %v3225_v10, %v3122_v40 }
 0x413   :  { %v11274_v49 = vadd.f32 %v3431_v42, %v3328_v26  ;;  %3163 = vmatmul.bf16.gmra.mxu2 %v14294_v44  ;;  %3366 = vmatmul.bf16.gmra.mxu0 %v14295_v46  ;;  %v8109_v42 = vld [vmem:[%s13709_s1 + $0x1d4] sm:$0xf0]  ;;  %v6857_v44 = vld [vmem:[%s13709_s1 + $0x28] sm:$0xf] }
 0x414   :  { %3470 = vmatmul.bf16.gmra.mxu1 %v14297_v5  ;;  %v7066_v14 = vor.u32 %v8109_v42, %v7065_v36 }
 0x416   :  { %3267 = vmatmul.bf16.gmra.mxu3 %v14296_v59  ;;  %v3124_v29 = vpop.f32.mrf.mxu2  ;;  %3804 = vmatpush.bf16.msra.mxu1 %v7066_v14  ;;  %v7050_v59 = vor.u32 %v8105_v8, %v7049_v6  ;;  %v8097_v8 = vld [vmem:[%s13709_s1 + $0x174] sm:$0xf0] }
 0x417   :  { %v3125_v26 = vadd.f32 %v3124_v29, %v10870_v12  ;;  %v7033_v29 = vld [vmem:[%s13709_s1 + $0x188] sm:$0xf] }
 0x418   :  { %v3329_v16 = vpop.f32.mrf.mxu0 }
 0x419   :  { %v3228_v25 = vpop.f32.mrf.mxu3  ;;  %v3330_v10 = vadd.f32 %v3329_v16, %v3226_v62  ;;  %v3433_v9 = vpop.f32.mrf.mxu1  ;;  %v8101_v62 = vld [vmem:[%s13709_s1 + $0x194] sm:$0xf0] }
 0x41a   :  { %v3229_v40 = vadd.f32 %v3228_v25, %v3125_v26  ;;  %3805 = vmatpush.bf16.msra.mxu1 %v7050_v59  ;;  %v7034_v26 = vor.u32 %v8101_v62, %v7033_v29  ;;  %v6889_v59 = vld [vmem:[%s13709_s1 + $0x68] sm:$0xf]  ;;  %v14299_v29 = vld [vmem:[#allocation114_spill] sm:$0xff] }
 0x41b   :  { %v11293_v5 = vadd.f32 %v3433_v9, %v3330_v10  ;;  %v8065_v9 = vld [vmem:[%s13709_s1 + $0x74] sm:$0xf0] }
 0x41c   :  { %v6890_v6 = vor.u32 %v8065_v9, %v6889_v59  ;;  %v8177_v59 = vld [vmem:[%s13709_s1 + $0x3f4] sm:$0xf0] }
 0x41e   :  { %v3126_v12 = vpop.f32.mrf.mxu2  ;;  %3806 = vmatpush.bf16.msra.mxu1 %v7034_v26  ;;  %v7209_v26 = vld [vmem:[%s13709_s1 + $0x2e8] sm:$0xf]  ;;  %3703 = vmatpush.bf16.msra.mxu0 %v6890_v6 }
 0x41f   :  { %v3127_v36 = vadd.f32 %v3126_v12, %v10916_v18  ;;  %v7017_v18 = vld [vmem:[%s13709_s1 + $0x168] sm:$0xf]  ;;  %v14298_v12 = vld [vmem:[#allocation113_spill] sm:$0xff] }
 0x420   :  { %v3332_v25 = vpop.f32.mrf.mxu0  ;;  %v7018_v62 = vor.u32 %v8097_v8, %v7017_v18  ;;  %v6873_v8 = vld [vmem:[%s13709_s1 + $0x48] sm:$0xf] }
 0x421   :  { %v3230_v42 = vpop.f32.mrf.mxu3  ;;  %v3333_v16 = vadd.f32 %v3332_v25, %v3229_v40  ;;  %v3436_v10 = vpop.f32.mrf.mxu1  ;;  %v8145_v25 = vld [vmem:[%s13709_s1 + $0x2f4] sm:$0xf0]  ;;  %v7001_v6 = vld [vmem:[%s13709_s1 + $0x148] sm:$0xf] }
 0x422   :  { %v3231_v14 = vadd.f32 %v3230_v42, %v3127_v36  ;;  %v14300_v36 = vld [vmem:[#allocation115_spill] sm:$0xff]  ;;  %v14301_v42 = vld [vmem:[#allocation116_spill] sm:$0xff]  ;;  %3807 = vmatpush.bf16.msra.mxu1 %v7018_v62 }
 0x423   :  { %v11314_v40 = vadd.f32 %v3436_v10, %v3333_v16  ;;  %3168 = vmatmul.bf16.gmra.mxu2 %v14298_v12  ;;  %3371 = vmatmul.bf16.gmra.mxu0 %v14299_v29  ;;  %v7337_v16 = vld [vmem:[%s13709_s1 + $0x3e8] sm:$0xf]  ;;  %v7210_v10 = vor.u32 %v8145_v25, %v7209_v26 }
 0x424   :  { %3475 = vmatmul.bf16.gmra.mxu1 %v14301_v42  ;;  %v7338_v18 = vor.u32 %v8177_v59, %v7337_v16  ;;  %v8061_v42 = vld [vmem:[%s13709_s1 + $0x54] sm:$0xf0] }
 0x425   :  { %3907 = vmatpush.bf16.msrb.mxu2 %v7210_v10  ;;  %v6874_v25 = vor.u32 %v8061_v42, %v6873_v8  ;;  %v8093_v16 = vld [vmem:[%s13709_s1 + $0x154] sm:$0xf0]  ;;  %v6985_v42 = vld [vmem:[%s13709_s1 + $0x128] sm:$0xf] }
 0x426   :  { %3272 = vmatmul.bf16.gmra.mxu3 %v14300_v36  ;;  %v3129_v9 = vpop.f32.mrf.mxu2  ;;  %v7002_v36 = vor.u32 %v8093_v16, %v7001_v6  ;;  %v6841_v8 = vld [vmem:[%s13709_s1 + $0x8] sm:$0xf]  ;;  %v8053_v6 = vld [vmem:[%s13709_s1 + $0x14] sm:$0xf0] }
 0x427   :  { %v3130_v62 = vadd.f32 %v3129_v9, %v10951_v43  ;;  %4011 = vmatpush.bf16.msrb.mxu3 %v7338_v18  ;;  %3704 = vmatpush.bf16.msra.mxu0 %v6874_v25  ;;  %v8057_v43 = vld [vmem:[%s13709_s1 + $0x34] sm:$0xf0] }
 0x428   :  { %v3334_v59 = vpop.f32.mrf.mxu0  ;;  %3808 = vmatpush.bf16.msra.mxu1 %v7002_v36  ;;  %v6858_v9 = vor.u32 %v8057_v43, %v6857_v44  ;;  %v6969_v44 = vld [vmem:[%s13709_s1 + $0x108] sm:$0xf] }
 0x429   :  { %v3233_v26 = vpop.f32.mrf.mxu3  ;;  %v3335_v12 = vadd.f32 %v3334_v59, %v3231_v14  ;;  %v3438_v46 = vpop.f32.mrf.mxu1  ;;  %v8089_v14 = vld [vmem:[%s13709_s1 + $0x134] sm:$0xf0] }
 0x42a   :  { %v3234_v29 = vadd.f32 %v3233_v26, %v3130_v62  ;;  %v6986_v36 = vor.u32 %v8089_v14, %v6985_v42  ;;  %v6842_v62 = vor.u32 %v8053_v6, %v6841_v8  ;;  %v8085_v26 = vld [vmem:[%s13709_s1 + $0x114] sm:$0xf0] }
 0x42b   :  { %v11354_v10 = vadd.f32 %v3438_v46, %v3335_v12  ;;  %3705 = vmatpush.bf16.msra.mxu0 %v6858_v9  ;;  %v6970_v16 = vor.u32 %v8085_v26, %v6969_v44 }
 0x42c   :  { %3809 = vmatpush.bf16.msra.mxu1 %v6986_v36 }
 0x42e   :  { %v3131_v18 = vpop.f32.mrf.mxu2 }
 0x42f   :  { %v3132_v46 = vadd.f32 %v3131_v18, %v10961_v32  ;;  %3706 = vmatpush.bf16.msra.mxu0 %v6842_v62 }
 0x430   :  { %v3337_v25 = vpop.f32.mrf.mxu0  ;;  %3810 = vmatpush.bf16.msra.mxu1 %v6970_v16 }
 0x431   :  { %v3235_v12 = vpop.f32.mrf.mxu3  ;;  %v3338_v43 = vadd.f32 %v3337_v25, %v3234_v29  ;;  %v3441_v42 = vpop.f32.mrf.mxu1 }
 0x432   :  { %v3236_v59 = vadd.f32 %v3235_v12, %v3132_v46 }
 0x433   :  { %v11372_v9 = vadd.f32 %v3441_v42, %v3338_v43  ;;  %3173 = vmatmul.bf16.gmra.mxu2 %v10196_v1  ;;  %3376 = vmatmul.bf16.gmra.mxu0 %v10198_v53 }
 0x434   :  { %3480 = vmatmul.bf16.gmra.mxu1 %v10205_v37 }
 0x436   :  { %3277 = vmatmul.bf16.gmra.mxu3 %v10203_v41  ;;  %v3134_v32 = vpop.f32.mrf.mxu2 }
 0x437   :  { %v3135_v14 = vadd.f32 %v3134_v32, %v10965_v15  ;;  %v14302_v15 = vld [vmem:[#allocation123_spill] sm:$0xff]  ;;  %v14303_v32 = vld [vmem:[#allocation124_spill] sm:$0xff] }
 0x438   :  { %v3339_v18 = vpop.f32.mrf.mxu0 }
 0x439   :  { %v3238_v36 = vpop.f32.mrf.mxu3  ;;  %v3340_v29 = vadd.f32 %v3339_v18, %v3236_v59  ;;  %v3443_v6 = vpop.f32.mrf.mxu1  ;;  %v14304_v59 = vld [vmem:[#allocation125_spill] sm:$0xff] }
 0x43a   :  { %v3239_v8 = vadd.f32 %v3238_v36, %v3135_v14 }
 0x43b   :  { %v11379_v44 = vadd.f32 %v3443_v6, %v3340_v29 }
 0x43e   :  { %v3136_v46 = vpop.f32.mrf.mxu2 }
 0x43f   :  { %v3137_v12 = vadd.f32 %v3136_v46, %v10975_v55 }
 0x440   :  { %v3342_v26 = vpop.f32.mrf.mxu0 }
 0x441   :  { %v3240_v62 = vpop.f32.mrf.mxu3  ;;  %v3343_v16 = vadd.f32 %v3342_v26, %v3239_v8  ;;  %v3446_v43 = vpop.f32.mrf.mxu1  ;;  %v7321_v26 = vld [vmem:[%s13709_s1 + $0x3c8] sm:$0xf] }
 0x442   :  { %v3241_v25 = vadd.f32 %v3240_v62, %v3137_v12  ;;  %v7193_v12 = vld [vmem:[%s13709_s1 + $0x2c8] sm:$0xf]  ;;  %v8141_v62 = vld [vmem:[%s13709_s1 + $0x2d4] sm:$0xf0] }
 0x443   :  { %v11382_v42 = vadd.f32 %v3446_v43, %v3343_v16  ;;  %3381 = vmatmul.bf16.gmra.mxu0 %v10241_v7  ;;  %3499 = vmatmul.bf16.vlgmr.msra.gmra.mxu2 %v14302_v15  ;;  %v14308_v15 = vld [vmem:[#allocation4_spill] sm:$0xff] }
 0x444   :  { %3485 = vmatmul.bf16.gmra.mxu1 %v14303_v32  ;;  %v14305_v32 = vld [vmem:[#allocation126_spill] sm:$0xff] }
 0x446   :  { %3603 = vmatmul.bf16.vlgmr.msra.gmra.mxu3 %v14304_v59  ;;  %v3139_v14 = vpop.f32.mrf.mxu2 }
 0x447   :  { %v3140_v36 = vadd.f32 %v3139_v14, %v10991_v11  ;;  %v7194_v11 = vor.u32 %v8141_v62, %v7193_v12  ;;  %v14306_v12 = vld [vmem:[#allocation2_spill] sm:$0xff]  ;;  %v14307_v62 = vld [vmem:[#allocation127_spill] sm:$0xff] }
 0x448   :  { %v3344_v55 = vpop.f32.mrf.mxu0 }
 0x449   :  { %v3243_v18 = vpop.f32.mrf.mxu3  ;;  %v3345_v6 = vadd.f32 %v3344_v55, %v3241_v25  ;;  %v3448_v46 = vpop.f32.mrf.mxu1  ;;  %v8173_v25 = vld [vmem:[%s13709_s1 + $0x3d4] sm:$0xf0]  ;;  %3908 = vmatpush.bf16.msrb.mxu2 %v7194_v11 }
 0x44a   :  { %v3244_v29 = vadd.f32 %v3243_v18, %v3140_v36  ;;  %v7322_v16 = vor.u32 %v8173_v25, %v7321_v26 }
 0x44b   :  { %v11389_v8 = vadd.f32 %v3448_v46, %v3345_v6 }
 0x44c   :  { %4012 = vmatpush.bf16.msrb.mxu3 %v7322_v16 }
 0x44e   :  { %v3141_v43 = vpop.f32.mrf.mxu2 }
 0x44f   :  { %v3142_v14 = vadd.f32 %v3141_v43, %v11001_v58 }
 0x450   :  { %v3347_v18 = vpop.f32.mrf.mxu0 }
 0x451   :  { %v3245_v36 = vpop.f32.mrf.mxu3  ;;  %v3348_v6 = vadd.f32 %v3347_v18, %v3244_v29  ;;  %v3451_v46 = vpop.f32.mrf.mxu1 }
 0x452   :  { %v3246_v55 = vadd.f32 %v3245_v36, %v3142_v14 }
 0x453   :  { %v11404_v59 = vadd.f32 %v3451_v46, %v3348_v6  ;;  %3504 = vmatmul.bf16.gmra.mxu2 %v14305_v32  ;;  %3707 = vmatmul.bf16.vlgmr.msra.gmra.mxu0 %v14306_v12 }
 0x454   :  { %3811 = vmatmul.bf16.vlgmr.msra.gmra.mxu1 %v14308_v15  ;;  %v14309_v15 = vld [vmem:[#allocation128_spill] sm:$0xff] }
 0x456   :  { %3608 = vmatmul.bf16.gmra.mxu3 %v14307_v62  ;;  %v3144_v26 = vpop.f32.mrf.mxu2 }
 0x457   :  { %v3145_v11 = vadd.f32 %v3144_v26, %v11005_v50  ;;  %v14310_v50 = vld [vmem:[#allocation6_spill] sm:$0xff]  ;;  %v14311_v26 = vld [vmem:[#allocation129_spill] sm:$0xff] }
 0x458   :  { %v3349_v25 = vpop.f32.mrf.mxu0 }
 0x459   :  { %v3248_v58 = vpop.f32.mrf.mxu3  ;;  %v3350_v43 = vadd.f32 %v3349_v25, %v3246_v55  ;;  %v3453_v14 = vpop.f32.mrf.mxu1  ;;  %v14312_v55 = vld [vmem:[#allocation8_spill] sm:$0xff] }
 0x45a   :  { %v3249_v16 = vadd.f32 %v3248_v58, %v3145_v11 }
 0x45b   :  { %v11411_v29 = vadd.f32 %v3453_v14, %v3350_v43 }
 0x45e   :  { %v3146_v36 = vpop.f32.mrf.mxu2 }
 0x45f   :  { %v3147_v18 = vadd.f32 %v3146_v36, %v11015_v2 }
 0x460   :  { %v3352_v46 = vpop.f32.mrf.mxu0 }
 0x461   :  { %v3250_v6 = vpop.f32.mrf.mxu3  ;;  %v3353_v32 = vadd.f32 %v3352_v46, %v3249_v16  ;;  %v3456_v62 = vpop.f32.mrf.mxu1 }
 0x462   :  { %v3251_v12 = vadd.f32 %v3250_v6, %v3147_v18 }
 0x463   :  { %v11414_v7 = vadd.f32 %v3456_v62, %v3353_v32  ;;  %3509 = vmatmul.bf16.gmra.mxu2 %v14309_v15  ;;  %3712 = vmatmul.bf16.gmra.mxu0 %v14310_v50 }
 0x464   :  { %3816 = vmatmul.bf16.gmra.mxu1 %v14312_v55  ;;  %v7177_v55 = vld [vmem:[%s13709_s1 + $0x2a8] sm:$0xf] }
 0x466   :  { %3613 = vmatmul.bf16.gmra.mxu3 %v14311_v26  ;;  %v3149_v11 = vpop.f32.mrf.mxu2 }
 0x467   :  { %v3150_v58 = vadd.f32 %v3149_v11, %v11019_v22  ;;  %v8137_v22 = vld [vmem:[%s13709_s1 + $0x2b4] sm:$0xf0] }
 0x468   :  { %v3354_v2 = vpop.f32.mrf.mxu0 }
 0x469   :  { %v3253_v25 = vpop.f32.mrf.mxu3  ;;  %v3355_v14 = vadd.f32 %v3354_v2, %v3251_v12  ;;  %v3458_v36 = vpop.f32.mrf.mxu1  ;;  %v7178_v12 = vor.u32 %v8137_v22, %v7177_v55  ;;  %v8169_v2 = vld [vmem:[%s13709_s1 + $0x3b4] sm:$0xf0] }
 0x46a   :  { %v3254_v43 = vadd.f32 %v3253_v25, %v3150_v58  ;;  %v14313_v58 = vld [vmem:[#allocation130_spill] sm:$0xff] }
 0x46b   :  { %v11421_v16 = vadd.f32 %v3458_v36, %v3355_v14  ;;  %v14314_v25 = vld [vmem:[#allocation10_spill] sm:$0xff]  ;;  %v14316_v14 = vld [vmem:[#allocation12_spill] sm:$0xff]  ;;  %3909 = vmatpush.bf16.msrb.mxu2 %v7178_v12 }
 0x46e   :  { %v3151_v32 = vpop.f32.mrf.mxu2 }
 0x46f   :  { %v3152_v62 = vadd.f32 %v3151_v32, %v11041_v31  ;;  %v7305_v31 = vld [vmem:[%s13709_s1 + $0x3a8] sm:$0xf] }
 0x470   :  { %v3357_v6 = vpop.f32.mrf.mxu0  ;;  %v7306_v36 = vor.u32 %v8169_v2, %v7305_v31  ;;  %v14317_v2 = vld [vmem:[#allocation132_spill] sm:$0xff] }
 0x471   :  { %v3255_v18 = vpop.f32.mrf.mxu3  ;;  %v3358_v50 = vadd.f32 %v3357_v6, %v3254_v43  ;;  %v3461_v26 = vpop.f32.mrf.mxu1  ;;  %v14315_v43 = vld [vmem:[#allocation131_spill] sm:$0xff] }
 0x472   :  { %v3256_v46 = vadd.f32 %v3255_v18, %v3152_v62  ;;  %4013 = vmatpush.bf16.msrb.mxu3 %v7306_v36  ;;  %v14319_v36 = vld [vmem:[#allocation133_spill] sm:$0xff] }
 0x473   :  { %v11430_v11 = vadd.f32 %v3461_v26, %v3358_v50  ;;  %3514 = vmatmul.bf16.gmra.mxu2 %v14313_v58  ;;  %3717 = vmatmul.bf16.gmra.mxu0 %v14314_v25 }
 0x474   :  { %3821 = vmatmul.bf16.gmra.mxu1 %v14316_v14 }
 0x476   :  { %3618 = vmatmul.bf16.gmra.mxu3 %v14315_v43  ;;  %v3154_v50 = vpop.f32.mrf.mxu2 }
 0x477   :  { %v3155_v26 = vadd.f32 %v3154_v50, %v11045_v63  ;;  %v14318_v63 = vld [vmem:[#allocation14_spill] sm:$0xff] }
 0x478   :  { %v3359_v32 = vpop.f32.mrf.mxu0 }
 0x479   :  { %v3258_v55 = vpop.f32.mrf.mxu3  ;;  %v3360_v18 = vadd.f32 %v3359_v32, %v3256_v46  ;;  %v3463_v6 = vpop.f32.mrf.mxu1  ;;  %v14320_v46 = vld [vmem:[#allocation16_spill] sm:$0xff] }
 0x47a   :  { %v3259_v62 = vadd.f32 %v3258_v55, %v3155_v26 }
 0x47b   :  { %v11443_v22 = vadd.f32 %v3463_v6, %v3360_v18 }
 0x47e   :  { %v3156_v25 = vpop.f32.mrf.mxu2 }
 0x47f   :  { %v3157_v58 = vadd.f32 %v3156_v25, %v11055_v54 }
 0x480   :  { %v3362_v43 = vpop.f32.mrf.mxu0 }
 0x481   :  { %v3260_v15 = vpop.f32.mrf.mxu3  ;;  %v3363_v14 = vadd.f32 %v3362_v43, %v3259_v62  ;;  %v3466_v31 = vpop.f32.mrf.mxu1 }
 0x482   :  { %v3261_v37 = vadd.f32 %v3260_v15, %v3157_v58 }
 0x483   :  { %v11446_v12 = vadd.f32 %v3466_v31, %v3363_v14  ;;  %3519 = vmatmul.bf16.gmra.mxu2 %v14317_v2  ;;  %3722 = vmatmul.bf16.gmra.mxu0 %v14318_v63  ;;  %v14335_v2 = vld [vmem:[#allocation137_spill] sm:$0xff] }
 0x484   :  { %3826 = vmatmul.bf16.gmra.mxu1 %v14320_v46  ;;  %v14321_v46 = vld [vmem:[#allocation134_spill] sm:$0xff] }
 0x486   :  { %3623 = vmatmul.bf16.gmra.mxu3 %v14319_v36  ;;  %v3159_v50 = vpop.f32.mrf.mxu2 }
 0x487   :  { %v3160_v26 = vadd.f32 %v3159_v50, %v11059_v60  ;;  %v14322_v60 = vld [vmem:[#allocation18_spill] sm:$0xff]  ;;  %v14323_v50 = vld [vmem:[#allocation135_spill] sm:$0xff] }
 0x488   :  { %v3364_v54 = vpop.f32.mrf.mxu0 }
 0x489   :  { %v3263_v55 = vpop.f32.mrf.mxu3  ;;  %v3365_v32 = vadd.f32 %v3364_v54, %v3261_v37  ;;  %v3468_v15 = vpop.f32.mrf.mxu1  ;;  %v14324_v37 = vld [vmem:[#allocation20_spill] sm:$0xff] }
 0x48a   :  { %v3264_v25 = vadd.f32 %v3263_v55, %v3160_v26  ;;  %v7161_v26 = vld [vmem:[%s13709_s1 + $0x288] sm:$0xf] }
 0x48b   :  { %v11453_v58 = vadd.f32 %v3468_v15, %v3365_v32 }
 0x48e   :  { %v3161_v43 = vpop.f32.mrf.mxu2 }
 0x48f   :  { %v3162_v14 = vadd.f32 %v3161_v43, %v11075_v33  ;;  %v8133_v33 = vld [vmem:[%s13709_s1 + $0x294] sm:$0xf0] }
 0x490   :  { %v3367_v18 = vpop.f32.mrf.mxu0  ;;  %v7162_v55 = vor.u32 %v8133_v33, %v7161_v26 }
 0x491   :  { %v3265_v62 = vpop.f32.mrf.mxu3  ;;  %v3368_v31 = vadd.f32 %v3367_v18, %v3264_v25  ;;  %v3471_v36 = vpop.f32.mrf.mxu1  ;;  %v8165_v18 = vld [vmem:[%s13709_s1 + $0x394] sm:$0xf0] }
 0x492   :  { %v3266_v6 = vadd.f32 %v3265_v62, %v3162_v14  ;;  %3910 = vmatpush.bf16.msrb.mxu2 %v7162_v55  ;;  %v7289_v62 = vld [vmem:[%s13709_s1 + $0x388] sm:$0xf] }
 0x493   :  { %v11456_v63 = vadd.f32 %v3471_v36, %v3368_v31  ;;  %3524 = vmatmul.bf16.gmra.mxu2 %v14321_v46  ;;  %3727 = vmatmul.bf16.gmra.mxu0 %v14322_v60  ;;  %v7290_v31 = vor.u32 %v8165_v18, %v7289_v62  ;;  %v14327_v60 = vld [vmem:[#allocation136_spill] sm:$0xff] }
 0x494   :  { %3831 = vmatmul.bf16.gmra.mxu1 %v14324_v37  ;;  %v14328_v62 = vld [vmem:[#allocation24_spill] sm:$0xff] }
 0x495   :  { %4014 = vmatpush.bf16.msrb.mxu3 %v7290_v31 }
 0x496   :  { %3628 = vmatmul.bf16.gmra.mxu3 %v14323_v50  ;;  %v3164_v54 = vpop.f32.mrf.mxu2  ;;  %v14326_v50 = vld [vmem:[#allocation22_spill] sm:$0xff] }
 0x497   :  { %v3165_v36 = vadd.f32 %v3164_v54, %v11085_v3 }
 0x498   :  { %v3369_v32 = vpop.f32.mrf.mxu0 }
 0x499   :  { %v3268_v25 = vpop.f32.mrf.mxu3  ;;  %v3370_v43 = vadd.f32 %v3369_v32, %v3266_v6  ;;  %v3473_v14 = vpop.f32.mrf.mxu1  ;;  %v14325_v32 = vld [vmem:[#allocation66_spill] sm:$0xff] }
 0x49a   :  { %v3269_v15 = vadd.f32 %v3268_v25, %v3165_v36 }
 0x49b   :  { %v11475_v37 = vadd.f32 %v3473_v14, %v3370_v43 }
 0x49e   :  { %v3166_v26 = vpop.f32.mrf.mxu2 }
 0x49f   :  { %v3167_v3 = vadd.f32 %v3166_v26, %v11095_v28 }
 0x4a0   :  { %v3372_v55 = vpop.f32.mrf.mxu0 }
 0x4a1   :  { %v3270_v33 = vpop.f32.mrf.mxu3  ;;  %v3373_v6 = vadd.f32 %v3372_v55, %v3269_v15  ;;  %v3476_v36 = vpop.f32.mrf.mxu1 }
 0x4a2   :  { %v3271_v54 = vadd.f32 %v3270_v33, %v3167_v3 }
 0x4a3   :  { %v11478_v25 = vadd.f32 %v3476_v36, %v3373_v6  ;;  %3529 = vmatmul.bf16.gmra.mxu2 %v14325_v32  ;;  %3732 = vmatmul.bf16.gmra.mxu0 %v14326_v50 }
 0x4a4   :  { %3836 = vmatmul.bf16.gmra.mxu1 %v14328_v62  ;;  %v14329_v62 = vld [vmem:[#allocation67_spill] sm:$0xff] }
 0x4a6   :  { %3633 = vmatmul.bf16.gmra.mxu3 %v14327_v60  ;;  %v3169_v43 = vpop.f32.mrf.mxu2 }
 0x4a7   :  { %v3170_v14 = vadd.f32 %v3169_v43, %v11099_v61  ;;  %v14330_v61 = vld [vmem:[#allocation26_spill] sm:$0xff]  ;;  %v14331_v43 = vld [vmem:[#allocation72_spill] sm:$0xff] }
 0x4a8   :  { %v3374_v28 = vpop.f32.mrf.mxu0 }
 0x4a9   :  { %v3273_v18 = vpop.f32.mrf.mxu3  ;;  %v3375_v26 = vadd.f32 %v3374_v28, %v3271_v54  ;;  %v3478_v3 = vpop.f32.mrf.mxu1  ;;  %v14332_v54 = vld [vmem:[#allocation28_spill] sm:$0xff] }
 0x4aa   :  { %v3274_v31 = vadd.f32 %v3273_v18, %v3170_v14 }
 0x4ab   :  { %v11485_v15 = vadd.f32 %v3478_v3, %v3375_v26 }
 0x4ae   :  { %v3171_v33 = vpop.f32.mrf.mxu2 }
 0x4af   :  { %v3172_v55 = vadd.f32 %v3171_v33, %v11115_v56 }
 0x4b0   :  { %v3377_v36 = vpop.f32.mrf.mxu0 }
 0x4b1   :  { %v3275_v6 = vpop.f32.mrf.mxu3  ;;  %v3378_v32 = vadd.f32 %v3377_v36, %v3274_v31  ;;  %v3481_v60 = vpop.f32.mrf.mxu1  ;;  %v8161_v36 = vld [vmem:[%s13709_s1 + $0x374] sm:$0xf0] }
 0x4b2   :  { %v3276_v50 = vadd.f32 %v3275_v6, %v3172_v55  ;;  %v7145_v55 = vld [vmem:[%s13709_s1 + $0x268] sm:$0xf] }
 0x4b3   :  { %v11488_v46 = vadd.f32 %v3481_v60, %v3378_v32  ;;  %3534 = vmatmul.bf16.gmra.mxu2 %v14329_v62  ;;  %3737 = vmatmul.bf16.gmra.mxu0 %v14330_v61  ;;  %v7465_v60 = vld [vmem:[%s13709_s1 + $0x4e8] sm:$0xf]  ;;  %v8209_v32 = vld [vmem:[%s13709_s1 + $0x4f4] sm:$0xf0]  ;;  %v14334_v62 = vld [vmem:[#allocation30_spill] sm:$0xff] }
 0x4b4   :  { %3841 = vmatmul.bf16.gmra.mxu1 %v14332_v54  ;;  %v7273_v6 = vld [vmem:[%s13709_s1 + $0x368] sm:$0xf]  ;;  %v14333_v61 = vld [vmem:[#allocation73_spill] sm:$0xff] }
 0x4b6   :  { %3638 = vmatmul.bf16.gmra.mxu3 %v14331_v43  ;;  %v3174_v14 = vpop.f32.mrf.mxu2 }
 0x4b7   :  { %v3175_v18 = vadd.f32 %v3174_v14, %v11131_v13  ;;  %v7466_v13 = vor.u32 %v8209_v32, %v7465_v60 }
 0x4b8   :  { %v3379_v56 = vpop.f32.mrf.mxu0 }
 0x4b9   :  { %v3278_v28 = vpop.f32.mrf.mxu3  ;;  %v3380_v3 = vadd.f32 %v3379_v56, %v3276_v50  ;;  %v3483_v33 = vpop.f32.mrf.mxu1  ;;  %v8129_v50 = vld [vmem:[%s13709_s1 + $0x274] sm:$0xf0]  ;;  %4115 = vmatpush.bf16.msrb.mxu0 %v7466_v13 }
 0x4ba   :  { %v3279_v26 = vadd.f32 %v3278_v28, %v3175_v18  ;;  %v7146_v14 = vor.u32 %v8129_v50, %v7145_v55  ;;  %v7274_v18 = vor.u32 %v8161_v36, %v7273_v6  ;;  %v14336_v55 = vld [vmem:[#allocation32_spill] sm:$0xff] }
 0x4bb   :  { %v11495_v31 = vadd.f32 %v3483_v33, %v3380_v3 }
 0x4bc   :  { %3911 = vmatpush.bf16.msrb.mxu2 %v7146_v14  ;;  %4015 = vmatpush.bf16.msrb.mxu3 %v7274_v18 }
 0x4be   :  { %v3176_v28 = vpop.f32.mrf.mxu2 }
 0x4bf   :  { %v3177_v56 = vadd.f32 %v3176_v28, %v11141_v20 }
 0x4c0   :  { %v3382_v33 = vpop.f32.mrf.mxu0 }
 0x4c1   :  { %v3280_v3 = vpop.f32.mrf.mxu3  ;;  %v3383_v32 = vadd.f32 %v3382_v33, %v3279_v26  ;;  %v3486_v54 = vpop.f32.mrf.mxu1 }
 0x4c2   :  { %v3281_v60 = vadd.f32 %v3280_v3, %v3177_v56 }
 0x4c3   :  { %v11516_v43 = vadd.f32 %v3486_v54, %v3383_v32  ;;  %3539 = vmatmul.bf16.gmra.mxu2 %v14333_v61  ;;  %3742 = vmatmul.bf16.gmra.mxu0 %v14334_v62  ;;  %v8483_v54 = vld [vmem:[%s13711_s2] sm:$0xf] }
 0x4c4   :  { %3846 = vmatmul.bf16.gmra.mxu1 %v14336_v55  ;;  %v11528_v28 = vperm.slane %v8483_v54, 2  ;;  %v14340_v54 = vld [vmem:[#allocation36_spill] sm:$0xff] }
 0x4c6   :  { %3643 = vmatmul.bf16.gmra.mxu3 %v14335_v2  ;;  %v3500_v13 = vpop.f32.mrf.mxu2 }
 0x4c7   :  { %v3501_v20 = vadd.f32 %v3500_v13, %v11144_v39 }
 0x4c8   :  { %v3384_v6 = vpop.f32.mrf.mxu0 }
 0x4c9   :  { %v3604_v50 = vpop.f32.mrf.mxu3  ;;  %v3385_v14 = vadd.f32 %v3384_v6, %v3281_v60  ;;  %v3488_v18 = vpop.f32.mrf.mxu1  ;;  %v14337_v6 = vld [vmem:[#allocation82_spill] sm:$0xff] }
 0x4ca   :  { %v3605_v36 = vadd.f32 %v3604_v50, %v3501_v20 }
 0x4cb   :  { %v11523_v26 = vadd.f32 %v3488_v18, %v3385_v14  ;;  %v14338_v14 = vld [vmem:[#allocation34_spill] sm:$0xff] }
 0x4cc   :  { %v5364_v20 = vmax.f32 %v3605_v36, 0.0  ;;  %v14339_v18 = vld [vmem:[#allocation138_spill] sm:$0xff] }
 0x4ce   :  { %v3502_v56 = vpop.f32.mrf.mxu2 }
 0x4cf   :  { %v3503_v3 = vadd.f32 %v3502_v56, %v11151_v52 }
 0x4d0   :  { %v3708_v32 = vpop.f32.mrf.mxu0 }
 0x4d1   :  { %v3606_v33 = vpop.f32.mrf.mxu3  ;;  %v3709_v39 = vadd.f32 %v3708_v32, %v11528_v28  ;;  %v3812_v13 = vpop.f32.mrf.mxu1 }
 0x4d2   :  { %v3607_v55 = vadd.f32 %v3606_v33, %v3503_v3 }
 0x4d3   :  { %v11532_v50 = vadd.f32 %v3812_v13, %v3709_v39  ;;  %3544 = vmatmul.bf16.gmra.mxu2 %v14337_v6  ;;  %3747 = vmatmul.bf16.gmra.mxu0 %v14338_v14  ;;  %v7449_v13 = vld [vmem:[%s13709_s1 + $0x4c8] sm:$0xf]  ;;  %v14342_v14 = vld [vmem:[#allocation140_spill] sm:$0xff]  ;;  %v14343_v6 = vld [vmem:[#allocation38_spill] sm:$0xff] }
 0x4d4   :  { %v5368_v60 = vmax.f32 %v3607_v55, 0.0  ;;  %3851 = vmatmul.bf16.gmra.mxu1 %v14340_v54 }
 0x4d6   :  { %3648 = vmatmul.bf16.gmra.mxu3 %v14339_v18  ;;  %v11538_v2 = vpack.c.bf16 %v5368_v60, %v5364_v20  ;;  %v3505_v52 = vpop.f32.mrf.mxu2  ;;  %v8205_v20 = vld [vmem:[%s13709_s1 + $0x4d4] sm:$0xf0] }
 0x4d7   :  { %v3506_v56 = vadd.f32 %v3505_v52, %v11160_v24  ;;  %v7450_v60 = vor.u32 %v8205_v20, %v7449_v13  ;;  %v7129_v13 = vld [vmem:[%s13709_s1 + $0x248] sm:$0xf]  ;;  %v14345_v20 = vld [vmem:[#allocation40_spill] sm:$0xff] }
 0x4d8   :  { %14341 = vst [vmem:[#allocation87_spill] sm:$0xff] %v11538_v2  ;;  %v3710_v33 = vpop.f32.mrf.mxu0 }
 0x4d9   :  { %v3609_v3 = vpop.f32.mrf.mxu3  ;;  %v3711_v55 = vadd.f32 %v3710_v33, %v11528_v28  ;;  %v3814_v36 = vpop.f32.mrf.mxu1  ;;  %4116 = vmatpush.bf16.msrb.mxu0 %v7450_v60  ;;  %v7257_v60 = vld [vmem:[%s13709_s1 + $0x348] sm:$0xf] }
 0x4da   :  { %v3610_v32 = vadd.f32 %v3609_v3, %v3506_v56 }
 0x4db   :  { %v11542_v39 = vadd.f32 %v3814_v36, %v3711_v55 }
 0x4dc   :  { %v5372_v36 = vmax.f32 %v3610_v32, 0.0 }
 0x4de   :  { %v3507_v2 = vpop.f32.mrf.mxu2 }
 0x4df   :  { %v3508_v24 = vadd.f32 %v3507_v2, %v11179_v35  ;;  %v8125_v35 = vld [vmem:[%s13709_s1 + $0x254] sm:$0xf0] }
 0x4e0   :  { %v3713_v56 = vpop.f32.mrf.mxu0  ;;  %v14344_v2 = vld [vmem:[#allocation141_spill] sm:$0xff]  ;;  %v7130_v32 = vor.u32 %v8125_v35, %v7129_v13 }
 0x4e1   :  { %v3611_v52 = vpop.f32.mrf.mxu3  ;;  %v3714_v33 = vadd.f32 %v3713_v56, %v11528_v28  ;;  %v3817_v55 = vpop.f32.mrf.mxu1 }
 0x4e2   :  { %v3612_v3 = vadd.f32 %v3611_v52, %v3508_v24  ;;  %v8157_v24 = vld [vmem:[%s13709_s1 + $0x354] sm:$0xf0]  ;;  %3912 = vmatpush.bf16.msrb.mxu2 %v7130_v32 }
 0x4e3   :  { %v11552_v18 = vadd.f32 %v3817_v55, %v3714_v33  ;;  %3549 = vmatmul.bf16.gmra.mxu2 %v14342_v14  ;;  %3752 = vmatmul.bf16.gmra.mxu0 %v14343_v6  ;;  %v7258_v52 = vor.u32 %v8157_v24, %v7257_v60 }
 0x4e4   :  { %v5376_v54 = vmax.f32 %v3612_v3, 0.0  ;;  %3856 = vmatmul.bf16.gmra.mxu1 %v14345_v20 }
 0x4e5   :  { %4016 = vmatpush.bf16.msrb.mxu3 %v7258_v52  ;;  %v14347_v52 = vld [vmem:[#allocation143_spill] sm:$0xff] }
 0x4e6   :  { %3653 = vmatmul.bf16.gmra.mxu3 %v14344_v2  ;;  %v11570_v56 = vpack.c.bf16 %v5376_v54, %v5372_v36  ;;  %v3510_v3 = vpop.f32.mrf.mxu2 }
 0x4e7   :  { %v3511_v33 = vadd.f32 %v3510_v3, %v11182_v4 }
 0x4e8   :  { %14346 = vst [vmem:[#allocation108_spill] sm:$0xff] %v11570_v56  ;;  %v3715_v2 = vpop.f32.mrf.mxu0 }
 0x4e9   :  { %v3614_v55 = vpop.f32.mrf.mxu3  ;;  %v3716_v13 = vadd.f32 %v3715_v2, %v11528_v28  ;;  %v3819_v35 = vpop.f32.mrf.mxu1  ;;  %v14349_v2 = vld [vmem:[#allocation144_spill] sm:$0xff] }
 0x4ea   :  { %v3615_v20 = vadd.f32 %v3614_v55, %v3511_v33  ;;  %v14348_v33 = vld [vmem:[#allocation3_spill] sm:$0xff]  ;;  %v14350_v55 = vld [vmem:[#allocation5_spill] sm:$0xff] }
 0x4eb   :  { %v11574_v6 = vadd.f32 %v3819_v35, %v3716_v13 }
 0x4ec   :  { %v5380_v24 = vmax.f32 %v3615_v20, 0.0 }
 0x4ee   :  { %v3512_v14 = vpop.f32.mrf.mxu2 }
 0x4ef   :  { %v3513_v62 = vadd.f32 %v3512_v14, %v11189_v38 }
 0x4f0   :  { %v3718_v60 = vpop.f32.mrf.mxu0 }
 0x4f1   :  { %v3616_v61 = vpop.f32.mrf.mxu3  ;;  %v3719_v36 = vadd.f32 %v3718_v60, %v11528_v28  ;;  %v3822_v32 = vpop.f32.mrf.mxu1 }
 0x4f2   :  { %v3617_v54 = vadd.f32 %v3616_v61, %v3513_v62 }
 0x4f3   :  { %v11578_v3 = vadd.f32 %v3822_v32, %v3719_v36  ;;  %3554 = vmatmul.bf16.gmra.mxu2 %v14347_v52  ;;  %3757 = vmatmul.bf16.gmra.mxu0 %v14348_v33 }
 0x4f4   :  { %v5384_v4 = vmax.f32 %v3617_v54, 0.0  ;;  %3861 = vmatmul.bf16.gmra.mxu1 %v14350_v55 }
 0x4f6   :  { %3658 = vmatmul.bf16.gmra.mxu3 %v14349_v2  ;;  %v11584_v13 = vpack.c.bf16 %v5384_v4, %v5380_v24  ;;  %v3515_v38 = vpop.f32.mrf.mxu2 }
 0x4f7   :  { %v3516_v62 = vadd.f32 %v3515_v38, %v11192_v57  ;;  %v14352_v38 = vld [vmem:[#allocation146_spill] sm:$0xff] }
 0x4f8   :  { %14351 = vst [vmem:[#allocation170_spill] sm:$0xff] %v11584_v13  ;;  %v3720_v14 = vpop.f32.mrf.mxu0 }
 0x4f9   :  { %v3619_v61 = vpop.f32.mrf.mxu3  ;;  %v3721_v20 = vadd.f32 %v3720_v14, %v11528_v28  ;;  %v3824_v60 = vpop.f32.mrf.mxu1  ;;  %v14355_v14 = vld [vmem:[#allocation9_spill] sm:$0xff] }
 0x4fa   :  { %v3620_v35 = vadd.f32 %v3619_v61, %v3516_v62  ;;  %v14353_v62 = vld [vmem:[#allocation7_spill] sm:$0xff] }
 0x4fb   :  { %v11588_v54 = vadd.f32 %v3824_v60, %v3721_v20  ;;  %v14354_v61 = vld [vmem:[#allocation147_spill] sm:$0xff] }
 0x4fc   :  { %v5388_v13 = vmax.f32 %v3620_v35, 0.0 }
 0x4fe   :  { %v3517_v36 = vpop.f32.mrf.mxu2 }
 0x4ff   :  { %v3518_v32 = vadd.f32 %v3517_v36, %v11211_v30  ;;  %v7433_v30 = vld [vmem:[%s13709_s1 + $0x4a8] sm:$0xf] }
 0x500   :  { %v3723_v2 = vpop.f32.mrf.mxu0 }
 0x501   :  { %v3621_v56 = vpop.f32.mrf.mxu3  ;;  %v3724_v24 = vadd.f32 %v3723_v2, %v11528_v28  ;;  %v3827_v4 = vpop.f32.mrf.mxu1 }
 0x502   :  { %v3622_v33 = vadd.f32 %v3621_v56, %v3518_v32  ;;  %v8201_v56 = vld [vmem:[%s13709_s1 + $0x4b4] sm:$0xf0] }
 0x503   :  { %v11592_v57 = vadd.f32 %v3827_v4, %v3724_v24  ;;  %3559 = vmatmul.bf16.gmra.mxu2 %v14352_v38  ;;  %3762 = vmatmul.bf16.gmra.mxu0 %v14353_v62  ;;  %v7434_v2 = vor.u32 %v8201_v56, %v7433_v30  ;;  %v8153_v30 = vld [vmem:[%s13709_s1 + $0x334] sm:$0xf0]  ;;  %v14358_v38 = vld [vmem:[#allocation11_spill] sm:$0xff] }
 0x504   :  { %v5392_v55 = vmax.f32 %v3622_v33, 0.0  ;;  %3866 = vmatmul.bf16.gmra.mxu1 %v14355_v14  ;;  %v14357_v62 = vld [vmem:[#allocation149_spill] sm:$0xff] }
 0x505   :  { %4117 = vmatpush.bf16.msrb.mxu0 %v7434_v2 }
 0x506   :  { %3663 = vmatmul.bf16.gmra.mxu3 %v14354_v61  ;;  %v11604_v33 = vpack.c.bf16 %v5392_v55, %v5388_v13  ;;  %v3520_v35 = vpop.f32.mrf.mxu2  ;;  %v7113_v61 = vld [vmem:[%s13709_s1 + $0x228] sm:$0xf]  ;;  %v8121_v55 = vld [vmem:[%s13709_s1 + $0x234] sm:$0xf0] }
 0x507   :  { %v3521_v20 = vadd.f32 %v3520_v35, %v11220_v23  ;;  %v7114_v13 = vor.u32 %v8121_v55, %v7113_v61  ;;  %v7241_v23 = vld [vmem:[%s13709_s1 + $0x328] sm:$0xf] }
 0x508   :  { %14356 = vst [vmem:[#allocation171_spill] sm:$0xff] %v11604_v33  ;;  %v3725_v36 = vpop.f32.mrf.mxu0  ;;  %v7242_v56 = vor.u32 %v8153_v30, %v7241_v23  ;;  %v14359_v23 = vld [vmem:[#allocation150_spill] sm:$0xff] }
 0x509   :  { %v3624_v60 = vpop.f32.mrf.mxu3  ;;  %v3726_v24 = vadd.f32 %v3725_v36, %v11528_v28  ;;  %v3829_v4 = vpop.f32.mrf.mxu1  ;;  %3913 = vmatpush.bf16.msrb.mxu2 %v7114_v13  ;;  %v14360_v13 = vld [vmem:[#allocation13_spill] sm:$0xff] }
 0x50a   :  { %v3625_v32 = vadd.f32 %v3624_v60, %v3521_v20  ;;  %4017 = vmatpush.bf16.msrb.mxu3 %v7242_v56 }
 0x50b   :  { %v11608_v14 = vadd.f32 %v3829_v4, %v3726_v24 }
 0x50c   :  { %v5396_v4 = vmax.f32 %v3625_v32, 0.0 }
 0x50e   :  { %v3522_v2 = vpop.f32.mrf.mxu2 }
 0x50f   :  { %v3523_v35 = vadd.f32 %v3522_v2, %v11227_v27 }
 0x510   :  { %v3728_v60 = vpop.f32.mrf.mxu0 }
 0x511   :  { %v3626_v20 = vpop.f32.mrf.mxu3  ;;  %v3729_v24 = vadd.f32 %v3728_v60, %v11528_v28  ;;  %v3832_v61 = vpop.f32.mrf.mxu1 }
 0x512   :  { %v3627_v36 = vadd.f32 %v3626_v20, %v3523_v35 }
 0x513   :  { %v11624_v33 = vadd.f32 %v3832_v61, %v3729_v24  ;;  %3564 = vmatmul.bf16.gmra.mxu2 %v14357_v62  ;;  %3767 = vmatmul.bf16.gmra.mxu0 %v14358_v38 }
 0x514   :  { %v5400_v55 = vmax.f32 %v3627_v36, 0.0  ;;  %3871 = vmatmul.bf16.gmra.mxu1 %v14360_v13 }
 0x516   :  { %3668 = vmatmul.bf16.gmra.mxu3 %v14359_v23  ;;  %v11630_v27 = vpack.c.bf16 %v5400_v55, %v5396_v4  ;;  %v3525_v30 = vpop.f32.mrf.mxu2 }
 0x517   :  { %v3526_v56 = vadd.f32 %v3525_v30, %v11230_v17  ;;  %v14362_v30 = vld [vmem:[#allocation103_spill] sm:$0xff] }
 0x518   :  { %14361 = vst [vmem:[#allocation172_spill] sm:$0xff] %v11630_v27  ;;  %v3730_v35 = vpop.f32.mrf.mxu0 }
 0x519   :  { %v3629_v2 = vpop.f32.mrf.mxu3  ;;  %v3731_v32 = vadd.f32 %v3730_v35, %v11528_v28  ;;  %v3834_v60 = vpop.f32.mrf.mxu1  ;;  %v14365_v35 = vld [vmem:[#allocation17_spill] sm:$0xff] }
 0x51a   :  { %v3630_v20 = vadd.f32 %v3629_v2, %v3526_v56  ;;  %v14363_v56 = vld [vmem:[#allocation15_spill] sm:$0xff]  ;;  %v14364_v2 = vld [vmem:[#allocation104_spill] sm:$0xff] }
 0x51b   :  { %v11634_v36 = vadd.f32 %v3834_v60, %v3731_v32 }
 0x51c   :  { %v5404_v27 = vmax.f32 %v3630_v20, 0.0 }
 0x51e   :  { %v3527_v24 = vpop.f32.mrf.mxu2 }
 0x51f   :  { %v3528_v61 = vadd.f32 %v3527_v24, %v11237_v0 }
 0x520   :  { %v3733_v23 = vpop.f32.mrf.mxu0 }
 0x521   :  { %v3631_v38 = vpop.f32.mrf.mxu3  ;;  %v3734_v4 = vadd.f32 %v3733_v23, %v11528_v28  ;;  %v3837_v55 = vpop.f32.mrf.mxu1 }
 0x522   :  { %v3632_v62 = vadd.f32 %v3631_v38, %v3528_v61 }
 0x523   :  { %v11638_v17 = vadd.f32 %v3837_v55, %v3734_v4  ;;  %3569 = vmatmul.bf16.gmra.mxu2 %v14362_v30  ;;  %3772 = vmatmul.bf16.gmra.mxu0 %v14363_v56  ;;  %v7417_v4 = vld [vmem:[%s13709_s1 + $0x488] sm:$0xf]  ;;  %v8117_v55 = vld [vmem:[%s13709_s1 + $0x214] sm:$0xf0] }
 0x524   :  { %v5408_v13 = vmax.f32 %v3632_v62, 0.0  ;;  %3876 = vmatmul.bf16.gmra.mxu1 %v14365_v35  ;;  %v14367_v56 = vld [vmem:[#allocation153_spill] sm:$0xff]  ;;  %v14368_v30 = vld [vmem:[#allocation19_spill] sm:$0xff] }
 0x526   :  { %3673 = vmatmul.bf16.gmra.mxu3 %v14364_v2  ;;  %v11644_v32 = vpack.c.bf16 %v5408_v13, %v5404_v27  ;;  %v3530_v0 = vpop.f32.mrf.mxu2  ;;  %v8197_v13 = vld [vmem:[%s13709_s1 + $0x494] sm:$0xf0] }
 0x527   :  { %v3531_v38 = vadd.f32 %v3530_v0, %v11258_v21  ;;  %v7418_v27 = vor.u32 %v8197_v13, %v7417_v4  ;;  %v7097_v21 = vld [vmem:[%s13709_s1 + $0x208] sm:$0xf] }
 0x528   :  { %14366 = vst [vmem:[#allocation173_spill] sm:$0xff] %v11644_v32  ;;  %v3735_v23 = vpop.f32.mrf.mxu0  ;;  %v7098_v0 = vor.u32 %v8117_v55, %v7097_v21  ;;  %v14369_v21 = vld [vmem:[#allocation154_spill] sm:$0xff]  ;;  %v14370_v55 = vld [vmem:[#allocation21_spill] sm:$0xff] }
 0x529   :  { %v3634_v60 = vpop.f32.mrf.mxu3  ;;  %v3736_v62 = vadd.f32 %v3735_v23, %v11528_v28  ;;  %v3839_v20 = vpop.f32.mrf.mxu1  ;;  %4118 = vmatpush.bf16.msrb.mxu0 %v7418_v27  ;;  %v7225_v27 = vld [vmem:[%s13709_s1 + $0x308] sm:$0xf] }
 0x52a   :  { %v3635_v24 = vadd.f32 %v3634_v60, %v3531_v38  ;;  %3914 = vmatpush.bf16.msrb.mxu2 %v7098_v0 }
 0x52b   :  { %v11648_v61 = vadd.f32 %v3839_v20, %v3736_v62 }
 0x52c   :  { %v5412_v13 = vmax.f32 %v3635_v24, 0.0 }
 0x52e   :  { %v3532_v38 = vpop.f32.mrf.mxu2 }
 0x52f   :  { %v3533_v60 = vadd.f32 %v3532_v38, %v11265_v19  ;;  %v8149_v19 = vld [vmem:[%s13709_s1 + $0x314] sm:$0xf0] }
 0x530   :  { %v3738_v62 = vpop.f32.mrf.mxu0  ;;  %v7226_v24 = vor.u32 %v8149_v19, %v7225_v27  ;;  %v8241_v19 = vld [vmem:[%s13709_s1 + $0x5f4] sm:$0xf0] }
 0x531   :  { %v3636_v23 = vpop.f32.mrf.mxu3  ;;  %v3739_v32 = vadd.f32 %v3738_v62, %v11528_v28  ;;  %v3842_v4 = vpop.f32.mrf.mxu1 }
 0x532   :  { %v3637_v20 = vadd.f32 %v3636_v23, %v3533_v60  ;;  %4018 = vmatpush.bf16.msrb.mxu3 %v7226_v24 }
 0x533   :  { %v11664_v2 = vadd.f32 %v3842_v4, %v3739_v32  ;;  %3574 = vmatmul.bf16.gmra.mxu2 %v14367_v56  ;;  %3777 = vmatmul.bf16.gmra.mxu0 %v14368_v30 }
 0x534   :  { %v5416_v35 = vmax.f32 %v3637_v20, 0.0  ;;  %3881 = vmatmul.bf16.gmra.mxu1 %v14370_v55 }
 0x536   :  { %3678 = vmatmul.bf16.gmra.mxu3 %v14369_v21  ;;  %v11676_v0 = vpack.c.bf16 %v5416_v35, %v5412_v13  ;;  %v3535_v32 = vpop.f32.mrf.mxu2 }
 0x537   :  { %v3536_v38 = vadd.f32 %v3535_v32, %v11274_v49  ;;  %v7593_v49 = vld [vmem:[%s13709_s1 + $0x5e8] sm:$0xf] }
 0x538   :  { %14371 = vst [vmem:[#allocation174_spill] sm:$0xff] %v11676_v0  ;;  %v3740_v23 = vpop.f32.mrf.mxu0 }
 0x539   :  { %v3639_v60 = vpop.f32.mrf.mxu3  ;;  %v3741_v20 = vadd.f32 %v3740_v23, %v11528_v28  ;;  %v3844_v4 = vpop.f32.mrf.mxu1 }
 0x53a   :  { %v3640_v62 = vadd.f32 %v3639_v60, %v3536_v38  ;;  %v14372_v60 = vld [vmem:[#allocation156_spill] sm:$0xff] }
 0x53b   :  { %v11680_v30 = vadd.f32 %v3844_v4, %v3741_v20  ;;  %v8237_v20 = vld [vmem:[%s13709_s1 + $0x5d4] sm:$0xf0] }
 0x53c   :  { %v5420_v24 = vmax.f32 %v3640_v62, 0.0  ;;  %v7577_v62 = vld [vmem:[%s13709_s1 + $0x5c8] sm:$0xf] }
 0x53e   :  { %v3537_v56 = vpop.f32.mrf.mxu2 }
 0x53f   :  { %v3538_v21 = vadd.f32 %v3537_v56, %v11293_v5  ;;  %v14373_v5 = vld [vmem:[#allocation23_spill] sm:$0xff]  ;;  %v14374_v56 = vld [vmem:[#allocation157_spill] sm:$0xff] }
 0x540   :  { %v3743_v55 = vpop.f32.mrf.mxu0 }
 0x541   :  { %v3641_v52 = vpop.f32.mrf.mxu3  ;;  %v3744_v35 = vadd.f32 %v3743_v55, %v11528_v28  ;;  %v3847_v13 = vpop.f32.mrf.mxu1 }
 0x542   :  { %v3642_v27 = vadd.f32 %v3641_v52, %v3538_v21  ;;  %v7594_v52 = vor.u32 %v8241_v19, %v7593_v49  ;;  %v14375_v21 = vld [vmem:[#allocation25_spill] sm:$0xff] }
 0x543   :  { %v11690_v38 = vadd.f32 %v3847_v13, %v3744_v35  ;;  %3579 = vmatmul.bf16.gmra.mxu2 %v14372_v60  ;;  %3782 = vmatmul.bf16.gmra.mxu0 %v14373_v5  ;;  %v7578_v35 = vor.u32 %v8237_v20, %v7577_v62  ;;  %v8229_v62 = vld [vmem:[%s13709_s1 + $0x594] sm:$0xf0] }
 0x544   :  { %v5424_v32 = vmax.f32 %v3642_v27, 0.0  ;;  %3886 = vmatmul.bf16.gmra.mxu1 %v14375_v21  ;;  %v14380_v21 = vld [vmem:[#allocation29_spill] sm:$0xff] }
 0x545   :  { %4219 = vmatpush.bf16.msrb.mxu1 %v7594_v52 }
 0x546   :  { %3683 = vmatmul.bf16.gmra.mxu3 %v14374_v56  ;;  %v11696_v55 = vpack.c.bf16 %v5424_v32, %v5420_v24  ;;  %v3540_v23 = vpop.f32.mrf.mxu2  ;;  %v7561_v24 = vld [vmem:[%s13709_s1 + $0x5a8] sm:$0xf]  ;;  %v8233_v32 = vld [vmem:[%s13709_s1 + $0x5b4] sm:$0xf0] }
 0x547   :  { %v3541_v4 = vadd.f32 %v3540_v23, %v11314_v40  ;;  %v7562_v0 = vor.u32 %v8233_v32, %v7561_v24  ;;  %v7545_v23 = vld [vmem:[%s13709_s1 + $0x588] sm:$0xf]  ;;  %v8193_v24 = vld [vmem:[%s13709_s1 + $0x474] sm:$0xf0] }
 0x548   :  { %14376 = vst [vmem:[#allocation156_spill] sm:$0xff] %v11696_v55  ;;  %v3745_v13 = vpop.f32.mrf.mxu0 }
 0x549   :  { %v3644_v27 = vpop.f32.mrf.mxu3  ;;  %v3746_v19 = vadd.f32 %v3745_v13, %v11528_v28  ;;  %v3849_v52 = vpop.f32.mrf.mxu1  ;;  %4220 = vmatpush.bf16.msrb.mxu1 %v7578_v35 }
 0x54a   :  { %v3645_v49 = vadd.f32 %v3644_v27, %v3541_v4  ;;  %v7546_v27 = vor.u32 %v8229_v62, %v7545_v23  ;;  %v14377_v62 = vld [vmem:[#allocation117_spill] sm:$0xff] }
 0x54b   :  { %v11712_v55 = vadd.f32 %v3849_v52, %v3746_v19 }
 0x54c   :  { %v5428_v32 = vmax.f32 %v3645_v49, 0.0  ;;  %v7721_v49 = vld [vmem:[%s13709_s1 + $0x6e8] sm:$0xf] }
 0x54d   :  { %4221 = vmatpush.bf16.msrb.mxu1 %v7562_v0  ;;  %v7401_v0 = vld [vmem:[%s13709_s1 + $0x468] sm:$0xf] }
 0x54e   :  { %v3542_v40 = vpop.f32.mrf.mxu2 }
 0x54f   :  { %v3543_v20 = vadd.f32 %v3542_v40, %v11354_v10  ;;  %v7529_v10 = vld [vmem:[%s13709_s1 + $0x568] sm:$0xf] }
 0x550   :  { %v3748_v35 = vpop.f32.mrf.mxu0 }
 0x551   :  { %v3646_v4 = vpop.f32.mrf.mxu3  ;;  %v3749_v19 = vadd.f32 %v3748_v35, %v11528_v28  ;;  %v3852_v52 = vpop.f32.mrf.mxu1  ;;  %4222 = vmatpush.bf16.msrb.mxu1 %v7546_v27  ;;  %v8225_v27 = vld [vmem:[%s13709_s1 + $0x574] sm:$0xf0]  ;;  %v14379_v35 = vld [vmem:[#allocation118_spill] sm:$0xff] }
 0x552   :  { %v3647_v13 = vadd.f32 %v3646_v4, %v3543_v20  ;;  %v14378_v20 = vld [vmem:[#allocation27_spill] sm:$0xff]  ;;  %v7402_v4 = vor.u32 %v8193_v24, %v7401_v0  ;;  %v8305_v24 = vld [vmem:[%s13709_s1 + $0x7f4] sm:$0xf0] }
 0x553   :  { %v11731_v23 = vadd.f32 %v3852_v52, %v3749_v19  ;;  %3584 = vmatmul.bf16.gmra.mxu2 %v14377_v62  ;;  %3787 = vmatmul.bf16.gmra.mxu0 %v14378_v20  ;;  %v7530_v19 = vor.u32 %v8225_v27, %v7529_v10  ;;  %v7849_v52 = vld [vmem:[%s13709_s1 + $0x7e8] sm:$0xf]  ;;  %v8189_v10 = vld [vmem:[%s13709_s1 + $0x454] sm:$0xf0] }
 0x554   :  { %v5432_v40 = vmax.f32 %v3647_v13, 0.0  ;;  %3891 = vmatmul.bf16.gmra.mxu1 %v14380_v21  ;;  %v8273_v13 = vld [vmem:[%s13709_s1 + $0x6f4] sm:$0xf0]  ;;  %4119 = vmatpush.bf16.msrb.mxu0 %v7402_v4  ;;  %v7850_v20 = vor.u32 %v8305_v24, %v7849_v52  ;;  %v7385_v62 = vld [vmem:[%s13709_s1 + $0x448] sm:$0xf] }
 0x555   :  { %v7722_v0 = vor.u32 %v8273_v13, %v7721_v49  ;;  %4223 = vmatpush.bf16.msrb.mxu1 %v7530_v19  ;;  %v7513_v4 = vld [vmem:[%s13709_s1 + $0x548] sm:$0xf] }
 0x556   :  { %3688 = vmatmul.bf16.gmra.mxu3 %v14379_v35  ;;  %v11752_v21 = vpack.c.bf16 %v5432_v40, %v5428_v32  ;;  %v3545_v35 = vpop.f32.mrf.mxu2  ;;  %v7386_v32 = vor.u32 %v8189_v10, %v7385_v62  ;;  %v8221_v40 = vld [vmem:[%s13709_s1 + $0x554] sm:$0xf0] }
 0x557   :  { %v3546_v27 = vadd.f32 %v3545_v35, %v11372_v9  ;;  %4323 = vmatpush.bf16.msra.mxu2 %v7722_v0  ;;  %4427 = vmatpush.bf16.msra.mxu3 %v7850_v20  ;;  %v7514_v19 = vor.u32 %v8221_v40, %v7513_v4  ;;  %v7369_v9 = vld [vmem:[%s13709_s1 + $0x428] sm:$0xf]  ;;  %v8185_v62 = vld [vmem:[%s13709_s1 + $0x434] sm:$0xf0] }
 0x558   :  { %14381 = vst [vmem:[#allocation175_spill] sm:$0xff] %v11752_v21  ;;  %v3750_v13 = vpop.f32.mrf.mxu0  ;;  %4120 = vmatpush.bf16.msrb.mxu0 %v7386_v32  ;;  %v7497_v35 = vld [vmem:[%s13709_s1 + $0x528] sm:$0xf]  ;;  %v7370_v0 = vor.u32 %v8185_v62, %v7369_v9  ;;  %v8217_v10 = vld [vmem:[%s13709_s1 + $0x534] sm:$0xf0] }
 0x559   :  { %v3649_v49 = vpop.f32.mrf.mxu3  ;;  %v3751_v24 = vadd.f32 %v3750_v13, %v11528_v28  ;;  %v3854_v21 = vpop.f32.mrf.mxu1  ;;  %4224 = vmatpush.bf16.msrb.mxu1 %v7514_v19  ;;  %v7498_v4 = vor.u32 %v8217_v10, %v7497_v35  ;;  %v8181_v32 = vld [vmem:[%s13709_s1 + $0x414] sm:$0xf0] }
 0x55a   :  { %v3650_v52 = vadd.f32 %v3649_v49, %v3546_v27  ;;  %v7353_v49 = vld [vmem:[%s13709_s1 + $0x408] sm:$0xf] }
 0x55b   :  { %v11777_v20 = vadd.f32 %v3854_v21, %v3751_v24  ;;  %v7481_v21 = vld [vmem:[%s13709_s1 + $0x508] sm:$0xf]  ;;  %v7354_v19 = vor.u32 %v8181_v32, %v7353_v49  ;;  %v8213_v24 = vld [vmem:[%s13709_s1 + $0x514] sm:$0xf0] }
 0x55c   :  { %4121 = vmatpush.bf16.msrb.mxu0 %v7370_v0  ;;  %v7482_v62 = vor.u32 %v8213_v24, %v7481_v21 }
 0x55d   :  { %4225 = vmatpush.bf16.msrb.mxu1 %v7498_v4  ;;  %v5436_v4 = vmax.f32 %v3650_v52, 0.0 }
 0x55e   :  { %v3547_v27 = vpop.f32.mrf.mxu2 }
 0x55f   :  { %v3548_v40 = vadd.f32 %v3547_v27, %v11379_v44  ;;  %v14382_v44 = vld [vmem:[#allocation33_spill] sm:$0xff] }
 0x560   :  { %v3753_v9 = vpop.f32.mrf.mxu0  ;;  %4122 = vmatpush.bf16.msrb.mxu0 %v7354_v19 }
 0x561   :  { %v3651_v13 = vpop.f32.mrf.mxu3  ;;  %v3754_v0 = vadd.f32 %v3753_v9, %v11528_v28  ;;  %v3857_v10 = vpop.f32.mrf.mxu1  ;;  %4226 = vmatpush.bf16.msrb.mxu1 %v7482_v62 }
 0x562   :  { %v3652_v35 = vadd.f32 %v3651_v13, %v3548_v40 }
 0x563   :  { %v11796_v5 = vadd.f32 %v3857_v10, %v3754_v0  ;;  %3589 = vmatmul.bf16.gmra.mxu2 %v10943_v34  ;;  %3792 = vmatmul.bf16.gmra.mxu0 %v14218_v48 }
 0x564   :  { %v5440_v56 = vmax.f32 %v3652_v35, 0.0  ;;  %3896 = vmatmul.bf16.gmra.mxu1 %v14382_v44 }
 0x566   :  { %3693 = vmatmul.bf16.gmra.mxu3 %v10948_v45  ;;  %v11802_v27 = vpack.c.bf16 %v5440_v56, %v5436_v4  ;;  %v3550_v49 = vpop.f32.mrf.mxu2 }
 0x567   :  { %v3551_v32 = vadd.f32 %v3550_v49, %v11382_v42  ;;  %v14384_v49 = vld [vmem:[#allocation35_spill] sm:$0xff] }
 0x568   :  { %14383 = vst [vmem:[#allocation176_spill] sm:$0xff] %v11802_v27  ;;  %v3755_v40 = vpop.f32.mrf.mxu0 }
 0x569   :  { %v3654_v21 = vpop.f32.mrf.mxu3  ;;  %v3756_v52 = vadd.f32 %v3755_v40, %v11528_v28  ;;  %v3859_v19 = vpop.f32.mrf.mxu1  ;;  %v14387_v40 = vld [vmem:[#allocation41_spill] sm:$0xff] }
 0x56a   :  { %v3655_v13 = vadd.f32 %v3654_v21, %v3551_v32  ;;  %v14385_v32 = vld [vmem:[#allocation39_spill] sm:$0xff]  ;;  %v14386_v21 = vld [vmem:[#allocation37_spill] sm:$0xff] }
 0x56b   :  { %v11806_v24 = vadd.f32 %v3859_v19, %v3756_v52 }
 0x56c   :  { %v5444_v27 = vmax.f32 %v3655_v13, 0.0 }
 0x56e   :  { %v3552_v9 = vpop.f32.mrf.mxu2 }
 0x56f   :  { %v3553_v62 = vadd.f32 %v3552_v9, %v11389_v8 }
 0x570   :  { %v3758_v0 = vpop.f32.mrf.mxu0 }
 0x571   :  { %v3656_v35 = vpop.f32.mrf.mxu3  ;;  %v3759_v56 = vadd.f32 %v3758_v0, %v11528_v28  ;;  %v3862_v4 = vpop.f32.mrf.mxu1 }
 0x572   :  { %v3657_v10 = vadd.f32 %v3656_v35, %v3553_v62 }
 0x573   :  { %v11810_v42 = vadd.f32 %v3862_v4, %v3759_v56  ;;  %3797 = vmatmul.bf16.gmra.mxu0 %v14384_v49  ;;  %3915 = vmatmul.bf16.vlgmr.msrb.gmra.mxu2 %v14385_v32  ;;  %v7705_v56 = vld [vmem:[%s13709_s1 + $0x6c8] sm:$0xf]  ;;  %v8301_v4 = vld [vmem:[%s13709_s1 + $0x7d4] sm:$0xf0]  ;;  %v14389_v32 = vld [vmem:[#allocation42_spill] sm:$0xff] }
 0x574   :  { %v5448_v44 = vmax.f32 %v3657_v10, 0.0  ;;  %3901 = vmatmul.bf16.gmra.mxu1 %v14386_v21  ;;  %v14390_v49 = vld [vmem:[#allocation43_spill] sm:$0xff] }
 0x576   :  { %4019 = vmatmul.bf16.vlgmr.msrb.gmra.mxu3 %v14387_v40  ;;  %v11816_v52 = vpack.c.bf16 %v5448_v44, %v5444_v27  ;;  %v3555_v8 = vpop.f32.mrf.mxu2  ;;  %v8269_v44 = vld [vmem:[%s13709_s1 + $0x6d4] sm:$0xf0] }
 0x577   :  { %v3556_v19 = vadd.f32 %v3555_v8, %v11404_v59  ;;  %v7706_v27 = vor.u32 %v8269_v44, %v7705_v56  ;;  %v7833_v59 = vld [vmem:[%s13709_s1 + $0x7c8] sm:$0xf] }
 0x578   :  { %14388 = vst [vmem:[#allocation177_spill] sm:$0xff] %v11816_v52  ;;  %v3760_v62 = vpop.f32.mrf.mxu0  ;;  %v7834_v8 = vor.u32 %v8301_v4, %v7833_v59  ;;  %v14391_v59 = vld [vmem:[#allocation44_spill] sm:$0xff] }
 0x579   :  { %v3659_v9 = vpop.f32.mrf.mxu3  ;;  %v3761_v13 = vadd.f32 %v3760_v62, %v11528_v28  ;;  %v3864_v0 = vpop.f32.mrf.mxu1  ;;  %4324 = vmatpush.bf16.msra.mxu2 %v7706_v27  ;;  %v14392_v27 = vld [vmem:[#allocation45_spill] sm:$0xff] }
 0x57a   :  { %v3660_v35 = vadd.f32 %v3659_v9, %v3556_v19  ;;  %4428 = vmatpush.bf16.msra.mxu3 %v7834_v8 }
 0x57b   :  { %v11820_v10 = vadd.f32 %v3864_v0, %v3761_v13 }
 0x57c   :  { %v5452_v44 = vmax.f32 %v3660_v35, 0.0 }
 0x57e   :  { %v3557_v19 = vpop.f32.mrf.mxu2 }
 0x57f   :  { %v3558_v9 = vadd.f32 %v3557_v19, %v11411_v29 }
 0x580   :  { %v3763_v13 = vpop.f32.mrf.mxu0 }
 0x581   :  { %v3661_v62 = vpop.f32.mrf.mxu3  ;;  %v3764_v52 = vadd.f32 %v3763_v13, %v11528_v28  ;;  %v3867_v56 = vpop.f32.mrf.mxu1 }
 0x582   :  { %v3662_v0 = vadd.f32 %v3661_v62, %v3558_v9 }
 0x583   :  { %v11836_v21 = vadd.f32 %v3867_v56, %v3764_v52  ;;  %3920 = vmatmul.bf16.gmra.mxu2 %v14389_v32  ;;  %4123 = vmatmul.bf16.vlgmr.msrb.gmra.mxu0 %v14390_v49 }
 0x584   :  { %v5456_v40 = vmax.f32 %v3662_v0, 0.0  ;;  %4227 = vmatmul.bf16.vlgmr.msrb.gmra.mxu1 %v14392_v27 }
 0x586   :  { %4024 = vmatmul.bf16.gmra.mxu3 %v14391_v59  ;;  %v11842_v29 = vpack.c.bf16 %v5456_v40, %v5452_v44  ;;  %v3560_v4 = vpop.f32.mrf.mxu2 }
 0x587   :  { %v3561_v8 = vadd.f32 %v3560_v4, %v11414_v7  ;;  %v14394_v4 = vld [vmem:[#allocation46_spill] sm:$0xff] }
 0x588   :  { %14393 = vst [vmem:[#allocation178_spill] sm:$0xff] %v11842_v29  ;;  %v3765_v9 = vpop.f32.mrf.mxu0 }
 0x589   :  { %v3664_v19 = vpop.f32.mrf.mxu3  ;;  %v3766_v35 = vadd.f32 %v3765_v9, %v11528_v28  ;;  %v3869_v52 = vpop.f32.mrf.mxu1  ;;  %v14397_v9 = vld [vmem:[#allocation49_spill] sm:$0xff] }
 0x58a   :  { %v3665_v62 = vadd.f32 %v3664_v19, %v3561_v8  ;;  %v14395_v8 = vld [vmem:[#allocation47_spill] sm:$0xff]  ;;  %v14396_v19 = vld [vmem:[#allocation48_spill] sm:$0xff] }
 0x58b   :  { %v11846_v13 = vadd.f32 %v3869_v52, %v3766_v35 }
 0x58c   :  { %v5460_v29 = vmax.f32 %v3665_v62, 0.0 }
 0x58e   :  { %v3562_v0 = vpop.f32.mrf.mxu2 }
 0x58f   :  { %v3563_v56 = vadd.f32 %v3562_v0, %v11421_v16 }
 0x590   :  { %v3768_v59 = vpop.f32.mrf.mxu0 }
 0x591   :  { %v3666_v49 = vpop.f32.mrf.mxu3  ;;  %v3769_v40 = vadd.f32 %v3768_v59, %v11528_v28  ;;  %v3872_v44 = vpop.f32.mrf.mxu1 }
 0x592   :  { %v3667_v32 = vadd.f32 %v3666_v49, %v3563_v56 }
 0x593   :  { %v11850_v7 = vadd.f32 %v3872_v44, %v3769_v40  ;;  %3925 = vmatmul.bf16.gmra.mxu2 %v14394_v4  ;;  %4128 = vmatmul.bf16.gmra.mxu0 %v14395_v8 }
 0x594   :  { %v5464_v27 = vmax.f32 %v3667_v32, 0.0  ;;  %4232 = vmatmul.bf16.gmra.mxu1 %v14397_v9 }
 0x596   :  { %4029 = vmatmul.bf16.gmra.mxu3 %v14396_v19  ;;  %v11856_v35 = vpack.c.bf16 %v5464_v27, %v5460_v29  ;;  %v3565_v16 = vpop.f32.mrf.mxu2 }
 0x597   :  { %v3566_v49 = vadd.f32 %v3565_v16, %v11430_v11  ;;  %v14399_v16 = vld [vmem:[#allocation50_spill] sm:$0xff] }
 0x598   :  { %14398 = vst [vmem:[#allocation179_spill] sm:$0xff] %v11856_v35  ;;  %v3770_v59 = vpop.f32.mrf.mxu0 }
 0x599   :  { %v3669_v52 = vpop.f32.mrf.mxu3  ;;  %v3771_v32 = vadd.f32 %v3770_v59, %v11528_v28  ;;  %v3874_v62 = vpop.f32.mrf.mxu1 }
 0x59a   :  { %v3670_v0 = vadd.f32 %v3669_v52, %v3566_v49  ;;  %v14400_v49 = vld [vmem:[#allocation51_spill] sm:$0xff] }
 0x59b   :  { %v11860_v56 = vadd.f32 %v3874_v62, %v3771_v32  ;;  %v7689_v52 = vld [vmem:[%s13709_s1 + $0x6a8] sm:$0xf] }
 0x59c   :  { %v5468_v35 = vmax.f32 %v3670_v0, 0.0  ;;  %v8297_v0 = vld [vmem:[%s13709_s1 + $0x7b4] sm:$0xf0] }
 0x59e   :  { %v3567_v40 = vpop.f32.mrf.mxu2 }
 0x59f   :  { %v3568_v44 = vadd.f32 %v3567_v40, %v11443_v22  ;;  %v8265_v22 = vld [vmem:[%s13709_s1 + $0x6b4] sm:$0xf0] }
 0x5a0   :  { %v3773_v19 = vpop.f32.mrf.mxu0  ;;  %v7690_v59 = vor.u32 %v8265_v22, %v7689_v52 }
 0x5a1   :  { %v3671_v8 = vpop.f32.mrf.mxu3  ;;  %v3774_v27 = vadd.f32 %v3773_v19, %v11528_v28  ;;  %v3877_v29 = vpop.f32.mrf.mxu1  ;;  %v14402_v19 = vld [vmem:[#allocation53_spill] sm:$0xff] }
 0x5a2   :  { %v3672_v4 = vadd.f32 %v3671_v8, %v3568_v44  ;;  %v14401_v8 = vld [vmem:[#allocation52_spill] sm:$0xff]  ;;  %4325 = vmatpush.bf16.msra.mxu2 %v7690_v59 }
 0x5a3   :  { %v11864_v11 = vadd.f32 %v3877_v29, %v3774_v27  ;;  %3930 = vmatmul.bf16.gmra.mxu2 %v14399_v16  ;;  %4133 = vmatmul.bf16.gmra.mxu0 %v14400_v49 }
 0x5a4   :  { %v5472_v9 = vmax.f32 %v3672_v4, 0.0  ;;  %4237 = vmatmul.bf16.gmra.mxu1 %v14402_v19  ;;  %v7817_v4 = vld [vmem:[%s13709_s1 + $0x7a8] sm:$0xf] }
 0x5a5   :  { %v7818_v32 = vor.u32 %v8297_v0, %v7817_v4 }
 0x5a6   :  { %4034 = vmatmul.bf16.gmra.mxu3 %v14401_v8  ;;  %v11882_v62 = vpack.c.bf16 %v5472_v9, %v5468_v35  ;;  %v3570_v40 = vpop.f32.mrf.mxu2 }
 0x5a7   :  { %v3571_v44 = vadd.f32 %v3570_v40, %v11446_v12  ;;  %4429 = vmatpush.bf16.msra.mxu3 %v7818_v32  ;;  %v14404_v32 = vld [vmem:[#allocation54_spill] sm:$0xff] }
 0x5a8   :  { %14403 = vst [vmem:[#allocation180_spill] sm:$0xff] %v11882_v62  ;;  %v3775_v29 = vpop.f32.mrf.mxu0 }
 0x5a9   :  { %v3674_v27 = vpop.f32.mrf.mxu3  ;;  %v3776_v52 = vadd.f32 %v3775_v29, %v11528_v28  ;;  %v3879_v22 = vpop.f32.mrf.mxu1  ;;  %v14407_v29 = vld [vmem:[#allocation57_spill] sm:$0xff] }
 0x5aa   :  { %v3675_v19 = vadd.f32 %v3674_v27, %v3571_v44  ;;  %v14405_v44 = vld [vmem:[#allocation55_spill] sm:$0xff]  ;;  %v14406_v27 = vld [vmem:[#allocation56_spill] sm:$0xff] }
 0x5ab   :  { %v11886_v8 = vadd.f32 %v3879_v22, %v3776_v52 }
 0x5ac   :  { %v5476_v0 = vmax.f32 %v3675_v19, 0.0 }
 0x5ae   :  { %v3572_v49 = vpop.f32.mrf.mxu2 }
 0x5af   :  { %v3573_v16 = vadd.f32 %v3572_v49, %v11453_v58 }
 0x5b0   :  { %v3778_v4 = vpop.f32.mrf.mxu0 }
 0x5b1   :  { %v3676_v45 = vpop.f32.mrf.mxu3  ;;  %v3779_v35 = vadd.f32 %v3778_v4, %v11528_v28  ;;  %v3882_v59 = vpop.f32.mrf.mxu1 }
 0x5b2   :  { %v3677_v9 = vadd.f32 %v3676_v45, %v3573_v16 }
 0x5b3   :  { %v11890_v40 = vadd.f32 %v3882_v59, %v3779_v35  ;;  %3935 = vmatmul.bf16.gmra.mxu2 %v14404_v32  ;;  %4138 = vmatmul.bf16.gmra.mxu0 %v14405_v44 }
 0x5b4   :  { %v5480_v12 = vmax.f32 %v3677_v9, 0.0  ;;  %4242 = vmatmul.bf16.gmra.mxu1 %v14407_v29 }
 0x5b6   :  { %4039 = vmatmul.bf16.gmra.mxu3 %v14406_v27  ;;  %v11896_v52 = vpack.c.bf16 %v5480_v12, %v5476_v0  ;;  %v3575_v58 = vpop.f32.mrf.mxu2 }
 0x5b7   :  { %v3576_v45 = vadd.f32 %v3575_v58, %v11456_v63  ;;  %v14409_v58 = vld [vmem:[#allocation58_spill] sm:$0xff] }
 0x5b8   :  { %14408 = vst [vmem:[#allocation181_spill] sm:$0xff] %v11896_v52  ;;  %v3780_v49 = vpop.f32.mrf.mxu0 }
 0x5b9   :  { %v3679_v16 = vpop.f32.mrf.mxu3  ;;  %v3781_v19 = vadd.f32 %v3780_v49, %v11528_v28  ;;  %v3884_v4 = vpop.f32.mrf.mxu1  ;;  %v14412_v49 = vld [vmem:[#allocation61_spill] sm:$0xff] }
 0x5ba   :  { %v3680_v22 = vadd.f32 %v3679_v16, %v3576_v45  ;;  %v14410_v45 = vld [vmem:[#allocation59_spill] sm:$0xff]  ;;  %v14411_v16 = vld [vmem:[#allocation60_spill] sm:$0xff] }
 0x5bb   :  { %v11900_v9 = vadd.f32 %v3884_v4, %v3781_v19 }
 0x5bc   :  { %v5484_v52 = vmax.f32 %v3680_v22, 0.0 }
 0x5be   :  { %v3577_v35 = vpop.f32.mrf.mxu2 }
 0x5bf   :  { %v3578_v59 = vadd.f32 %v3577_v35, %v11475_v37  ;;  %v7673_v37 = vld [vmem:[%s13709_s1 + $0x688] sm:$0xf] }
 0x5c0   :  { %v3783_v27 = vpop.f32.mrf.mxu0 }
 0x5c1   :  { %v3681_v62 = vpop.f32.mrf.mxu3  ;;  %v3784_v0 = vadd.f32 %v3783_v27, %v11528_v28  ;;  %v3887_v12 = vpop.f32.mrf.mxu1 }
 0x5c2   :  { %v3682_v44 = vadd.f32 %v3681_v62, %v3578_v59  ;;  %v8261_v62 = vld [vmem:[%s13709_s1 + $0x694] sm:$0xf0] }
 0x5c3   :  { %v11904_v63 = vadd.f32 %v3887_v12, %v3784_v0  ;;  %3940 = vmatmul.bf16.gmra.mxu2 %v14409_v58  ;;  %4143 = vmatmul.bf16.gmra.mxu0 %v14410_v45  ;;  %v7674_v27 = vor.u32 %v8261_v62, %v7673_v37  ;;  %v14415_v45 = vld [vmem:[#allocation63_spill] sm:$0xff]  ;;  %v14416_v58 = vld [vmem:[#allocation64_spill] sm:$0xff] }
 0x5c4   :  { %v5488_v29 = vmax.f32 %v3682_v44, 0.0  ;;  %4247 = vmatmul.bf16.gmra.mxu1 %v14412_v49 }
 0x5c5   :  { %4326 = vmatpush.bf16.msra.mxu2 %v7674_v27 }
 0x5c6   :  { %4044 = vmatmul.bf16.gmra.mxu3 %v14411_v16  ;;  %v11916_v44 = vpack.c.bf16 %v5488_v29, %v5484_v52  ;;  %v3580_v22 = vpop.f32.mrf.mxu2  ;;  %v7801_v16 = vld [vmem:[%s13709_s1 + $0x788] sm:$0xf]  ;;  %v8293_v29 = vld [vmem:[%s13709_s1 + $0x794] sm:$0xf0] }
 0x5c7   :  { %v3581_v19 = vadd.f32 %v3580_v22, %v11478_v25  ;;  %v7802_v52 = vor.u32 %v8293_v29, %v7801_v16  ;;  %v14417_v16 = vld [vmem:[#allocation65_spill] sm:$0xff] }
 0x5c8   :  { %14413 = vst [vmem:[#allocation182_spill] sm:$0xff] %v11916_v44  ;;  %v3785_v35 = vpop.f32.mrf.mxu0  ;;  %v14414_v44 = vld [vmem:[#allocation62_spill] sm:$0xff] }
 0x5c9   :  { %v3684_v4 = vpop.f32.mrf.mxu3  ;;  %v3786_v0 = vadd.f32 %v3785_v35, %v11528_v28  ;;  %v3889_v12 = vpop.f32.mrf.mxu1  ;;  %4430 = vmatpush.bf16.msra.mxu3 %v7802_v52 }
 0x5ca   :  { %v3685_v59 = vadd.f32 %v3684_v4, %v3581_v19 }
 0x5cb   :  { %v11920_v49 = vadd.f32 %v3889_v12, %v3786_v0 }
 0x5cc   :  { %v5492_v35 = vmax.f32 %v3685_v59, 0.0 }
 0x5ce   :  { %v3582_v37 = vpop.f32.mrf.mxu2 }
 0x5cf   :  { %v3583_v25 = vadd.f32 %v3582_v37, %v11485_v15 }
 0x5d0   :  { %v3788_v27 = vpop.f32.mrf.mxu0 }
 0x5d1   :  { %v3686_v62 = vpop.f32.mrf.mxu3  ;;  %v3789_v19 = vadd.f32 %v3788_v27, %v11528_v28  ;;  %v3892_v4 = vpop.f32.mrf.mxu1 }
 0x5d2   :  { %v3687_v22 = vadd.f32 %v3686_v62, %v3583_v25 }
 0x5d3   :  { %v11930_v12 = vadd.f32 %v3892_v4, %v3789_v19  ;;  %3945 = vmatmul.bf16.gmra.mxu2 %v14414_v44  ;;  %4148 = vmatmul.bf16.gmra.mxu0 %v14415_v45 }
 0x5d4   :  { %v5496_v0 = vmax.f32 %v3687_v22, 0.0  ;;  %4252 = vmatmul.bf16.gmra.mxu1 %v14417_v16 }
 0x5d6   :  { %4049 = vmatmul.bf16.gmra.mxu3 %v14416_v58  ;;  %v11936_v29 = vpack.c.bf16 %v5496_v0, %v5492_v35  ;;  %v3585_v15 = vpop.f32.mrf.mxu2 }
 0x5d7   :  { %v3586_v52 = vadd.f32 %v3585_v15, %v11488_v46  ;;  %v14419_v15 = vld [vmem:[#allocation68_spill] sm:$0xff] }
 0x5d8   :  { %14418 = vst [vmem:[#allocation183_spill] sm:$0xff] %v11936_v29  ;;  %v3790_v25 = vpop.f32.mrf.mxu0 }
 0x5d9   :  { %v3689_v37 = vpop.f32.mrf.mxu3  ;;  %v3791_v59 = vadd.f32 %v3790_v25, %v11528_v28  ;;  %v3894_v27 = vpop.f32.mrf.mxu1  ;;  %v14422_v25 = vld [vmem:[#allocation71_spill] sm:$0xff] }
 0x5da   :  { %v3690_v62 = vadd.f32 %v3689_v37, %v3586_v52  ;;  %v14420_v52 = vld [vmem:[#allocation69_spill] sm:$0xff]  ;;  %v14421_v37 = vld [vmem:[#allocation70_spill] sm:$0xff] }
 0x5db   :  { %v11940_v22 = vadd.f32 %v3894_v27, %v3791_v59 }
 0x5dc   :  { %v5500_v29 = vmax.f32 %v3690_v62, 0.0 }
 0x5de   :  { %v3587_v19 = vpop.f32.mrf.mxu2 }
 0x5df   :  { %v3588_v4 = vadd.f32 %v3587_v19, %v11495_v31 }
 0x5e0   :  { %v3793_v58 = vpop.f32.mrf.mxu0 }
 0x5e1   :  { %v3691_v45 = vpop.f32.mrf.mxu3  ;;  %v3794_v35 = vadd.f32 %v3793_v58, %v11528_v28  ;;  %v3897_v0 = vpop.f32.mrf.mxu1 }
 0x5e2   :  { %v3692_v44 = vadd.f32 %v3691_v45, %v3588_v4  ;;  %v8079_v4 = vld [vmem:[%s13709_s1 + $0xec] sm:$0xf] }
 0x5e3   :  { %v11944_v46 = vadd.f32 %v3897_v0, %v3794_v35  ;;  %3950 = vmatmul.bf16.gmra.mxu2 %v14419_v15  ;;  %4153 = vmatmul.bf16.gmra.mxu0 %v14420_v52  ;;  %v6955_v35 = vld [vmem:[%s13709_s1 + $0xf8] sm:$0xf0]  ;;  %v14424_v52 = vld [vmem:[#allocation74_spill] sm:$0xff]  ;;  %v14425_v15 = vld [vmem:[#allocation75_spill] sm:$0xff] }
 0x5e4   :  { %v5504_v16 = vmax.f32 %v3692_v44, 0.0  ;;  %4257 = vmatmul.bf16.gmra.mxu1 %v14422_v25  ;;  %v6958_v0 = vor.u32 %v8079_v4, %v6955_v35 }
 0x5e6   :  { %4054 = vmatmul.bf16.gmra.mxu3 %v14421_v37  ;;  %v11950_v59 = vpack.c.bf16 %v5504_v16, %v5500_v29  ;;  %v3590_v31 = vpop.f32.mrf.mxu2  ;;  %v8257_v29 = vld [vmem:[%s13709_s1 + $0x674] sm:$0xf0]  ;;  %4531 = vmatpush.bf16.msra.mxu0 %v6958_v0 }
 0x5e7   :  { %v3591_v45 = vadd.f32 %v3590_v31, %v11516_v43  ;;  %v7657_v43 = vld [vmem:[%s13709_s1 + $0x668] sm:$0xf] }
 0x5e8   :  { %14423 = vst [vmem:[#allocation184_spill] sm:$0xff] %v11950_v59  ;;  %v3795_v58 = vpop.f32.mrf.mxu0  ;;  %v7658_v31 = vor.u32 %v8257_v29, %v7657_v43 }
 0x5e9   :  { %v3694_v27 = vpop.f32.mrf.mxu3  ;;  %v3796_v44 = vadd.f32 %v3795_v58, %v11528_v28  ;;  %v3899_v62 = vpop.f32.mrf.mxu1 }
 0x5ea   :  { %v3695_v19 = vadd.f32 %v3694_v27, %v3591_v45  ;;  %v7785_v45 = vld [vmem:[%s13709_s1 + $0x768] sm:$0xf]  ;;  %v8289_v27 = vld [vmem:[%s13709_s1 + $0x774] sm:$0xf0]  ;;  %4327 = vmatpush.bf16.msra.mxu2 %v7658_v31 }
 0x5eb   :  { %v11960_v16 = vadd.f32 %v3899_v62, %v3796_v44  ;;  %v7786_v58 = vor.u32 %v8289_v27, %v7785_v45  ;;  %v14426_v45 = vld [vmem:[#allocation76_spill] sm:$0xff]  ;;  %v14427_v31 = vld [vmem:[#allocation77_spill] sm:$0xff] }
 0x5ec   :  { %v5508_v29 = vmax.f32 %v3695_v19, 0.0 }
 0x5ed   :  { %4431 = vmatpush.bf16.msra.mxu3 %v7786_v58 }
 0x5ee   :  { %v3592_v44 = vpop.f32.mrf.mxu2 }
 0x5ef   :  { %v3593_v62 = vadd.f32 %v3592_v44, %v11523_v26 }
 0x5f0   :  { %v3798_v35 = vpop.f32.mrf.mxu0 }
 0x5f1   :  { %v3696_v4 = vpop.f32.mrf.mxu3  ;;  %v3799_v0 = vadd.f32 %v3798_v35, %v11528_v28  ;;  %v3902_v43 = vpop.f32.mrf.mxu1 }
 0x5f2   :  { %v3697_v59 = vadd.f32 %v3696_v4, %v3593_v62 }
 0x5f3   :  { %v11976_v37 = vadd.f32 %v3902_v43, %v3799_v0  ;;  %3955 = vmatmul.bf16.gmra.mxu2 %v14424_v52  ;;  %4158 = vmatmul.bf16.gmra.mxu0 %v14425_v15 }
 0x5f4   :  { %v5512_v25 = vmax.f32 %v3697_v59, 0.0  ;;  %4262 = vmatmul.bf16.gmra.mxu1 %v14427_v31 }
 0x5f6   :  { %4059 = vmatmul.bf16.gmra.mxu3 %v14426_v45  ;;  %v11982_v26 = vpack.c.bf16 %v5512_v25, %v5508_v29  ;;  %v3916_v27 = vpop.f32.mrf.mxu2 }
 0x5f7   :  { %v3917_v58 = vadd.f32 %v3916_v27, %v11532_v50  ;;  %v14430_v50 = vld [vmem:[#allocation79_spill] sm:$0xff]  ;;  %v14431_v27 = vld [vmem:[#allocation80_spill] sm:$0xff] }
 0x5f8   :  { %14428 = vst [vmem:[#allocation185_spill] sm:$0xff] %v11982_v26  ;;  %v3800_v62 = vpop.f32.mrf.mxu0  ;;  %v14429_v26 = vld [vmem:[#allocation78_spill] sm:$0xff] }
 0x5f9   :  { %v4020_v44 = vpop.f32.mrf.mxu3  ;;  %v3801_v59 = vadd.f32 %v3800_v62, %v11528_v28  ;;  %v3904_v19 = vpop.f32.mrf.mxu1  ;;  %v14432_v28 = vld [vmem:[#allocation81_spill] sm:$0xff] }
 0x5fa   :  { %v4021_v4 = vadd.f32 %v4020_v44, %v3917_v58 }
 0x5fb   :  { %v11986_v35 = vadd.f32 %v3904_v19, %v3801_v59 }
 0x5fe   :  { %v3918_v0 = vpop.f32.mrf.mxu2 }
 0x5ff   :  { %v3919_v43 = vadd.f32 %v3918_v0, %v11542_v39 }
 0x600   :  { %v4124_v45 = vpop.f32.mrf.mxu0 }
 0x601   :  { %v4022_v15 = vpop.f32.mrf.mxu3  ;;  %v4125_v31 = vadd.f32 %v4124_v45, %v4021_v4  ;;  %v4228_v25 = vpop.f32.mrf.mxu1  ;;  %v6939_v4 = vld [vmem:[%s13709_s1 + $0xd8] sm:$0xf0] }
 0x602   :  { %v4023_v52 = vadd.f32 %v4022_v15, %v3919_v43 }
 0x603   :  { %v11989_v29 = vadd.f32 %v4228_v25, %v4125_v31  ;;  %3960 = vmatmul.bf16.gmra.mxu2 %v14429_v26  ;;  %4163 = vmatmul.bf16.gmra.mxu0 %v14430_v50  ;;  %v8075_v31 = vld [vmem:[%s13709_s1 + $0xcc] sm:$0xf] }
 0x604   :  { %4267 = vmatmul.bf16.gmra.mxu1 %v14432_v28  ;;  %v6942_v0 = vor.u32 %v8075_v31, %v6939_v4  ;;  %v7641_v28 = vld [vmem:[%s13709_s1 + $0x648] sm:$0xf]  ;;  %v8253_v31 = vld [vmem:[%s13709_s1 + $0x654] sm:$0xf0]  ;;  %v14436_v4 = vld [vmem:[#allocation86_spill] sm:$0xff] }
 0x606   :  { %4064 = vmatmul.bf16.gmra.mxu3 %v14431_v27  ;;  %v3921_v58 = vpop.f32.mrf.mxu2  ;;  %4532 = vmatpush.bf16.msra.mxu0 %v6942_v0  ;;  %v7769_v0 = vld [vmem:[%s13709_s1 + $0x748] sm:$0xf] }
 0x607   :  { %v3922_v44 = vadd.f32 %v3921_v58, %v11552_v18 }
 0x608   :  { %v4126_v39 = vpop.f32.mrf.mxu0 }
 0x609   :  { %v4025_v62 = vpop.f32.mrf.mxu3  ;;  %v4127_v19 = vadd.f32 %v4126_v39, %v4023_v52  ;;  %v4230_v15 = vpop.f32.mrf.mxu1 }
 0x60a   :  { %v4026_v59 = vadd.f32 %v4025_v62, %v3922_v44 }
 0x60b   :  { %v11996_v45 = vadd.f32 %v4230_v15, %v4127_v19  ;;  %v14433_v19 = vld [vmem:[#allocation83_spill] sm:$0xff]  ;;  %v14434_v15 = vld [vmem:[#allocation84_spill] sm:$0xff] }
 0x60e   :  { %v3923_v43 = vpop.f32.mrf.mxu2 }
 0x60f   :  { %v3924_v18 = vadd.f32 %v3923_v43, %v11574_v6  ;;  %v14435_v6 = vld [vmem:[#allocation85_spill] sm:$0xff] }
 0x610   :  { %v4129_v58 = vpop.f32.mrf.mxu0  ;;  %v8285_v43 = vld [vmem:[%s13709_s1 + $0x754] sm:$0xf0] }
 0x611   :  { %v4027_v25 = vpop.f32.mrf.mxu3  ;;  %v4130_v52 = vadd.f32 %v4129_v58, %v4026_v59  ;;  %v4233_v62 = vpop.f32.mrf.mxu1  ;;  %v7642_v59 = vor.u32 %v8253_v31, %v7641_v28 }
 0x612   :  { %v4028_v44 = vadd.f32 %v4027_v25, %v3924_v18  ;;  %v7770_v18 = vor.u32 %v8285_v43, %v7769_v0 }
 0x613   :  { %v12005_v39 = vadd.f32 %v4233_v62, %v4130_v52  ;;  %3965 = vmatmul.bf16.gmra.mxu2 %v14433_v19  ;;  %4168 = vmatmul.bf16.gmra.mxu0 %v14434_v15 }
 0x614   :  { %4272 = vmatmul.bf16.gmra.mxu1 %v14436_v4  ;;  %4328 = vmatpush.bf16.msra.mxu2 %v7642_v59  ;;  %v14438_v59 = vld [vmem:[#allocation89_spill] sm:$0xff] }
 0x615   :  { %4432 = vmatpush.bf16.msra.mxu3 %v7770_v18 }
 0x616   :  { %4069 = vmatmul.bf16.gmra.mxu3 %v14435_v6  ;;  %v3926_v25 = vpop.f32.mrf.mxu2 }
 0x617   :  { %v3927_v58 = vadd.f32 %v3926_v25, %v11578_v3  ;;  %v14437_v3 = vld [vmem:[#allocation88_spill] sm:$0xff] }
 0x618   :  { %v4131_v62 = vpop.f32.mrf.mxu0 }
 0x619   :  { %v4030_v52 = vpop.f32.mrf.mxu3  ;;  %v4132_v15 = vadd.f32 %v4131_v62, %v4028_v44  ;;  %v4235_v4 = vpop.f32.mrf.mxu1  ;;  %v14439_v44 = vld [vmem:[#allocation90_spill] sm:$0xff] }
 0x61a   :  { %v4031_v6 = vadd.f32 %v4030_v52, %v3927_v58 }
 0x61b   :  { %v12024_v28 = vadd.f32 %v4235_v4, %v4132_v15 }
 0x61e   :  { %v3928_v31 = vpop.f32.mrf.mxu2 }
 0x61f   :  { %v3929_v19 = vadd.f32 %v3928_v31, %v11588_v54 }
 0x620   :  { %v4134_v50 = vpop.f32.mrf.mxu0 }
 0x621   :  { %v4032_v27 = vpop.f32.mrf.mxu3  ;;  %v4135_v32 = vadd.f32 %v4134_v50, %v4031_v6  ;;  %v4238_v0 = vpop.f32.mrf.mxu1 }
 0x622   :  { %v4033_v26 = vadd.f32 %v4032_v27, %v3929_v19 }
 0x623   :  { %v12027_v43 = vadd.f32 %v4238_v0, %v4135_v32  ;;  %3970 = vmatmul.bf16.gmra.mxu2 %v14274_v47  ;;  %4173 = vmatmul.bf16.gmra.mxu0 %v14437_v3 }
 0x624   :  { %4277 = vmatmul.bf16.gmra.mxu1 %v14439_v44  ;;  %v14440_v44 = vld [vmem:[#allocation91_spill] sm:$0xff] }
 0x626   :  { %4074 = vmatmul.bf16.gmra.mxu3 %v14438_v59  ;;  %v3931_v15 = vpop.f32.mrf.mxu2 }
 0x627   :  { %v3932_v4 = vadd.f32 %v3931_v15, %v11592_v57  ;;  %v14441_v57 = vld [vmem:[#allocation92_spill] sm:$0xff]  ;;  %v14442_v15 = vld [vmem:[#allocation93_spill] sm:$0xff] }
 0x628   :  { %v4136_v54 = vpop.f32.mrf.mxu0 }
 0x629   :  { %v4035_v18 = vpop.f32.mrf.mxu3  ;;  %v4137_v58 = vadd.f32 %v4136_v54, %v4033_v26  ;;  %v4240_v27 = vpop.f32.mrf.mxu1  ;;  %v14443_v26 = vld [vmem:[#allocation94_spill] sm:$0xff] }
 0x62a   :  { %v4036_v25 = vadd.f32 %v4035_v18, %v3932_v4  ;;  %v8071_v4 = vld [vmem:[%s13709_s1 + $0xac] sm:$0xf] }
 0x62b   :  { %v12034_v50 = vadd.f32 %v4240_v27, %v4137_v58 }
 0x62e   :  { %v3933_v32 = vpop.f32.mrf.mxu2 }
 0x62f   :  { %v3934_v19 = vadd.f32 %v3933_v32, %v11608_v14  ;;  %v6923_v14 = vld [vmem:[%s13709_s1 + $0xb8] sm:$0xf0] }
 0x630   :  { %v4139_v52 = vpop.f32.mrf.mxu0  ;;  %v6926_v18 = vor.u32 %v8071_v4, %v6923_v14 }
 0x631   :  { %v4037_v6 = vpop.f32.mrf.mxu3  ;;  %v4140_v31 = vadd.f32 %v4139_v52, %v4036_v25  ;;  %v4243_v0 = vpop.f32.mrf.mxu1  ;;  %v7625_v52 = vld [vmem:[%s13709_s1 + $0x628] sm:$0xf] }
 0x632   :  { %v4038_v62 = vadd.f32 %v4037_v6, %v3934_v19  ;;  %4533 = vmatpush.bf16.msra.mxu0 %v6926_v18 }
 0x633   :  { %v12037_v59 = vadd.f32 %v4243_v0, %v4140_v31  ;;  %3975 = vmatmul.bf16.gmra.mxu2 %v14440_v44  ;;  %4178 = vmatmul.bf16.gmra.mxu0 %v14441_v57  ;;  %v8249_v31 = vld [vmem:[%s13709_s1 + $0x634] sm:$0xf0]  ;;  %v14447_v57 = vld [vmem:[#allocation98_spill] sm:$0xff] }
 0x634   :  { %4282 = vmatmul.bf16.gmra.mxu1 %v14443_v26  ;;  %v7626_v0 = vor.u32 %v8249_v31, %v7625_v52  ;;  %v14444_v52 = vld [vmem:[#allocation95_spill] sm:$0xff]  ;;  %v14445_v31 = vld [vmem:[#allocation96_spill] sm:$0xff] }
 0x636   :  { %4079 = vmatmul.bf16.gmra.mxu3 %v14442_v15  ;;  %v3936_v54 = vpop.f32.mrf.mxu2  ;;  %4329 = vmatpush.bf16.msra.mxu2 %v7626_v0  ;;  %v14446_v15 = vld [vmem:[#allocation97_spill] sm:$0xff] }
 0x637   :  { %v3937_v25 = vadd.f32 %v3936_v54, %v11624_v33  ;;  %v7753_v33 = vld [vmem:[%s13709_s1 + $0x728] sm:$0xf] }
 0x638   :  { %v4141_v27 = vpop.f32.mrf.mxu0 }
 0x639   :  { %v4040_v58 = vpop.f32.mrf.mxu3  ;;  %v4142_v19 = vadd.f32 %v4141_v27, %v4038_v62  ;;  %v4245_v6 = vpop.f32.mrf.mxu1  ;;  %v8281_v62 = vld [vmem:[%s13709_s1 + $0x734] sm:$0xf0] }
 0x63a   :  { %v4041_v32 = vadd.f32 %v4040_v58, %v3937_v25  ;;  %v7754_v4 = vor.u32 %v8281_v62, %v7753_v33 }
 0x63b   :  { %v12056_v26 = vadd.f32 %v4245_v6, %v4142_v19 }
 0x63c   :  { %4433 = vmatpush.bf16.msra.mxu3 %v7754_v4 }
 0x63e   :  { %v3938_v14 = vpop.f32.mrf.mxu2 }
 0x63f   :  { %v3939_v18 = vadd.f32 %v3938_v14, %v11634_v36 }
 0x640   :  { %v4144_v25 = vpop.f32.mrf.mxu0 }
 0x641   :  { %v4042_v54 = vpop.f32.mrf.mxu3  ;;  %v4145_v27 = vadd.f32 %v4144_v25, %v4041_v32  ;;  %v4248_v19 = vpop.f32.mrf.mxu1 }
 0x642   :  { %v4043_v58 = vadd.f32 %v4042_v54, %v3939_v18 }
 0x643   :  { %v12065_v6 = vadd.f32 %v4248_v19, %v4145_v27  ;;  %3980 = vmatmul.bf16.gmra.mxu2 %v14444_v52  ;;  %4183 = vmatmul.bf16.gmra.mxu0 %v14445_v31 }
 0x644   :  { %4287 = vmatmul.bf16.gmra.mxu1 %v14447_v57  ;;  %v14448_v57 = vld [vmem:[#allocation99_spill] sm:$0xff] }
 0x646   :  { %4084 = vmatmul.bf16.gmra.mxu3 %v14446_v15  ;;  %v3941_v0 = vpop.f32.mrf.mxu2 }
 0x647   :  { %v3942_v33 = vadd.f32 %v3941_v0, %v11638_v17  ;;  %v14449_v17 = vld [vmem:[#allocation100_spill] sm:$0xff]  ;;  %v14450_v0 = vld [vmem:[#allocation101_spill] sm:$0xff] }
 0x648   :  { %v4146_v36 = vpop.f32.mrf.mxu0 }
 0x649   :  { %v4045_v62 = vpop.f32.mrf.mxu3  ;;  %v4147_v14 = vadd.f32 %v4146_v36, %v4043_v58  ;;  %v4250_v18 = vpop.f32.mrf.mxu1  ;;  %v14451_v58 = vld [vmem:[#allocation102_spill] sm:$0xff] }
 0x64a   :  { %v4046_v4 = vadd.f32 %v4045_v62, %v3942_v33 }
 0x64b   :  { %v12072_v32 = vadd.f32 %v4250_v18, %v4147_v14 }
 0x64e   :  { %v3943_v54 = vpop.f32.mrf.mxu2 }
 0x64f   :  { %v3944_v25 = vadd.f32 %v3943_v54, %v11648_v61 }
 0x650   :  { %v4149_v19 = vpop.f32.mrf.mxu0 }
 0x651   :  { %v4047_v27 = vpop.f32.mrf.mxu3  ;;  %v4150_v52 = vadd.f32 %v4149_v19, %v4046_v4  ;;  %v4253_v15 = vpop.f32.mrf.mxu1 }
 0x652   :  { %v4048_v31 = vadd.f32 %v4047_v27, %v3944_v25  ;;  %v7609_v25 = vld [vmem:[%s13709_s1 + $0x608] sm:$0xf] }
 0x653   :  { %v12075_v44 = vadd.f32 %v4253_v15, %v4150_v52  ;;  %3985 = vmatmul.bf16.gmra.mxu2 %v14448_v57  ;;  %4188 = vmatmul.bf16.gmra.mxu0 %v14449_v17  ;;  %v8067_v15 = vld [vmem:[%s13709_s1 + $0x8c] sm:$0xf]  ;;  %v6907_v52 = vld [vmem:[%s13709_s1 + $0x98] sm:$0xf0] }
 0x654   :  { %4292 = vmatmul.bf16.gmra.mxu1 %v14451_v58  ;;  %v7737_v58 = vld [vmem:[%s13709_s1 + $0x708] sm:$0xf] }
 0x656   :  { %4089 = vmatmul.bf16.gmra.mxu3 %v14450_v0  ;;  %v3946_v33 = vpop.f32.mrf.mxu2 }
 0x657   :  { %v3947_v62 = vadd.f32 %v3946_v33, %v11664_v2  ;;  %v6910_v2 = vor.u32 %v8067_v15, %v6907_v52  ;;  %v8277_v15 = vld [vmem:[%s13709_s1 + $0x714] sm:$0xf0] }
 0x658   :  { %v4151_v61 = vpop.f32.mrf.mxu0  ;;  %v7738_v52 = vor.u32 %v8277_v15, %v7737_v58 }
 0x659   :  { %v4050_v36 = vpop.f32.mrf.mxu3  ;;  %v4152_v18 = vadd.f32 %v4151_v61, %v4048_v31  ;;  %v4255_v54 = vpop.f32.mrf.mxu1  ;;  %v8245_v31 = vld [vmem:[%s13709_s1 + $0x614] sm:$0xf0]  ;;  %4534 = vmatpush.bf16.msra.mxu0 %v6910_v2 }
 0x65a   :  { %v4051_v14 = vadd.f32 %v4050_v36, %v3947_v62  ;;  %v7610_v27 = vor.u32 %v8245_v31, %v7609_v25  ;;  %v14452_v2 = vld [vmem:[#allocation105_spill] sm:$0xff]  ;;  %v14454_v31 = vld [vmem:[#allocation107_spill] sm:$0xff]  ;;  %4434 = vmatpush.bf16.msra.mxu3 %v7738_v52 }
 0x65b   :  { %v12082_v4 = vadd.f32 %v4255_v54, %v4152_v18  ;;  %v8111_v52 = vld [vmem:[%s13709_s1 + $0x1ec] sm:$0xf] }
 0x65c   :  { %4330 = vmatpush.bf16.msra.mxu2 %v7610_v27 }
 0x65e   :  { %v3948_v19 = vpop.f32.mrf.mxu2 }
 0x65f   :  { %v3949_v33 = vadd.f32 %v3948_v19, %v11680_v30  ;;  %v14453_v30 = vld [vmem:[#allocation106_spill] sm:$0xff] }
 0x660   :  { %v4154_v36 = vpop.f32.mrf.mxu0 }
 0x661   :  { %v4052_v62 = vpop.f32.mrf.mxu3  ;;  %v4155_v18 = vadd.f32 %v4154_v36, %v4051_v14  ;;  %v4258_v54 = vpop.f32.mrf.mxu1 }
 0x662   :  { %v4053_v61 = vadd.f32 %v4052_v62, %v3949_v33 }
 0x663   :  { %v12103_v25 = vadd.f32 %v4258_v54, %v4155_v18  ;;  %3990 = vmatmul.bf16.gmra.mxu2 %v14452_v2  ;;  %4193 = vmatmul.bf16.gmra.mxu0 %v14453_v30 }
 0x664   :  { %4297 = vmatmul.bf16.gmra.mxu1 %v14293_v51 }
 0x666   :  { %4094 = vmatmul.bf16.gmra.mxu3 %v14454_v31  ;;  %v3951_v14 = vpop.f32.mrf.mxu2 }
 0x667   :  { %v3952_v27 = vadd.f32 %v3951_v14, %v11690_v38  ;;  %v7083_v38 = vld [vmem:[%s13709_s1 + $0x1f8] sm:$0xf0]  ;;  %v14456_v14 = vld [vmem:[#allocation110_spill] sm:$0xff] }
 0x668   :  { %v4156_v33 = vpop.f32.mrf.mxu0 }
 0x669   :  { %v4055_v19 = vpop.f32.mrf.mxu3  ;;  %v4157_v36 = vadd.f32 %v4156_v33, %v4053_v61  ;;  %v4260_v0 = vpop.f32.mrf.mxu1  ;;  %v8107_v33 = vld [vmem:[%s13709_s1 + $0x1cc] sm:$0xf] }
 0x66a   :  { %v4056_v62 = vadd.f32 %v4055_v19, %v3952_v27  ;;  %v14457_v27 = vld [vmem:[#allocation111_spill] sm:$0xff]  ;;  %v14458_v19 = vld [vmem:[#allocation112_spill] sm:$0xff] }
 0x66b   :  { %v12110_v58 = vadd.f32 %v4260_v0, %v4157_v36  ;;  %v14455_v0 = vld [vmem:[#allocation109_spill] sm:$0xff] }
 0x66e   :  { %v3953_v18 = vpop.f32.mrf.mxu2 }
 0x66f   :  { %v3954_v54 = vadd.f32 %v3953_v18, %v11712_v55  ;;  %v7086_v55 = vor.u32 %v8111_v52, %v7083_v38  ;;  %v8103_v38 = vld [vmem:[%s13709_s1 + $0x1ac] sm:$0xf] }
 0x670   :  { %v4159_v30 = vpop.f32.mrf.mxu0 }
 0x671   :  { %v4057_v15 = vpop.f32.mrf.mxu3  ;;  %v4160_v31 = vadd.f32 %v4159_v30, %v4056_v62  ;;  %v4263_v17 = vpop.f32.mrf.mxu1  ;;  %4635 = vmatpush.bf16.msra.mxu1 %v7086_v55  ;;  %v7051_v55 = vld [vmem:[%s13709_s1 + $0x1b8] sm:$0xf0] }
 0x672   :  { %v4058_v2 = vadd.f32 %v4057_v15, %v3954_v54 }
 0x673   :  { %v12119_v61 = vadd.f32 %v4263_v17, %v4160_v31  ;;  %3995 = vmatmul.bf16.gmra.mxu2 %v14455_v0  ;;  %4198 = vmatmul.bf16.gmra.mxu0 %v14456_v14  ;;  %v7067_v17 = vld [vmem:[%s13709_s1 + $0x1d8] sm:$0xf0]  ;;  %v8055_v0 = vld [vmem:[%s13709_s1 + $0x2c] sm:$0xf] }
 0x674   :  { %4302 = vmatmul.bf16.gmra.mxu1 %v14458_v19  ;;  %v7070_v36 = vor.u32 %v8107_v33, %v7067_v17 }
 0x676   :  { %4099 = vmatmul.bf16.gmra.mxu3 %v14457_v27  ;;  %v3956_v30 = vpop.f32.mrf.mxu2  ;;  %4636 = vmatpush.bf16.msra.mxu1 %v7070_v36  ;;  %v7054_v27 = vor.u32 %v8103_v38, %v7051_v55  ;;  %v7019_v55 = vld [vmem:[%s13709_s1 + $0x178] sm:$0xf0] }
 0x677   :  { %v3957_v31 = vadd.f32 %v3956_v30, %v11731_v23  ;;  %v8099_v30 = vld [vmem:[%s13709_s1 + $0x18c] sm:$0xf] }
 0x678   :  { %v4161_v18 = vpop.f32.mrf.mxu0 }
 0x679   :  { %v4060_v62 = vpop.f32.mrf.mxu3  ;;  %v4162_v15 = vadd.f32 %v4161_v18, %v4058_v2  ;;  %v4265_v52 = vpop.f32.mrf.mxu1  ;;  %v7035_v2 = vld [vmem:[%s13709_s1 + $0x198] sm:$0xf0] }
 0x67a   :  { %v4061_v54 = vadd.f32 %v4060_v62, %v3957_v31  ;;  %4637 = vmatpush.bf16.msra.mxu1 %v7054_v27  ;;  %v7038_v31 = vor.u32 %v8099_v30, %v7035_v2  ;;  %v8063_v27 = vld [vmem:[%s13709_s1 + $0x6c] sm:$0xf]  ;;  %v14460_v30 = vld [vmem:[#allocation114_spill] sm:$0xff] }
 0x67b   :  { %v12138_v19 = vadd.f32 %v4265_v52, %v4162_v15  ;;  %v6891_v52 = vld [vmem:[%s13709_s1 + $0x78] sm:$0xf0] }
 0x67c   :  { %v6894_v38 = vor.u32 %v8063_v27, %v6891_v52  ;;  %v7339_v27 = vld [vmem:[%s13709_s1 + $0x3f8] sm:$0xf0] }
 0x67e   :  { %v3958_v23 = vpop.f32.mrf.mxu2  ;;  %4638 = vmatpush.bf16.msra.mxu1 %v7038_v31  ;;  %v8143_v31 = vld [vmem:[%s13709_s1 + $0x2ec] sm:$0xf]  ;;  %4535 = vmatpush.bf16.msra.mxu0 %v6894_v38 }
 0x67f   :  { %v3959_v33 = vadd.f32 %v3958_v23, %v11777_v20  ;;  %v8095_v20 = vld [vmem:[%s13709_s1 + $0x16c] sm:$0xf]  ;;  %v14459_v23 = vld [vmem:[#allocation113_spill] sm:$0xff] }
 0x680   :  { %v4164_v62 = vpop.f32.mrf.mxu0  ;;  %v7022_v2 = vor.u32 %v8095_v20, %v7019_v55  ;;  %v8059_v55 = vld [vmem:[%s13709_s1 + $0x4c] sm:$0xf] }
 0x681   :  { %v4062_v17 = vpop.f32.mrf.mxu3  ;;  %v4165_v18 = vadd.f32 %v4164_v62, %v4061_v54  ;;  %v4268_v15 = vpop.f32.mrf.mxu1  ;;  %v7211_v62 = vld [vmem:[%s13709_s1 + $0x2f8] sm:$0xf0]  ;;  %v8091_v38 = vld [vmem:[%s13709_s1 + $0x14c] sm:$0xf] }
 0x682   :  { %v4063_v36 = vadd.f32 %v4062_v17, %v3959_v33  ;;  %v14461_v33 = vld [vmem:[#allocation115_spill] sm:$0xff]  ;;  %v14462_v17 = vld [vmem:[#allocation116_spill] sm:$0xff]  ;;  %4639 = vmatpush.bf16.msra.mxu1 %v7022_v2 }
 0x683   :  { %v12159_v54 = vadd.f32 %v4268_v15, %v4165_v18  ;;  %4000 = vmatmul.bf16.gmra.mxu2 %v14459_v23  ;;  %4203 = vmatmul.bf16.gmra.mxu0 %v14460_v30  ;;  %v8175_v18 = vld [vmem:[%s13709_s1 + $0x3ec] sm:$0xf]  ;;  %v7214_v15 = vor.u32 %v8143_v31, %v7211_v62 }
 0x684   :  { %4307 = vmatmul.bf16.gmra.mxu1 %v14462_v17  ;;  %v7342_v20 = vor.u32 %v8175_v18, %v7339_v27  ;;  %v6875_v17 = vld [vmem:[%s13709_s1 + $0x58] sm:$0xf0] }
 0x685   :  { %4739 = vmatpush.bf16.msrb.mxu2 %v7214_v15  ;;  %v6878_v62 = vor.u32 %v8059_v55, %v6875_v17  ;;  %v7003_v18 = vld [vmem:[%s13709_s1 + $0x158] sm:$0xf0]  ;;  %v8087_v17 = vld [vmem:[%s13709_s1 + $0x12c] sm:$0xf] }
 0x686   :  { %4104 = vmatmul.bf16.gmra.mxu3 %v14461_v33  ;;  %v3961_v52 = vpop.f32.mrf.mxu2  ;;  %v7006_v33 = vor.u32 %v8091_v38, %v7003_v18  ;;  %v8051_v55 = vld [vmem:[%s13709_s1 + $0xc] sm:$0xf]  ;;  %v6843_v38 = vld [vmem:[%s13709_s1 + $0x18] sm:$0xf0] }
 0x687   :  { %v3962_v2 = vadd.f32 %v3961_v52, %v11796_v5  ;;  %4843 = vmatpush.bf16.msrb.mxu3 %v7342_v20  ;;  %4536 = vmatpush.bf16.msra.mxu0 %v6878_v62  ;;  %v6859_v5 = vld [vmem:[%s13709_s1 + $0x38] sm:$0xf0] }
 0x688   :  { %v4166_v27 = vpop.f32.mrf.mxu0  ;;  %4640 = vmatpush.bf16.msra.mxu1 %v7006_v33  ;;  %v6862_v52 = vor.u32 %v8055_v0, %v6859_v5  ;;  %v8083_v0 = vld [vmem:[%s13709_s1 + $0x10c] sm:$0xf] }
 0x689   :  { %v4065_v31 = vpop.f32.mrf.mxu3  ;;  %v4167_v23 = vadd.f32 %v4166_v27, %v4063_v36  ;;  %v4270_v14 = vpop.f32.mrf.mxu1  ;;  %v6987_v36 = vld [vmem:[%s13709_s1 + $0x138] sm:$0xf0] }
 0x68a   :  { %v4066_v30 = vadd.f32 %v4065_v31, %v3962_v2  ;;  %v6990_v33 = vor.u32 %v8087_v17, %v6987_v36  ;;  %v6846_v2 = vor.u32 %v8051_v55, %v6843_v38  ;;  %v6971_v31 = vld [vmem:[%s13709_s1 + $0x118] sm:$0xf0] }
 0x68b   :  { %v12199_v15 = vadd.f32 %v4270_v14, %v4167_v23  ;;  %4537 = vmatpush.bf16.msra.mxu0 %v6862_v52  ;;  %v6974_v18 = vor.u32 %v8083_v0, %v6971_v31 }
 0x68c   :  { %4641 = vmatpush.bf16.msra.mxu1 %v6990_v33 }
 0x68e   :  { %v3963_v20 = vpop.f32.mrf.mxu2 }
 0x68f   :  { %v3964_v14 = vadd.f32 %v3963_v20, %v11806_v24  ;;  %4538 = vmatpush.bf16.msra.mxu0 %v6846_v2  ;;  %v14463_v24 = vld [vmem:[#allocation121_spill] sm:$0xff] }
 0x690   :  { %v4169_v62 = vpop.f32.mrf.mxu0  ;;  %4642 = vmatpush.bf16.msra.mxu1 %v6974_v18 }
 0x691   :  { %v4067_v23 = vpop.f32.mrf.mxu3  ;;  %v4170_v5 = vadd.f32 %v4169_v62, %v4066_v30  ;;  %v4273_v17 = vpop.f32.mrf.mxu1 }
 0x692   :  { %v4068_v27 = vadd.f32 %v4067_v23, %v3964_v14 }
 0x693   :  { %v12217_v52 = vadd.f32 %v4273_v17, %v4170_v5  ;;  %4005 = vmatmul.bf16.gmra.mxu2 %v10196_v1  ;;  %4208 = vmatmul.bf16.gmra.mxu0 %v10198_v53 }
 0x694   :  { %4312 = vmatmul.bf16.gmra.mxu1 %v14463_v24  ;;  %v14464_v24 = vld [vmem:[#allocation122_spill] sm:$0xff] }
 0x696   :  { %4109 = vmatmul.bf16.gmra.mxu3 %v10203_v41  ;;  %v3966_v36 = vpop.f32.mrf.mxu2 }
 0x697   :  { %v3967_v33 = vadd.f32 %v3966_v36, %v11810_v42  ;;  %v14465_v42 = vld [vmem:[#allocation123_spill] sm:$0xff]  ;;  %v14466_v36 = vld [vmem:[#allocation124_spill] sm:$0xff] }
 0x698   :  { %v4171_v55 = vpop.f32.mrf.mxu0 }
 0x699   :  { %v4070_v20 = vpop.f32.mrf.mxu3  ;;  %v4172_v30 = vadd.f32 %v4171_v55, %v4068_v27  ;;  %v4275_v0 = vpop.f32.mrf.mxu1  ;;  %v14467_v27 = vld [vmem:[#allocation125_spill] sm:$0xff] }
 0x69a   :  { %v4071_v38 = vadd.f32 %v4070_v20, %v3967_v33 }
 0x69b   :  { %v12224_v14 = vadd.f32 %v4275_v0, %v4172_v30 }
 0x69e   :  { %v3968_v23 = vpop.f32.mrf.mxu2 }
 0x69f   :  { %v3969_v2 = vadd.f32 %v3968_v23, %v11820_v10 }
 0x6a0   :  { %v4174_v62 = vpop.f32.mrf.mxu0 }
 0x6a1   :  { %v4072_v31 = vpop.f32.mrf.mxu3  ;;  %v4175_v5 = vadd.f32 %v4174_v62, %v4071_v38  ;;  %v4278_v17 = vpop.f32.mrf.mxu1  ;;  %v8171_v62 = vld [vmem:[%s13709_s1 + $0x3cc] sm:$0xf] }
 0x6a2   :  { %v4073_v18 = vadd.f32 %v4072_v31, %v3969_v2  ;;  %v8139_v2 = vld [vmem:[%s13709_s1 + $0x2cc] sm:$0xf]  ;;  %v7195_v31 = vld [vmem:[%s13709_s1 + $0x2d8] sm:$0xf0] }
 0x6a3   :  { %v12227_v41 = vadd.f32 %v4278_v17, %v4175_v5  ;;  %4213 = vmatmul.bf16.gmra.mxu0 %v14464_v24  ;;  %4331 = vmatmul.bf16.vlgmr.msra.gmra.mxu2 %v14465_v42  ;;  %v14471_v42 = vld [vmem:[#allocation4_spill] sm:$0xff] }
 0x6a4   :  { %4317 = vmatmul.bf16.gmra.mxu1 %v14466_v36  ;;  %v14468_v36 = vld [vmem:[#allocation126_spill] sm:$0xff] }
 0x6a6   :  { %4435 = vmatmul.bf16.vlgmr.msra.gmra.mxu3 %v14467_v27  ;;  %v3971_v33 = vpop.f32.mrf.mxu2 }
 0x6a7   :  { %v3972_v20 = vadd.f32 %v3971_v33, %v11836_v21  ;;  %v7198_v21 = vor.u32 %v8139_v2, %v7195_v31  ;;  %v14469_v2 = vld [vmem:[#allocation2_spill] sm:$0xff]  ;;  %v14470_v31 = vld [vmem:[#allocation127_spill] sm:$0xff] }
 0x6a8   :  { %v4176_v10 = vpop.f32.mrf.mxu0 }
 0x6a9   :  { %v4075_v55 = vpop.f32.mrf.mxu3  ;;  %v4177_v0 = vadd.f32 %v4176_v10, %v4073_v18  ;;  %v4280_v23 = vpop.f32.mrf.mxu1  ;;  %v7323_v18 = vld [vmem:[%s13709_s1 + $0x3d8] sm:$0xf0]  ;;  %4740 = vmatpush.bf16.msrb.mxu2 %v7198_v21 }
 0x6aa   :  { %v4076_v30 = vadd.f32 %v4075_v55, %v3972_v20  ;;  %v7326_v5 = vor.u32 %v8171_v62, %v7323_v18 }
 0x6ab   :  { %v12234_v38 = vadd.f32 %v4280_v23, %v4177_v0 }
 0x6ac   :  { %4844 = vmatpush.bf16.msrb.mxu3 %v7326_v5 }
 0x6ae   :  { %v3973_v17 = vpop.f32.mrf.mxu2 }
 0x6af   :  { %v3974_v33 = vadd.f32 %v3973_v17, %v11846_v13 }
 0x6b0   :  { %v4179_v55 = vpop.f32.mrf.mxu0 }
 0x6b1   :  { %v4077_v20 = vpop.f32.mrf.mxu3  ;;  %v4180_v0 = vadd.f32 %v4179_v55, %v4076_v30  ;;  %v4283_v23 = vpop.f32.mrf.mxu1 }
 0x6b2   :  { %v4078_v10 = vadd.f32 %v4077_v20, %v3974_v33 }
 0x6b3   :  { %v12249_v27 = vadd.f32 %v4283_v23, %v4180_v0  ;;  %4336 = vmatmul.bf16.gmra.mxu2 %v14468_v36  ;;  %4539 = vmatmul.bf16.vlgmr.msra.gmra.mxu0 %v14469_v2 }
 0x6b4   :  { %4643 = vmatmul.bf16.vlgmr.msra.gmra.mxu1 %v14471_v42  ;;  %v14472_v42 = vld [vmem:[#allocation128_spill] sm:$0xff] }
 0x6b6   :  { %4440 = vmatmul.bf16.gmra.mxu3 %v14470_v31  ;;  %v3976_v62 = vpop.f32.mrf.mxu2 }
 0x6b7   :  { %v3977_v21 = vadd.f32 %v3976_v62, %v11850_v7  ;;  %v14473_v7 = vld [vmem:[#allocation6_spill] sm:$0xff]  ;;  %v14474_v62 = vld [vmem:[#allocation129_spill] sm:$0xff] }
 0x6b8   :  { %v4181_v18 = vpop.f32.mrf.mxu0 }
 0x6b9   :  { %v4080_v13 = vpop.f32.mrf.mxu3  ;;  %v4182_v17 = vadd.f32 %v4181_v18, %v4078_v10  ;;  %v4285_v33 = vpop.f32.mrf.mxu1  ;;  %v14475_v10 = vld [vmem:[#allocation8_spill] sm:$0xff] }
 0x6ba   :  { %v4081_v5 = vadd.f32 %v4080_v13, %v3977_v21 }
 0x6bb   :  { %v12256_v30 = vadd.f32 %v4285_v33, %v4182_v17 }
 0x6be   :  { %v3978_v20 = vpop.f32.mrf.mxu2 }
 0x6bf   :  { %v3979_v55 = vadd.f32 %v3978_v20, %v11860_v56 }
 0x6c0   :  { %v4184_v23 = vpop.f32.mrf.mxu0 }
 0x6c1   :  { %v4082_v0 = vpop.f32.mrf.mxu3  ;;  %v4185_v36 = vadd.f32 %v4184_v23, %v4081_v5  ;;  %v4288_v31 = vpop.f32.mrf.mxu1 }
 0x6c2   :  { %v4083_v2 = vadd.f32 %v4082_v0, %v3979_v55 }
 0x6c3   :  { %v12259_v24 = vadd.f32 %v4288_v31, %v4185_v36  ;;  %4341 = vmatmul.bf16.gmra.mxu2 %v14472_v42  ;;  %4544 = vmatmul.bf16.gmra.mxu0 %v14473_v7 }
 0x6c4   :  { %4648 = vmatmul.bf16.gmra.mxu1 %v14475_v10  ;;  %v8135_v10 = vld [vmem:[%s13709_s1 + $0x2ac] sm:$0xf] }
 0x6c6   :  { %4445 = vmatmul.bf16.gmra.mxu3 %v14474_v62  ;;  %v3981_v21 = vpop.f32.mrf.mxu2 }
 0x6c7   :  { %v3982_v13 = vadd.f32 %v3981_v21, %v11864_v11  ;;  %v7179_v11 = vld [vmem:[%s13709_s1 + $0x2b8] sm:$0xf0] }
 0x6c8   :  { %v4186_v56 = vpop.f32.mrf.mxu0 }
 0x6c9   :  { %v4085_v18 = vpop.f32.mrf.mxu3  ;;  %v4187_v33 = vadd.f32 %v4186_v56, %v4083_v2  ;;  %v4290_v20 = vpop.f32.mrf.mxu1  ;;  %v7182_v2 = vor.u32 %v8135_v10, %v7179_v11  ;;  %v7307_v56 = vld [vmem:[%s13709_s1 + $0x3b8] sm:$0xf0] }
 0x6ca   :  { %v4086_v17 = vadd.f32 %v4085_v18, %v3982_v13  ;;  %v14476_v13 = vld [vmem:[#allocation130_spill] sm:$0xff] }
 0x6cb   :  { %v12266_v5 = vadd.f32 %v4290_v20, %v4187_v33  ;;  %v14477_v18 = vld [vmem:[#allocation10_spill] sm:$0xff]  ;;  %v14479_v33 = vld [vmem:[#allocation12_spill] sm:$0xff]  ;;  %4741 = vmatpush.bf16.msrb.mxu2 %v7182_v2 }
 0x6ce   :  { %v3983_v36 = vpop.f32.mrf.mxu2 }
 0x6cf   :  { %v3984_v31 = vadd.f32 %v3983_v36, %v11886_v8  ;;  %v8167_v8 = vld [vmem:[%s13709_s1 + $0x3ac] sm:$0xf] }
 0x6d0   :  { %v4189_v0 = vpop.f32.mrf.mxu0  ;;  %v7310_v20 = vor.u32 %v8167_v8, %v7307_v56  ;;  %v14480_v56 = vld [vmem:[#allocation132_spill] sm:$0xff] }
 0x6d1   :  { %v4087_v55 = vpop.f32.mrf.mxu3  ;;  %v4190_v7 = vadd.f32 %v4189_v0, %v4086_v17  ;;  %v4293_v62 = vpop.f32.mrf.mxu1  ;;  %v14478_v17 = vld [vmem:[#allocation131_spill] sm:$0xff] }
 0x6d2   :  { %v4088_v23 = vadd.f32 %v4087_v55, %v3984_v31  ;;  %4845 = vmatpush.bf16.msrb.mxu3 %v7310_v20  ;;  %v14482_v20 = vld [vmem:[#allocation133_spill] sm:$0xff] }
 0x6d3   :  { %v12275_v21 = vadd.f32 %v4293_v62, %v4190_v7  ;;  %4346 = vmatmul.bf16.gmra.mxu2 %v14476_v13  ;;  %4549 = vmatmul.bf16.gmra.mxu0 %v14477_v18 }
 0x6d4   :  { %4653 = vmatmul.bf16.gmra.mxu1 %v14479_v33 }
 0x6d6   :  { %4450 = vmatmul.bf16.gmra.mxu3 %v14478_v17  ;;  %v3986_v62 = vpop.f32.mrf.mxu2 }
 0x6d7   :  { %v3987_v36 = vadd.f32 %v3986_v62, %v11890_v40  ;;  %v14481_v40 = vld [vmem:[#allocation14_spill] sm:$0xff] }
 0x6d8   :  { %v4191_v55 = vpop.f32.mrf.mxu0 }
 0x6d9   :  { %v4090_v31 = vpop.f32.mrf.mxu3  ;;  %v4192_v7 = vadd.f32 %v4191_v55, %v4088_v23  ;;  %v4295_v10 = vpop.f32.mrf.mxu1  ;;  %v14483_v23 = vld [vmem:[#allocation16_spill] sm:$0xff] }
 0x6da   :  { %v4091_v0 = vadd.f32 %v4090_v31, %v3987_v36 }
 0x6db   :  { %v12288_v11 = vadd.f32 %v4295_v10, %v4192_v7 }
 0x6de   :  { %v3988_v18 = vpop.f32.mrf.mxu2 }
 0x6df   :  { %v3989_v13 = vadd.f32 %v3988_v18, %v11900_v9 }
 0x6e0   :  { %v4194_v17 = vpop.f32.mrf.mxu0 }
 0x6e1   :  { %v4092_v42 = vpop.f32.mrf.mxu3  ;;  %v4195_v33 = vadd.f32 %v4194_v17, %v4091_v0  ;;  %v4298_v8 = vpop.f32.mrf.mxu1 }
 0x6e2   :  { %v4093_v53 = vadd.f32 %v4092_v42, %v3989_v13 }
 0x6e3   :  { %v12291_v2 = vadd.f32 %v4298_v8, %v4195_v33  ;;  %4351 = vmatmul.bf16.gmra.mxu2 %v14480_v56  ;;  %4554 = vmatmul.bf16.gmra.mxu0 %v14481_v40  ;;  %v14498_v56 = vld [vmem:[#allocation137_spill] sm:$0xff] }
 0x6e4   :  { %4658 = vmatmul.bf16.gmra.mxu1 %v14483_v23  ;;  %v14484_v23 = vld [vmem:[#allocation134_spill] sm:$0xff] }
 0x6e6   :  { %4455 = vmatmul.bf16.gmra.mxu3 %v14482_v20  ;;  %v3991_v62 = vpop.f32.mrf.mxu2 }
 0x6e7   :  { %v3992_v36 = vadd.f32 %v3991_v62, %v11904_v63  ;;  %v14485_v63 = vld [vmem:[#allocation18_spill] sm:$0xff]  ;;  %v14486_v62 = vld [vmem:[#allocation135_spill] sm:$0xff] }
 0x6e8   :  { %v4196_v9 = vpop.f32.mrf.mxu0 }
 0x6e9   :  { %v4095_v31 = vpop.f32.mrf.mxu3  ;;  %v4197_v7 = vadd.f32 %v4196_v9, %v4093_v53  ;;  %v4300_v42 = vpop.f32.mrf.mxu1  ;;  %v14487_v53 = vld [vmem:[#allocation20_spill] sm:$0xff] }
 0x6ea   :  { %v4096_v55 = vadd.f32 %v4095_v31, %v3992_v36  ;;  %v8131_v36 = vld [vmem:[%s13709_s1 + $0x28c] sm:$0xf] }
 0x6eb   :  { %v12298_v13 = vadd.f32 %v4300_v42, %v4197_v7 }
 0x6ee   :  { %v3993_v17 = vpop.f32.mrf.mxu2 }
 0x6ef   :  { %v3994_v0 = vadd.f32 %v3993_v17, %v11920_v49  ;;  %v7163_v49 = vld [vmem:[%s13709_s1 + $0x298] sm:$0xf0] }
 0x6f0   :  { %v4199_v18 = vpop.f32.mrf.mxu0  ;;  %v7166_v31 = vor.u32 %v8131_v36, %v7163_v49 }
 0x6f1   :  { %v4097_v10 = vpop.f32.mrf.mxu3  ;;  %v4200_v8 = vadd.f32 %v4199_v18, %v4096_v55  ;;  %v4303_v40 = vpop.f32.mrf.mxu1  ;;  %v8163_v18 = vld [vmem:[%s13709_s1 + $0x38c] sm:$0xf] }
 0x6f2   :  { %v4098_v33 = vadd.f32 %v4097_v10, %v3994_v0  ;;  %4742 = vmatpush.bf16.msrb.mxu2 %v7166_v31 }
 0x6f3   :  { %v12301_v20 = vadd.f32 %v4303_v40, %v4200_v8  ;;  %4356 = vmatmul.bf16.gmra.mxu2 %v14484_v23  ;;  %4559 = vmatmul.bf16.gmra.mxu0 %v14485_v63  ;;  %v7291_v8 = vld [vmem:[%s13709_s1 + $0x398] sm:$0xf0] }
 0x6f4   :  { %4663 = vmatmul.bf16.gmra.mxu1 %v14487_v53  ;;  %v7294_v40 = vor.u32 %v8163_v18, %v7291_v8  ;;  %v14491_v18 = vld [vmem:[#allocation24_spill] sm:$0xff] }
 0x6f6   :  { %4460 = vmatmul.bf16.gmra.mxu3 %v14486_v62  ;;  %v3996_v9 = vpop.f32.mrf.mxu2  ;;  %v14490_v62 = vld [vmem:[#allocation136_spill] sm:$0xff] }
 0x6f7   :  { %v3997_v55 = vadd.f32 %v3996_v9, %v11930_v12  ;;  %4846 = vmatpush.bf16.msrb.mxu3 %v7294_v40 }
 0x6f8   :  { %v4201_v42 = vpop.f32.mrf.mxu0 }
 0x6f9   :  { %v4100_v7 = vpop.f32.mrf.mxu3  ;;  %v4202_v0 = vadd.f32 %v4201_v42, %v4098_v33  ;;  %v4305_v10 = vpop.f32.mrf.mxu1  ;;  %v14489_v42 = vld [vmem:[#allocation22_spill] sm:$0xff] }
 0x6fa   :  { %v4101_v17 = vadd.f32 %v4100_v7, %v3997_v55  ;;  %v14488_v7 = vld [vmem:[#allocation66_spill] sm:$0xff] }
 0x6fb   :  { %v12320_v63 = vadd.f32 %v4305_v10, %v4202_v0 }
 0x6fe   :  { %v3998_v53 = vpop.f32.mrf.mxu2 }
 0x6ff   :  { %v3999_v12 = vadd.f32 %v3998_v53, %v11940_v22 }
 0x700   :  { %v4204_v49 = vpop.f32.mrf.mxu0 }
 0x701   :  { %v4102_v36 = vpop.f32.mrf.mxu3  ;;  %v4205_v33 = vadd.f32 %v4204_v49, %v4101_v17  ;;  %v4308_v9 = vpop.f32.mrf.mxu1 }
 0x702   :  { %v4103_v31 = vadd.f32 %v4102_v36, %v3999_v12 }
 0x703   :  { %v12323_v55 = vadd.f32 %v4308_v9, %v4205_v33  ;;  %4361 = vmatmul.bf16.gmra.mxu2 %v14488_v7  ;;  %4564 = vmatmul.bf16.gmra.mxu0 %v14489_v42 }
 0x704   :  { %4668 = vmatmul.bf16.gmra.mxu1 %v14491_v18  ;;  %v14492_v18 = vld [vmem:[#allocation67_spill] sm:$0xff] }
 0x706   :  { %4465 = vmatmul.bf16.gmra.mxu3 %v14490_v62  ;;  %v4001_v0 = vpop.f32.mrf.mxu2 }
 0x707   :  { %v4002_v10 = vadd.f32 %v4001_v0, %v11944_v46  ;;  %v14493_v46 = vld [vmem:[#allocation26_spill] sm:$0xff]  ;;  %v14494_v0 = vld [vmem:[#allocation72_spill] sm:$0xff] }
 0x708   :  { %v4206_v22 = vpop.f32.mrf.mxu0 }
 0x709   :  { %v4105_v8 = vpop.f32.mrf.mxu3  ;;  %v4207_v53 = vadd.f32 %v4206_v22, %v4103_v31  ;;  %v4310_v12 = vpop.f32.mrf.mxu1  ;;  %v14495_v31 = vld [vmem:[#allocation28_spill] sm:$0xff] }
 0x70a   :  { %v4106_v40 = vadd.f32 %v4105_v8, %v4002_v10 }
 0x70b   :  { %v12330_v17 = vadd.f32 %v4310_v12, %v4207_v53 }
 0x70e   :  { %v4003_v36 = vpop.f32.mrf.mxu2 }
 0x70f   :  { %v4004_v49 = vadd.f32 %v4003_v36, %v11960_v16 }
 0x710   :  { %v4209_v9 = vpop.f32.mrf.mxu0 }
 0x711   :  { %v4107_v33 = vpop.f32.mrf.mxu3  ;;  %v4210_v7 = vadd.f32 %v4209_v9, %v4106_v40  ;;  %v4313_v62 = vpop.f32.mrf.mxu1  ;;  %v8159_v9 = vld [vmem:[%s13709_s1 + $0x36c] sm:$0xf] }
 0x712   :  { %v4108_v42 = vadd.f32 %v4107_v33, %v4004_v49  ;;  %v8127_v49 = vld [vmem:[%s13709_s1 + $0x26c] sm:$0xf]  ;;  %v7147_v33 = vld [vmem:[%s13709_s1 + $0x278] sm:$0xf0] }
 0x713   :  { %v12333_v23 = vadd.f32 %v4313_v62, %v4210_v7  ;;  %4366 = vmatmul.bf16.gmra.mxu2 %v14492_v18  ;;  %4569 = vmatmul.bf16.gmra.mxu0 %v14493_v46  ;;  %v8207_v62 = vld [vmem:[%s13709_s1 + $0x4ec] sm:$0xf]  ;;  %v7467_v7 = vld [vmem:[%s13709_s1 + $0x4f8] sm:$0xf0]  ;;  %v7150_v46 = vor.u32 %v8127_v49, %v7147_v33  ;;  %v14497_v18 = vld [vmem:[#allocation30_spill] sm:$0xff] }
 0x714   :  { %4673 = vmatmul.bf16.gmra.mxu1 %v14495_v31  ;;  %v14499_v49 = vld [vmem:[#allocation32_spill] sm:$0xff] }
 0x715   :  { %4743 = vmatpush.bf16.msrb.mxu2 %v7150_v46 }
 0x716   :  { %4470 = vmatmul.bf16.gmra.mxu3 %v14494_v0  ;;  %v4006_v10 = vpop.f32.mrf.mxu2  ;;  %v14496_v0 = vld [vmem:[#allocation73_spill] sm:$0xff] }
 0x717   :  { %v4007_v8 = vadd.f32 %v4006_v10, %v11976_v37  ;;  %v7470_v37 = vor.u32 %v8207_v62, %v7467_v7 }
 0x718   :  { %v4211_v16 = vpop.f32.mrf.mxu0 }
 0x719   :  { %v4110_v22 = vpop.f32.mrf.mxu3  ;;  %v4212_v12 = vadd.f32 %v4211_v16, %v4108_v42  ;;  %v4315_v36 = vpop.f32.mrf.mxu1  ;;  %v7275_v42 = vld [vmem:[%s13709_s1 + $0x378] sm:$0xf0]  ;;  %4947 = vmatpush.bf16.msrb.mxu0 %v7470_v37 }
 0x71a   :  { %v4111_v53 = vadd.f32 %v4110_v22, %v4007_v8  ;;  %v7278_v31 = vor.u32 %v8159_v9, %v7275_v42 }
 0x71b   :  { %v12340_v40 = vadd.f32 %v4315_v36, %v4212_v12 }
 0x71c   :  { %4847 = vmatpush.bf16.msrb.mxu3 %v7278_v31 }
 0x71e   :  { %v4008_v10 = vpop.f32.mrf.mxu2 }
 0x71f   :  { %v4009_v8 = vadd.f32 %v4008_v10, %v11986_v35  ;;  %v8484_v10 = vld [vmem:[%s13711_s2] sm:$0xf] }
 0x720   :  { %v4214_v16 = vpop.f32.mrf.mxu0 }
 0x721   :  { %v4112_v22 = vpop.f32.mrf.mxu3  ;;  %v4215_v36 = vadd.f32 %v4214_v16, %v4111_v53  ;;  %v4318_v62 = vpop.f32.mrf.mxu1 }
 0x722   :  { %v4113_v12 = vadd.f32 %v4112_v22, %v4009_v8  ;;  %v12373_v8 = vperm.slane %v8484_v10, 3 }
 0x723   :  { %v12361_v7 = vadd.f32 %v4318_v62, %v4215_v36  ;;  %4371 = vmatmul.bf16.gmra.mxu2 %v14496_v0  ;;  %4574 = vmatmul.bf16.gmra.mxu0 %v14497_v18 }
 0x724   :  { %4678 = vmatmul.bf16.gmra.mxu1 %v14499_v49 }
 0x726   :  { %4475 = vmatmul.bf16.gmra.mxu3 %v14498_v56  ;;  %v4332_v37 = vpop.f32.mrf.mxu2 }
 0x727   :  { %v4333_v35 = vadd.f32 %v4332_v37, %v11989_v29 }
 0x728   :  { %v4216_v9 = vpop.f32.mrf.mxu0 }
 0x729   :  { %v4436_v33 = vpop.f32.mrf.mxu3  ;;  %v4217_v46 = vadd.f32 %v4216_v9, %v4113_v12  ;;  %v4320_v31 = vpop.f32.mrf.mxu1  ;;  %v14501_v9 = vld [vmem:[#allocation34_spill] sm:$0xff] }
 0x72a   :  { %v4437_v42 = vadd.f32 %v4436_v33, %v4333_v35  ;;  %v14500_v33 = vld [vmem:[#allocation82_spill] sm:$0xff] }
 0x72b   :  { %v12368_v53 = vadd.f32 %v4320_v31, %v4217_v46  ;;  %v14502_v46 = vld [vmem:[#allocation138_spill] sm:$0xff]  ;;  %v14503_v31 = vld [vmem:[#allocation36_spill] sm:$0xff] }
 0x72c   :  { %v5365_v37 = vmax.f32 %v4437_v42, 0.0 }
 0x72e   :  { %v4334_v18 = vpop.f32.mrf.mxu2 }
 0x72f   :  { %v4335_v22 = vadd.f32 %v4334_v18, %v11996_v45 }
 0x730   :  { %v4540_v36 = vpop.f32.mrf.mxu0 }
 0x731   :  { %v4438_v16 = vpop.f32.mrf.mxu3  ;;  %v4541_v29 = vadd.f32 %v4540_v36, %v12373_v8  ;;  %v4644_v49 = vpop.f32.mrf.mxu1 }
 0x732   :  { %v4439_v62 = vadd.f32 %v4438_v16, %v4335_v22 }
 0x733   :  { %v12377_v35 = vadd.f32 %v4644_v49, %v4541_v29  ;;  %4376 = vmatmul.bf16.gmra.mxu2 %v14500_v33  ;;  %4579 = vmatmul.bf16.gmra.mxu0 %v14501_v9  ;;  %v8203_v49 = vld [vmem:[%s13709_s1 + $0x4cc] sm:$0xf]  ;;  %v14506_v33 = vld [vmem:[#allocation38_spill] sm:$0xff] }
 0x734   :  { %v5369_v12 = vmax.f32 %v4439_v62, 0.0  ;;  %4683 = vmatmul.bf16.gmra.mxu1 %v14503_v31 }
 0x736   :  { %4480 = vmatmul.bf16.gmra.mxu3 %v14502_v46  ;;  %v12383_v10 = vpack.c.bf16 %v5369_v12, %v5365_v37  ;;  %v4337_v45 = vpop.f32.mrf.mxu2  ;;  %v7451_v37 = vld [vmem:[%s13709_s1 + $0x4d8] sm:$0xf0]  ;;  %v14505_v46 = vld [vmem:[#allocation140_spill] sm:$0xff] }
 0x737   :  { %v4338_v18 = vadd.f32 %v4337_v45, %v12005_v39  ;;  %v7454_v12 = vor.u32 %v8203_v49, %v7451_v37  ;;  %v8123_v49 = vld [vmem:[%s13709_s1 + $0x24c] sm:$0xf]  ;;  %v14507_v37 = vld [vmem:[#allocation141_spill] sm:$0xff] }
 0x738   :  { %14504 = vst [vmem:[#allocation88_spill] sm:$0xff] %v12383_v10  ;;  %v4542_v16 = vpop.f32.mrf.mxu0 }
 0x739   :  { %v4441_v22 = vpop.f32.mrf.mxu3  ;;  %v4543_v42 = vadd.f32 %v4542_v16, %v12373_v8  ;;  %v4646_v62 = vpop.f32.mrf.mxu1  ;;  %4948 = vmatpush.bf16.msrb.mxu0 %v7454_v12  ;;  %v14508_v12 = vld [vmem:[#allocation40_spill] sm:$0xff] }
 0x73a   :  { %v4442_v36 = vadd.f32 %v4441_v22, %v4338_v18 }
 0x73b   :  { %v12387_v29 = vadd.f32 %v4646_v62, %v4543_v42 }
 0x73c   :  { %v5373_v42 = vmax.f32 %v4442_v36, 0.0 }
 0x73e   :  { %v4339_v9 = vpop.f32.mrf.mxu2 }
 0x73f   :  { %v4340_v39 = vadd.f32 %v4339_v9, %v12024_v28  ;;  %v7131_v28 = vld [vmem:[%s13709_s1 + $0x258] sm:$0xf0]  ;;  %v8155_v9 = vld [vmem:[%s13709_s1 + $0x34c] sm:$0xf] }
 0x740   :  { %v4545_v45 = vpop.f32.mrf.mxu0  ;;  %v7134_v36 = vor.u32 %v8123_v49, %v7131_v28 }
 0x741   :  { %v4443_v31 = vpop.f32.mrf.mxu3  ;;  %v4546_v22 = vadd.f32 %v4545_v45, %v12373_v8  ;;  %v4649_v16 = vpop.f32.mrf.mxu1 }
 0x742   :  { %v4444_v18 = vadd.f32 %v4443_v31, %v4340_v39  ;;  %4744 = vmatpush.bf16.msrb.mxu2 %v7134_v36 }
 0x743   :  { %v12397_v10 = vadd.f32 %v4649_v16, %v4546_v22  ;;  %4381 = vmatmul.bf16.gmra.mxu2 %v14505_v46  ;;  %4584 = vmatmul.bf16.gmra.mxu0 %v14506_v33  ;;  %v7259_v33 = vld [vmem:[%s13709_s1 + $0x358] sm:$0xf0] }
 0x744   :  { %v5377_v62 = vmax.f32 %v4444_v18, 0.0  ;;  %4688 = vmatmul.bf16.gmra.mxu1 %v14508_v12  ;;  %v7262_v39 = vor.u32 %v8155_v9, %v7259_v33 }
 0x746   :  { %4485 = vmatmul.bf16.gmra.mxu3 %v14507_v37  ;;  %v12415_v31 = vpack.c.bf16 %v5377_v62, %v5373_v42  ;;  %v4342_v45 = vpop.f32.mrf.mxu2 }
 0x747   :  { %v4343_v18 = vadd.f32 %v4342_v45, %v12027_v43  ;;  %4848 = vmatpush.bf16.msrb.mxu3 %v7262_v39  ;;  %v14510_v39 = vld [vmem:[#allocation143_spill] sm:$0xff] }
 0x748   :  { %14509 = vst [vmem:[#allocation99_spill] sm:$0xff] %v12415_v31  ;;  %v4547_v16 = vpop.f32.mrf.mxu0 }
 0x749   :  { %v4446_v22 = vpop.f32.mrf.mxu3  ;;  %v4548_v49 = vadd.f32 %v4547_v16, %v12373_v8  ;;  %v4651_v28 = vpop.f32.mrf.mxu1  ;;  %v14513_v16 = vld [vmem:[#allocation5_spill] sm:$0xff] }
 0x74a   :  { %v4447_v12 = vadd.f32 %v4446_v22, %v4343_v18  ;;  %v14511_v18 = vld [vmem:[#allocation3_spill] sm:$0xff]  ;;  %v14512_v22 = vld [vmem:[#allocation144_spill] sm:$0xff] }
 0x74b   :  { %v12419_v37 = vadd.f32 %v4651_v28, %v4548_v49 }
 0x74c   :  { %v5381_v33 = vmax.f32 %v4447_v12, 0.0 }
 0x74e   :  { %v4344_v46 = vpop.f32.mrf.mxu2 }
 0x74f   :  { %v4345_v56 = vadd.f32 %v4344_v46, %v12034_v50 }
 0x750   :  { %v4550_v9 = vpop.f32.mrf.mxu0 }
 0x751   :  { %v4448_v0 = vpop.f32.mrf.mxu3  ;;  %v4551_v62 = vadd.f32 %v4550_v9, %v12373_v8  ;;  %v4654_v36 = vpop.f32.mrf.mxu1 }
 0x752   :  { %v4449_v42 = vadd.f32 %v4448_v0, %v4345_v56 }
 0x753   :  { %v12423_v45 = vadd.f32 %v4654_v36, %v4551_v62  ;;  %4386 = vmatmul.bf16.gmra.mxu2 %v14510_v39  ;;  %4589 = vmatmul.bf16.gmra.mxu0 %v14511_v18 }
 0x754   :  { %v5385_v43 = vmax.f32 %v4449_v42, 0.0  ;;  %4693 = vmatmul.bf16.gmra.mxu1 %v14513_v16 }
 0x756   :  { %4490 = vmatmul.bf16.gmra.mxu3 %v14512_v22  ;;  %v12429_v49 = vpack.c.bf16 %v5385_v43, %v5381_v33  ;;  %v4347_v50 = vpop.f32.mrf.mxu2 }
 0x757   :  { %v4348_v56 = vadd.f32 %v4347_v50, %v12037_v59  ;;  %v14515_v50 = vld [vmem:[#allocation146_spill] sm:$0xff] }
 0x758   :  { %14514 = vst [vmem:[#allocation2_spill] sm:$0xff] %v12429_v49  ;;  %v4552_v46 = vpop.f32.mrf.mxu0 }
 0x759   :  { %v4451_v0 = vpop.f32.mrf.mxu3  ;;  %v4553_v12 = vadd.f32 %v4552_v46, %v12373_v8  ;;  %v4656_v9 = vpop.f32.mrf.mxu1  ;;  %v14518_v46 = vld [vmem:[#allocation9_spill] sm:$0xff] }
 0x75a   :  { %v4452_v28 = vadd.f32 %v4451_v0, %v4348_v56  ;;  %v14516_v56 = vld [vmem:[#allocation7_spill] sm:$0xff] }
 0x75b   :  { %v12433_v42 = vadd.f32 %v4656_v9, %v4553_v12  ;;  %v14517_v0 = vld [vmem:[#allocation147_spill] sm:$0xff] }
 0x75c   :  { %v5389_v16 = vmax.f32 %v4452_v28, 0.0 }
 0x75e   :  { %v4349_v62 = vpop.f32.mrf.mxu2 }
 0x75f   :  { %v4350_v36 = vadd.f32 %v4349_v62, %v12056_v26  ;;  %v8199_v26 = vld [vmem:[%s13709_s1 + $0x4ac] sm:$0xf] }
 0x760   :  { %v4555_v31 = vpop.f32.mrf.mxu0 }
 0x761   :  { %v4453_v18 = vpop.f32.mrf.mxu3  ;;  %v4556_v33 = vadd.f32 %v4555_v31, %v12373_v8  ;;  %v4659_v43 = vpop.f32.mrf.mxu1  ;;  %v7435_v31 = vld [vmem:[%s13709_s1 + $0x4b8] sm:$0xf0] }
 0x762   :  { %v4454_v22 = vadd.f32 %v4453_v18, %v4350_v36  ;;  %v7438_v28 = vor.u32 %v8199_v26, %v7435_v31  ;;  %v7243_v26 = vld [vmem:[%s13709_s1 + $0x338] sm:$0xf0] }
 0x763   :  { %v12437_v59 = vadd.f32 %v4659_v43, %v4556_v33  ;;  %4391 = vmatmul.bf16.gmra.mxu2 %v14515_v50  ;;  %4594 = vmatmul.bf16.gmra.mxu0 %v14516_v56  ;;  %v14521_v50 = vld [vmem:[#allocation11_spill] sm:$0xff] }
 0x764   :  { %v5393_v49 = vmax.f32 %v4454_v22, 0.0  ;;  %4698 = vmatmul.bf16.gmra.mxu1 %v14518_v46  ;;  %4949 = vmatpush.bf16.msrb.mxu0 %v7438_v28  ;;  %v8119_v46 = vld [vmem:[%s13709_s1 + $0x22c] sm:$0xf] }
 0x766   :  { %4495 = vmatmul.bf16.gmra.mxu3 %v14517_v0  ;;  %v12449_v22 = vpack.c.bf16 %v5393_v49, %v5389_v16  ;;  %v4352_v12 = vpop.f32.mrf.mxu2  ;;  %v7115_v49 = vld [vmem:[%s13709_s1 + $0x238] sm:$0xf0] }
 0x767   :  { %v4353_v9 = vadd.f32 %v4352_v12, %v12065_v6  ;;  %v7118_v16 = vor.u32 %v8119_v46, %v7115_v49  ;;  %v8151_v6 = vld [vmem:[%s13709_s1 + $0x32c] sm:$0xf]  ;;  %v14520_v0 = vld [vmem:[#allocation149_spill] sm:$0xff] }
 0x768   :  { %14519 = vst [vmem:[#allocation4_spill] sm:$0xff] %v12449_v22  ;;  %v4557_v36 = vpop.f32.mrf.mxu0  ;;  %v7246_v31 = vor.u32 %v8151_v6, %v7243_v26  ;;  %v14522_v6 = vld [vmem:[#allocation150_spill] sm:$0xff] }
 0x769   :  { %v4456_v62 = vpop.f32.mrf.mxu3  ;;  %v4558_v33 = vadd.f32 %v4557_v36, %v12373_v8  ;;  %v4661_v43 = vpop.f32.mrf.mxu1  ;;  %4745 = vmatpush.bf16.msrb.mxu2 %v7118_v16  ;;  %v14523_v16 = vld [vmem:[#allocation13_spill] sm:$0xff] }
 0x76a   :  { %v4457_v18 = vadd.f32 %v4456_v62, %v4353_v9  ;;  %4849 = vmatpush.bf16.msrb.mxu3 %v7246_v31 }
 0x76b   :  { %v12453_v56 = vadd.f32 %v4661_v43, %v4558_v33 }
 0x76c   :  { %v5397_v46 = vmax.f32 %v4457_v18, 0.0 }
 0x76e   :  { %v4354_v28 = vpop.f32.mrf.mxu2 }
 0x76f   :  { %v4355_v12 = vadd.f32 %v4354_v28, %v12072_v32 }
 0x770   :  { %v4560_v62 = vpop.f32.mrf.mxu0 }
 0x771   :  { %v4458_v9 = vpop.f32.mrf.mxu3  ;;  %v4561_v33 = vadd.f32 %v4560_v62, %v12373_v8  ;;  %v4664_v43 = vpop.f32.mrf.mxu1 }
 0x772   :  { %v4459_v36 = vadd.f32 %v4458_v9, %v4355_v12 }
 0x773   :  { %v12469_v22 = vadd.f32 %v4664_v43, %v4561_v33  ;;  %4396 = vmatmul.bf16.gmra.mxu2 %v14520_v0  ;;  %4599 = vmatmul.bf16.gmra.mxu0 %v14521_v50 }
 0x774   :  { %v5401_v49 = vmax.f32 %v4459_v36, 0.0  ;;  %4703 = vmatmul.bf16.gmra.mxu1 %v14523_v16 }
 0x776   :  { %4500 = vmatmul.bf16.gmra.mxu3 %v14522_v6  ;;  %v12475_v32 = vpack.c.bf16 %v5401_v49, %v5397_v46  ;;  %v4357_v26 = vpop.f32.mrf.mxu2 }
 0x777   :  { %v4358_v31 = vadd.f32 %v4357_v26, %v12075_v44  ;;  %v14525_v26 = vld [vmem:[#allocation103_spill] sm:$0xff] }
 0x778   :  { %14524 = vst [vmem:[#allocation6_spill] sm:$0xff] %v12475_v32  ;;  %v4562_v12 = vpop.f32.mrf.mxu0 }
 0x779   :  { %v4461_v28 = vpop.f32.mrf.mxu3  ;;  %v4563_v18 = vadd.f32 %v4562_v12, %v12373_v8  ;;  %v4666_v62 = vpop.f32.mrf.mxu1  ;;  %v14528_v12 = vld [vmem:[#allocation17_spill] sm:$0xff] }
 0x77a   :  { %v4462_v9 = vadd.f32 %v4461_v28, %v4358_v31  ;;  %v14526_v31 = vld [vmem:[#allocation15_spill] sm:$0xff]  ;;  %v14527_v28 = vld [vmem:[#allocation104_spill] sm:$0xff] }
 0x77b   :  { %v12479_v36 = vadd.f32 %v4666_v62, %v4563_v18 }
 0x77c   :  { %v5405_v16 = vmax.f32 %v4462_v9, 0.0 }
 0x77e   :  { %v4359_v33 = vpop.f32.mrf.mxu2 }
 0x77f   :  { %v4360_v50 = vadd.f32 %v4359_v33, %v12082_v4 }
 0x780   :  { %v4565_v6 = vpop.f32.mrf.mxu0 }
 0x781   :  { %v4463_v43 = vpop.f32.mrf.mxu3  ;;  %v4566_v46 = vadd.f32 %v4565_v6, %v12373_v8  ;;  %v4669_v49 = vpop.f32.mrf.mxu1 }
 0x782   :  { %v4464_v0 = vadd.f32 %v4463_v43, %v4360_v50 }
 0x783   :  { %v12483_v44 = vadd.f32 %v4669_v49, %v4566_v46  ;;  %4401 = vmatmul.bf16.gmra.mxu2 %v14525_v26  ;;  %4604 = vmatmul.bf16.gmra.mxu0 %v14526_v31  ;;  %v8195_v46 = vld [vmem:[%s13709_s1 + $0x48c] sm:$0xf] }
 0x784   :  { %v5409_v32 = vmax.f32 %v4464_v0, 0.0  ;;  %4708 = vmatmul.bf16.gmra.mxu1 %v14528_v12  ;;  %v14531_v26 = vld [vmem:[#allocation19_spill] sm:$0xff] }
 0x786   :  { %4505 = vmatmul.bf16.gmra.mxu3 %v14527_v28  ;;  %v12489_v18 = vpack.c.bf16 %v5409_v32, %v5405_v16  ;;  %v4362_v4 = vpop.f32.mrf.mxu2  ;;  %v7419_v32 = vld [vmem:[%s13709_s1 + $0x498] sm:$0xf0] }
 0x787   :  { %v4363_v62 = vadd.f32 %v4362_v4, %v12103_v25  ;;  %v7422_v49 = vor.u32 %v8195_v46, %v7419_v32  ;;  %v8115_v25 = vld [vmem:[%s13709_s1 + $0x20c] sm:$0xf]  ;;  %v7099_v16 = vld [vmem:[%s13709_s1 + $0x218] sm:$0xf0] }
 0x788   :  { %14529 = vst [vmem:[#allocation8_spill] sm:$0xff] %v12489_v18  ;;  %v4567_v6 = vpop.f32.mrf.mxu0  ;;  %v7102_v31 = vor.u32 %v8115_v25, %v7099_v16  ;;  %v14530_v28 = vld [vmem:[#allocation153_spill] sm:$0xff]  ;;  %v14532_v25 = vld [vmem:[#allocation154_spill] sm:$0xff] }
 0x789   :  { %v4466_v33 = vpop.f32.mrf.mxu3  ;;  %v4568_v0 = vadd.f32 %v4567_v6, %v12373_v8  ;;  %v4671_v9 = vpop.f32.mrf.mxu1  ;;  %4950 = vmatpush.bf16.msrb.mxu0 %v7422_v49  ;;  %v8147_v49 = vld [vmem:[%s13709_s1 + $0x30c] sm:$0xf]  ;;  %v14533_v16 = vld [vmem:[#allocation21_spill] sm:$0xff] }
 0x78a   :  { %v4467_v50 = vadd.f32 %v4466_v33, %v4363_v62  ;;  %4746 = vmatpush.bf16.msrb.mxu2 %v7102_v31 }
 0x78b   :  { %v12493_v43 = vadd.f32 %v4671_v9, %v4568_v0 }
 0x78c   :  { %v5413_v46 = vmax.f32 %v4467_v50, 0.0 }
 0x78e   :  { %v4364_v12 = vpop.f32.mrf.mxu2 }
 0x78f   :  { %v4365_v4 = vadd.f32 %v4364_v12, %v12110_v58  ;;  %v7227_v58 = vld [vmem:[%s13709_s1 + $0x318] sm:$0xf0] }
 0x790   :  { %v4570_v33 = vpop.f32.mrf.mxu0  ;;  %v7230_v50 = vor.u32 %v8147_v49, %v7227_v58  ;;  %v7595_v58 = vld [vmem:[%s13709_s1 + $0x5f8] sm:$0xf0] }
 0x791   :  { %v4468_v62 = vpop.f32.mrf.mxu3  ;;  %v4571_v0 = vadd.f32 %v4570_v33, %v12373_v8  ;;  %v4674_v9 = vpop.f32.mrf.mxu1 }
 0x792   :  { %v4469_v6 = vadd.f32 %v4468_v62, %v4365_v4  ;;  %4850 = vmatpush.bf16.msrb.mxu3 %v7230_v50 }
 0x793   :  { %v12509_v18 = vadd.f32 %v4674_v9, %v4571_v0  ;;  %4406 = vmatmul.bf16.gmra.mxu2 %v14530_v28  ;;  %4609 = vmatmul.bf16.gmra.mxu0 %v14531_v26 }
 0x794   :  { %v5417_v32 = vmax.f32 %v4469_v6, 0.0  ;;  %4713 = vmatmul.bf16.gmra.mxu1 %v14533_v16 }
 0x796   :  { %4510 = vmatmul.bf16.gmra.mxu3 %v14532_v25  ;;  %v12521_v31 = vpack.c.bf16 %v5417_v32, %v5413_v46  ;;  %v4367_v12 = vpop.f32.mrf.mxu2 }
 0x797   :  { %v4368_v4 = vadd.f32 %v4367_v12, %v12119_v61  ;;  %v8239_v61 = vld [vmem:[%s13709_s1 + $0x5ec] sm:$0xf] }
 0x798   :  { %14534 = vst [vmem:[#allocation10_spill] sm:$0xff] %v12521_v31  ;;  %v4572_v62 = vpop.f32.mrf.mxu0  ;;  %v8187_v31 = vld [vmem:[%s13709_s1 + $0x44c] sm:$0xf] }
 0x799   :  { %v4471_v26 = vpop.f32.mrf.mxu3  ;;  %v4573_v6 = vadd.f32 %v4572_v62, %v12373_v8  ;;  %v4676_v0 = vpop.f32.mrf.mxu1 }
 0x79a   :  { %v4472_v33 = vadd.f32 %v4471_v26, %v4368_v4 }
 0x79b   :  { %v12525_v9 = vadd.f32 %v4676_v0, %v4573_v6  ;;  %v7579_v6 = vld [vmem:[%s13709_s1 + $0x5d8] sm:$0xf0] }
 0x79c   :  { %v5421_v50 = vmax.f32 %v4472_v33, 0.0  ;;  %v8235_v33 = vld [vmem:[%s13709_s1 + $0x5cc] sm:$0xf] }
 0x79e   :  { %v4369_v28 = vpop.f32.mrf.mxu2 }
 0x79f   :  { %v4370_v25 = vadd.f32 %v4369_v28, %v12138_v19  ;;  %v14535_v19 = vld [vmem:[#allocation23_spill] sm:$0xff]  ;;  %v14536_v28 = vld [vmem:[#allocation157_spill] sm:$0xff] }
 0x7a0   :  { %v4575_v16 = vpop.f32.mrf.mxu0 }
 0x7a1   :  { %v4473_v39 = vpop.f32.mrf.mxu3  ;;  %v4576_v46 = vadd.f32 %v4575_v16, %v12373_v8  ;;  %v4679_v32 = vpop.f32.mrf.mxu1 }
 0x7a2   :  { %v4474_v49 = vadd.f32 %v4473_v39, %v4370_v25  ;;  %v7598_v39 = vor.u32 %v8239_v61, %v7595_v58  ;;  %v14537_v25 = vld [vmem:[#allocation25_spill] sm:$0xff] }
 0x7a3   :  { %v12535_v4 = vadd.f32 %v4679_v32, %v4576_v46  ;;  %4411 = vmatmul.bf16.gmra.mxu2 %v14372_v60  ;;  %4614 = vmatmul.bf16.gmra.mxu0 %v14535_v19 }
 0x7a4   :  { %v5425_v12 = vmax.f32 %v4474_v49, 0.0  ;;  %4718 = vmatmul.bf16.gmra.mxu1 %v14537_v25  ;;  %v7582_v49 = vor.u32 %v8235_v33, %v7579_v6  ;;  %v8227_v25 = vld [vmem:[%s13709_s1 + $0x58c] sm:$0xf] }
 0x7a5   :  { %5051 = vmatpush.bf16.msrb.mxu1 %v7598_v39 }
 0x7a6   :  { %4515 = vmatmul.bf16.gmra.mxu3 %v14536_v28  ;;  %v12541_v26 = vpack.c.bf16 %v5425_v12, %v5421_v50  ;;  %v4372_v62 = vpop.f32.mrf.mxu2  ;;  %v8231_v50 = vld [vmem:[%s13709_s1 + $0x5ac] sm:$0xf]  ;;  %v7563_v12 = vld [vmem:[%s13709_s1 + $0x5b8] sm:$0xf0] }
 0x7a7   :  { %v4373_v0 = vadd.f32 %v4372_v62, %v12159_v54  ;;  %v7566_v39 = vor.u32 %v8231_v50, %v7563_v12  ;;  %v7547_v62 = vld [vmem:[%s13709_s1 + $0x598] sm:$0xf0] }
 0x7a8   :  { %14538 = vst [vmem:[#allocation12_spill] sm:$0xff] %v12541_v26  ;;  %v4577_v46 = vpop.f32.mrf.mxu0  ;;  %v7403_v50 = vld [vmem:[%s13709_s1 + $0x478] sm:$0xf0] }
 0x7a9   :  { %v4476_v16 = vpop.f32.mrf.mxu3  ;;  %v4578_v61 = vadd.f32 %v4577_v46, %v12373_v8  ;;  %v4681_v58 = vpop.f32.mrf.mxu1  ;;  %5052 = vmatpush.bf16.msrb.mxu1 %v7582_v49 }
 0x7aa   :  { %v4477_v32 = vadd.f32 %v4476_v16, %v4373_v0  ;;  %v7550_v0 = vor.u32 %v8227_v25, %v7547_v62  ;;  %v14539_v25 = vld [vmem:[#allocation117_spill] sm:$0xff]  ;;  %v14540_v62 = vld [vmem:[#allocation27_spill] sm:$0xff] }
 0x7ab   :  { %v12557_v19 = vadd.f32 %v4681_v58, %v4578_v61  ;;  %v8191_v58 = vld [vmem:[%s13709_s1 + $0x46c] sm:$0xf] }
 0x7ac   :  { %v5429_v12 = vmax.f32 %v4477_v32, 0.0  ;;  %v8271_v32 = vld [vmem:[%s13709_s1 + $0x6ec] sm:$0xf] }
 0x7ad   :  { %5053 = vmatpush.bf16.msrb.mxu1 %v7566_v39 }
 0x7ae   :  { %v4374_v54 = vpop.f32.mrf.mxu2 }
 0x7af   :  { %v4375_v33 = vadd.f32 %v4374_v54, %v12199_v15  ;;  %v8223_v15 = vld [vmem:[%s13709_s1 + $0x56c] sm:$0xf] }
 0x7b0   :  { %v4580_v16 = vpop.f32.mrf.mxu0 }
 0x7b1   :  { %v4478_v6 = vpop.f32.mrf.mxu3  ;;  %v4581_v46 = vadd.f32 %v4580_v16, %v12373_v8  ;;  %v4684_v61 = vpop.f32.mrf.mxu1  ;;  %5054 = vmatpush.bf16.msrb.mxu1 %v7550_v0  ;;  %v14541_v0 = vld [vmem:[#allocation118_spill] sm:$0xff]  ;;  %v14542_v16 = vld [vmem:[#allocation29_spill] sm:$0xff] }
 0x7b2   :  { %v4479_v49 = vadd.f32 %v4478_v6, %v4375_v33  ;;  %v7406_v33 = vor.u32 %v8191_v58, %v7403_v50  ;;  %v7531_v6 = vld [vmem:[%s13709_s1 + $0x578] sm:$0xf0] }
 0x7b3   :  { %v12576_v54 = vadd.f32 %v4684_v61, %v4581_v46  ;;  %4416 = vmatmul.bf16.gmra.mxu2 %v14539_v25  ;;  %4619 = vmatmul.bf16.gmra.mxu0 %v14540_v62  ;;  %v7534_v46 = vor.u32 %v8223_v15, %v7531_v6  ;;  %v8303_v61 = vld [vmem:[%s13709_s1 + $0x7ec] sm:$0xf]  ;;  %v7851_v50 = vld [vmem:[%s13709_s1 + $0x7f8] sm:$0xf0] }
 0x7b4   :  { %v5433_v39 = vmax.f32 %v4479_v49, 0.0  ;;  %4723 = vmatmul.bf16.gmra.mxu1 %v14542_v16  ;;  %v7723_v49 = vld [vmem:[%s13709_s1 + $0x6f8] sm:$0xf0]  ;;  %4951 = vmatpush.bf16.msrb.mxu0 %v7406_v33  ;;  %v7854_v26 = vor.u32 %v8303_v61, %v7851_v50  ;;  %v8219_v33 = vld [vmem:[%s13709_s1 + $0x54c] sm:$0xf] }
 0x7b5   :  { %v7726_v58 = vor.u32 %v8271_v32, %v7723_v49  ;;  %5055 = vmatpush.bf16.msrb.mxu1 %v7534_v46  ;;  %v7387_v15 = vld [vmem:[%s13709_s1 + $0x458] sm:$0xf0] }
 0x7b6   :  { %4520 = vmatmul.bf16.gmra.mxu3 %v14541_v0  ;;  %v12597_v62 = vpack.c.bf16 %v5433_v39, %v5429_v12  ;;  %v4377_v16 = vpop.f32.mrf.mxu2  ;;  %v7390_v12 = vor.u32 %v8187_v31, %v7387_v15  ;;  %v7515_v39 = vld [vmem:[%s13709_s1 + $0x558] sm:$0xf0] }
 0x7b7   :  { %v4378_v6 = vadd.f32 %v4377_v16, %v12217_v52  ;;  %5155 = vmatpush.bf16.msra.mxu2 %v7726_v58  ;;  %5259 = vmatpush.bf16.msra.mxu3 %v7854_v26  ;;  %v7518_v46 = vor.u32 %v8219_v33, %v7515_v39  ;;  %v8183_v52 = vld [vmem:[%s13709_s1 + $0x42c] sm:$0xf]  ;;  %v7371_v31 = vld [vmem:[%s13709_s1 + $0x438] sm:$0xf0] }
 0x7b8   :  { %14543 = vst [vmem:[#allocation14_spill] sm:$0xff] %v12597_v62  ;;  %v4582_v49 = vpop.f32.mrf.mxu0  ;;  %4952 = vmatpush.bf16.msrb.mxu0 %v7390_v12  ;;  %v8215_v58 = vld [vmem:[%s13709_s1 + $0x52c] sm:$0xf]  ;;  %v7374_v16 = vor.u32 %v8183_v52, %v7371_v31  ;;  %v7499_v15 = vld [vmem:[%s13709_s1 + $0x538] sm:$0xf0] }
 0x7b9   :  { %v4481_v32 = vpop.f32.mrf.mxu3  ;;  %v4583_v50 = vadd.f32 %v4582_v49, %v12373_v8  ;;  %v4686_v62 = vpop.f32.mrf.mxu1  ;;  %5056 = vmatpush.bf16.msrb.mxu1 %v7518_v46  ;;  %v7502_v33 = vor.u32 %v8215_v58, %v7499_v15  ;;  %v7355_v12 = vld [vmem:[%s13709_s1 + $0x418] sm:$0xf0] }
 0x7ba   :  { %v4482_v61 = vadd.f32 %v4481_v32, %v4378_v6  ;;  %v8179_v32 = vld [vmem:[%s13709_s1 + $0x40c] sm:$0xf] }
 0x7bb   :  { %v12622_v26 = vadd.f32 %v4686_v62, %v4583_v50  ;;  %v8211_v62 = vld [vmem:[%s13709_s1 + $0x50c] sm:$0xf]  ;;  %v7358_v46 = vor.u32 %v8179_v32, %v7355_v12  ;;  %v7483_v50 = vld [vmem:[%s13709_s1 + $0x518] sm:$0xf0] }
 0x7bc   :  { %4953 = vmatpush.bf16.msrb.mxu0 %v7374_v16  ;;  %v7486_v31 = vor.u32 %v8211_v62, %v7483_v50 }
 0x7bd   :  { %5057 = vmatpush.bf16.msrb.mxu1 %v7502_v33  ;;  %v5437_v33 = vmax.f32 %v4482_v61, 0.0 }
 0x7be   :  { %v4379_v6 = vpop.f32.mrf.mxu2 }
 0x7bf   :  { %v4380_v39 = vadd.f32 %v4379_v6, %v12224_v14  ;;  %v14544_v14 = vld [vmem:[#allocation160_spill] sm:$0xff]  ;;  %v14545_v6 = vld [vmem:[#allocation33_spill] sm:$0xff] }
 0x7c0   :  { %v4585_v52 = vpop.f32.mrf.mxu0  ;;  %4954 = vmatpush.bf16.msrb.mxu0 %v7358_v46 }
 0x7c1   :  { %v4483_v49 = vpop.f32.mrf.mxu3  ;;  %v4586_v16 = vadd.f32 %v4585_v52, %v12373_v8  ;;  %v4689_v15 = vpop.f32.mrf.mxu1  ;;  %5058 = vmatpush.bf16.msrb.mxu1 %v7486_v31 }
 0x7c2   :  { %v4484_v58 = vadd.f32 %v4483_v49, %v4380_v39 }
 0x7c3   :  { %v12641_v25 = vadd.f32 %v4689_v15, %v4586_v16  ;;  %4421 = vmatmul.bf16.gmra.mxu2 %v10943_v34  ;;  %4624 = vmatmul.bf16.gmra.mxu0 %v14218_v48 }
 0x7c4   :  { %v5441_v0 = vmax.f32 %v4484_v58, 0.0  ;;  %4728 = vmatmul.bf16.gmra.mxu1 %v14545_v6 }
 0x7c6   :  { %4525 = vmatmul.bf16.gmra.mxu3 %v14544_v14  ;;  %v12647_v32 = vpack.c.bf16 %v5441_v0, %v5437_v33  ;;  %v4382_v12 = vpop.f32.mrf.mxu2 }
 0x7c7   :  { %v4383_v62 = vadd.f32 %v4382_v12, %v12227_v41  ;;  %v14547_v12 = vld [vmem:[#allocation35_spill] sm:$0xff] }
 0x7c8   :  { %14546 = vst [vmem:[#allocation16_spill] sm:$0xff] %v12647_v32  ;;  %v4587_v49 = vpop.f32.mrf.mxu0 }
 0x7c9   :  { %v4486_v39 = vpop.f32.mrf.mxu3  ;;  %v4588_v61 = vadd.f32 %v4587_v49, %v12373_v8  ;;  %v4691_v50 = vpop.f32.mrf.mxu1  ;;  %v14550_v49 = vld [vmem:[#allocation41_spill] sm:$0xff] }
 0x7ca   :  { %v4487_v46 = vadd.f32 %v4486_v39, %v4383_v62  ;;  %v14548_v62 = vld [vmem:[#allocation39_spill] sm:$0xff]  ;;  %v14549_v39 = vld [vmem:[#allocation37_spill] sm:$0xff] }
 0x7cb   :  { %v12651_v52 = vadd.f32 %v4691_v50, %v4588_v61 }
 0x7cc   :  { %v5445_v6 = vmax.f32 %v4487_v46, 0.0 }
 0x7ce   :  { %v4384_v31 = vpop.f32.mrf.mxu2 }
 0x7cf   :  { %v4385_v48 = vadd.f32 %v4384_v31, %v12234_v38 }
 0x7d0   :  { %v4590_v16 = vpop.f32.mrf.mxu0 }
 0x7d1   :  { %v4488_v58 = vpop.f32.mrf.mxu3  ;;  %v4591_v0 = vadd.f32 %v4590_v16, %v12373_v8  ;;  %v4694_v33 = vpop.f32.mrf.mxu1 }
 0x7d2   :  { %v4489_v15 = vadd.f32 %v4488_v58, %v4385_v48 }
 0x7d3   :  { %v12655_v41 = vadd.f32 %v4694_v33, %v4591_v0  ;;  %4629 = vmatmul.bf16.gmra.mxu0 %v14547_v12  ;;  %4747 = vmatmul.bf16.vlgmr.msrb.gmra.mxu2 %v14548_v62  ;;  %v8267_v0 = vld [vmem:[%s13709_s1 + $0x6cc] sm:$0xf] }
 0x7d4   :  { %v5449_v32 = vmax.f32 %v4489_v15, 0.0  ;;  %4733 = vmatmul.bf16.gmra.mxu1 %v14549_v39 }
 0x7d6   :  { %4851 = vmatmul.bf16.vlgmr.msrb.gmra.mxu3 %v14550_v49  ;;  %v12661_v61 = vpack.c.bf16 %v5449_v32, %v5445_v6  ;;  %v4387_v38 = vpop.f32.mrf.mxu2  ;;  %v7707_v32 = vld [vmem:[%s13709_s1 + $0x6d8] sm:$0xf0] }
 0x7d7   :  { %v4388_v50 = vadd.f32 %v4387_v38, %v12249_v27  ;;  %v7710_v33 = vor.u32 %v8267_v0, %v7707_v32  ;;  %v8299_v27 = vld [vmem:[%s13709_s1 + $0x7cc] sm:$0xf]  ;;  %v7835_v6 = vld [vmem:[%s13709_s1 + $0x7d8] sm:$0xf0]  ;;  %v14552_v32 = vld [vmem:[#allocation42_spill] sm:$0xff] }
 0x7d8   :  { %14551 = vst [vmem:[#allocation18_spill] sm:$0xff] %v12661_v61  ;;  %v4592_v48 = vpop.f32.mrf.mxu0  ;;  %v7838_v12 = vor.u32 %v8299_v27, %v7835_v6  ;;  %v14553_v61 = vld [vmem:[#allocation43_spill] sm:$0xff]  ;;  %v14554_v27 = vld [vmem:[#allocation44_spill] sm:$0xff] }
 0x7d9   :  { %v4491_v31 = vpop.f32.mrf.mxu3  ;;  %v4593_v46 = vadd.f32 %v4592_v48, %v12373_v8  ;;  %v4696_v16 = vpop.f32.mrf.mxu1  ;;  %5156 = vmatpush.bf16.msra.mxu2 %v7710_v33  ;;  %v14555_v33 = vld [vmem:[#allocation45_spill] sm:$0xff] }
 0x7da   :  { %v4492_v58 = vadd.f32 %v4491_v31, %v4388_v50  ;;  %5260 = vmatpush.bf16.msra.mxu3 %v7838_v12 }
 0x7db   :  { %v12665_v15 = vadd.f32 %v4696_v16, %v4593_v46 }
 0x7dc   :  { %v5453_v46 = vmax.f32 %v4492_v58, 0.0 }
 0x7de   :  { %v4389_v62 = vpop.f32.mrf.mxu2 }
 0x7df   :  { %v4390_v39 = vadd.f32 %v4389_v62, %v12256_v30 }
 0x7e0   :  { %v4595_v38 = vpop.f32.mrf.mxu0 }
 0x7e1   :  { %v4493_v49 = vpop.f32.mrf.mxu3  ;;  %v4596_v31 = vadd.f32 %v4595_v38, %v12373_v8  ;;  %v4699_v48 = vpop.f32.mrf.mxu1 }
 0x7e2   :  { %v4494_v50 = vadd.f32 %v4493_v49, %v4390_v39 }
 0x7e3   :  { %v12681_v0 = vadd.f32 %v4699_v48, %v4596_v31  ;;  %4752 = vmatmul.bf16.gmra.mxu2 %v14552_v32  ;;  %4955 = vmatmul.bf16.vlgmr.msrb.gmra.mxu0 %v14553_v61 }
 0x7e4   :  { %v5457_v16 = vmax.f32 %v4494_v50, 0.0  ;;  %5059 = vmatmul.bf16.vlgmr.msrb.gmra.mxu1 %v14555_v33 }
 0x7e6   :  { %4856 = vmatmul.bf16.gmra.mxu3 %v14554_v27  ;;  %v12687_v30 = vpack.c.bf16 %v5457_v16, %v5453_v46  ;;  %v4392_v6 = vpop.f32.mrf.mxu2 }
 0x7e7   :  { %v4393_v12 = vadd.f32 %v4392_v6, %v12259_v24  ;;  %v14557_v6 = vld [vmem:[#allocation46_spill] sm:$0xff] }
 0x7e8   :  { %14556 = vst [vmem:[#allocation20_spill] sm:$0xff] %v12687_v30  ;;  %v4597_v39 = vpop.f32.mrf.mxu0 }
 0x7e9   :  { %v4496_v62 = vpop.f32.mrf.mxu3  ;;  %v4598_v58 = vadd.f32 %v4597_v39, %v12373_v8  ;;  %v4701_v38 = vpop.f32.mrf.mxu1  ;;  %v14560_v39 = vld [vmem:[#allocation49_spill] sm:$0xff] }
 0x7ea   :  { %v4497_v49 = vadd.f32 %v4496_v62, %v4393_v12  ;;  %v14558_v12 = vld [vmem:[#allocation47_spill] sm:$0xff]  ;;  %v14559_v62 = vld [vmem:[#allocation48_spill] sm:$0xff] }
 0x7eb   :  { %v12691_v50 = vadd.f32 %v4701_v38, %v4598_v58 }
 0x7ec   :  { %v5461_v33 = vmax.f32 %v4497_v49, 0.0 }
 0x7ee   :  { %v4394_v31 = vpop.f32.mrf.mxu2 }
 0x7ef   :  { %v4395_v61 = vadd.f32 %v4394_v31, %v12266_v5 }
 0x7f0   :  { %v4600_v32 = vpop.f32.mrf.mxu0 }
 0x7f1   :  { %v4498_v48 = vpop.f32.mrf.mxu3  ;;  %v4601_v46 = vadd.f32 %v4600_v32, %v12373_v8  ;;  %v4704_v16 = vpop.f32.mrf.mxu1 }
 0x7f2   :  { %v4499_v27 = vadd.f32 %v4498_v48, %v4395_v61 }
 0x7f3   :  { %v12695_v24 = vadd.f32 %v4704_v16, %v4601_v46  ;;  %4757 = vmatmul.bf16.gmra.mxu2 %v14557_v6  ;;  %4960 = vmatmul.bf16.gmra.mxu0 %v14558_v12 }
 0x7f4   :  { %v5465_v30 = vmax.f32 %v4499_v27, 0.0  ;;  %5064 = vmatmul.bf16.gmra.mxu1 %v14560_v39 }
 0x7f6   :  { %4861 = vmatmul.bf16.gmra.mxu3 %v14559_v62  ;;  %v12701_v58 = vpack.c.bf16 %v5465_v30, %v5461_v33  ;;  %v4397_v5 = vpop.f32.mrf.mxu2 }
 0x7f7   :  { %v4398_v38 = vadd.f32 %v4397_v5, %v12275_v21  ;;  %v14562_v5 = vld [vmem:[#allocation50_spill] sm:$0xff] }
 0x7f8   :  { %14561 = vst [vmem:[#allocation22_spill] sm:$0xff] %v12701_v58  ;;  %v4602_v61 = vpop.f32.mrf.mxu0 }
 0x7f9   :  { %v4501_v31 = vpop.f32.mrf.mxu3  ;;  %v4603_v49 = vadd.f32 %v4602_v61, %v12373_v8  ;;  %v4706_v32 = vpop.f32.mrf.mxu1  ;;  %v14564_v61 = vld [vmem:[#allocation52_spill] sm:$0xff] }
 0x7fa   :  { %v4502_v48 = vadd.f32 %v4501_v31, %v4398_v38  ;;  %v14563_v38 = vld [vmem:[#allocation51_spill] sm:$0xff] }
 0x7fb   :  { %v12705_v27 = vadd.f32 %v4706_v32, %v4603_v49  ;;  %v8263_v31 = vld [vmem:[%s13709_s1 + $0x6ac] sm:$0xf]  ;;  %v14565_v49 = vld [vmem:[#allocation53_spill] sm:$0xff] }
 0x7fc   :  { %v5469_v39 = vmax.f32 %v4502_v48, 0.0  ;;  %v8295_v32 = vld [vmem:[%s13709_s1 + $0x7ac] sm:$0xf] }
 0x7fe   :  { %v4399_v46 = vpop.f32.mrf.mxu2 }
 0x7ff   :  { %v4400_v16 = vadd.f32 %v4399_v46, %v12288_v11  ;;  %v7691_v11 = vld [vmem:[%s13709_s1 + $0x6b8] sm:$0xf0] }
 0x800   :  { %v4605_v12 = vpop.f32.mrf.mxu0  ;;  %v7694_v48 = vor.u32 %v8263_v31, %v7691_v11  ;;  %v7819_v46 = vld [vmem:[%s13709_s1 + $0x7b8] sm:$0xf0] }
 0x801   :  { %v4503_v6 = vpop.f32.mrf.mxu3  ;;  %v4606_v30 = vadd.f32 %v4605_v12, %v12373_v8  ;;  %v4709_v33 = vpop.f32.mrf.mxu1 }
 0x802   :  { %v4504_v62 = vadd.f32 %v4503_v6, %v4400_v16  ;;  %v7822_v16 = vor.u32 %v8295_v32, %v7819_v46  ;;  %5157 = vmatpush.bf16.msra.mxu2 %v7694_v48 }
 0x803   :  { %v12709_v21 = vadd.f32 %v4709_v33, %v4606_v30  ;;  %4762 = vmatmul.bf16.gmra.mxu2 %v14562_v5  ;;  %4965 = vmatmul.bf16.gmra.mxu0 %v14563_v38 }
 0x804   :  { %v5473_v58 = vmax.f32 %v4504_v62, 0.0  ;;  %5069 = vmatmul.bf16.gmra.mxu1 %v14565_v49  ;;  %5261 = vmatpush.bf16.msra.mxu3 %v7822_v16  ;;  %v14567_v16 = vld [vmem:[#allocation54_spill] sm:$0xff] }
 0x806   :  { %4866 = vmatmul.bf16.gmra.mxu3 %v14564_v61  ;;  %v12727_v6 = vpack.c.bf16 %v5473_v58, %v5469_v39  ;;  %v4402_v12 = vpop.f32.mrf.mxu2 }
 0x807   :  { %v4403_v62 = vadd.f32 %v4402_v12, %v12291_v2 }
 0x808   :  { %14566 = vst [vmem:[#allocation24_spill] sm:$0xff] %v12727_v6  ;;  %v4607_v33 = vpop.f32.mrf.mxu0 }
 0x809   :  { %v4506_v30 = vpop.f32.mrf.mxu3  ;;  %v4608_v38 = vadd.f32 %v4607_v33, %v12373_v8  ;;  %v4711_v31 = vpop.f32.mrf.mxu1  ;;  %v14570_v33 = vld [vmem:[#allocation57_spill] sm:$0xff] }
 0x80a   :  { %v4507_v5 = vadd.f32 %v4506_v30, %v4403_v62  ;;  %v14568_v62 = vld [vmem:[#allocation55_spill] sm:$0xff]  ;;  %v14569_v30 = vld [vmem:[#allocation56_spill] sm:$0xff] }
 0x80b   :  { %v12731_v11 = vadd.f32 %v4711_v31, %v4608_v38 }
 0x80c   :  { %v5477_v46 = vmax.f32 %v4507_v5, 0.0 }
 0x80e   :  { %v4404_v61 = vpop.f32.mrf.mxu2 }
 0x80f   :  { %v4405_v49 = vadd.f32 %v4404_v61, %v12298_v13 }
 0x810   :  { %v4610_v32 = vpop.f32.mrf.mxu0 }
 0x811   :  { %v4508_v14 = vpop.f32.mrf.mxu3  ;;  %v4611_v39 = vadd.f32 %v4610_v32, %v12373_v8  ;;  %v4714_v48 = vpop.f32.mrf.mxu1 }
 0x812   :  { %v4509_v58 = vadd.f32 %v4508_v14, %v4405_v49 }
 0x813   :  { %v12735_v12 = vadd.f32 %v4714_v48, %v4611_v39  ;;  %4767 = vmatmul.bf16.gmra.mxu2 %v14567_v16  ;;  %4970 = vmatmul.bf16.gmra.mxu0 %v14568_v62 }
 0x814   :  { %v5481_v2 = vmax.f32 %v4509_v58, 0.0  ;;  %5074 = vmatmul.bf16.gmra.mxu1 %v14570_v33 }
 0x816   :  { %4871 = vmatmul.bf16.gmra.mxu3 %v14569_v30  ;;  %v12741_v38 = vpack.c.bf16 %v5481_v2, %v5477_v46  ;;  %v4407_v13 = vpop.f32.mrf.mxu2 }
 0x817   :  { %v4408_v14 = vadd.f32 %v4407_v13, %v12301_v20  ;;  %v14572_v13 = vld [vmem:[#allocation58_spill] sm:$0xff] }
 0x818   :  { %14571 = vst [vmem:[#allocation26_spill] sm:$0xff] %v12741_v38  ;;  %v4612_v61 = vpop.f32.mrf.mxu0 }
 0x819   :  { %v4511_v31 = vpop.f32.mrf.mxu3  ;;  %v4613_v5 = vadd.f32 %v4612_v61, %v12373_v8  ;;  %v4716_v32 = vpop.f32.mrf.mxu1  ;;  %v14575_v61 = vld [vmem:[#allocation61_spill] sm:$0xff] }
 0x81a   :  { %v4512_v49 = vadd.f32 %v4511_v31, %v4408_v14  ;;  %v14573_v14 = vld [vmem:[#allocation59_spill] sm:$0xff]  ;;  %v14574_v31 = vld [vmem:[#allocation60_spill] sm:$0xff] }
 0x81b   :  { %v12745_v58 = vadd.f32 %v4716_v32, %v4613_v5  ;;  %v7675_v5 = vld [vmem:[%s13709_s1 + $0x698] sm:$0xf0] }
 0x81c   :  { %v5485_v33 = vmax.f32 %v4512_v49, 0.0 }
 0x81e   :  { %v4409_v39 = vpop.f32.mrf.mxu2 }
 0x81f   :  { %v4410_v48 = vadd.f32 %v4409_v39, %v12320_v63  ;;  %v8259_v63 = vld [vmem:[%s13709_s1 + $0x68c] sm:$0xf] }
 0x820   :  { %v4615_v62 = vpop.f32.mrf.mxu0  ;;  %v7678_v49 = vor.u32 %v8259_v63, %v7675_v5 }
 0x821   :  { %v4513_v16 = vpop.f32.mrf.mxu3  ;;  %v4616_v46 = vadd.f32 %v4615_v62, %v12373_v8  ;;  %v4719_v2 = vpop.f32.mrf.mxu1 }
 0x822   :  { %v4514_v30 = vadd.f32 %v4513_v16, %v4410_v48  ;;  %5158 = vmatpush.bf16.msra.mxu2 %v7678_v49 }
 0x823   :  { %v12749_v20 = vadd.f32 %v4719_v2, %v4616_v46  ;;  %4772 = vmatmul.bf16.gmra.mxu2 %v14572_v13  ;;  %4975 = vmatmul.bf16.gmra.mxu0 %v14573_v14  ;;  %v8291_v14 = vld [vmem:[%s13709_s1 + $0x78c] sm:$0xf] }
 0x824   :  { %v5489_v38 = vmax.f32 %v4514_v30, 0.0  ;;  %5079 = vmatmul.bf16.gmra.mxu1 %v14575_v61 }
 0x826   :  { %4876 = vmatmul.bf16.gmra.mxu3 %v14574_v31  ;;  %v12761_v32 = vpack.c.bf16 %v5489_v38, %v5485_v33  ;;  %v4412_v39 = vpop.f32.mrf.mxu2  ;;  %v7803_v38 = vld [vmem:[%s13709_s1 + $0x798] sm:$0xf0] }
 0x827   :  { %v4413_v48 = vadd.f32 %v4412_v39, %v12323_v55  ;;  %v7806_v33 = vor.u32 %v8291_v14, %v7803_v38  ;;  %v14580_v14 = vld [vmem:[#allocation65_spill] sm:$0xff] }
 0x828   :  { %14576 = vst [vmem:[#allocation28_spill] sm:$0xff] %v12761_v32  ;;  %v4617_v62 = vpop.f32.mrf.mxu0  ;;  %v14579_v32 = vld [vmem:[#allocation64_spill] sm:$0xff] }
 0x829   :  { %v4516_v16 = vpop.f32.mrf.mxu3  ;;  %v4618_v46 = vadd.f32 %v4617_v62, %v12373_v8  ;;  %v4721_v2 = vpop.f32.mrf.mxu1  ;;  %5262 = vmatpush.bf16.msra.mxu3 %v7806_v33 }
 0x82a   :  { %v4517_v30 = vadd.f32 %v4516_v16, %v4413_v48 }
 0x82b   :  { %v12765_v13 = vadd.f32 %v4721_v2, %v4618_v46  ;;  %v14577_v46 = vld [vmem:[#allocation62_spill] sm:$0xff]  ;;  %v14578_v2 = vld [vmem:[#allocation63_spill] sm:$0xff] }
 0x82c   :  { %v5493_v48 = vmax.f32 %v4517_v30, 0.0 }
 0x82e   :  { %v4414_v31 = vpop.f32.mrf.mxu2 }
 0x82f   :  { %v4415_v55 = vadd.f32 %v4414_v31, %v12330_v17 }
 0x830   :  { %v4620_v63 = vpop.f32.mrf.mxu0 }
 0x831   :  { %v4518_v61 = vpop.f32.mrf.mxu3  ;;  %v4621_v49 = vadd.f32 %v4620_v63, %v12373_v8  ;;  %v4724_v39 = vpop.f32.mrf.mxu1 }
 0x832   :  { %v4519_v5 = vadd.f32 %v4518_v61, %v4415_v55 }
 0x833   :  { %v12775_v62 = vadd.f32 %v4724_v39, %v4621_v49  ;;  %4777 = vmatmul.bf16.gmra.mxu2 %v14577_v46  ;;  %4980 = vmatmul.bf16.gmra.mxu0 %v14578_v2 }
 0x834   :  { %v5497_v16 = vmax.f32 %v4519_v5, 0.0  ;;  %5084 = vmatmul.bf16.gmra.mxu1 %v14580_v14 }
 0x836   :  { %4881 = vmatmul.bf16.gmra.mxu3 %v14579_v32  ;;  %v12781_v38 = vpack.c.bf16 %v5497_v16, %v5493_v48  ;;  %v4417_v17 = vpop.f32.mrf.mxu2 }
 0x837   :  { %v4418_v33 = vadd.f32 %v4417_v17, %v12333_v23  ;;  %v14582_v17 = vld [vmem:[#allocation68_spill] sm:$0xff] }
 0x838   :  { %14581 = vst [vmem:[#allocation30_spill] sm:$0xff] %v12781_v38  ;;  %v4622_v55 = vpop.f32.mrf.mxu0 }
 0x839   :  { %v4521_v31 = vpop.f32.mrf.mxu3  ;;  %v4623_v30 = vadd.f32 %v4622_v55, %v12373_v8  ;;  %v4726_v63 = vpop.f32.mrf.mxu1  ;;  %v14585_v55 = vld [vmem:[#allocation71_spill] sm:$0xff] }
 0x83a   :  { %v4522_v61 = vadd.f32 %v4521_v31, %v4418_v33  ;;  %v14583_v33 = vld [vmem:[#allocation69_spill] sm:$0xff]  ;;  %v14584_v31 = vld [vmem:[#allocation70_spill] sm:$0xff] }
 0x83b   :  { %v12785_v5 = vadd.f32 %v4726_v63, %v4623_v30 }
 0x83c   :  { %v5501_v14 = vmax.f32 %v4522_v61, 0.0 }
 0x83e   :  { %v4419_v49 = vpop.f32.mrf.mxu2 }
 0x83f   :  { %v4420_v39 = vadd.f32 %v4419_v49, %v12340_v40 }
 0x840   :  { %v4625_v32 = vpop.f32.mrf.mxu0 }
 0x841   :  { %v4523_v46 = vpop.f32.mrf.mxu3  ;;  %v4626_v48 = vadd.f32 %v4625_v32, %v12373_v8  ;;  %v4729_v16 = vpop.f32.mrf.mxu1 }
 0x842   :  { %v4524_v2 = vadd.f32 %v4523_v46, %v4420_v39 }
 0x843   :  { %v12789_v23 = vadd.f32 %v4729_v16, %v4626_v48  ;;  %4782 = vmatmul.bf16.gmra.mxu2 %v14582_v17  ;;  %4985 = vmatmul.bf16.gmra.mxu0 %v14583_v33  ;;  %v7787_v17 = vld [vmem:[%s13709_s1 + $0x778] sm:$0xf0] }
 0x844   :  { %v5505_v38 = vmax.f32 %v4524_v2, 0.0  ;;  %5089 = vmatmul.bf16.gmra.mxu1 %v14585_v55  ;;  %v8313_v2 = vld [vmem:[%s13712_s3 + $0x38] sm:$0xff] }
 0x845   :  { %5851 = vmatpush.bf16.msra.mxu0 %v8313_v2 }
 0x846   :  { %4886 = vmatmul.bf16.gmra.mxu3 %v14584_v31  ;;  %v12795_v30 = vpack.c.bf16 %v5505_v38, %v5501_v14  ;;  %v4422_v40 = vpop.f32.mrf.mxu2  ;;  %v8255_v38 = vld [vmem:[%s13709_s1 + $0x66c] sm:$0xf] }
 0x847   :  { %v4423_v63 = vadd.f32 %v4422_v40, %v12361_v7  ;;  %v7659_v7 = vld [vmem:[%s13709_s1 + $0x678] sm:$0xf0]  ;;  %v8287_v14 = vld [vmem:[%s13709_s1 + $0x76c] sm:$0xf] }
 0x848   :  { %14586 = vst [vmem:[#allocation32_spill] sm:$0xff] %v12795_v30  ;;  %v4627_v39 = vpop.f32.mrf.mxu0  ;;  %v7662_v16 = vor.u32 %v8255_v38, %v7659_v7  ;;  %v7790_v33 = vor.u32 %v8287_v14, %v7787_v17  ;;  %v14587_v7 = vld [vmem:[#allocation74_spill] sm:$0xff]  ;;  %v14588_v30 = vld [vmem:[#allocation75_spill] sm:$0xff]  ;;  %v14589_v14 = vld [vmem:[#allocation76_spill] sm:$0xff] }
 0x849   :  { %v4526_v49 = vpop.f32.mrf.mxu3  ;;  %v4628_v61 = vadd.f32 %v4627_v39, %v12373_v8  ;;  %v4731_v32 = vpop.f32.mrf.mxu1 }
 0x84a   :  { %v4527_v46 = vadd.f32 %v4526_v49, %v4423_v63  ;;  %5159 = vmatpush.bf16.msra.mxu2 %v7662_v16  ;;  %5263 = vmatpush.bf16.msra.mxu3 %v7790_v33  ;;  %v14590_v16 = vld [vmem:[#allocation77_spill] sm:$0xff] }
 0x84b   :  { %v12802_v48 = vadd.f32 %v4731_v32, %v4628_v61 }
 0x84c   :  { %v5509_v32 = vmax.f32 %v4527_v46, 0.0 }
 0x84e   :  { %v4424_v31 = vpop.f32.mrf.mxu2 }
 0x84f   :  { %v4425_v55 = vadd.f32 %v4424_v31, %v12368_v53 }
 0x850   :  { %v4630_v63 = vpop.f32.mrf.mxu0 }
 0x851   :  { %v4528_v40 = vpop.f32.mrf.mxu3  ;;  %v4631_v39 = vadd.f32 %v4630_v63, %v12373_v8  ;;  %v4734_v61 = vpop.f32.mrf.mxu1 }
 0x852   :  { %v4529_v49 = vadd.f32 %v4528_v40, %v4425_v55 }
 0x853   :  { %v12818_v38 = vadd.f32 %v4734_v61, %v4631_v39  ;;  %4787 = vmatmul.bf16.gmra.mxu2 %v14587_v7  ;;  %4990 = vmatmul.bf16.gmra.mxu0 %v14588_v30 }
 0x854   :  { %v5513_v2 = vmax.f32 %v4529_v49, 0.0  ;;  %5094 = vmatmul.bf16.gmra.mxu1 %v14590_v16 }
 0x856   :  { %4891 = vmatmul.bf16.gmra.mxu3 %v14589_v14  ;;  %v12824_v53 = vpack.c.bf16 %v5513_v2, %v5509_v32  ;;  %v4748_v17 = vpop.f32.mrf.mxu2 }
 0x857   :  { %v4749_v33 = vadd.f32 %v4748_v17, %v12377_v35  ;;  %v14593_v35 = vld [vmem:[#allocation79_spill] sm:$0xff]  ;;  %v14594_v17 = vld [vmem:[#allocation80_spill] sm:$0xff] }
 0x858   :  { %14591 = vst [vmem:[#allocation34_spill] sm:$0xff] %v12824_v53  ;;  %v4632_v55 = vpop.f32.mrf.mxu0  ;;  %v14592_v53 = vld [vmem:[#allocation78_spill] sm:$0xff] }
 0x859   :  { %v4852_v31 = vpop.f32.mrf.mxu3  ;;  %v4633_v46 = vadd.f32 %v4632_v55, %v12373_v8  ;;  %v4736_v63 = vpop.f32.mrf.mxu1  ;;  %v14595_v8 = vld [vmem:[#allocation81_spill] sm:$0xff] }
 0x85a   :  { %v4853_v40 = vadd.f32 %v4852_v31, %v4749_v33 }
 0x85b   :  { %v12828_v49 = vadd.f32 %v4736_v63, %v4633_v46 }
 0x85e   :  { %v4750_v39 = vpop.f32.mrf.mxu2 }
 0x85f   :  { %v4751_v30 = vadd.f32 %v4750_v39, %v12387_v29 }
 0x860   :  { %v4956_v7 = vpop.f32.mrf.mxu0 }
 0x861   :  { %v4854_v61 = vpop.f32.mrf.mxu3  ;;  %v4957_v16 = vadd.f32 %v4956_v7, %v4853_v40  ;;  %v5060_v32 = vpop.f32.mrf.mxu1 }
 0x862   :  { %v4855_v14 = vadd.f32 %v4854_v61, %v4751_v30 }
 0x863   :  { %v12831_v2 = vadd.f32 %v5060_v32, %v4957_v16  ;;  %4792 = vmatmul.bf16.gmra.mxu2 %v14592_v53  ;;  %4995 = vmatmul.bf16.gmra.mxu0 %v14593_v35  ;;  %v8312_v53 = vld [vmem:[%s13712_s3 + $0x30] sm:$0xff] }
 0x864   :  { %5099 = vmatmul.bf16.gmra.mxu1 %v14595_v8  ;;  %5852 = vmatpush.bf16.msra.mxu0 %v8312_v53  ;;  %v14596_v8 = vld [vmem:[#allocation83_spill] sm:$0xff] }
 0x866   :  { %4896 = vmatmul.bf16.gmra.mxu3 %v14594_v17  ;;  %v4753_v33 = vpop.f32.mrf.mxu2 }
 0x867   :  { %v4754_v31 = vadd.f32 %v4753_v33, %v12397_v10  ;;  %v8251_v33 = vld [vmem:[%s13709_s1 + $0x64c] sm:$0xf] }
 0x868   :  { %v4958_v29 = vpop.f32.mrf.mxu0 }
 0x869   :  { %v4857_v55 = vpop.f32.mrf.mxu3  ;;  %v4959_v63 = vadd.f32 %v4958_v29, %v4855_v14  ;;  %v5062_v39 = vpop.f32.mrf.mxu1  ;;  %v14597_v14 = vld [vmem:[#allocation84_spill] sm:$0xff] }
 0x86a   :  { %v4858_v46 = vadd.f32 %v4857_v55, %v4754_v31  ;;  %v7643_v31 = vld [vmem:[%s13709_s1 + $0x658] sm:$0xf0]  ;;  %v14599_v55 = vld [vmem:[#allocation86_spill] sm:$0xff] }
 0x86b   :  { %v12838_v40 = vadd.f32 %v5062_v39, %v4959_v63  ;;  %v7646_v29 = vor.u32 %v8251_v33, %v7643_v31  ;;  %v7771_v63 = vld [vmem:[%s13709_s1 + $0x758] sm:$0xf0] }
 0x86d   :  { %5160 = vmatpush.bf16.msra.mxu2 %v7646_v29 }
 0x86e   :  { %v4755_v30 = vpop.f32.mrf.mxu2 }
 0x86f   :  { %v4756_v61 = vadd.f32 %v4755_v30, %v12419_v37  ;;  %v14598_v37 = vld [vmem:[#allocation85_spill] sm:$0xff] }
 0x870   :  { %v4961_v16 = vpop.f32.mrf.mxu0 }
 0x871   :  { %v4859_v7 = vpop.f32.mrf.mxu3  ;;  %v4962_v35 = vadd.f32 %v4961_v16, %v4858_v46  ;;  %v5065_v10 = vpop.f32.mrf.mxu1  ;;  %v8283_v46 = vld [vmem:[%s13709_s1 + $0x74c] sm:$0xf] }
 0x872   :  { %v4860_v32 = vadd.f32 %v4859_v7, %v4756_v61  ;;  %v7774_v39 = vor.u32 %v8283_v46, %v7771_v63 }
 0x873   :  { %v12844_v17 = vadd.f32 %v5065_v10, %v4962_v35  ;;  %4797 = vmatmul.bf16.gmra.mxu2 %v14596_v8  ;;  %5000 = vmatmul.bf16.gmra.mxu0 %v14597_v14 }
 0x874   :  { %5104 = vmatmul.bf16.gmra.mxu1 %v14599_v55  ;;  %5264 = vmatpush.bf16.msra.mxu3 %v7774_v39 }
 0x876   :  { %4901 = vmatmul.bf16.gmra.mxu3 %v14598_v37  ;;  %v4758_v53 = vpop.f32.mrf.mxu2 }
 0x877   :  { %v4759_v30 = vadd.f32 %v4758_v53, %v12423_v45  ;;  %v14600_v45 = vld [vmem:[#allocation89_spill] sm:$0xff] }
 0x878   :  { %v4963_v7 = vpop.f32.mrf.mxu0 }
 0x879   :  { %v4862_v61 = vpop.f32.mrf.mxu3  ;;  %v4964_v35 = vadd.f32 %v4963_v7, %v4860_v32  ;;  %v5067_v10 = vpop.f32.mrf.mxu1  ;;  %v14601_v32 = vld [vmem:[#allocation90_spill] sm:$0xff] }
 0x87a   :  { %v4863_v16 = vadd.f32 %v4862_v61, %v4759_v30 }
 0x87b   :  { %v12863_v8 = vadd.f32 %v5067_v10, %v4964_v35 }
 0x87e   :  { %v4760_v14 = vpop.f32.mrf.mxu2 }
 0x87f   :  { %v4761_v33 = vadd.f32 %v4760_v14, %v12433_v42 }
 0x880   :  { %v4966_v37 = vpop.f32.mrf.mxu0 }
 0x881   :  { %v4864_v31 = vpop.f32.mrf.mxu3  ;;  %v4967_v6 = vadd.f32 %v4966_v37, %v4863_v16  ;;  %v5070_v46 = vpop.f32.mrf.mxu1  ;;  %v14602_v37 = vld [vmem:[#allocation91_spill] sm:$0xff] }
 0x882   :  { %v4865_v55 = vadd.f32 %v4864_v31, %v4761_v33 }
 0x883   :  { %v12866_v63 = vadd.f32 %v5070_v46, %v4967_v6  ;;  %4802 = vmatmul.bf16.gmra.mxu2 %v14274_v47  ;;  %5005 = vmatmul.bf16.gmra.mxu0 %v14437_v3  ;;  %v14604_v46 = vld [vmem:[#allocation93_spill] sm:$0xff] }
 0x884   :  { %5109 = vmatmul.bf16.gmra.mxu1 %v14601_v32 }
 0x886   :  { %4906 = vmatmul.bf16.gmra.mxu3 %v14600_v45  ;;  %v4763_v29 = vpop.f32.mrf.mxu2  ;;  %v8311_v45 = vld [vmem:[%s13712_s3 + $0x28] sm:$0xff] }
 0x887   :  { %v4764_v39 = vadd.f32 %v4763_v29, %v12437_v59  ;;  %v14603_v59 = vld [vmem:[#allocation92_spill] sm:$0xff]  ;;  %5853 = vmatpush.bf16.msra.mxu0 %v8311_v45 }
 0x888   :  { %v4968_v42 = vpop.f32.mrf.mxu0 }
 0x889   :  { %v4867_v53 = vpop.f32.mrf.mxu3  ;;  %v4969_v61 = vadd.f32 %v4968_v42, %v4865_v55  ;;  %v5072_v7 = vpop.f32.mrf.mxu1  ;;  %v14605_v55 = vld [vmem:[#allocation94_spill] sm:$0xff] }
 0x88a   :  { %v4868_v30 = vadd.f32 %v4867_v53, %v4764_v39 }
 0x88b   :  { %v12873_v16 = vadd.f32 %v5072_v7, %v4969_v61  ;;  %v8247_v61 = vld [vmem:[%s13709_s1 + $0x62c] sm:$0xf]  ;;  %v7627_v7 = vld [vmem:[%s13709_s1 + $0x638] sm:$0xf0] }
 0x88e   :  { %v4765_v6 = vpop.f32.mrf.mxu2 }
 0x88f   :  { %v4766_v35 = vadd.f32 %v4765_v6, %v12453_v56  ;;  %v7630_v6 = vor.u32 %v8247_v61, %v7627_v7 }
 0x890   :  { %v4971_v10 = vpop.f32.mrf.mxu0 }
 0x891   :  { %v4869_v47 = vpop.f32.mrf.mxu3  ;;  %v4972_v14 = vadd.f32 %v4971_v10, %v4868_v30  ;;  %v5075_v33 = vpop.f32.mrf.mxu1  ;;  %5161 = vmatpush.bf16.msra.mxu2 %v7630_v6 }
 0x892   :  { %v4870_v3 = vadd.f32 %v4869_v47, %v4766_v35  ;;  %v7755_v47 = vld [vmem:[%s13709_s1 + $0x738] sm:$0xf0] }
 0x893   :  { %v12876_v31 = vadd.f32 %v5075_v33, %v4972_v14  ;;  %4807 = vmatmul.bf16.gmra.mxu2 %v14602_v37  ;;  %5010 = vmatmul.bf16.gmra.mxu0 %v14603_v59 }
 0x894   :  { %5114 = vmatmul.bf16.gmra.mxu1 %v14605_v55 }
 0x896   :  { %4911 = vmatmul.bf16.gmra.mxu3 %v14604_v46  ;;  %v4768_v56 = vpop.f32.mrf.mxu2 }
 0x897   :  { %v4769_v32 = vadd.f32 %v4768_v56, %v12469_v22  ;;  %v8279_v22 = vld [vmem:[%s13709_s1 + $0x72c] sm:$0xf] }
 0x898   :  { %v4973_v39 = vpop.f32.mrf.mxu0  ;;  %v7758_v10 = vor.u32 %v8279_v22, %v7755_v47  ;;  %v14606_v56 = vld [vmem:[#allocation95_spill] sm:$0xff] }
 0x899   :  { %v4872_v29 = vpop.f32.mrf.mxu3  ;;  %v4974_v42 = vadd.f32 %v4973_v39, %v4870_v3  ;;  %v5077_v30 = vpop.f32.mrf.mxu1  ;;  %v14609_v39 = vld [vmem:[#allocation98_spill] sm:$0xff] }
 0x89a   :  { %v4873_v53 = vadd.f32 %v4872_v29, %v4769_v32  ;;  %5265 = vmatpush.bf16.msra.mxu3 %v7758_v10  ;;  %v14607_v32 = vld [vmem:[#allocation96_spill] sm:$0xff]  ;;  %v14608_v29 = vld [vmem:[#allocation97_spill] sm:$0xff] }
 0x89b   :  { %v12892_v35 = vadd.f32 %v5077_v30, %v4974_v42 }
 0x89e   :  { %v4770_v3 = vpop.f32.mrf.mxu2 }
 0x89f   :  { %v4771_v14 = vadd.f32 %v4770_v3, %v12479_v36 }
 0x8a0   :  { %v4976_v37 = vpop.f32.mrf.mxu0 }
 0x8a1   :  { %v4874_v33 = vpop.f32.mrf.mxu3  ;;  %v4977_v46 = vadd.f32 %v4976_v37, %v4873_v53  ;;  %v5080_v55 = vpop.f32.mrf.mxu1 }
 0x8a2   :  { %v4875_v59 = vadd.f32 %v4874_v33, %v4771_v14 }
 0x8a3   :  { %v12901_v45 = vadd.f32 %v5080_v55, %v4977_v46  ;;  %4812 = vmatmul.bf16.gmra.mxu2 %v14606_v56  ;;  %5015 = vmatmul.bf16.gmra.mxu0 %v14607_v32  ;;  %v14611_v56 = vld [vmem:[#allocation101_spill] sm:$0xff] }
 0x8a4   :  { %5119 = vmatmul.bf16.gmra.mxu1 %v14609_v39 }
 0x8a6   :  { %4916 = vmatmul.bf16.gmra.mxu3 %v14608_v29  ;;  %v4773_v42 = vpop.f32.mrf.mxu2 }
 0x8a7   :  { %v4774_v30 = vadd.f32 %v4773_v42, %v12483_v44  ;;  %v14610_v44 = vld [vmem:[#allocation100_spill] sm:$0xff] }
 0x8a8   :  { %v4978_v36 = vpop.f32.mrf.mxu0 }
 0x8a9   :  { %v4877_v61 = vpop.f32.mrf.mxu3  ;;  %v4979_v6 = vadd.f32 %v4978_v36, %v4875_v59  ;;  %v5082_v22 = vpop.f32.mrf.mxu1  ;;  %v14612_v59 = vld [vmem:[#allocation102_spill] sm:$0xff] }
 0x8aa   :  { %v4878_v7 = vadd.f32 %v4877_v61, %v4774_v30 }
 0x8ab   :  { %v12908_v53 = vadd.f32 %v5082_v22, %v4979_v6  ;;  %v7611_v6 = vld [vmem:[%s13709_s1 + $0x618] sm:$0xf0] }
 0x8ae   :  { %v4775_v47 = vpop.f32.mrf.mxu2 }
 0x8af   :  { %v4776_v10 = vadd.f32 %v4775_v47, %v12493_v43 }
 0x8b0   :  { %v4981_v14 = vpop.f32.mrf.mxu0 }
 0x8b1   :  { %v4879_v3 = vpop.f32.mrf.mxu3  ;;  %v4982_v37 = vadd.f32 %v4981_v14, %v4878_v7  ;;  %v5085_v46 = vpop.f32.mrf.mxu1  ;;  %v8243_v7 = vld [vmem:[%s13709_s1 + $0x60c] sm:$0xf] }
 0x8b2   :  { %v4880_v33 = vadd.f32 %v4879_v3, %v4776_v10 }
 0x8b3   :  { %v12911_v55 = vadd.f32 %v5085_v46, %v4982_v37  ;;  %4817 = vmatmul.bf16.gmra.mxu2 %v14448_v57  ;;  %5020 = vmatmul.bf16.gmra.mxu0 %v14610_v44  ;;  %v8310_v57 = vld [vmem:[%s13712_s3 + $0x20] sm:$0xff]  ;;  %v8275_v46 = vld [vmem:[%s13709_s1 + $0x70c] sm:$0xf]  ;;  %v7739_v44 = vld [vmem:[%s13709_s1 + $0x718] sm:$0xf0] }
 0x8b4   :  { %5124 = vmatmul.bf16.gmra.mxu1 %v14612_v59  ;;  %5854 = vmatpush.bf16.msra.mxu0 %v8310_v57 }
 0x8b6   :  { %4921 = vmatmul.bf16.gmra.mxu3 %v14611_v56  ;;  %v4778_v32 = vpop.f32.mrf.mxu2  ;;  %v7742_v56 = vor.u32 %v8275_v46, %v7739_v44  ;;  %v14616_v46 = vld [vmem:[#allocation109_spill] sm:$0xff]  ;;  %v14618_v44 = vld [vmem:[#allocation111_spill] sm:$0xff] }
 0x8b7   :  { %v4779_v29 = vadd.f32 %v4778_v32, %v12509_v18  ;;  %v7614_v18 = vor.u32 %v8243_v7, %v7611_v6  ;;  %v14613_v32 = vld [vmem:[#allocation105_spill] sm:$0xff] }
 0x8b8   :  { %v4983_v43 = vpop.f32.mrf.mxu0  ;;  %5266 = vmatpush.bf16.msra.mxu3 %v7742_v56  ;;  %v14619_v56 = vld [vmem:[#allocation112_spill] sm:$0xff] }
 0x8b9   :  { %v4882_v39 = vpop.f32.mrf.mxu3  ;;  %v4984_v30 = vadd.f32 %v4983_v43, %v4880_v33  ;;  %v5087_v61 = vpop.f32.mrf.mxu1  ;;  %5162 = vmatpush.bf16.msra.mxu2 %v7614_v18 }
 0x8ba   :  { %v4883_v42 = vadd.f32 %v4882_v39, %v4779_v29  ;;  %v14614_v29 = vld [vmem:[#allocation106_spill] sm:$0xff] }
 0x8bb   :  { %v12918_v36 = vadd.f32 %v5087_v61, %v4984_v30 }
 0x8be   :  { %v4780_v22 = vpop.f32.mrf.mxu2 }
 0x8bf   :  { %v4781_v47 = vadd.f32 %v4780_v22, %v12525_v9  ;;  %v14615_v9 = vld [vmem:[#allocation107_spill] sm:$0xff] }
 0x8c0   :  { %v4986_v3 = vpop.f32.mrf.mxu0 }
 0x8c1   :  { %v4884_v10 = vpop.f32.mrf.mxu3  ;;  %v4987_v33 = vadd.f32 %v4986_v3, %v4883_v42  ;;  %v5090_v37 = vpop.f32.mrf.mxu1 }
 0x8c2   :  { %v4885_v14 = vadd.f32 %v4884_v10, %v4781_v47 }
 0x8c3   :  { %v12936_v59 = vadd.f32 %v5090_v37, %v4987_v33  ;;  %4822 = vmatmul.bf16.gmra.mxu2 %v14613_v32  ;;  %5025 = vmatmul.bf16.gmra.mxu0 %v14614_v29 }
 0x8c4   :  { %5129 = vmatmul.bf16.gmra.mxu1 %v14293_v51 }
 0x8c6   :  { %4926 = vmatmul.bf16.gmra.mxu3 %v14615_v9  ;;  %v4783_v39 = vpop.f32.mrf.mxu2  ;;  %v8320_v9 = vld [vmem:[%s13712_s3 + $0x70] sm:$0xff] }
 0x8c7   :  { %v4784_v43 = vadd.f32 %v4783_v39, %v12535_v4  ;;  %v14617_v4 = vld [vmem:[#allocation110_spill] sm:$0xff] }
 0x8c8   :  { %v4988_v30 = vpop.f32.mrf.mxu0 }
 0x8c9   :  { %v4887_v42 = vpop.f32.mrf.mxu3  ;;  %v4989_v57 = vadd.f32 %v4988_v30, %v4885_v14  ;;  %v5092_v7 = vpop.f32.mrf.mxu1  ;;  %v8321_v14 = vld [vmem:[%s13712_s3 + $0x78] sm:$0xff] }
 0x8ca   :  { %v4888_v61 = vadd.f32 %v4887_v42, %v4784_v43  ;;  %5955 = vmatpush.bf16.msra.mxu1 %v8321_v14  ;;  %v14621_v14 = vld [vmem:[#allocation114_spill] sm:$0xff] }
 0x8cb   :  { %v12943_v6 = vadd.f32 %v5092_v7, %v4989_v57  ;;  %v8319_v57 = vld [vmem:[%s13712_s3 + $0x68] sm:$0xff] }
 0x8ce   :  { %v4785_v18 = vpop.f32.mrf.mxu2  ;;  %5956 = vmatpush.bf16.msra.mxu1 %v8320_v9 }
 0x8cf   :  { %v4786_v22 = vadd.f32 %v4785_v18, %v12557_v19 }
 0x8d0   :  { %v4991_v10 = vpop.f32.mrf.mxu0 }
 0x8d1   :  { %v4889_v47 = vpop.f32.mrf.mxu3  ;;  %v4992_v33 = vadd.f32 %v4991_v10, %v4888_v61  ;;  %v5095_v37 = vpop.f32.mrf.mxu1 }
 0x8d2   :  { %v4890_v3 = vadd.f32 %v4889_v47, %v4786_v22  ;;  %5957 = vmatpush.bf16.msra.mxu1 %v8319_v57  ;;  %v8318_v22 = vld [vmem:[%s13712_s3 + $0x60] sm:$0xff] }
 0x8d3   :  { %v12946_v51 = vadd.f32 %v5095_v37, %v4992_v33  ;;  %4827 = vmatmul.bf16.gmra.mxu2 %v14616_v46  ;;  %5030 = vmatmul.bf16.gmra.mxu0 %v14617_v4  ;;  %v8309_v37 = vld [vmem:[%s13712_s3 + $0x18] sm:$0xff] }
 0x8d4   :  { %5134 = vmatmul.bf16.gmra.mxu1 %v14619_v56  ;;  %v14620_v4 = vld [vmem:[#allocation113_spill] sm:$0xff]  ;;  %v14623_v56 = vld [vmem:[#allocation116_spill] sm:$0xff]  ;;  %5855 = vmatpush.bf16.msra.mxu0 %v8309_v37  ;;  %v8314_v37 = vld [vmem:[%s13712_s3 + $0x40] sm:$0xff] }
 0x8d6   :  { %4931 = vmatmul.bf16.gmra.mxu3 %v14618_v44  ;;  %v4788_v19 = vpop.f32.mrf.mxu2  ;;  %5958 = vmatpush.bf16.msra.mxu1 %v8318_v22  ;;  %v14622_v44 = vld [vmem:[#allocation115_spill] sm:$0xff] }
 0x8d7   :  { %v4789_v32 = vadd.f32 %v4788_v19, %v12576_v54  ;;  %v8329_v19 = vld [vmem:[%s13712_s3 + $0xb8] sm:$0xff]  ;;  %v8315_v22 = vld [vmem:[%s13712_s3 + $0x48] sm:$0xff] }
 0x8d8   :  { %v4993_v39 = vpop.f32.mrf.mxu0  ;;  %6059 = vmatpush.bf16.msrb.mxu2 %v8329_v19  ;;  %v14625_v19 = vld [vmem:[#allocation120_spill] sm:$0xff] }
 0x8d9   :  { %v4892_v29 = vpop.f32.mrf.mxu3  ;;  %v4994_v42 = vadd.f32 %v4993_v39, %v4890_v3  ;;  %v5097_v30 = vpop.f32.mrf.mxu1 }
 0x8da   :  { %v4893_v43 = vadd.f32 %v4892_v29, %v4789_v32  ;;  %v8337_v32 = vld [vmem:[%s13712_s3 + $0xf8] sm:$0xff] }
 0x8db   :  { %v12959_v61 = vadd.f32 %v5097_v30, %v4994_v42  ;;  %6163 = vmatpush.bf16.msrb.mxu3 %v8337_v32  ;;  %v8316_v42 = vld [vmem:[%s13712_s3 + $0x50] sm:$0xff]  ;;  %v14626_v32 = vld [vmem:[#allocation121_spill] sm:$0xff] }
 0x8de   :  { %v4790_v7 = vpop.f32.mrf.mxu2 }
 0x8df   :  { %v4791_v54 = vadd.f32 %v4790_v7, %v12622_v26  ;;  %v8317_v26 = vld [vmem:[%s13712_s3 + $0x58] sm:$0xff] }
 0x8e0   :  { %v4996_v47 = vpop.f32.mrf.mxu0  ;;  %5959 = vmatpush.bf16.msra.mxu1 %v8317_v26 }
 0x8e1   :  { %v4894_v18 = vpop.f32.mrf.mxu3  ;;  %v4997_v3 = vadd.f32 %v4996_v47, %v4893_v43  ;;  %v5100_v33 = vpop.f32.mrf.mxu1  ;;  %v8308_v43 = vld [vmem:[%s13712_s3 + $0x10] sm:$0xff] }
 0x8e2   :  { %v4895_v10 = vadd.f32 %v4894_v18, %v4791_v54  ;;  %5856 = vmatpush.bf16.msra.mxu0 %v8308_v43 }
 0x8e3   :  { %v12971_v46 = vadd.f32 %v5100_v33, %v4997_v3  ;;  %4832 = vmatmul.bf16.gmra.mxu2 %v14620_v4  ;;  %5035 = vmatmul.bf16.gmra.mxu0 %v14621_v14 }
 0x8e4   :  { %5139 = vmatmul.bf16.gmra.mxu1 %v14623_v56 }
 0x8e5   :  { %5960 = vmatpush.bf16.msra.mxu1 %v8316_v42 }
 0x8e6   :  { %4936 = vmatmul.bf16.gmra.mxu3 %v14622_v44  ;;  %v4793_v29 = vpop.f32.mrf.mxu2 }
 0x8e7   :  { %v4794_v9 = vadd.f32 %v4793_v29, %v12641_v25  ;;  %v8307_v25 = vld [vmem:[%s13712_s3 + $0x8] sm:$0xff] }
 0x8e8   :  { %v4998_v30 = vpop.f32.mrf.mxu0  ;;  %5857 = vmatpush.bf16.msra.mxu0 %v8307_v25 }
 0x8e9   :  { %v4897_v39 = vpop.f32.mrf.mxu3  ;;  %v4999_v7 = vadd.f32 %v4998_v30, %v4895_v10  ;;  %v5102_v54 = vpop.f32.mrf.mxu1  ;;  %5961 = vmatpush.bf16.msra.mxu1 %v8315_v22  ;;  %v8306_v10 = vld [vmem:[%s13712_s3] sm:$0xff] }
 0x8ea   :  { %v4898_v57 = vadd.f32 %v4897_v39, %v4794_v9 }
 0x8eb   :  { %v12993_v18 = vadd.f32 %v5102_v54, %v4999_v7 }
 0x8ec   :  { %5858 = vmatpush.bf16.msra.mxu0 %v8306_v10 }
 0x8ed   :  { %5962 = vmatpush.bf16.msra.mxu1 %v8314_v37  ;;  %v14627_v37 = vld [vmem:[#allocation122_spill] sm:$0xff] }
 0x8ee   :  { %v4795_v47 = vpop.f32.mrf.mxu2 }
 0x8ef   :  { %v4796_v3 = vadd.f32 %v4795_v47, %v12651_v52  ;;  %v14624_v52 = vld [vmem:[#allocation119_spill] sm:$0xff] }
 0x8f0   :  { %v5001_v4 = vpop.f32.mrf.mxu0 }
 0x8f1   :  { %v4899_v33 = vpop.f32.mrf.mxu3  ;;  %v5002_v26 = vadd.f32 %v5001_v4, %v4898_v57  ;;  %v5105_v44 = vpop.f32.mrf.mxu1  ;;  %v14629_v4 = vld [vmem:[#allocation124_spill] sm:$0xff] }
 0x8f2   :  { %v4900_v14 = vadd.f32 %v4899_v33, %v4796_v3 }
 0x8f3   :  { %v13008_v56 = vadd.f32 %v5105_v44, %v5002_v26  ;;  %4837 = vmatmul.bf16.gmra.mxu2 %v10196_v1  ;;  %5040 = vmatmul.bf16.gmra.mxu0 %v14624_v52 }
 0x8f4   :  { %5144 = vmatmul.bf16.gmra.mxu1 %v14626_v32 }
 0x8f6   :  { %4941 = vmatmul.bf16.gmra.mxu3 %v14625_v19  ;;  %v4798_v29 = vpop.f32.mrf.mxu2 }
 0x8f7   :  { %v4799_v9 = vadd.f32 %v4798_v29, %v12655_v41  ;;  %v14628_v41 = vld [vmem:[#allocation123_spill] sm:$0xff] }
 0x8f8   :  { %v5003_v43 = vpop.f32.mrf.mxu0 }
 0x8f9   :  { %v4902_v39 = vpop.f32.mrf.mxu3  ;;  %v5004_v30 = vadd.f32 %v5003_v43, %v4900_v14  ;;  %v5107_v57 = vpop.f32.mrf.mxu1  ;;  %v14630_v14 = vld [vmem:[#allocation125_spill] sm:$0xff]  ;;  %v8336_v43 = vld [vmem:[%s13712_s3 + $0xf0] sm:$0xff] }
 0x8fa   :  { %v4903_v42 = vadd.f32 %v4902_v39, %v4799_v9  ;;  %v8328_v39 = vld [vmem:[%s13712_s3 + $0xb0] sm:$0xff]  ;;  %6164 = vmatpush.bf16.msrb.mxu3 %v8336_v43 }
 0x8fb   :  { %v13015_v7 = vadd.f32 %v5107_v57, %v5004_v30  ;;  %6060 = vmatpush.bf16.msrb.mxu2 %v8328_v39 }
 0x8fe   :  { %v4800_v54 = vpop.f32.mrf.mxu2 }
 0x8ff   :  { %v4801_v25 = vadd.f32 %v4800_v54, %v12665_v15 }
 0x900   :  { %v5006_v22 = vpop.f32.mrf.mxu0 }
 0x901   :  { %v4904_v1 = vpop.f32.mrf.mxu3  ;;  %v5007_v3 = vadd.f32 %v5006_v22, %v4903_v42  ;;  %v5110_v33 = vpop.f32.mrf.mxu1 }
 0x902   :  { %v4905_v47 = vadd.f32 %v4904_v1, %v4801_v25 }
 0x903   :  { %v13018_v10 = vadd.f32 %v5110_v33, %v5007_v3  ;;  %5045 = vmatmul.bf16.gmra.mxu0 %v14627_v37  ;;  %5163 = vmatmul.bf16.vlgmr.msra.gmra.mxu2 %v14628_v41  ;;  %v14632_v3 = vld [vmem:[#allocation139_spill] sm:$0xff] }
 0x904   :  { %5149 = vmatmul.bf16.gmra.mxu1 %v14629_v4  ;;  %v14633_v33 = vld [vmem:[#allocation127_spill] sm:$0xff] }
 0x905   :  { %v14634_v37 = vld [vmem:[#allocation87_spill] sm:$0xff] }
 0x906   :  { %5267 = vmatmul.bf16.vlgmr.msra.gmra.mxu3 %v14630_v14  ;;  %v4803_v26 = vpop.f32.mrf.mxu2 }
 0x907   :  { %v4804_v44 = vadd.f32 %v4803_v26, %v12681_v0 }
 0x908   :  { %v5008_v15 = vpop.f32.mrf.mxu0 }
 0x909   :  { %v4907_v52 = vpop.f32.mrf.mxu3  ;;  %v5009_v32 = vadd.f32 %v5008_v15, %v4905_v47  ;;  %v5112_v29 = vpop.f32.mrf.mxu1  ;;  %v14631_v47 = vld [vmem:[#allocation126_spill] sm:$0xff] }
 0x90a   :  { %v4908_v19 = vadd.f32 %v4907_v52, %v4804_v44 }
 0x90b   :  { %v13025_v9 = vadd.f32 %v5112_v29, %v5009_v32 }
 0x90e   :  { %v4805_v42 = vpop.f32.mrf.mxu2 }
 0x90f   :  { %v4806_v0 = vadd.f32 %v4805_v42, %v12691_v50 }
 0x910   :  { %v5011_v57 = vpop.f32.mrf.mxu0 }
 0x911   :  { %v4909_v30 = vpop.f32.mrf.mxu3  ;;  %v5012_v25 = vadd.f32 %v5011_v57, %v4908_v19  ;;  %v5115_v1 = vpop.f32.mrf.mxu1  ;;  %v14635_v57 = vld [vmem:[#allocation128_spill] sm:$0xff] }
 0x912   :  { %v4910_v54 = vadd.f32 %v4909_v30, %v4806_v0 }
 0x913   :  { %v13034_v22 = vadd.f32 %v5115_v1, %v5012_v25  ;;  %5168 = vmatmul.bf16.gmra.mxu2 %v14631_v47  ;;  %5859 = vmatmul.bf16.vlgmr.msra.gmra.mxu0 %v14632_v3  ;;  %v14637_v25 = vld [vmem:[#allocation129_spill] sm:$0xff] }
 0x914   :  { %5963 = vmatmul.bf16.vlgmr.msra.gmra.mxu1 %v14634_v37 }
 0x916   :  { %5272 = vmatmul.bf16.gmra.mxu3 %v14633_v33  ;;  %v4808_v41 = vpop.f32.mrf.mxu2 }
 0x917   :  { %v4809_v4 = vadd.f32 %v4808_v41, %v12695_v24  ;;  %v14636_v24 = vld [vmem:[#allocation142_spill] sm:$0xff] }
 0x918   :  { %v5013_v50 = vpop.f32.mrf.mxu0 }
 0x919   :  { %v4912_v14 = vpop.f32.mrf.mxu3  ;;  %v5014_v44 = vadd.f32 %v5013_v50, %v4910_v54  ;;  %v5117_v52 = vpop.f32.mrf.mxu1  ;;  %v14638_v54 = vld [vmem:[#allocation108_spill] sm:$0xff] }
 0x91a   :  { %v4913_v26 = vadd.f32 %v4912_v14, %v4809_v4 }
 0x91b   :  { %v13041_v15 = vadd.f32 %v5117_v52, %v5014_v44 }
 0x91e   :  { %v4810_v19 = vpop.f32.mrf.mxu2 }
 0x91f   :  { %v4811_v32 = vadd.f32 %v4810_v19, %v12705_v27 }
 0x920   :  { %v5016_v39 = vpop.f32.mrf.mxu0 }
 0x921   :  { %v4914_v29 = vpop.f32.mrf.mxu3  ;;  %v5017_v42 = vadd.f32 %v5016_v39, %v4913_v26  ;;  %v5120_v0 = vpop.f32.mrf.mxu1  ;;  %v14639_v39 = vld [vmem:[#allocation130_spill] sm:$0xff] }
 0x922   :  { %v4915_v43 = vadd.f32 %v4914_v29, %v4811_v32  ;;  %v8327_v29 = vld [vmem:[%s13712_s3 + $0xa8] sm:$0xff] }
 0x923   :  { %v13044_v30 = vadd.f32 %v5120_v0, %v5017_v42  ;;  %5173 = vmatmul.bf16.gmra.mxu2 %v14635_v57  ;;  %5864 = vmatmul.bf16.gmra.mxu0 %v14636_v24  ;;  %v8335_v42 = vld [vmem:[%s13712_s3 + $0xe8] sm:$0xff]  ;;  %v14642_v0 = vld [vmem:[#allocation170_spill] sm:$0xff] }
 0x924   :  { %5968 = vmatmul.bf16.gmra.mxu1 %v14638_v54  ;;  %6061 = vmatpush.bf16.msrb.mxu2 %v8327_v29  ;;  %v14645_v29 = vld [vmem:[#allocation133_spill] sm:$0xff] }
 0x925   :  { %6165 = vmatpush.bf16.msrb.mxu3 %v8335_v42 }
 0x926   :  { %5277 = vmatmul.bf16.gmra.mxu3 %v14637_v25  ;;  %v4813_v1 = vpop.f32.mrf.mxu2 }
 0x927   :  { %v4814_v47 = vadd.f32 %v4813_v1, %v12709_v21 }
 0x928   :  { %v5018_v27 = vpop.f32.mrf.mxu0 }
 0x929   :  { %v4917_v3 = vpop.f32.mrf.mxu3  ;;  %v5019_v37 = vadd.f32 %v5018_v27, %v4915_v43  ;;  %v5122_v41 = vpop.f32.mrf.mxu1  ;;  %v14640_v43 = vld [vmem:[#allocation145_spill] sm:$0xff] }
 0x92a   :  { %v4918_v33 = vadd.f32 %v4917_v3, %v4814_v47 }
 0x92b   :  { %v13051_v4 = vadd.f32 %v5122_v41, %v5019_v37 }
 0x92e   :  { %v4815_v14 = vpop.f32.mrf.mxu2 }
 0x92f   :  { %v4816_v50 = vadd.f32 %v4815_v14, %v12731_v11  ;;  %v14641_v11 = vld [vmem:[#allocation131_spill] sm:$0xff] }
 0x930   :  { %v5021_v44 = vpop.f32.mrf.mxu0 }
 0x931   :  { %v4919_v26 = vpop.f32.mrf.mxu3  ;;  %v5022_v19 = vadd.f32 %v5021_v44, %v4918_v33  ;;  %v5125_v32 = vpop.f32.mrf.mxu1 }
 0x932   :  { %v4920_v52 = vadd.f32 %v4919_v26, %v4816_v50 }
 0x933   :  { %v13057_v21 = vadd.f32 %v5125_v32, %v5022_v19  ;;  %5178 = vmatmul.bf16.gmra.mxu2 %v14639_v39  ;;  %5869 = vmatmul.bf16.gmra.mxu0 %v14640_v43  ;;  %v14643_v32 = vld [vmem:[#allocation132_spill] sm:$0xff] }
 0x934   :  { %5973 = vmatmul.bf16.gmra.mxu1 %v14642_v0 }
 0x936   :  { %5282 = vmatmul.bf16.gmra.mxu3 %v14641_v11  ;;  %v4818_v57 = vpop.f32.mrf.mxu2 }
 0x937   :  { %v4819_v24 = vadd.f32 %v4818_v57, %v12735_v12  ;;  %v14644_v12 = vld [vmem:[#allocation148_spill] sm:$0xff] }
 0x938   :  { %v5023_v54 = vpop.f32.mrf.mxu0 }
 0x939   :  { %v4922_v25 = vpop.f32.mrf.mxu3  ;;  %v5024_v47 = vadd.f32 %v5023_v54, %v4920_v52  ;;  %v5127_v3 = vpop.f32.mrf.mxu1  ;;  %v14646_v52 = vld [vmem:[#allocation171_spill] sm:$0xff] }
 0x93a   :  { %v4923_v1 = vadd.f32 %v4922_v25, %v4819_v24 }
 0x93b   :  { %v13067_v27 = vadd.f32 %v5127_v3, %v5024_v47 }
 0x93e   :  { %v4820_v33 = vpop.f32.mrf.mxu2 }
 0x93f   :  { %v4821_v37 = vadd.f32 %v4820_v33, %v12745_v58 }
 0x940   :  { %v5026_v14 = vpop.f32.mrf.mxu0 }
 0x941   :  { %v4924_v41 = vpop.f32.mrf.mxu3  ;;  %v5027_v26 = vadd.f32 %v5026_v14, %v4923_v1  ;;  %v5130_v44 = vpop.f32.mrf.mxu1  ;;  %v14647_v14 = vld [vmem:[#allocation134_spill] sm:$0xff] }
 0x942   :  { %v4925_v50 = vadd.f32 %v4924_v41, %v4821_v37 }
 0x943   :  { %v13070_v19 = vadd.f32 %v5130_v44, %v5027_v26  ;;  %5183 = vmatmul.bf16.gmra.mxu2 %v14643_v32  ;;  %5874 = vmatmul.bf16.gmra.mxu0 %v14644_v12  ;;  %v14649_v26 = vld [vmem:[#allocation135_spill] sm:$0xff]  ;;  %v8326_v44 = vld [vmem:[%s13712_s3 + $0xa0] sm:$0xff] }
 0x944   :  { %5978 = vmatmul.bf16.gmra.mxu1 %v14646_v52  ;;  %6062 = vmatpush.bf16.msrb.mxu2 %v8326_v44 }
 0x946   :  { %5287 = vmatmul.bf16.gmra.mxu3 %v14645_v29  ;;  %v4823_v39 = vpop.f32.mrf.mxu2 }
 0x947   :  { %v4824_v43 = vadd.f32 %v4823_v39, %v12749_v20  ;;  %v14648_v20 = vld [vmem:[#allocation151_spill] sm:$0xff] }
 0x948   :  { %v5028_v58 = vpop.f32.mrf.mxu0 }
 0x949   :  { %v4927_v42 = vpop.f32.mrf.mxu3  ;;  %v5029_v0 = vadd.f32 %v5028_v58, %v4925_v50  ;;  %v5132_v57 = vpop.f32.mrf.mxu1  ;;  %v14650_v50 = vld [vmem:[#allocation172_spill] sm:$0xff] }
 0x94a   :  { %v4928_v11 = vadd.f32 %v4927_v42, %v4824_v43  ;;  %v8334_v42 = vld [vmem:[%s13712_s3 + $0xe0] sm:$0xff] }
 0x94b   :  { %v13077_v24 = vadd.f32 %v5132_v57, %v5029_v0  ;;  %6166 = vmatpush.bf16.msrb.mxu3 %v8334_v42 }
 0x94e   :  { %v4825_v25 = vpop.f32.mrf.mxu2 }
 0x94f   :  { %v4826_v54 = vadd.f32 %v4825_v25, %v12765_v13 }
 0x950   :  { %v5031_v47 = vpop.f32.mrf.mxu0 }
 0x951   :  { %v4929_v1 = vpop.f32.mrf.mxu3  ;;  %v5032_v33 = vadd.f32 %v5031_v47, %v4928_v11  ;;  %v5135_v37 = vpop.f32.mrf.mxu1 }
 0x952   :  { %v4930_v3 = vadd.f32 %v4929_v1, %v4826_v54 }
 0x953   :  { %v13080_v41 = vadd.f32 %v5135_v37, %v5032_v33  ;;  %5188 = vmatmul.bf16.gmra.mxu2 %v14647_v14  ;;  %5879 = vmatmul.bf16.gmra.mxu0 %v14648_v20  ;;  %v14651_v33 = vld [vmem:[#allocation66_spill] sm:$0xff]  ;;  %v14653_v37 = vld [vmem:[#allocation136_spill] sm:$0xff]  ;;  %v14654_v14 = vld [vmem:[#allocation173_spill] sm:$0xff] }
 0x954   :  { %5983 = vmatmul.bf16.gmra.mxu1 %v14650_v50 }
 0x956   :  { %5292 = vmatmul.bf16.gmra.mxu3 %v14649_v26  ;;  %v4828_v13 = vpop.f32.mrf.mxu2 }
 0x957   :  { %v4829_v32 = vadd.f32 %v4828_v13, %v12775_v62 }
 0x958   :  { %v5033_v29 = vpop.f32.mrf.mxu0 }
 0x959   :  { %v4932_v12 = vpop.f32.mrf.mxu3  ;;  %v5034_v39 = vadd.f32 %v5033_v29, %v4930_v3  ;;  %v5137_v43 = vpop.f32.mrf.mxu1  ;;  %v14652_v3 = vld [vmem:[#allocation152_spill] sm:$0xff] }
 0x95a   :  { %v4933_v52 = vadd.f32 %v4932_v12, %v4829_v32 }
 0x95b   :  { %v13093_v58 = vadd.f32 %v5137_v43, %v5034_v39 }
 0x95e   :  { %v4830_v11 = vpop.f32.mrf.mxu2 }
 0x95f   :  { %v4831_v0 = vadd.f32 %v4830_v11, %v12785_v5 }
 0x960   :  { %v5036_v25 = vpop.f32.mrf.mxu0 }
 0x961   :  { %v4934_v57 = vpop.f32.mrf.mxu3  ;;  %v5037_v1 = vadd.f32 %v5036_v25, %v4933_v52  ;;  %v5140_v62 = vpop.f32.mrf.mxu1  ;;  %v14655_v25 = vld [vmem:[#allocation67_spill] sm:$0xff] }
 0x962   :  { %v4935_v54 = vadd.f32 %v4934_v57, %v4831_v0 }
 0x963   :  { %v13096_v47 = vadd.f32 %v5140_v62, %v5037_v1  ;;  %5193 = vmatmul.bf16.gmra.mxu2 %v14651_v33  ;;  %5884 = vmatmul.bf16.gmra.mxu0 %v14652_v3  ;;  %v14657_v1 = vld [vmem:[#allocation72_spill] sm:$0xff] }
 0x964   :  { %5988 = vmatmul.bf16.gmra.mxu1 %v14654_v14 }
 0x966   :  { %5297 = vmatmul.bf16.gmra.mxu3 %v14653_v37  ;;  %v4833_v20 = vpop.f32.mrf.mxu2 }
 0x967   :  { %v4834_v26 = vadd.f32 %v4833_v20, %v12789_v23  ;;  %v14656_v23 = vld [vmem:[#allocation155_spill] sm:$0xff] }
 0x968   :  { %v5038_v5 = vpop.f32.mrf.mxu0 }
 0x969   :  { %v4937_v50 = vpop.f32.mrf.mxu3  ;;  %v5039_v13 = vadd.f32 %v5038_v5, %v4935_v54  ;;  %v5142_v32 = vpop.f32.mrf.mxu1  ;;  %v14658_v54 = vld [vmem:[#allocation174_spill] sm:$0xff]  ;;  %v8325_v5 = vld [vmem:[%s13712_s3 + $0x98] sm:$0xff] }
 0x96a   :  { %v4938_v44 = vadd.f32 %v4937_v50, %v4834_v26  ;;  %v8345_v50 = vld [vmem:[%s13714_s5 + $0x38] sm:$0xff]  ;;  %6063 = vmatpush.bf16.msrb.mxu2 %v8325_v5 }
 0x96b   :  { %v13103_v12 = vadd.f32 %v5142_v32, %v5039_v13  ;;  %6392 = vmatpush.bf16.msrb.mxu0 %v8345_v50 }
 0x96e   :  { %v4835_v29 = vpop.f32.mrf.mxu2 }
 0x96f   :  { %v4836_v52 = vadd.f32 %v4835_v29, %v12802_v48 }
 0x970   :  { %v5041_v43 = vpop.f32.mrf.mxu0 }
 0x971   :  { %v4939_v39 = vpop.f32.mrf.mxu3  ;;  %v5042_v11 = vadd.f32 %v5041_v43, %v4938_v44  ;;  %v5145_v0 = vpop.f32.mrf.mxu1  ;;  %v8333_v44 = vld [vmem:[%s13712_s3 + $0xd8] sm:$0xff] }
 0x972   :  { %v4940_v42 = vadd.f32 %v4939_v39, %v4836_v52  ;;  %6167 = vmatpush.bf16.msrb.mxu3 %v8333_v44 }
 0x973   :  { %v13106_v57 = vadd.f32 %v5145_v0, %v5042_v11  ;;  %5198 = vmatmul.bf16.gmra.mxu2 %v14655_v25  ;;  %5889 = vmatmul.bf16.gmra.mxu0 %v14656_v23  ;;  %v14659_v11 = vld [vmem:[#allocation73_spill] sm:$0xff]  ;;  %v14660_v0 = vld [vmem:[#allocation158_spill] sm:$0xff]  ;;  %v14662_v23 = vld [vmem:[#allocation156_spill] sm:$0xff] }
 0x974   :  { %5993 = vmatmul.bf16.gmra.mxu1 %v14658_v54  ;;  %v14661_v25 = vld [vmem:[#allocation137_spill] sm:$0xff] }
 0x976   :  { %5302 = vmatmul.bf16.gmra.mxu3 %v14657_v1  ;;  %v4838_v62 = vpop.f32.mrf.mxu2 }
 0x977   :  { %v4839_v33 = vadd.f32 %v4838_v62, %v12818_v38 }
 0x978   :  { %v5043_v48 = vpop.f32.mrf.mxu0 }
 0x979   :  { %v4942_v3 = vpop.f32.mrf.mxu3  ;;  %v5044_v14 = vadd.f32 %v5043_v48, %v4940_v42  ;;  %v5147_v20 = vpop.f32.mrf.mxu1 }
 0x97a   :  { %v4943_v37 = vadd.f32 %v4942_v3, %v4839_v33 }
 0x97b   :  { %v13113_v26 = vadd.f32 %v5147_v20, %v5044_v14  ;;  %v13137_v14 = vld [vmem:[%s13713_s4] ss:$0 sm:$0xff] }
 0x97e   :  { %v4840_v38 = vpop.f32.mrf.mxu2 }
 0x97f   :  { %v4841_v13 = vadd.f32 %v4840_v38, %v12828_v49 }
 0x980   :  { %v5046_v29 = vpop.f32.mrf.mxu0 }
 0x981   :  { %v4944_v32 = vpop.f32.mrf.mxu3  ;;  %v5047_v39 = vadd.f32 %v5046_v29, %v4943_v37  ;;  %v5150_v43 = vpop.f32.mrf.mxu1 }
 0x982   :  { %v4945_v52 = vadd.f32 %v4944_v32, %v4841_v13 }
 0x983   :  { %v13125_v42 = vadd.f32 %v5150_v43, %v5047_v39  ;;  %5203 = vmatmul.bf16.gmra.mxu2 %v14659_v11  ;;  %5894 = vmatmul.bf16.gmra.mxu0 %v14660_v0  ;;  %v14663_v39 = vld [vmem:[#allocation82_spill] sm:$0xff]  ;;  %v14664_v43 = vld [vmem:[#allocation159_spill] sm:$0xff] }
 0x984   :  { %5998 = vmatmul.bf16.gmra.mxu1 %v14662_v23  ;;  %v14665_v11 = vld [vmem:[#allocation138_spill] sm:$0xff]  ;;  %v14666_v0 = vld [vmem:[#allocation175_spill] sm:$0xff] }
 0x986   :  { %5307 = vmatmul.bf16.gmra.mxu3 %v14661_v25  ;;  %v5164_v1 = vpop.f32.mrf.mxu2 }
 0x987   :  { %v5165_v54 = vadd.f32 %v5164_v1, %v12831_v2 }
 0x988   :  { %v5048_v49 = vpop.f32.mrf.mxu0 }
 0x989   :  { %v5268_v62 = vpop.f32.mrf.mxu3  ;;  %v5049_v3 = vadd.f32 %v5048_v49, %v4945_v52  ;;  %v5152_v48 = vpop.f32.mrf.mxu1 }
 0x98a   :  { %v5269_v33 = vadd.f32 %v5268_v62, %v5165_v54 }
 0x98b   :  { %v13132_v37 = vadd.f32 %v5152_v48, %v5049_v3  ;;  %v8344_v48 = vld [vmem:[%s13714_s5 + $0x30] sm:$0xff] }
 0x98c   :  { %v5366_v32 = vmax.f32 %v5269_v33, 0.0  ;;  %6393 = vmatpush.bf16.msrb.mxu0 %v8344_v48 }
 0x98e   :  { %v5166_v20 = vpop.f32.mrf.mxu2 }
 0x98f   :  { %v5167_v50 = vadd.f32 %v5166_v20, %v12838_v40 }
 0x990   :  { %v5860_v44 = vpop.f32.mrf.mxu0 }
 0x991   :  { %v5270_v5 = vpop.f32.mrf.mxu3  ;;  %v5861_v2 = vadd.f32 %v13137_v14, %v5860_v44  ;;  %v5964_v13 = vpop.f32.mrf.mxu1 }
 0x992   :  { %v5271_v38 = vadd.f32 %v5270_v5, %v5167_v50 }
 0x993   :  { %v13141_v52 = vadd.f32 %v5964_v13, %v5861_v2  ;;  %5208 = vmatmul.bf16.gmra.mxu2 %v14663_v39  ;;  %5899 = vmatmul.bf16.gmra.mxu0 %v14664_v43  ;;  %v14667_v39 = vld [vmem:[#allocation140_spill] sm:$0xff]  ;;  %v14668_v43 = vld [vmem:[#allocation31_spill] sm:$0xff] }
 0x994   :  { %v5370_v29 = vmax.f32 %v5271_v38, 0.0  ;;  %6003 = vmatmul.bf16.gmra.mxu1 %v14666_v0  ;;  %v14669_v0 = vld [vmem:[#allocation141_spill] sm:$0xff] }
 0x996   :  { %5312 = vmatmul.bf16.gmra.mxu3 %v14665_v11  ;;  %v13147_v25 = vpack.c.bf16 %v5370_v29, %v5366_v32  ;;  %v5169_v40 = vpop.f32.mrf.mxu2  ;;  %v8324_v11 = vld [vmem:[%s13712_s3 + $0x90] sm:$0xff] }
 0x997   :  { %v5170_v23 = vadd.f32 %v5169_v40, %v12844_v17  ;;  %v8332_v40 = vld [vmem:[%s13712_s3 + $0xd0] sm:$0xff]  ;;  %6064 = vmatpush.bf16.msrb.mxu2 %v8324_v11  ;;  %v14671_v11 = vld [vmem:[#allocation143_spill] sm:$0xff] }
 0x998   :  { %v5862_v54 = vpop.f32.mrf.mxu0  ;;  %6168 = vmatpush.bf16.msrb.mxu3 %v8332_v40  ;;  %v14674_v40 = vld [vmem:[#allocation177_spill] sm:$0xff] }
 0x999   :  { %v5273_v1 = vpop.f32.mrf.mxu3  ;;  %v5863_v49 = vadd.f32 %v13137_v14, %v5862_v54  ;;  %v5966_v33 = vpop.f32.mrf.mxu1 }
 0x99a   :  { %v5274_v62 = vadd.f32 %v5273_v1, %v5170_v23 }
 0x99b   :  { %v13151_v3 = vadd.f32 %v5966_v33, %v5863_v49 }
 0x99c   :  { %v5374_v13 = vmax.f32 %v5274_v62, 0.0 }
 0x99e   :  { %v5171_v20 = vpop.f32.mrf.mxu2 }
 0x99f   :  { %v5172_v50 = vadd.f32 %v5171_v20, %v12863_v8  ;;  %v14670_v8 = vld [vmem:[#allocation176_spill] sm:$0xff] }
 0x9a0   :  { %v5865_v44 = vpop.f32.mrf.mxu0 }
 0x9a1   :  { %v5275_v5 = vpop.f32.mrf.mxu3  ;;  %v5866_v17 = vadd.f32 %v13137_v14, %v5865_v44  ;;  %v5969_v2 = vpop.f32.mrf.mxu1 }
 0x9a2   :  { %v5276_v38 = vadd.f32 %v5275_v5, %v5172_v50 }
 0x9a3   :  { %v13158_v29 = vadd.f32 %v5969_v2, %v5866_v17  ;;  %5213 = vmatmul.bf16.gmra.mxu2 %v14667_v39  ;;  %5904 = vmatmul.bf16.gmra.mxu0 %v14668_v43 }
 0x9a4   :  { %v5378_v32 = vmax.f32 %v5276_v38, 0.0  ;;  %6008 = vmatmul.bf16.gmra.mxu1 %v14670_v8  ;;  %v14673_v8 = vld [vmem:[#allocation144_spill] sm:$0xff] }
 0x9a6   :  { %5317 = vmatmul.bf16.gmra.mxu3 %v14669_v0  ;;  %v13170_v23 = vpack.c.bf16 %v5378_v32, %v5374_v13  ;;  %v5174_v1 = vpop.f32.mrf.mxu2  ;;  %v14672_v0 = vld [vmem:[#allocation161_spill] sm:$0xff] }
 0x9a7   :  { %v5175_v54 = vadd.f32 %v5174_v1, %v12866_v63 }
 0x9a8   :  { %v5867_v49 = vpop.f32.mrf.mxu0 }
 0x9a9   :  { %v5278_v62 = vpop.f32.mrf.mxu3  ;;  %v5868_v48 = vadd.f32 %v13137_v14, %v5867_v49  ;;  %v5971_v20 = vpop.f32.mrf.mxu1 }
 0x9aa   :  { %v5279_v33 = vadd.f32 %v5278_v62, %v5175_v54 }
 0x9ab   :  { %v13174_v50 = vadd.f32 %v5971_v20, %v5868_v48 }
 0x9ac   :  { %v5382_v39 = vmax.f32 %v5279_v33, 0.0 }
 0x9ae   :  { %v5176_v5 = vpop.f32.mrf.mxu2 }
 0x9af   :  { %v5177_v44 = vadd.f32 %v5176_v5, %v12873_v16 }
 0x9b0   :  { %v5870_v17 = vpop.f32.mrf.mxu0 }
 0x9b1   :  { %v5280_v38 = vpop.f32.mrf.mxu3  ;;  %v5871_v13 = vadd.f32 %v13137_v14, %v5870_v17  ;;  %v5974_v32 = vpop.f32.mrf.mxu1 }
 0x9b2   :  { %v5281_v2 = vadd.f32 %v5280_v38, %v5177_v44 }
 0x9b3   :  { %v13178_v63 = vadd.f32 %v5974_v32, %v5871_v13  ;;  %5218 = vmatmul.bf16.gmra.mxu2 %v14671_v11  ;;  %5909 = vmatmul.bf16.gmra.mxu0 %v14672_v0  ;;  %v14675_v0 = vld [vmem:[#allocation146_spill] sm:$0xff] }
 0x9b4   :  { %v5386_v43 = vmax.f32 %v5281_v2, 0.0  ;;  %6013 = vmatmul.bf16.gmra.mxu1 %v14674_v40  ;;  %v14677_v40 = vld [vmem:[#allocation147_spill] sm:$0xff] }
 0x9b6   :  { %5322 = vmatmul.bf16.gmra.mxu3 %v14673_v8  ;;  %v13184_v1 = vpack.c.bf16 %v5386_v43, %v5382_v39  ;;  %v5179_v16 = vpop.f32.mrf.mxu2  ;;  %v14676_v8 = vld [vmem:[#allocation162_spill] sm:$0xff] }
 0x9b7   :  { %v5180_v54 = vadd.f32 %v5179_v16, %v12876_v31  ;;  %v14678_v16 = vld [vmem:[#allocation178_spill] sm:$0xff] }
 0x9b8   :  { %v5872_v49 = vpop.f32.mrf.mxu0 }
 0x9b9   :  { %v5283_v62 = vpop.f32.mrf.mxu3  ;;  %v5873_v33 = vadd.f32 %v13137_v14, %v5872_v49  ;;  %v5976_v20 = vpop.f32.mrf.mxu1 }
 0x9ba   :  { %v5284_v48 = vadd.f32 %v5283_v62, %v5180_v54 }
 0x9bb   :  { %v13188_v5 = vadd.f32 %v5976_v20, %v5873_v33 }
 0x9bc   :  { %v5390_v43 = vmax.f32 %v5284_v48, 0.0 }
 0x9be   :  { %v5181_v44 = vpop.f32.mrf.mxu2 }
 0x9bf   :  { %v5182_v38 = vadd.f32 %v5181_v44, %v12892_v35  ;;  %v8343_v35 = vld [vmem:[%s13714_s5 + $0x28] sm:$0xff] }
 0x9c0   :  { %v5875_v2 = vpop.f32.mrf.mxu0  ;;  %6394 = vmatpush.bf16.msrb.mxu0 %v8343_v35 }
 0x9c1   :  { %v5285_v17 = vpop.f32.mrf.mxu3  ;;  %v5876_v32 = vadd.f32 %v13137_v14, %v5875_v2  ;;  %v5979_v39 = vpop.f32.mrf.mxu1  ;;  %v8323_v2 = vld [vmem:[%s13712_s3 + $0x88] sm:$0xff] }
 0x9c2   :  { %v5286_v13 = vadd.f32 %v5285_v17, %v5182_v38  ;;  %6065 = vmatpush.bf16.msrb.mxu2 %v8323_v2 }
 0x9c3   :  { %v13192_v31 = vadd.f32 %v5979_v39, %v5876_v32  ;;  %5223 = vmatmul.bf16.gmra.mxu2 %v14675_v0  ;;  %5914 = vmatmul.bf16.gmra.mxu0 %v14676_v8 }
 0x9c4   :  { %v5394_v11 = vmax.f32 %v5286_v13, 0.0  ;;  %6018 = vmatmul.bf16.gmra.mxu1 %v14678_v16  ;;  %v8331_v13 = vld [vmem:[%s13712_s3 + $0xc8] sm:$0xff] }
 0x9c5   :  { %6169 = vmatpush.bf16.msrb.mxu3 %v8331_v13 }
 0x9c6   :  { %5327 = vmatmul.bf16.gmra.mxu3 %v14677_v40  ;;  %v13201_v54 = vpack.c.bf16 %v5394_v11, %v5390_v43  ;;  %v5184_v62 = vpop.f32.mrf.mxu2 }
 0x9c7   :  { %v5185_v49 = vadd.f32 %v5184_v62, %v12901_v45  ;;  %v14679_v62 = vld [vmem:[#allocation149_spill] sm:$0xff] }
 0x9c8   :  { %v5877_v33 = vpop.f32.mrf.mxu0 }
 0x9c9   :  { %v5288_v48 = vpop.f32.mrf.mxu3  ;;  %v5878_v44 = vadd.f32 %v13137_v14, %v5877_v33  ;;  %v5981_v38 = vpop.f32.mrf.mxu1  ;;  %v14682_v33 = vld [vmem:[#allocation179_spill] sm:$0xff] }
 0x9ca   :  { %v5289_v20 = vadd.f32 %v5288_v48, %v5185_v49  ;;  %v14680_v49 = vld [vmem:[#allocation163_spill] sm:$0xff]  ;;  %v14681_v48 = vld [vmem:[#allocation150_spill] sm:$0xff] }
 0x9cb   :  { %v13205_v17 = vadd.f32 %v5981_v38, %v5878_v44 }
 0x9cc   :  { %v5398_v40 = vmax.f32 %v5289_v20, 0.0 }
 0x9ce   :  { %v5186_v32 = vpop.f32.mrf.mxu2 }
 0x9cf   :  { %v5187_v45 = vadd.f32 %v5186_v32, %v12908_v53 }
 0x9d0   :  { %v5880_v43 = vpop.f32.mrf.mxu0 }
 0x9d1   :  { %v5290_v39 = vpop.f32.mrf.mxu3  ;;  %v5881_v0 = vadd.f32 %v13137_v14, %v5880_v43  ;;  %v5984_v8 = vpop.f32.mrf.mxu1 }
 0x9d2   :  { %v5291_v11 = vadd.f32 %v5290_v39, %v5187_v45 }
 0x9d3   :  { %v13215_v35 = vadd.f32 %v5984_v8, %v5881_v0  ;;  %5228 = vmatmul.bf16.gmra.mxu2 %v14679_v62  ;;  %5919 = vmatmul.bf16.gmra.mxu0 %v14680_v49 }
 0x9d4   :  { %v5402_v16 = vmax.f32 %v5291_v11, 0.0  ;;  %6023 = vmatmul.bf16.gmra.mxu1 %v14682_v33  ;;  %v14683_v33 = vld [vmem:[#allocation103_spill] sm:$0xff] }
 0x9d6   :  { %5332 = vmatmul.bf16.gmra.mxu3 %v14681_v48  ;;  %v13221_v44 = vpack.c.bf16 %v5402_v16, %v5398_v40  ;;  %v5189_v53 = vpop.f32.mrf.mxu2 }
 0x9d7   :  { %v5190_v38 = vadd.f32 %v5189_v53, %v12911_v55  ;;  %v14684_v53 = vld [vmem:[#allocation164_spill] sm:$0xff] }
 0x9d8   :  { %v5882_v13 = vpop.f32.mrf.mxu0 }
 0x9d9   :  { %v5293_v2 = vpop.f32.mrf.mxu3  ;;  %v5883_v20 = vadd.f32 %v13137_v14, %v5882_v13  ;;  %v5986_v45 = vpop.f32.mrf.mxu1 }
 0x9da   :  { %v5294_v32 = vadd.f32 %v5293_v2, %v5190_v38  ;;  %v14685_v38 = vld [vmem:[#allocation104_spill] sm:$0xff] }
 0x9db   :  { %v13225_v39 = vadd.f32 %v5986_v45, %v5883_v20  ;;  %v14686_v2 = vld [vmem:[#allocation180_spill] sm:$0xff] }
 0x9dc   :  { %v5406_v49 = vmax.f32 %v5294_v32, 0.0 }
 0x9de   :  { %v5191_v43 = vpop.f32.mrf.mxu2 }
 0x9df   :  { %v5192_v11 = vadd.f32 %v5191_v43, %v12918_v36 }
 0x9e0   :  { %v5885_v8 = vpop.f32.mrf.mxu0 }
 0x9e1   :  { %v5295_v0 = vpop.f32.mrf.mxu3  ;;  %v5886_v40 = vadd.f32 %v13137_v14, %v5885_v8  ;;  %v5989_v16 = vpop.f32.mrf.mxu1 }
 0x9e2   :  { %v5296_v62 = vadd.f32 %v5295_v0, %v5192_v11 }
 0x9e3   :  { %v13229_v55 = vadd.f32 %v5989_v16, %v5886_v40  ;;  %5233 = vmatmul.bf16.gmra.mxu2 %v14683_v33  ;;  %5924 = vmatmul.bf16.gmra.mxu0 %v14684_v53  ;;  %v8322_v40 = vld [vmem:[%s13712_s3 + $0x80] sm:$0xff] }
 0x9e4   :  { %v5410_v48 = vmax.f32 %v5296_v62, 0.0  ;;  %6028 = vmatmul.bf16.gmra.mxu1 %v14686_v2  ;;  %v8342_v62 = vld [vmem:[%s13714_s5 + $0x20] sm:$0xff]  ;;  %6066 = vmatpush.bf16.msrb.mxu2 %v8322_v40 }
 0x9e5   :  { %6395 = vmatpush.bf16.msrb.mxu0 %v8342_v62 }
 0x9e6   :  { %5337 = vmatmul.bf16.gmra.mxu3 %v14685_v38  ;;  %v13235_v13 = vpack.c.bf16 %v5410_v48, %v5406_v49  ;;  %v5194_v36 = vpop.f32.mrf.mxu2 }
 0x9e7   :  { %v5195_v20 = vadd.f32 %v5194_v36, %v12936_v59 }
 0x9e8   :  { %v5887_v43 = vpop.f32.mrf.mxu0 }
 0x9e9   :  { %v5298_v45 = vpop.f32.mrf.mxu3  ;;  %v5888_v32 = vadd.f32 %v13137_v14, %v5887_v43  ;;  %v5991_v0 = vpop.f32.mrf.mxu1  ;;  %v14688_v43 = vld [vmem:[#allocation165_spill] sm:$0xff] }
 0x9ea   :  { %v5299_v11 = vadd.f32 %v5298_v45, %v5195_v20  ;;  %v14687_v45 = vld [vmem:[#allocation153_spill] sm:$0xff] }
 0x9eb   :  { %v13239_v8 = vadd.f32 %v5991_v0, %v5888_v32  ;;  %v8330_v32 = vld [vmem:[%s13712_s3 + $0xc0] sm:$0xff] }
 0x9ec   :  { %v5414_v2 = vmax.f32 %v5299_v11, 0.0  ;;  %v14689_v0 = vld [vmem:[#allocation154_spill] sm:$0xff]  ;;  %6170 = vmatpush.bf16.msrb.mxu3 %v8330_v32 }
 0x9ee   :  { %v5196_v16 = vpop.f32.mrf.mxu2 }
 0x9ef   :  { %v5197_v59 = vadd.f32 %v5196_v16, %v12943_v6  ;;  %v14690_v6 = vld [vmem:[#allocation181_spill] sm:$0xff] }
 0x9f0   :  { %v5890_v48 = vpop.f32.mrf.mxu0 }
 0x9f1   :  { %v5300_v49 = vpop.f32.mrf.mxu3  ;;  %v5891_v53 = vadd.f32 %v13137_v14, %v5890_v48  ;;  %v5994_v38 = vpop.f32.mrf.mxu1 }
 0x9f2   :  { %v5301_v33 = vadd.f32 %v5300_v49, %v5197_v59 }
 0x9f3   :  { %v13249_v20 = vadd.f32 %v5994_v38, %v5891_v53  ;;  %5238 = vmatmul.bf16.gmra.mxu2 %v14687_v45  ;;  %5929 = vmatmul.bf16.gmra.mxu0 %v14688_v43 }
 0x9f4   :  { %v5418_v36 = vmax.f32 %v5301_v33, 0.0  ;;  %6033 = vmatmul.bf16.gmra.mxu1 %v14690_v6 }
 0x9f6   :  { %5342 = vmatmul.bf16.gmra.mxu3 %v14689_v0  ;;  %v13258_v62 = vpack.c.bf16 %v5418_v36, %v5414_v2  ;;  %v5199_v40 = vpop.f32.mrf.mxu2  ;;  %v14691_v2 = vld [vmem:[#allocation166_spill] sm:$0xff]  ;;  %v8349_v36 = vld [vmem:[%s13715_s7 + $0x18] sm:$0xff] }
 0x9f7   :  { %v5200_v11 = vadd.f32 %v5199_v40, %v12946_v51  ;;  %v14692_v51 = vld [vmem:[#allocation182_spill] sm:$0xff]  ;;  %6651 = vmatpush.bf16.msrb.mxu1 %v8349_v36 }
 0x9f8   :  { %v5892_v59 = vpop.f32.mrf.mxu0 }
 0x9f9   :  { %v5303_v16 = vpop.f32.mrf.mxu3  ;;  %v5893_v48 = vadd.f32 %v13137_v14, %v5892_v59  ;;  %v5996_v33 = vpop.f32.mrf.mxu1 }
 0x9fa   :  { %v5304_v49 = vadd.f32 %v5303_v16, %v5200_v11 }
 0x9fb   :  { %v13262_v53 = vadd.f32 %v5996_v33, %v5893_v48 }
 0x9fc   :  { %v5422_v6 = vmax.f32 %v5304_v49, 0.0 }
 0x9fe   :  { %v5201_v38 = vpop.f32.mrf.mxu2 }
 0x9ff   :  { %v5202_v45 = vadd.f32 %v5201_v38, %v12959_v61 }
 0xa01   :  { %v5305_v43 = vpop.f32.mrf.mxu3 }
 0xa02   :  { %v5306_v0 = vadd.f32 %v5305_v43, %v5202_v45  ;;  %v14693_v45 = vld [vmem:[#allocation117_spill] sm:$0xff]  ;;  %v14694_v43 = vld [vmem:[#allocation167_spill] sm:$0xff] }
 0xa03   :  { %5243 = vmatmul.bf16.gmra.mxu2 %v14372_v60  ;;  %5934 = vmatmul.bf16.gmra.mxu0 %v14691_v2 }
 0xa04   :  { %v5426_v32 = vmax.f32 %v5306_v0, 0.0  ;;  %6038 = vmatmul.bf16.gmra.mxu1 %v14692_v51  ;;  %v8341_v0 = vld [vmem:[%s13714_s5 + $0x18] sm:$0xff] }
 0xa05   :  { %6396 = vmatpush.bf16.msrb.mxu0 %v8341_v0 }
 0xa06   :  { %5347 = vmatmul.bf16.gmra.mxu3 %v14536_v28  ;;  %v13272_v40 = vpack.c.bf16 %v5426_v32, %v5422_v6  ;;  %v5204_v11 = vpop.f32.mrf.mxu2  ;;  %v14695_v6 = vld [vmem:[#allocation118_spill] sm:$0xff] }
 0xa07   :  { %v5205_v61 = vadd.f32 %v5204_v11, %v12971_v46  ;;  %v14696_v46 = vld [vmem:[#allocation183_spill] sm:$0xff] }
 0xa09   :  { %v5308_v16 = vpop.f32.mrf.mxu3 }
 0xa0a   :  { %v5309_v59 = vadd.f32 %v5308_v16, %v5205_v61 }
 0xa0c   :  { %v5430_v28 = vmax.f32 %v5309_v59, 0.0 }
 0xa0e   :  { %v5206_v49 = vpop.f32.mrf.mxu2 }
 0xa0f   :  { %v5207_v60 = vadd.f32 %v5206_v49, %v12993_v18 }
 0xa11   :  { %v5310_v48 = vpop.f32.mrf.mxu3 }
 0xa12   :  { %v5311_v33 = vadd.f32 %v5310_v48, %v5207_v60  ;;  %v14697_v48 = vld [vmem:[#allocation168_spill] sm:$0xff] }
 0xa13   :  { %5248 = vmatmul.bf16.gmra.mxu2 %v14693_v45  ;;  %5939 = vmatmul.bf16.gmra.mxu0 %v14694_v43 }
 0xa14   :  { %v5434_v38 = vmax.f32 %v5311_v33, 0.0  ;;  %6043 = vmatmul.bf16.gmra.mxu1 %v14696_v46  ;;  %v14698_v33 = vld [vmem:[#allocation160_spill] sm:$0xff] }
 0xa16   :  { %5352 = vmatmul.bf16.gmra.mxu3 %v14695_v6  ;;  %v13283_v32 = vpack.c.bf16 %v5434_v38, %v5430_v28  ;;  %v5209_v18 = vpop.f32.mrf.mxu2  ;;  %v14699_v28 = vld [vmem:[#allocation184_spill] sm:$0xff] }
 0xa17   :  { %v5210_v2 = vadd.f32 %v5209_v18, %v13008_v56 }
 0xa19   :  { %v5313_v51 = vpop.f32.mrf.mxu3 }
 0xa1a   :  { %v5314_v36 = vadd.f32 %v5313_v51, %v5210_v2  ;;  %v14700_v51 = vld [vmem:[#allocation169_spill] sm:$0xff] }
 0xa1c   :  { %v5438_v49 = vmax.f32 %v5314_v36, 0.0  ;;  %v14701_v36 = vld [vmem:[#allocation88_spill] sm:$0xff] }
 0xa1e   :  { %v5211_v11 = vpop.f32.mrf.mxu2 }
 0xa1f   :  { %v5212_v61 = vadd.f32 %v5211_v11, %v13015_v7  ;;  %v14702_v11 = vld [vmem:[#allocation185_spill] sm:$0xff] }
 0xa21   :  { %v5315_v16 = vpop.f32.mrf.mxu3 }
 0xa22   :  { %v5316_v59 = vadd.f32 %v5315_v16, %v5212_v61 }
 0xa23   :  { %5253 = vmatmul.bf16.gmra.mxu2 %v10943_v34  ;;  %5944 = vmatmul.bf16.gmra.mxu0 %v14697_v48 }
 0xa24   :  { %v5442_v60 = vmax.f32 %v5316_v59, 0.0  ;;  %6048 = vmatmul.bf16.gmra.mxu1 %v14699_v28 }
 0xa26   :  { %5357 = vmatmul.bf16.gmra.mxu3 %v14698_v33  ;;  %v13291_v38 = vpack.c.bf16 %v5442_v60, %v5438_v49  ;;  %v5214_v56 = vpop.f32.mrf.mxu2 }
 0xa27   :  { %v5215_v45 = vadd.f32 %v5214_v56, %v13018_v10  ;;  %v8340_v10 = vld [vmem:[%s13714_s5 + $0x10] sm:$0xff] }
 0xa28   :  { %6397 = vmatpush.bf16.msrb.mxu0 %v8340_v10 }
 0xa29   :  { %v5318_v43 = vpop.f32.mrf.mxu3 }
 0xa2a   :  { %v5319_v0 = vadd.f32 %v5318_v43, %v5215_v45 }
 0xa2c   :  { %v5446_v2 = vmax.f32 %v5319_v0, 0.0 }
 0xa2e   :  { %v5216_v7 = vpop.f32.mrf.mxu2 }
 0xa2f   :  { %v5217_v6 = vadd.f32 %v5216_v7, %v13025_v9 }
 0xa31   :  { %v5320_v46 = vpop.f32.mrf.mxu3 }
 0xa32   :  { %v5321_v18 = vadd.f32 %v5320_v46, %v5217_v6 }
 0xa33   :  { %5949 = vmatmul.bf16.gmra.mxu0 %v14700_v51  ;;  %6067 = vmatmul.bf16.vlgmr.msrb.gmra.mxu2 %v14701_v36  ;;  %v14704_v36 = vld [vmem:[#allocation2_spill] sm:$0xff] }
 0xa34   :  { %v5450_v34 = vmax.f32 %v5321_v18, 0.0  ;;  %6053 = vmatmul.bf16.gmra.mxu1 %v14702_v11 }
 0xa36   :  { %6171 = vmatmul.bf16.vlgmr.msrb.gmra.mxu3 %v13147_v25  ;;  %v13302_v61 = vpack.c.bf16 %v5450_v34, %v5446_v2  ;;  %v5219_v16 = vpop.f32.mrf.mxu2  ;;  %v14703_v25 = vld [vmem:[#allocation99_spill] sm:$0xff] }
 0xa37   :  { %v5220_v9 = vadd.f32 %v5219_v16, %v13034_v22 }
 0xa39   :  { %v5323_v59 = vpop.f32.mrf.mxu3 }
 0xa3a   :  { %v5324_v49 = vadd.f32 %v5323_v59, %v5220_v9  ;;  %v8339_v59 = vld [vmem:[%s13714_s5 + $0x8] sm:$0xff] }
 0xa3b   :  { %6398 = vmatpush.bf16.msrb.mxu0 %v8339_v59 }
 0xa3c   :  { %v5454_v56 = vmax.f32 %v5324_v49, 0.0 }
 0xa3e   :  { %v5221_v60 = vpop.f32.mrf.mxu2 }
 0xa3f   :  { %v5222_v48 = vadd.f32 %v5221_v60, %v13041_v15 }
 0xa41   :  { %v5325_v33 = vpop.f32.mrf.mxu3 }
 0xa42   :  { %v5326_v28 = vadd.f32 %v5325_v33, %v5222_v48 }
 0xa43   :  { %6072 = vmatmul.bf16.gmra.mxu2 %v14703_v25 }
 0xa44   :  { %v5458_v45 = vmax.f32 %v5326_v28, 0.0 }
 0xa46   :  { %6176 = vmatmul.bf16.gmra.mxu3 %v13170_v23  ;;  %v13308_v43 = vpack.c.bf16 %v5458_v45, %v5454_v56  ;;  %v5224_v0 = vpop.f32.mrf.mxu2  ;;  %v8348_v23 = vld [vmem:[%s13715_s7 + $0x10] sm:$0xff] }
 0xa47   :  { %v5225_v7 = vadd.f32 %v5224_v0, %v13044_v30  ;;  %6652 = vmatpush.bf16.msrb.mxu1 %v8348_v23  ;;  %v13319_v30 = vpop.f32.mrf.mxu0  ;;  %v14705_v45 = vld [vmem:[#allocation4_spill] sm:$0xff] }
 0xa49   :  { %v5328_v6 = vpop.f32.mrf.mxu3 }
 0xa4a   :  { %v5329_v22 = vadd.f32 %v5328_v6, %v5225_v7 }
 0xa4c   :  { %v5462_v34 = vmax.f32 %v5329_v22, 0.0 }
 0xa4e   :  { %v5226_v46 = vpop.f32.mrf.mxu2 }
 0xa4f   :  { %v5227_v18 = vadd.f32 %v5226_v46, %v13051_v4 }
 0xa51   :  { %v5330_v2 = vpop.f32.mrf.mxu3 }
 0xa52   :  { %v5331_v15 = vadd.f32 %v5330_v2, %v5227_v18 }
 0xa53   :  { %6077 = vmatmul.bf16.gmra.mxu2 %v14704_v36 }
 0xa54   :  { %v5466_v51 = vmax.f32 %v5331_v15, 0.0 }
 0xa56   :  { %6181 = vmatmul.bf16.gmra.mxu3 %v13184_v1  ;;  %v13317_v11 = vpack.c.bf16 %v5466_v51, %v5462_v34  ;;  %v5229_v10 = vpop.f32.mrf.mxu2  ;;  %v13326_v1 = vpop.f32.mrf.mxu0  ;;  %v14706_v51 = vld [vmem:[#allocation6_spill] sm:$0xff] }
 0xa57   :  { %v5230_v4 = vadd.f32 %v5229_v10, %v13057_v21 }
 0xa59   :  { %v5333_v16 = vpop.f32.mrf.mxu3 }
 0xa5a   :  { %v5334_v9 = vadd.f32 %v5333_v16, %v5230_v4 }
 0xa5c   :  { %v5470_v28 = vmax.f32 %v5334_v9, 0.0 }
 0xa5e   :  { %v5231_v49 = vpop.f32.mrf.mxu2  ;;  %v13333_v22 = vpop.f32.mrf.mxu0 }
 0xa5f   :  { %v5232_v60 = vadd.f32 %v5231_v49, %v13067_v27 }
 0xa61   :  { %v5335_v48 = vpop.f32.mrf.mxu3 }
 0xa62   :  { %v5336_v33 = vadd.f32 %v5335_v48, %v5232_v60 }
 0xa63   :  { %6082 = vmatmul.bf16.gmra.mxu2 %v14705_v45 }
 0xa64   :  { %v5474_v56 = vmax.f32 %v5336_v33, 0.0  ;;  %v14707_v33 = vld [vmem:[#allocation8_spill] sm:$0xff] }
 0xa66   :  { %6186 = vmatmul.bf16.gmra.mxu3 %v13201_v54  ;;  %v13330_v21 = vpack.c.bf16 %v5474_v56, %v5470_v28  ;;  %v5234_v25 = vpop.f32.mrf.mxu2  ;;  %v13337_v36 = vpop.f32.mrf.mxu0 }
 0xa67   :  { %v5235_v0 = vadd.f32 %v5234_v25, %v13070_v19 }
 0xa69   :  { %v5338_v7 = vpop.f32.mrf.mxu3 }
 0xa6a   :  { %v5339_v6 = vadd.f32 %v5338_v7, %v5235_v0 }
 0xa6c   :  { %v5478_v15 = vmax.f32 %v5339_v6, 0.0 }
 0xa6e   :  { %v5236_v27 = vpop.f32.mrf.mxu2  ;;  %v13343_v16 = vpop.f32.mrf.mxu0 }
 0xa6f   :  { %v5237_v46 = vadd.f32 %v5236_v27, %v13077_v24 }
 0xa71   :  { %v5340_v18 = vpop.f32.mrf.mxu3 }
 0xa72   :  { %v5341_v2 = vadd.f32 %v5340_v18, %v5237_v46 }
 0xa73   :  { %6087 = vmatmul.bf16.gmra.mxu2 %v14706_v51 }
 0xa74   :  { %v5482_v34 = vmax.f32 %v5341_v2, 0.0 }
 0xa76   :  { %6191 = vmatmul.bf16.gmra.mxu3 %v13221_v44  ;;  %v13340_v54 = vpack.c.bf16 %v5482_v34, %v5478_v15  ;;  %v5239_v19 = vpop.f32.mrf.mxu2  ;;  %v8338_v44 = vld [vmem:[%s13714_s5] sm:$0xff] }
 0xa77   :  { %v5240_v23 = vadd.f32 %v5239_v19, %v13080_v41  ;;  %6399 = vmatpush.bf16.msrb.mxu0 %v8338_v44 }
 0xa79   :  { %v5343_v10 = vpop.f32.mrf.mxu3 }
 0xa7a   :  { %v5344_v4 = vadd.f32 %v5343_v10, %v5240_v23 }
 0xa7c   :  { %v5486_v60 = vmax.f32 %v5344_v4, 0.0 }
 0xa7e   :  { %v5241_v24 = vpop.f32.mrf.mxu2 }
 0xa7f   :  { %v5242_v9 = vadd.f32 %v5241_v24, %v13093_v58  ;;  %v13354_v58 = vpop.f32.mrf.mxu0 }
 0xa81   :  { %v5345_v59 = vpop.f32.mrf.mxu3 }
 0xa82   :  { %v5346_v49 = vadd.f32 %v5345_v59, %v5242_v9 }
 0xa83   :  { %6092 = vmatmul.bf16.gmra.mxu2 %v14707_v33 }
 0xa84   :  { %v5490_v48 = vmax.f32 %v5346_v49, 0.0  ;;  %v14709_v49 = vld [vmem:[#allocation12_spill] sm:$0xff] }
 0xa86   :  { %6196 = vmatmul.bf16.gmra.mxu3 %v13235_v13  ;;  %v13351_v41 = vpack.c.bf16 %v5490_v48, %v5486_v60  ;;  %v5244_v28 = vpop.f32.mrf.mxu2  ;;  %v14708_v13 = vld [vmem:[#allocation10_spill] sm:$0xff] }
 0xa87   :  { %v5245_v56 = vadd.f32 %v5244_v28, %v13096_v47  ;;  %v13357_v46 = vpop.f32.mrf.mxu0 }
 0xa89   :  { %v5348_v45 = vpop.f32.mrf.mxu3 }
 0xa8a   :  { %v5349_v25 = vadd.f32 %v5348_v45, %v5245_v56 }
 0xa8c   :  { %v5494_v18 = vmax.f32 %v5349_v25, 0.0 }
 0xa8e   :  { %v5246_v0 = vpop.f32.mrf.mxu2 }
 0xa8f   :  { %v5247_v7 = vadd.f32 %v5246_v0, %v13103_v12  ;;  %v8347_v12 = vld [vmem:[%s13715_s7 + $0x8] sm:$0xff]  ;;  %v13367_v23 = vpop.f32.mrf.mxu0 }
 0xa90   :  { %6653 = vmatpush.bf16.msrb.mxu1 %v8347_v12 }
 0xa91   :  { %v5350_v6 = vpop.f32.mrf.mxu3 }
 0xa92   :  { %v5351_v27 = vadd.f32 %v5350_v6, %v5247_v7 }
 0xa93   :  { %6097 = vmatmul.bf16.gmra.mxu2 %v14708_v13 }
 0xa94   :  { %v5498_v2 = vmax.f32 %v5351_v27, 0.0  ;;  %v14710_v27 = vld [vmem:[#allocation14_spill] sm:$0xff] }
 0xa96   :  { %6201 = vmatmul.bf16.gmra.mxu3 %v13258_v62  ;;  %v13361_v15 = vpack.c.bf16 %v5498_v2, %v5494_v18  ;;  %v5249_v47 = vpop.f32.mrf.mxu2 }
 0xa97   :  { %v5250_v34 = vadd.f32 %v5249_v47, %v13106_v57  ;;  %v13374_v60 = vpop.f32.mrf.mxu0 }
 0xa99   :  { %v5353_v51 = vpop.f32.mrf.mxu3 }
 0xa9a   :  { %v5354_v19 = vadd.f32 %v5353_v51, %v5250_v34 }
 0xa9c   :  { %v5502_v62 = vmax.f32 %v5354_v19, 0.0 }
 0xa9e   :  { %v5251_v10 = vpop.f32.mrf.mxu2 }
 0xa9f   :  { %v5252_v4 = vadd.f32 %v5251_v10, %v13113_v26  ;;  %v13378_v25 = vpop.f32.mrf.mxu0 }
 0xaa1   :  { %v5355_v24 = vpop.f32.mrf.mxu3 }
 0xaa2   :  { %v5356_v9 = vadd.f32 %v5355_v24, %v5252_v4  ;;  %v14711_v4 = vld [vmem:[#allocation16_spill] sm:$0xff] }
 0xaa3   :  { %6102 = vmatmul.bf16.gmra.mxu2 %v14709_v49 }
 0xaa4   :  { %v5506_v59 = vmax.f32 %v5356_v9, 0.0 }
 0xaa6   :  { %6206 = vmatmul.bf16.gmra.mxu3 %v13272_v40  ;;  %v13372_v57 = vpack.c.bf16 %v5506_v59, %v5502_v62  ;;  %v5254_v48 = vpop.f32.mrf.mxu2 }
 0xaa7   :  { %v5255_v33 = vadd.f32 %v5254_v48, %v13125_v42  ;;  %v13384_v42 = vpop.f32.mrf.mxu0 }
 0xaa9   :  { %v5358_v44 = vpop.f32.mrf.mxu3 }
 0xaaa   :  { %v5359_v28 = vadd.f32 %v5358_v44, %v5255_v33 }
 0xaac   :  { %v5510_v7 = vmax.f32 %v5359_v28, 0.0 }
 0xaae   :  { %v5256_v56 = vpop.f32.mrf.mxu2 }
 0xaaf   :  { %v5257_v26 = vadd.f32 %v5256_v56, %v13132_v37  ;;  %v13389_v24 = vpop.f32.mrf.mxu0 }
 0xab1   :  { %v5360_v45 = vpop.f32.mrf.mxu3 }
 0xab2   :  { %v5361_v0 = vadd.f32 %v5360_v45, %v5257_v26  ;;  %v14712_v26 = vld [vmem:[#allocation18_spill] sm:$0xff] }
 0xab3   :  { %6107 = vmatmul.bf16.gmra.mxu2 %v14710_v27 }
 0xab4   :  { %v5514_v6 = vmax.f32 %v5361_v0, 0.0 }
 0xab6   :  { %6211 = vmatmul.bf16.gmra.mxu3 %v13283_v32  ;;  %v13382_v40 = vpack.c.bf16 %v5514_v6, %v5510_v7  ;;  %v6068_v18 = vpop.f32.mrf.mxu2 }
 0xab7   :  { %v6069_v13 = vadd.f32 %v6068_v18, %v13141_v52  ;;  %v13393_v59 = vpop.f32.mrf.mxu0 }
 0xab9   :  { %v6172_v2 = vpop.f32.mrf.mxu3 }
 0xaba   :  { %v6173_v37 = vadd.f32 %v6172_v2, %v6069_v13  ;;  %v13402_v2 = vpop.f32.mrf.mxu1 }
 0xabc   :  { %v6267_v12 = vmax.f32 %v6173_v37, 0.0 }
 0xabe   :  { %v6070_v47 = vpop.f32.mrf.mxu2 }
 0xabf   :  { %v6071_v34 = vadd.f32 %v6070_v47, %v13151_v3  ;;  %v13398_v7 = vpop.f32.mrf.mxu0 }
 0xac1   :  { %v6174_v51 = vpop.f32.mrf.mxu3 }
 0xac2   :  { %v6175_v19 = vadd.f32 %v6174_v51, %v6071_v34  ;;  %v14713_v34 = vld [vmem:[#allocation20_spill] sm:$0xff] }
 0xac3   :  { %6112 = vmatmul.bf16.gmra.mxu2 %v14711_v4 }
 0xac4   :  { %v6268_v10 = vmax.f32 %v6175_v19, 0.0 }
 0xac6   :  { %6216 = vmatmul.bf16.gmra.mxu3 %v13291_v38  ;;  %v6305_v32 = vpack.c.bf16 %v6268_v10, %v6267_v12  ;;  %v6073_v9 = vpop.f32.mrf.mxu2  ;;  %v8346_v10 = vld [vmem:[%s13715_s7] sm:$0xff] }
 0xac7   :  { %v6074_v52 = vadd.f32 %v6073_v9, %v13158_v29  ;;  %v13404_v47 = vpop.f32.mrf.mxu0  ;;  %6654 = vmatpush.bf16.msrb.mxu1 %v8346_v10 }
 0xac8   :  { %6400 = vmatmul.bf16.vlgmr.msrb.gmra.mxu0 %v6305_v32 }
 0xac9   :  { %v6177_v62 = vpop.f32.mrf.mxu3 }
 0xaca   :  { %v6178_v3 = vadd.f32 %v6177_v62, %v6074_v52 }
 0xacc   :  { %v6269_v28 = vmax.f32 %v6178_v3, 0.0 }
 0xace   :  { %v6075_v49 = vpop.f32.mrf.mxu2 }
 0xacf   :  { %v6076_v48 = vadd.f32 %v6075_v49, %v13174_v50  ;;  %v13414_v4 = vpop.f32.mrf.mxu0 }
 0xad1   :  { %v6179_v33 = vpop.f32.mrf.mxu3 }
 0xad2   :  { %v6180_v44 = vadd.f32 %v6179_v33, %v6076_v48  ;;  %v14714_v48 = vld [vmem:[#allocation22_spill] sm:$0xff] }
 0xad3   :  { %6117 = vmatmul.bf16.gmra.mxu2 %v14712_v26 }
 0xad4   :  { %v6270_v56 = vmax.f32 %v6180_v44, 0.0 }
 0xad6   :  { %6221 = vmatmul.bf16.gmra.mxu3 %v13302_v61  ;;  %v6306_v38 = vpack.c.bf16 %v6270_v56, %v6269_v28  ;;  %v6078_v45 = vpop.f32.mrf.mxu2 }
 0xad7   :  { %v6079_v29 = vadd.f32 %v6078_v45, %v13178_v63  ;;  %v13408_v63 = vpop.f32.mrf.mxu1  ;;  %v13421_v44 = vpop.f32.mrf.mxu0 }
 0xad8   :  { %6405 = vmatmul.bf16.gmra.mxu0 %v6306_v38 }
 0xad9   :  { %v6182_v0 = vpop.f32.mrf.mxu3 }
 0xada   :  { %v6183_v27 = vadd.f32 %v6182_v0, %v6079_v29 }
 0xadc   :  { %v6271_v37 = vmax.f32 %v6183_v27, 0.0 }
 0xade   :  { %v6080_v6 = vpop.f32.mrf.mxu2 }
 0xadf   :  { %v6081_v50 = vadd.f32 %v6080_v6, %v13188_v5  ;;  %v13427_v6 = vpop.f32.mrf.mxu0 }
 0xae1   :  { %v6184_v18 = vpop.f32.mrf.mxu3 }
 0xae2   :  { %v6185_v13 = vadd.f32 %v6184_v18, %v6081_v50  ;;  %v14715_v18 = vld [vmem:[#allocation24_spill] sm:$0xff] }
 0xae3   :  { %6122 = vmatmul.bf16.gmra.mxu2 %v14713_v34 }
 0xae4   :  { %v6272_v61 = vmax.f32 %v6185_v13, 0.0 }
 0xae6   :  { %6226 = vmatmul.bf16.gmra.mxu3 %v13308_v43  ;;  %v6307_v51 = vpack.c.bf16 %v6272_v61, %v6271_v37  ;;  %v6083_v19 = vpop.f32.mrf.mxu2 }
 0xae7   :  { %v6084_v5 = vadd.f32 %v6083_v19, %v13192_v31  ;;  %v13419_v31 = vpop.f32.mrf.mxu1  ;;  %v13433_v34 = vpop.f32.mrf.mxu0 }
 0xae8   :  { %6410 = vmatmul.bf16.gmra.mxu0 %v6307_v51 }
 0xae9   :  { %v6187_v12 = vpop.f32.mrf.mxu3 }
 0xaea   :  { %v6188_v9 = vadd.f32 %v6187_v12, %v6084_v5 }
 0xaec   :  { %v6273_v49 = vmax.f32 %v6188_v9, 0.0 }
 0xaee   :  { %v6085_v32 = vpop.f32.mrf.mxu2 }
 0xaef   :  { %v6086_v62 = vadd.f32 %v6085_v32, %v13205_v17  ;;  %v13424_v17 = vpop.f32.mrf.mxu1 }
 0xaf1   :  { %v6189_v43 = vpop.f32.mrf.mxu3 }
 0xaf2   :  { %v6190_v52 = vadd.f32 %v6189_v43, %v6086_v62  ;;  %v14716_v62 = vld [vmem:[#allocation26_spill] sm:$0xff]  ;;  %v13440_v43 = vpop.f32.mrf.mxu0 }
 0xaf3   :  { %6127 = vmatmul.bf16.gmra.mxu2 %v14714_v48 }
 0xaf4   :  { %v6274_v3 = vmax.f32 %v6190_v52, 0.0 }
 0xaf6   :  { %6231 = vmatmul.bf16.gmra.mxu3 %v13317_v11  ;;  %v6308_v33 = vpack.c.bf16 %v6274_v3, %v6273_v49  ;;  %v6088_v28 = vpop.f32.mrf.mxu2 }
 0xaf7   :  { %v6089_v26 = vadd.f32 %v6088_v28, %v13215_v35  ;;  %v13431_v35 = vpop.f32.mrf.mxu1 }
 0xaf8   :  { %6415 = vmatmul.bf16.gmra.mxu0 %v6308_v33 }
 0xaf9   :  { %v6192_v56 = vpop.f32.mrf.mxu3 }
 0xafa   :  { %v6193_v45 = vadd.f32 %v6192_v56, %v6089_v26 }
 0xafc   :  { %v6275_v27 = vmax.f32 %v6193_v45, 0.0 }
 0xafe   :  { %v6090_v38 = vpop.f32.mrf.mxu2 }
 0xaff   :  { %v6091_v0 = vadd.f32 %v6090_v38, %v13225_v39  ;;  %v13437_v32 = vpop.f32.mrf.mxu1 }
 0xb01   :  { %v6194_v29 = vpop.f32.mrf.mxu3 }
 0xb02   :  { %v6195_v11 = vadd.f32 %v6194_v29, %v6091_v0  ;;  %v14717_v29 = vld [vmem:[#allocation28_spill] sm:$0xff] }
 0xb03   :  { %6132 = vmatmul.bf16.gmra.mxu2 %v14715_v18 }
 0xb04   :  { %v6276_v50 = vmax.f32 %v6195_v11, 0.0 }
 0xb06   :  { %6236 = vmatmul.bf16.gmra.mxu3 %v13330_v21  ;;  %v6309_v13 = vpack.c.bf16 %v6276_v50, %v6275_v27  ;;  %v6093_v37 = vpop.f32.mrf.mxu2 }
 0xb07   :  { %v6094_v39 = vadd.f32 %v6093_v37, %v13229_v55  ;;  %v13444_v48 = vpop.f32.mrf.mxu1 }
 0xb08   :  { %6420 = vmatmul.bf16.gmra.mxu0 %v6309_v13  ;;  %v5898_v13 = vadd.f32 %v13137_v14, %v13326_v1  ;;  %v5901_v1 = vadd.f32 %v13137_v14, %v13333_v22 }
 0xb09   :  { %v6197_v61 = vpop.f32.mrf.mxu3 }
 0xb0a   :  { %v6198_v19 = vadd.f32 %v6197_v61, %v6094_v39  ;;  %v6002_v61 = vadd.f32 %v13408_v63, %v5898_v13 }
 0xb0c   :  { %v6277_v9 = vmax.f32 %v6198_v19, 0.0 }
 0xb0e   :  { %v6095_v51 = vpop.f32.mrf.mxu2 }
 0xb0f   :  { %v6096_v12 = vadd.f32 %v6095_v51, %v13239_v8  ;;  %v13446_v8 = vpop.f32.mrf.mxu0  ;;  %v13453_v50 = vpop.f32.mrf.mxu1 }
 0xb11   :  { %v6199_v5 = vpop.f32.mrf.mxu3 }
 0xb12   :  { %v6200_v10 = vadd.f32 %v6199_v5, %v6096_v12 }
 0xb13   :  { %6137 = vmatmul.bf16.gmra.mxu2 %v14716_v62 }
 0xb14   :  { %v6278_v21 = vmax.f32 %v6200_v10, 0.0 }
 0xb16   :  { %6241 = vmatmul.bf16.gmra.mxu3 %v13340_v54  ;;  %v6310_v52 = vpack.c.bf16 %v6278_v21, %v6277_v9  ;;  %v6098_v49 = vpop.f32.mrf.mxu2  ;;  %v5896_v54 = vadd.f32 %v13137_v14, %v13319_v30  ;;  %v14718_v21 = vld [vmem:[#allocation30_spill] sm:$0xff] }
 0xb17   :  { %v6099_v55 = vadd.f32 %v6098_v49, %v13249_v20  ;;  %v13455_v18 = vpop.f32.mrf.mxu0  ;;  %v13461_v12 = vpop.f32.mrf.mxu1  ;;  %v5903_v49 = vadd.f32 %v13137_v14, %v13337_v36  ;;  %v13482_v14 = vld [vmem:[%s13713_s4] ss:$0 sm:$0xff] }
 0xb18   :  { %6425 = vmatmul.bf16.gmra.mxu0 %v6310_v52  ;;  %v6005_v52 = vadd.f32 %v13419_v31, %v5901_v1  ;;  %v5906_v36 = vadd.f32 %v13482_v14, %v13343_v16 }
 0xb19   :  { %v6202_v3 = vpop.f32.mrf.mxu3 }
 0xb1a   :  { %v6203_v28 = vadd.f32 %v6202_v3, %v6099_v55 }
 0xb1c   :  { %v6279_v45 = vmax.f32 %v6203_v28, 0.0  ;;  %v6007_v28 = vadd.f32 %v13424_v17, %v5903_v49 }
 0xb1e   :  { %v6100_v33 = vpop.f32.mrf.mxu2 }
 0xb1f   :  { %v6101_v56 = vadd.f32 %v6100_v33, %v13262_v53  ;;  %v6000_v53 = vadd.f32 %v13402_v2, %v5896_v54  ;;  %v13463_v5 = vpop.f32.mrf.mxu0  ;;  %v13472_v55 = vpop.f32.mrf.mxu1 }
 0xb21   :  { %v6204_v26 = vpop.f32.mrf.mxu3 }
 0xb22   :  { %v6205_v38 = vadd.f32 %v6204_v26, %v6101_v56 }
 0xb23   :  { %6142 = vmatmul.bf16.gmra.mxu2 %v14717_v29  ;;  %v14719_v29 = vld [vmem:[#allocation32_spill] sm:$0xff] }
 0xb24   :  { %v6280_v0 = vmax.f32 %v6205_v38, 0.0 }
 0xb26   :  { %6246 = vmatmul.bf16.gmra.mxu3 %v13351_v41  ;;  %v6311_v20 = vpack.c.bf16 %v6280_v0, %v6279_v45  ;;  %v6103_v11 = vpop.f32.mrf.mxu2 }
 0xb27   :  { %v6104_v37 = vadd.f32 %v6103_v11, %v6000_v53  ;;  %v13474_v33 = vpop.f32.mrf.mxu0  ;;  %v13486_v54 = vpop.f32.mrf.mxu1  ;;  %v13491_v11 = vld [vmem:[%s13716_s6] ss:$0 sm:$0xff]  ;;  %v5908_v53 = vadd.f32 %v13482_v14, %v13354_v58 }
 0xb28   :  { %6430 = vmatmul.bf16.gmra.mxu0 %v6311_v20 }
 0xb29   :  { %v6207_v27 = vpop.f32.mrf.mxu3 }
 0xb2a   :  { %v6208_v39 = vadd.f32 %v6207_v27, %v6104_v37 }
 0xb2c   :  { %v6281_v10 = vmax.f32 %v6208_v39, 0.0 }
 0xb2e   :  { %v6105_v41 = vpop.f32.mrf.mxu2 }
 0xb2f   :  { %v6106_v51 = vadd.f32 %v6105_v41, %v6002_v61  ;;  %v6012_v61 = vadd.f32 %v13437_v32, %v5908_v53 }
 0xb31   :  { %v6209_v30 = vpop.f32.mrf.mxu3 }
 0xb32   :  { %v6210_v19 = vadd.f32 %v6209_v30, %v6106_v51 }
 0xb33   :  { %6147 = vmatmul.bf16.gmra.mxu2 %v14718_v21  ;;  %v13499_v21 = vpop.f32.mrf.mxu1 }
 0xb34   :  { %v6282_v9 = vmax.f32 %v6210_v19, 0.0 }
 0xb36   :  { %6251 = vmatmul.bf16.gmra.mxu3 %v13361_v15  ;;  %v6312_v2 = vpack.c.bf16 %v6282_v9, %v6281_v10  ;;  %v6108_v63 = vpop.f32.mrf.mxu2 }
 0xb37   :  { %v6109_v3 = vadd.f32 %v6108_v63, %v6005_v52  ;;  %v14720_v63 = vld [vmem:[#allocation34_spill] sm:$0xff] }
 0xb38   :  { %6435 = vmatmul.bf16.gmra.mxu0 %v6312_v2 }
 0xb39   :  { %v6212_v62 = vpop.f32.mrf.mxu3 }
 0xb3a   :  { %v6213_v56 = vadd.f32 %v6212_v62, %v6109_v3  ;;  %v5911_v62 = vadd.f32 %v13482_v14, %v13357_v46 }
 0xb3c   :  { %v6283_v45 = vmax.f32 %v6213_v56, 0.0  ;;  %v13509_v56 = vpop.f32.mrf.mxu1 }
 0xb3e   :  { %v6110_v15 = vpop.f32.mrf.mxu2 }
 0xb3f   :  { %v6111_v26 = vadd.f32 %v6110_v15, %v6007_v28  ;;  %v6015_v28 = vadd.f32 %v13444_v48, %v5911_v62  ;;  %v5913_v15 = vadd.f32 %v13482_v14, %v13367_v23 }
 0xb41   :  { %v6214_v22 = vpop.f32.mrf.mxu3 }
 0xb42   :  { %v6215_v38 = vadd.f32 %v6214_v22, %v6111_v26 }
 0xb43   :  { %6152 = vmatmul.bf16.gmra.mxu2 %v14719_v29 }
 0xb44   :  { %v6284_v0 = vmax.f32 %v6215_v38, 0.0 }
 0xb45   :  { %v6401_v31 = vpop.f32.mrf.mxu0 }
 0xb46   :  { %6256 = vmatmul.bf16.gmra.mxu3 %v13372_v57  ;;  %v6313_v17 = vpack.c.bf16 %v6284_v0, %v6283_v45  ;;  %v6113_v20 = vpop.f32.mrf.mxu2  ;;  %v6010_v57 = vadd.f32 %v13431_v35, %v5906_v36  ;;  %v6402_v13 = vadd.f32 %v13491_v11, %v6401_v31 }
 0xb48   :  { %6440 = vmatmul.bf16.gmra.mxu0 %v6313_v17  ;;  %v6114_v37 = vadd.f32 %v6113_v20, %v6010_v57  ;;  %v6496_v51 = vmax.f32 %v6402_v13, 0.0  ;;  %v13515_v57 = vpop.f32.mrf.mxu1 }
 0xb49   :  { %v6217_v27 = vpop.f32.mrf.mxu3 }
 0xb4a   :  { %v6218_v30 = vadd.f32 %v6217_v27, %v6114_v37 }
 0xb4c   :  { %v6285_v58 = vmax.f32 %v6218_v30, 0.0 }
 0xb4d   :  { %v6403_v16 = vpop.f32.mrf.mxu0 }
 0xb4e   :  { %v6404_v41 = vadd.f32 %v13491_v11, %v6403_v16  ;;  %v6115_v39 = vpop.f32.mrf.mxu2 }
 0xb4f   :  { %v6116_v10 = vadd.f32 %v6115_v39, %v6012_v61 }
 0xb50   :  { %v6497_v19 = vmax.f32 %v6404_v41, 0.0  ;;  %v5918_v41 = vadd.f32 %v13482_v14, %v13378_v25 }
 0xb51   :  { %v6219_v9 = vpop.f32.mrf.mxu3 }
 0xb52   :  { %v6534_v35 = vpack.c.bf16 %v6497_v19, %v6496_v51  ;;  %v6220_v1 = vadd.f32 %v6219_v9, %v6116_v10  ;;  %v6022_v19 = vadd.f32 %v13472_v55, %v5918_v41  ;;  %v13525_v9 = vpop.f32.mrf.mxu1  ;;  %v5921_v55 = vadd.f32 %v13482_v14, %v13384_v42 }
 0xb53   :  { %6157 = vmatmul.bf16.gmra.mxu2 %v14720_v63 }
 0xb54   :  { %v6286_v2 = vmax.f32 %v6220_v1, 0.0  ;;  %8031 = vmatmul.msk.bf16.vlgmr.msrb.gmra.mxu1 %vm6589_vm0, %v6534_v35 }
 0xb55   :  { %v6406_v32 = vpop.f32.mrf.mxu0 }
 0xb56   :  { %6261 = vmatmul.bf16.gmra.mxu3 %v13382_v40  ;;  %v6314_v52 = vpack.c.bf16 %v6286_v2, %v6285_v58  ;;  %v6118_v49 = vpop.f32.mrf.mxu2  ;;  %v6407_v26 = vadd.f32 %v13491_v11, %v6406_v32  ;;  %v6017_v40 = vadd.f32 %v13453_v50, %v5913_v15  ;;  %v5916_v50 = vadd.f32 %v13482_v14, %v13374_v60 }
 0xb57   :  { %v6119_v22 = vadd.f32 %v6118_v49, %v6015_v28 }
 0xb58   :  { %6445 = vmatmul.bf16.gmra.mxu0 %v6314_v52  ;;  %v6498_v0 = vmax.f32 %v6407_v26, 0.0  ;;  %v6020_v61 = vadd.f32 %v13461_v12, %v5916_v50  ;;  %v6025_v26 = vadd.f32 %v13486_v54, %v5921_v55  ;;  %v5926_v50 = vadd.f32 %v13482_v14, %v13393_v59 }
 0xb59   :  { %v6222_v3 = vpop.f32.mrf.mxu3 }
 0xb5a   :  { %v6223_v29 = vadd.f32 %v6222_v3, %v6119_v22  ;;  %v6036_v15 = vpop.f32.mrf.mxu1  ;;  %v5923_v22 = vadd.f32 %v13482_v14, %v13389_v24 }
 0xb5c   :  { %v6287_v27 = vmax.f32 %v6223_v29, 0.0 }
 0xb5d   :  { %v6408_v38 = vpop.f32.mrf.mxu0 }
 0xb5e   :  { %v6409_v45 = vadd.f32 %v13491_v11, %v6408_v38  ;;  %v6120_v46 = vpop.f32.mrf.mxu2 }
 0xb5f   :  { %v6121_v36 = vadd.f32 %v6120_v46, %v6017_v40  ;;  %v6027_v46 = vadd.f32 %v13499_v21, %v5923_v22 }
 0xb60   :  { %v6499_v31 = vmax.f32 %v6409_v45, 0.0 }
 0xb61   :  { %v6224_v17 = vpop.f32.mrf.mxu3 }
 0xb62   :  { %v6535_v48 = vpack.c.bf16 %v6499_v31, %v6498_v0  ;;  %v6225_v20 = vadd.f32 %v6224_v17, %v6121_v36  ;;  %v6039_v54 = vpop.f32.mrf.mxu1 }
 0xb64   :  { %v6288_v23 = vmax.f32 %v6225_v20, 0.0  ;;  %8032 = vmatmul.msk.bf16.gmra.mxu1 %vm6589_vm0, %v6535_v48 }
 0xb65   :  { %v6411_v53 = vpop.f32.mrf.mxu0 }
 0xb66   :  { %v6315_v13 = vpack.c.bf16 %v6288_v23, %v6287_v27  ;;  %v6123_v37 = vpop.f32.mrf.mxu2  ;;  %v6412_v39 = vadd.f32 %v13491_v11, %v6411_v53 }
 0xb67   :  { %v6124_v51 = vadd.f32 %v6123_v37, %v6020_v61  ;;  %v5928_v61 = vadd.f32 %v13482_v14, %v13398_v7 }
 0xb68   :  { %6450 = vmatmul.bf16.gmra.mxu0 %v6315_v13  ;;  %v6500_v35 = vmax.f32 %v6412_v39, 0.0 }
 0xb69   :  { %v6227_v16 = vpop.f32.mrf.mxu3 }
 0xb6a   :  { %v6228_v1 = vadd.f32 %v6227_v16, %v6124_v51  ;;  %v6030_v16 = vadd.f32 %v13509_v56, %v5926_v50  ;;  %v6041_v51 = vpop.f32.mrf.mxu1 }
 0xb6c   :  { %v6289_v62 = vmax.f32 %v6228_v1, 0.0 }
 0xb6d   :  { %v6413_v30 = vpop.f32.mrf.mxu0 }
 0xb6e   :  { %v6414_v10 = vadd.f32 %v13491_v11, %v6413_v30  ;;  %v6125_v60 = vpop.f32.mrf.mxu2 }
 0xb6f   :  { %v6126_v2 = vadd.f32 %v6125_v60, %v6022_v19  ;;  %v6032_v19 = vadd.f32 %v13515_v57, %v5928_v61 }
 0xb70   :  { %v6501_v58 = vmax.f32 %v6414_v10, 0.0 }
 0xb71   :  { %v6229_v63 = vpop.f32.mrf.mxu3 }
 0xb72   :  { %v6536_v12 = vpack.c.bf16 %v6501_v58, %v6500_v35  ;;  %v6230_v32 = vadd.f32 %v6229_v63, %v6126_v2  ;;  %v6044_v57 = vpop.f32.mrf.mxu1 }
 0xb74   :  { %v6290_v25 = vmax.f32 %v6230_v32, 0.0  ;;  %8033 = vmatmul.msk.bf16.gmra.mxu1 %vm6589_vm0, %v6536_v12 }
 0xb75   :  { %v6416_v52 = vpop.f32.mrf.mxu0 }
 0xb76   :  { %v6316_v49 = vpack.c.bf16 %v6290_v25, %v6289_v62  ;;  %v6128_v3 = vpop.f32.mrf.mxu2  ;;  %v6417_v38 = vadd.f32 %v13491_v11, %v6416_v52  ;;  %v5931_v62 = vadd.f32 %v13482_v14, %v13404_v47 }
 0xb77   :  { %v6129_v40 = vadd.f32 %v6128_v3, %v6025_v26  ;;  %v5933_v3 = vadd.f32 %v13482_v14, %v13414_v4 }
 0xb78   :  { %6455 = vmatmul.bf16.gmra.mxu0 %v6316_v49  ;;  %v6502_v42 = vmax.f32 %v6417_v38, 0.0  ;;  %v6035_v49 = vadd.f32 %v13525_v9, %v5931_v62 }
 0xb79   :  { %v6232_v28 = vpop.f32.mrf.mxu3  ;;  %v6037_v38 = vadd.f32 %v6036_v15, %v5933_v3 }
 0xb7a   :  { %v6233_v31 = vadd.f32 %v6232_v28, %v6129_v40 }
 0xb7c   :  { %v6291_v23 = vmax.f32 %v6233_v31, 0.0  ;;  %v6046_v31 = vpop.f32.mrf.mxu1 }
 0xb7d   :  { %v6418_v45 = vpop.f32.mrf.mxu0 }
 0xb7e   :  { %v6419_v0 = vadd.f32 %v13491_v11, %v6418_v45  ;;  %v6130_v29 = vpop.f32.mrf.mxu2 }
 0xb7f   :  { %v6131_v17 = vadd.f32 %v6130_v29, %v6027_v46 }
 0xb80   :  { %v6503_v36 = vmax.f32 %v6419_v0, 0.0 }
 0xb81   :  { %v6234_v48 = vpop.f32.mrf.mxu3 }
 0xb82   :  { %v6537_v20 = vpack.c.bf16 %v6503_v36, %v6502_v42  ;;  %v6235_v27 = vadd.f32 %v6234_v48, %v6131_v17 }
 0xb84   :  { %v6292_v53 = vmax.f32 %v6235_v27, 0.0  ;;  %8034 = vmatmul.msk.bf16.gmra.mxu1 %vm6589_vm0, %v6537_v20  ;;  %v5936_v20 = vadd.f32 %v13482_v14, %v13421_v44  ;;  %v6049_v50 = vpop.f32.mrf.mxu1 }
 0xb85   :  { %v6421_v24 = vpop.f32.mrf.mxu0 }
 0xb86   :  { %v6317_v21 = vpack.c.bf16 %v6292_v53, %v6291_v23  ;;  %v6133_v13 = vpop.f32.mrf.mxu2  ;;  %v6422_v41 = vadd.f32 %v13491_v11, %v6421_v24  ;;  %v6040_v53 = vadd.f32 %v6039_v54, %v5936_v20  ;;  %v5938_v24 = vadd.f32 %v13482_v14, %v13427_v6 }
 0xb87   :  { %v6134_v39 = vadd.f32 %v6133_v13, %v6030_v16 }
 0xb88   :  { %6460 = vmatmul.bf16.gmra.mxu0 %v6317_v21  ;;  %v6504_v59 = vmax.f32 %v6422_v41, 0.0  ;;  %v6042_v16 = vadd.f32 %v6041_v51, %v5938_v24 }
 0xb89   :  { %v6237_v37 = vpop.f32.mrf.mxu3 }
 0xb8a   :  { %v6238_v35 = vadd.f32 %v6237_v37, %v6134_v39 }
 0xb8c   :  { %v6293_v12 = vmax.f32 %v6238_v35, 0.0  ;;  %v6051_v6 = vpop.f32.mrf.mxu1 }
 0xb8d   :  { %v6423_v30 = vpop.f32.mrf.mxu0 }
 0xb8e   :  { %v6424_v10 = vadd.f32 %v13491_v11, %v6423_v30  ;;  %v6135_v60 = vpop.f32.mrf.mxu2 }
 0xb8f   :  { %v6136_v58 = vadd.f32 %v6135_v60, %v6032_v19 }
 0xb90   :  { %v6505_v1 = vmax.f32 %v6424_v10, 0.0 }
 0xb91   :  { %v6239_v2 = vpop.f32.mrf.mxu3 }
 0xb92   :  { %v6538_v63 = vpack.c.bf16 %v6505_v1, %v6504_v59  ;;  %v6240_v56 = vadd.f32 %v6239_v2, %v6136_v58  ;;  %v5941_v58 = vadd.f32 %v13482_v14, %v13433_v34 }
 0xb94   :  { %v6294_v32 = vmax.f32 %v6240_v56, 0.0  ;;  %8035 = vmatmul.msk.bf16.gmra.mxu1 %vm6589_vm0, %v6538_v63  ;;  %v6045_v56 = vadd.f32 %v6044_v57, %v5941_v58 }
 0xb95   :  { %v6426_v7 = vpop.f32.mrf.mxu0 }
 0xb96   :  { %v6318_v25 = vpack.c.bf16 %v6294_v32, %v6293_v12  ;;  %v6138_v52 = vpop.f32.mrf.mxu2  ;;  %v6427_v28 = vadd.f32 %v13491_v11, %v6426_v7  ;;  %v5943_v12 = vadd.f32 %v13482_v14, %v13440_v43 }
 0xb97   :  { %v6139_v26 = vadd.f32 %v6138_v52, %v6035_v49 }
 0xb98   :  { %6465 = vmatmul.bf16.gmra.mxu0 %v6318_v25  ;;  %v6506_v46 = vmax.f32 %v6427_v28, 0.0  ;;  %v6047_v25 = vadd.f32 %v6046_v31, %v5943_v12 }
 0xb99   :  { %v6242_v55 = vpop.f32.mrf.mxu3 }
 0xb9a   :  { %v6243_v47 = vadd.f32 %v6242_v55, %v6139_v26  ;;  %v6054_v55 = vpop.f32.mrf.mxu1 }
 0xb9c   :  { %v6295_v9 = vmax.f32 %v6243_v47, 0.0 }
 0xb9d   :  { %v6428_v22 = vpop.f32.mrf.mxu0 }
 0xb9e   :  { %v6429_v40 = vadd.f32 %v13491_v11, %v6428_v22  ;;  %v6140_v45 = vpop.f32.mrf.mxu2 }
 0xb9f   :  { %v6141_v29 = vadd.f32 %v6140_v45, %v6037_v38 }
 0xba0   :  { %v6507_v0 = vmax.f32 %v6429_v40, 0.0 }
 0xba1   :  { %v6244_v42 = vpop.f32.mrf.mxu3 }
 0xba2   :  { %v6539_v36 = vpack.c.bf16 %v6507_v0, %v6506_v46  ;;  %v6245_v17 = vadd.f32 %v6244_v42, %v6141_v29  ;;  %v5946_v46 = vadd.f32 %v13482_v14, %v13446_v8  ;;  %v6056_v42 = vpop.f32.mrf.mxu1 }
 0xba4   :  { %v6296_v48 = vmax.f32 %v6245_v17, 0.0  ;;  %8036 = vmatmul.msk.bf16.gmra.mxu1 %vm6589_vm0, %v6539_v36  ;;  %v6050_v31 = vadd.f32 %v6049_v50, %v5946_v46  ;;  %v5948_v36 = vadd.f32 %v13482_v14, %v13455_v18 }
 0xba5   :  { %v6431_v4 = vpop.f32.mrf.mxu0 }
 0xba6   :  { %v6319_v15 = vpack.c.bf16 %v6296_v48, %v6295_v9  ;;  %v6143_v27 = vpop.f32.mrf.mxu2  ;;  %v6432_v21 = vadd.f32 %v13491_v11, %v6431_v4  ;;  %v6052_v4 = vadd.f32 %v6051_v6, %v5948_v36 }
 0xba7   :  { %v6144_v13 = vadd.f32 %v6143_v27, %v6040_v53 }
 0xba8   :  { %6470 = vmatmul.bf16.gmra.mxu0 %v6319_v15  ;;  %v6508_v39 = vmax.f32 %v6432_v21, 0.0 }
 0xba9   :  { %v6247_v23 = vpop.f32.mrf.mxu3 }
 0xbaa   :  { %v6248_v30 = vadd.f32 %v6247_v23, %v6144_v13 }
 0xbac   :  { %v6297_v54 = vmax.f32 %v6248_v30, 0.0 }
 0xbad   :  { %v6433_v37 = vpop.f32.mrf.mxu0 }
 0xbae   :  { %v6434_v61 = vadd.f32 %v13491_v11, %v6433_v37  ;;  %v6145_v41 = vpop.f32.mrf.mxu2 }
 0xbaf   :  { %v6146_v19 = vadd.f32 %v6145_v41, %v6042_v16 }
 0xbb0   :  { %v6509_v44 = vmax.f32 %v6434_v61, 0.0  ;;  %v5951_v61 = vadd.f32 %v13482_v14, %v13463_v5 }
 0xbb1   :  { %v6249_v10 = vpop.f32.mrf.mxu3 }
 0xbb2   :  { %v6540_v60 = vpack.c.bf16 %v6509_v44, %v6508_v39  ;;  %v6250_v59 = vadd.f32 %v6249_v10, %v6146_v19  ;;  %v13580_v39 = vld [vmem:[%s13717_s8] ss:$0 sm:$0xff]  ;;  %v6055_v10 = vadd.f32 %v6054_v55, %v5951_v61 }
 0xbb4   :  { %v6298_v35 = vmax.f32 %v6250_v59, 0.0  ;;  %8037 = vmatmul.msk.bf16.gmra.mxu1 %vm6589_vm0, %v6540_v60  ;;  %v5953_v60 = vadd.f32 %v13482_v14, %v13474_v33 }
 0xbb5   :  { %v6436_v1 = vpop.f32.mrf.mxu0 }
 0xbb6   :  { %v6320_v51 = vpack.c.bf16 %v6298_v35, %v6297_v54  ;;  %v6148_v2 = vpop.f32.mrf.mxu2  ;;  %v6437_v32 = vadd.f32 %v13491_v11, %v6436_v1  ;;  %v6057_v58 = vadd.f32 %v6056_v42, %v5953_v60 }
 0xbb7   :  { %v6149_v7 = vadd.f32 %v6148_v2, %v6045_v56 }
 0xbb8   :  { %6475 = vmatmul.bf16.gmra.mxu0 %v6320_v51  ;;  %v6510_v3 = vmax.f32 %v6437_v32, 0.0 }
 0xbb9   :  { %v6252_v63 = vpop.f32.mrf.mxu3 }
 0xbba   :  { %v6253_v28 = vadd.f32 %v6252_v63, %v6149_v7 }
 0xbbc   :  { %v6299_v57 = vmax.f32 %v6253_v28, 0.0 }
 0xbbd   :  { %v6438_v62 = vpop.f32.mrf.mxu0 }
 0xbbe   :  { %v6439_v52 = vadd.f32 %v13491_v11, %v6438_v62  ;;  %v6150_v49 = vpop.f32.mrf.mxu2 }
 0xbbf   :  { %v6151_v26 = vadd.f32 %v6150_v49, %v6047_v25 }
 0xbc0   :  { %v6511_v34 = vmax.f32 %v6439_v52, 0.0 }
 0xbc1   :  { %v6254_v22 = vpop.f32.mrf.mxu3 }
 0xbc2   :  { %v6541_v38 = vpack.c.bf16 %v6511_v34, %v6510_v3  ;;  %v6255_v40 = vadd.f32 %v6254_v22, %v6151_v26 }
 0xbc4   :  { %v6300_v45 = vmax.f32 %v6255_v40, 0.0  ;;  %8038 = vmatmul.msk.bf16.gmra.mxu1 %vm6589_vm0, %v6541_v38 }
 0xbc5   :  { %v6441_v43 = vpop.f32.mrf.mxu0 }
 0xbc6   :  { %v6321_v47 = vpack.c.bf16 %v6300_v45, %v6299_v57  ;;  %v6153_v0 = vpop.f32.mrf.mxu2  ;;  %v6442_v17 = vadd.f32 %v13491_v11, %v6441_v43 }
 0xbc7   :  { %v6154_v9 = vadd.f32 %v6153_v0, %v6050_v31 }
 0xbc8   :  { %6480 = vmatmul.bf16.gmra.mxu0 %v6321_v47  ;;  %v6512_v27 = vmax.f32 %v6442_v17, 0.0 }
 0xbc9   :  { %v6257_v29 = vpop.f32.mrf.mxu3 }
 0xbca   :  { %v6258_v23 = vadd.f32 %v6257_v29, %v6154_v9 }
 0xbcc   :  { %v6301_v50 = vmax.f32 %v6258_v23, 0.0 }
 0xbcd   :  { %v6443_v48 = vpop.f32.mrf.mxu0 }
 0xbce   :  { %v6444_v20 = vadd.f32 %v13491_v11, %v6443_v48  ;;  %v6155_v15 = vpop.f32.mrf.mxu2 }
 0xbcf   :  { %v6156_v53 = vadd.f32 %v6155_v15, %v6052_v4 }
 0xbd0   :  { %v6513_v8 = vmax.f32 %v6444_v20, 0.0 }
 0xbd1   :  { %v6259_v24 = vpop.f32.mrf.mxu3  ;;  %v6656_v21 = vpop.f32.mrf.mxu1 }
 0xbd2   :  { %v6542_v13 = vpack.c.bf16 %v6513_v8, %v6512_v27  ;;  %v6260_v37 = vadd.f32 %v6259_v24, %v6156_v53  ;;  %v6657_v59 = vadd.f32 %v13580_v39, %v6656_v21 }
 0xbd4   :  { %v6302_v16 = vmax.f32 %v6260_v37, 0.0  ;;  %8039 = vmatmul.msk.bf16.gmra.mxu1 %vm6589_vm0, %v6542_v13 }
 0xbd5   :  { %v6446_v18 = vpop.f32.mrf.mxu0 }
 0xbd6   :  { %v6322_v41 = vpack.c.bf16 %v6302_v16, %v6301_v50  ;;  %v6158_v30 = vpop.f32.mrf.mxu2  ;;  %v6447_v5 = vadd.f32 %v13491_v11, %v6446_v18 }
 0xbd7   :  { %v6159_v35 = vadd.f32 %v6158_v30, %v6055_v10 }
 0xbd8   :  { %6485 = vmatmul.bf16.gmra.mxu0 %v6322_v41  ;;  %v6514_v63 = vmax.f32 %v6447_v5, 0.0 }
 0xbd9   :  { %v6262_v44 = vpop.f32.mrf.mxu3  ;;  %v6658_v19 = vpop.f32.mrf.mxu1 }
 0xbda   :  { %v6659_v54 = vadd.f32 %v13580_v39, %v6658_v19  ;;  %v6263_v56 = vadd.f32 %v6262_v44, %v6159_v35 }
 0xbdc   :  { %v8353_v6 = vpack.c.bf16 %v6659_v54, %v6657_v59  ;;  %v6303_v25 = vmax.f32 %v6263_v56, 0.0 }
 0xbdd   :  { %v6448_v1 = vpop.f32.mrf.mxu0 }
 0xbde   :  { %8354 = vst [vmem:[%s13718_s9] sm:$0xff] %v8353_v6   ;;  %v6449_v51 = vadd.f32 %v13491_v11, %v6448_v1  ;;  %v6160_v2 = vpop.f32.mrf.mxu2 }
 0xbdf   :  { %v6161_v14 = vadd.f32 %v6160_v2, %v6057_v58 }
 0xbe0   :  { %v6515_v33 = vmax.f32 %v6449_v51, 0.0 }
 0xbe1   :  { %v6264_v12 = vpop.f32.mrf.mxu3  ;;  %v6661_v32 = vpop.f32.mrf.mxu1 }
 0xbe2   :  { %v6543_v7 = vpack.c.bf16 %v6515_v33, %v6514_v63  ;;  %v6265_v62 = vadd.f32 %v6264_v12, %v6161_v14  ;;  %v6662_v28 = vadd.f32 %v13580_v39, %v6661_v32 }
 0xbe4   :  { %v6304_v52 = vmax.f32 %v6265_v62, 0.0  ;;  %8040 = vmatmul.msk.bf16.gmra.mxu1 %vm6589_vm0, %v6543_v7 }
 0xbe5   :  { %v6451_v55 = vpop.f32.mrf.mxu0 }
 0xbe6   :  { %v6323_v49 = vpack.c.bf16 %v6304_v52, %v6303_v25  ;;  %v6452_v26 = vadd.f32 %v13491_v11, %v6451_v55 }
 0xbe8   :  { %6490 = vmatmul.bf16.gmra.mxu0 %v6323_v49  ;;  %v6516_v57 = vmax.f32 %v6452_v26, 0.0 }
 0xbe9   :  { %v6663_v3 = vpop.f32.mrf.mxu1 }
 0xbea   :  { %v6664_v34 = vadd.f32 %v13580_v39, %v6663_v3 }
 0xbec   :  { %v8358_v22 = vpack.c.bf16 %v6664_v34, %v6662_v28 }
 0xbed   :  { %v6453_v38 = vpop.f32.mrf.mxu0 }
 0xbee   :  { %8445 = vst [vmem:[%s13718_s9 + $0x8] sm:$0xff] %v8358_v22   ;;  %v6454_v40 = vadd.f32 %v13491_v11, %v6453_v38 }
 0xbf0   :  { %v6517_v45 = vmax.f32 %v6454_v40, 0.0 }
 0xbf1   :  { %v6666_v43 = vpop.f32.mrf.mxu1 }
 0xbf2   :  { %v6544_v46 = vpack.c.bf16 %v6517_v45, %v6516_v57  ;;  %v6667_v29 = vadd.f32 %v13580_v39, %v6666_v43 }
 0xbf4   :  { %8041 = vmatmul.msk.bf16.gmra.mxu1 %vm6589_vm0, %v6544_v46 }
 0xbf5   :  { %v6456_v47 = vpop.f32.mrf.mxu0 }
 0xbf6   :  { %v6457_v31 = vadd.f32 %v13491_v11, %v6456_v47 }
 0xbf8   :  { %v6518_v48 = vmax.f32 %v6457_v31, 0.0 }
 0xbf9   :  { %v6668_v0 = vpop.f32.mrf.mxu1 }
 0xbfa   :  { %v6669_v42 = vadd.f32 %v13580_v39, %v6668_v0 }
 0xbfc   :  { %v8363_v36 = vpack.c.bf16 %v6669_v42, %v6667_v29 }
 0xbfd   :  { %v6458_v17 = vpop.f32.mrf.mxu0 }
 0xbfe   :  { %8446 = vst [vmem:[%s13718_s9 + $0x10] sm:$0xff] %v8363_v36   ;;  %v6459_v9 = vadd.f32 %v13491_v11, %v6458_v17 }
 0xc00   :  { %v6519_v4 = vmax.f32 %v6459_v9, 0.0 }
 0xc01   :  { %v6671_v20 = vpop.f32.mrf.mxu1 }
 0xc02   :  { %v6545_v15 = vpack.c.bf16 %v6519_v4, %v6518_v48  ;;  %v6672_v8 = vadd.f32 %v13580_v39, %v6671_v20 }
 0xc04   :  { %8042 = vmatmul.msk.bf16.gmra.mxu1 %vm6589_vm0, %v6545_v15 }
 0xc05   :  { %v6461_v27 = vpop.f32.mrf.mxu0 }
 0xc06   :  { %v6462_v24 = vadd.f32 %v13491_v11, %v6461_v27 }
 0xc08   :  { %v6520_v50 = vmax.f32 %v6462_v24, 0.0 }
 0xc09   :  { %v6673_v23 = vpop.f32.mrf.mxu1 }
 0xc0a   :  { %v6674_v53 = vadd.f32 %v13580_v39, %v6673_v23 }
 0xc0c   :  { %v8368_v21 = vpack.c.bf16 %v6674_v53, %v6672_v8 }
 0xc0d   :  { %v6463_v13 = vpop.f32.mrf.mxu0 }
 0xc0e   :  { %8447 = vst [vmem:[%s13718_s9 + $0x18] sm:$0xff] %v8368_v21   ;;  %v6464_v37 = vadd.f32 %v13491_v11, %v6463_v13 }
 0xc10   :  { %v6521_v16 = vmax.f32 %v6464_v37, 0.0 }
 0xc11   :  { %v6676_v18 = vpop.f32.mrf.mxu1 }
 0xc12   :  { %v6546_v61 = vpack.c.bf16 %v6521_v16, %v6520_v50  ;;  %v6677_v44 = vadd.f32 %v13580_v39, %v6676_v18 }
 0xc14   :  { %8043 = vmatmul.msk.bf16.gmra.mxu1 %vm6589_vm0, %v6546_v61 }
 0xc15   :  { %v6466_v41 = vpop.f32.mrf.mxu0 }
 0xc16   :  { %v6467_v10 = vadd.f32 %v13491_v11, %v6466_v41 }
 0xc18   :  { %v6522_v5 = vmax.f32 %v6467_v10, 0.0 }
 0xc19   :  { %v6678_v30 = vpop.f32.mrf.mxu1 }
 0xc1a   :  { %v6679_v19 = vadd.f32 %v13580_v39, %v6678_v30 }
 0xc1c   :  { %v8373_v60 = vpack.c.bf16 %v6679_v19, %v6677_v44 }
 0xc1d   :  { %v6468_v59 = vpop.f32.mrf.mxu0 }
 0xc1e   :  { %8448 = vst [vmem:[%s13718_s9 + $0x20] sm:$0xff] %v8373_v60   ;;  %v6469_v54 = vadd.f32 %v13491_v11, %v6468_v59 }
 0xc20   :  { %v6523_v35 = vmax.f32 %v6469_v54, 0.0 }
 0xc21   :  { %v6681_v6 = vpop.f32.mrf.mxu1 }
 0xc22   :  { %v6547_v1 = vpack.c.bf16 %v6523_v35, %v6522_v5  ;;  %v6682_v2 = vadd.f32 %v13580_v39, %v6681_v6 }
 0xc24   :  { %8044 = vmatmul.msk.bf16.gmra.mxu1 %vm6589_vm0, %v6547_v1 }
 0xc25   :  { %v6471_v58 = vpop.f32.mrf.mxu0 }
 0xc26   :  { %v6472_v56 = vadd.f32 %v13491_v11, %v6471_v58 }
 0xc28   :  { %v6524_v32 = vmax.f32 %v6472_v56, 0.0 }
 0xc29   :  { %v6683_v51 = vpop.f32.mrf.mxu1 }
 0xc2a   :  { %v6684_v63 = vadd.f32 %v13580_v39, %v6683_v51 }
 0xc2c   :  { %v8378_v33 = vpack.c.bf16 %v6684_v63, %v6682_v2 }
 0xc2d   :  { %v6473_v14 = vpop.f32.mrf.mxu0 }
 0xc2e   :  { %8449 = vst [vmem:[%s13718_s9 + $0x28] sm:$0xff] %v8378_v33   ;;  %v6474_v12 = vadd.f32 %v13491_v11, %v6473_v14 }
 0xc30   :  { %v6525_v7 = vmax.f32 %v6474_v12, 0.0 }
 0xc31   :  { %v6686_v62 = vpop.f32.mrf.mxu1 }
 0xc32   :  { %v6548_v25 = vpack.c.bf16 %v6525_v7, %v6524_v32  ;;  %v6687_v49 = vadd.f32 %v13580_v39, %v6686_v62 }
 0xc34   :  { %8045 = vmatmul.msk.bf16.gmra.mxu1 %vm6589_vm0, %v6548_v25 }
 0xc35   :  { %v6476_v52 = vpop.f32.mrf.mxu0 }
 0xc36   :  { %v6477_v28 = vadd.f32 %v13491_v11, %v6476_v52 }
 0xc38   :  { %v6526_v38 = vmax.f32 %v6477_v28, 0.0 }
 0xc39   :  { %v6688_v55 = vpop.f32.mrf.mxu1 }
 0xc3a   :  { %v6689_v3 = vadd.f32 %v13580_v39, %v6688_v55 }
 0xc3c   :  { %v8383_v34 = vpack.c.bf16 %v6689_v3, %v6687_v49 }
 0xc3d   :  { %v6478_v26 = vpop.f32.mrf.mxu0 }
 0xc3e   :  { %8450 = vst [vmem:[%s13718_s9 + $0x30] sm:$0xff] %v8383_v34   ;;  %v6479_v22 = vadd.f32 %v13491_v11, %v6478_v26 }
 0xc40   :  { %v6527_v40 = vmax.f32 %v6479_v22, 0.0 }
 0xc41   :  { %v6691_v57 = vpop.f32.mrf.mxu1 }
 0xc42   :  { %v6549_v45 = vpack.c.bf16 %v6527_v40, %v6526_v38  ;;  %v6692_v47 = vadd.f32 %v13580_v39, %v6691_v57 }
 0xc44   :  { %8046 = vmatmul.msk.bf16.gmra.mxu1 %vm6589_vm0, %v6549_v45 }
 0xc45   :  { %v6481_v43 = vpop.f32.mrf.mxu0 }
 0xc46   :  { %v6482_v29 = vadd.f32 %v13491_v11, %v6481_v43 }
 0xc48   :  { %v6528_v17 = vmax.f32 %v6482_v29, 0.0 }
 0xc49   :  { %v6693_v46 = vpop.f32.mrf.mxu1 }
 0xc4a   :  { %v6694_v0 = vadd.f32 %v13580_v39, %v6693_v46 }
 0xc4c   :  { %v8388_v42 = vpack.c.bf16 %v6694_v0, %v6692_v47 }
 0xc4d   :  { %v6483_v31 = vpop.f32.mrf.mxu0 }
 0xc4e   :  { %8451 = vst [vmem:[%s13718_s9 + $0x38] sm:$0xff] %v8388_v42   ;;  %v6484_v36 = vadd.f32 %v13491_v11, %v6483_v31 }
 0xc50   :  { %v6529_v9 = vmax.f32 %v6484_v36, 0.0 }
 0xc51   :  { %v6696_v48 = vpop.f32.mrf.mxu1 }
 0xc52   :  { %v6550_v4 = vpack.c.bf16 %v6529_v9, %v6528_v17  ;;  %v6697_v27 = vadd.f32 %v13580_v39, %v6696_v48 }
 0xc54   :  { %8047 = vmatmul.msk.bf16.gmra.mxu1 %vm6589_vm0, %v6550_v4 }
 0xc55   :  { %v6486_v20 = vpop.f32.mrf.mxu0 }
 0xc56   :  { %v6487_v8 = vadd.f32 %v13491_v11, %v6486_v20 }
 0xc58   :  { %v6530_v13 = vmax.f32 %v6487_v8, 0.0 }
 0xc59   :  { %v6698_v15 = vpop.f32.mrf.mxu1 }
 0xc5a   :  { %v6699_v23 = vadd.f32 %v13580_v39, %v6698_v15 }
 0xc5c   :  { %v8393_v53 = vpack.c.bf16 %v6699_v23, %v6697_v27 }
 0xc5d   :  { %v6488_v24 = vpop.f32.mrf.mxu0 }
 0xc5e   :  { %8452 = vst [vmem:[%s13718_s9 + $0x40] sm:$0xff] %v8393_v53   ;;  %v6489_v21 = vadd.f32 %v13491_v11, %v6488_v24 }
 0xc60   :  { %v6531_v37 = vmax.f32 %v6489_v21, 0.0 }
 0xc61   :  { %v6701_v50 = vpop.f32.mrf.mxu1 }
 0xc62   :  { %v6551_v16 = vpack.c.bf16 %v6531_v37, %v6530_v13  ;;  %v6702_v41 = vadd.f32 %v13580_v39, %v6701_v50 }
 0xc64   :  { %8048 = vmatmul.msk.bf16.gmra.mxu1 %vm6589_vm0, %v6551_v16 }
 0xc65   :  { %v6491_v18 = vpop.f32.mrf.mxu0 }
 0xc66   :  { %v6492_v44 = vadd.f32 %v13491_v11, %v6491_v18 }
 0xc68   :  { %v6532_v59 = vmax.f32 %v6492_v44, 0.0 }
 0xc69   :  { %v6703_v61 = vpop.f32.mrf.mxu1 }
 0xc6a   :  { %v6704_v30 = vadd.f32 %v13580_v39, %v6703_v61 }
 0xc6c   :  { %v8398_v19 = vpack.c.bf16 %v6704_v30, %v6702_v41 }
 0xc6d   :  { %v6493_v10 = vpop.f32.mrf.mxu0 }
 0xc6e   :  { %8453 = vst [vmem:[%s13718_s9 + $0x48] sm:$0xff] %v8398_v19   ;;  %v6494_v60 = vadd.f32 %v13491_v11, %v6493_v10 }
 0xc70   :  { %v6533_v54 = vmax.f32 %v6494_v60, 0.0 }
 0xc71   :  { %v6706_v5 = vpop.f32.mrf.mxu1 }
 0xc72   :  { %v6552_v35 = vpack.c.bf16 %v6533_v54, %v6532_v59  ;;  %v6707_v1 = vadd.f32 %v13580_v39, %v6706_v5 }
 0xc74   :  { %8049 = vmatmul.msk.bf16.gmra.mxu1 %vm6589_vm0, %v6552_v35 }
 0xc79   :  { %v6708_v6 = vpop.f32.mrf.mxu1 }
 0xc7a   :  { %v6709_v58 = vadd.f32 %v13580_v39, %v6708_v6 }
 0xc7c   :  { %v8403_v51 = vpack.c.bf16 %v6709_v58, %v6707_v1 }
 0xc7e   :  { %8454 = vst [vmem:[%s13718_s9 + $0x50] sm:$0xff] %v8403_v51  }
 0xc81   :  { %v6711_v2 = vpop.f32.mrf.mxu1 }
 0xc82   :  { %v6712_v11 = vadd.f32 %v13580_v39, %v6711_v2 }
 0xc89   :  { %v6713_v63 = vpop.f32.mrf.mxu1 }
 0xc8a   :  { %v6714_v56 = vadd.f32 %v13580_v39, %v6713_v63 }
 0xc8c   :  { %v8408_v33 = vpack.c.bf16 %v6714_v56, %v6712_v11 }
 0xc8e   :  { %8455 = vst [vmem:[%s13718_s9 + $0x58] sm:$0xff] %v8408_v33  }
 0xc91   :  { %v6716_v14 = vpop.f32.mrf.mxu1 }
 0xc92   :  { %v6717_v32 = vadd.f32 %v13580_v39, %v6716_v14 }
 0xc99   :  { %v6718_v12 = vpop.f32.mrf.mxu1 }
 0xc9a   :  { %v6719_v7 = vadd.f32 %v13580_v39, %v6718_v12 }
 0xc9c   :  { %v8413_v62 = vpack.c.bf16 %v6719_v7, %v6717_v32 }
 0xc9e   :  { %8456 = vst [vmem:[%s13718_s9 + $0x60] sm:$0xff] %v8413_v62  }
 0xca1   :  { %v6721_v25 = vpop.f32.mrf.mxu1 }
 0xca2   :  { %v6722_v55 = vadd.f32 %v13580_v39, %v6721_v25 }
 0xca9   :  { %v6723_v52 = vpop.f32.mrf.mxu1 }
 0xcaa   :  { %v6724_v49 = vadd.f32 %v13580_v39, %v6723_v52 }
 0xcac   :  { %v8418_v3 = vpack.c.bf16 %v6724_v49, %v6722_v55 }
 0xcae   :  { %8457 = vst [vmem:[%s13718_s9 + $0x68] sm:$0xff] %v8418_v3  }
 0xcb1   :  { %v6726_v28 = vpop.f32.mrf.mxu1 }
 0xcb2   :  { %v6727_v26 = vadd.f32 %v13580_v39, %v6726_v28 }
 0xcb9   :  { %v6728_v34 = vpop.f32.mrf.mxu1 }
 0xcba   :  { %v6729_v22 = vadd.f32 %v13580_v39, %v6728_v34 }
 0xcbc   :  { %v8423_v38 = vpack.c.bf16 %v6729_v22, %v6727_v26 }
 0xcbe   :  { %8458 = vst [vmem:[%s13718_s9 + $0x70] sm:$0xff] %v8423_v38  }
 0xcc1   :  { %v6731_v40 = vpop.f32.mrf.mxu1 }
 0xcc2   :  { %v6732_v45 = vadd.f32 %v13580_v39, %v6731_v40 }
 0xcc9   :  { %v6733_v57 = vpop.f32.mrf.mxu1 }
 0xcca   :  { %v6734_v43 = vadd.f32 %v13580_v39, %v6733_v57 }
 0xccc   :  { %v8428_v46 = vpack.c.bf16 %v6734_v43, %v6732_v45 }
 0xcce   :  { %8459 = vst [vmem:[%s13718_s9 + $0x78] sm:$0xff] %v8428_v46  }
 0xcd1   :  { %v6736_v47 = vpop.f32.mrf.mxu1 }
 0xcd2   :  { %v6737_v29 = vadd.f32 %v13580_v39, %v6736_v47 }
 0xcd9   :  { %v6738_v0 = vpop.f32.mrf.mxu1 }
 0xcda   :  { %v6739_v42 = vadd.f32 %v13580_v39, %v6738_v0 }
 0xcdc   :  { %v8433_v31 = vpack.c.bf16 %v6739_v42, %v6737_v29 }
 0xcde   :  { %8460 = vst [vmem:[%s13718_s9 + $0x80] sm:$0xff] %v8433_v31  }
 0xce1   :  { %v6741_v36 = vpop.f32.mrf.mxu1 }
 0xce2   :  { %v6742_v9 = vadd.f32 %v13580_v39, %v6741_v36 }
 0xce9   :  { %v6743_v17 = vpop.f32.mrf.mxu1 }
 0xcea   :  { %v6744_v48 = vadd.f32 %v13580_v39, %v6743_v17 }
 0xcec   :  { %v8438_v4 = vpack.c.bf16 %v6744_v48, %v6742_v9 }
 0xcee   :  { %8461 = vst [vmem:[%s13718_s9 + $0x88] sm:$0xff] %v8438_v4  }
 0xcf1   :  { %v6746_v20 = vpop.f32.mrf.mxu1 }
 0xcf2   :  { %v6747_v27 = vadd.f32 %v13580_v39, %v6746_v20 }
 0xcf9   :  { %v6748_v15 = vpop.f32.mrf.mxu1 }
 0xcfa   :  { %v6749_v23 = vadd.f32 %v13580_v39, %v6748_v15 }
 0xcfc   :  { %v8443_v8 = vpack.c.bf16 %v6749_v23, %v6747_v27 }
 0xcfe   :  { %8462 = vst [vmem:[%s13718_s9 + $0x90] sm:$0xff] %v8443_v8  }

</bundles_post_ra>
